<compile_context>
chip_gen: v7x
topology: tpu7x:2x2x1
jax: 0.10.0
libtpu: 0.0.40
codegen_flags: <defaults>
</compile_context>

<pallas_src>
import functools

import jax
import jax.numpy as jnp
from jax.experimental import pallas as pl
from jax.experimental.pallas import tpu as pltpu


# ----------------------------------------------------------------------------
# small helpers
# ----------------------------------------------------------------------------
def _pick_tile(m, target=512):
    """Largest multiple-of-8 divisor of m up to `target`.

    Falls back to 8 (with row padding) when m is not a multiple of 8.  A
    single big block is preferred on single-TC chips (v5e/v6e); only split in
    two when each block stays >= 256 rows so both v7x TensorCores get an even
    share without adding per-step overhead elsewhere.
    """
    cap = min(target, max(m, 8))
    best = 8
    for t in range(8, cap + 1, 8):
        if m % t == 0:
            best = t
    if best == m and m >= 512 and (m // 2) % 8 == 0:
        best = m // 2
    return best


def _pad_rows(x, mp):
    m = x.shape[0]
    if mp == m:
        return x
    return jnp.pad(x, ((0, mp - m),) + ((0, 0),) * (x.ndim - 1))


def _lrelu(x):
    return jnp.where(x > 0.0, x, 0.2 * x)


def _dot(a, b):
    return jnp.dot(a, b, preferred_element_type=jnp.float32)


# ----------------------------------------------------------------------------
# Kernel 1: bv/re/se convs + cosine weighting + fconv   (lane-flattened input)
# ----------------------------------------------------------------------------
def _pre_agg_kernel(da_ref, ft_ref,
                    wbv_ref, bbv_ref, wre_ref, bre_ref, wse_ref, bse_ref,
                    wf_ft_ref, wf_ab_ref, wf_dr_ref, wf_t_ref, bf_ref,
                    aggf_ref, *, cin, kn):
    da = da_ref[...]                                   # (TM, 2*cin*kn)
    d_ch = [da[:, c * kn:(c + 1) * kn] for c in range(cin)]            # (TM,kn)
    ab_ch = [da[:, (cin + c) * kn:(cin + c + 1) * kn] for c in range(cin)]

    # --- basevector (bvconv + bvbn + lrelu, mean over neighbors), VPU ------
    basevec = []
    for c in range(cin):
        pre = bbv_ref[c]
        for m in range(cin):
            pre = pre + d_ch[m] * wbv_ref[m, c]
        basevec.append(jnp.mean(_lrelu(pre), axis=-1, keepdims=True))  # (TM,1)

    dist1 = sum(b * b for b in basevec)                                # (TM,1)
    dist2 = sum(dc * dc for dc in d_ch)                                # (TM,kn)
    inn = sum(basevec[c] * d_ch[c] for c in range(cin))                # (TM,kn)
    cos = inn * jax.lax.rsqrt(dist1 * dist2 + 1e-10)                   # (TM,kn)

    # --- reconv + rebn + lrelu (cin -> 1), VPU ------------------------------
    pre = bre_ref[0]
    for m in range(cin):
        pre = pre + d_ch[m] * wre_ref[m]
    dr = _lrelu(pre)                                                   # (TM,kn)

    # --- seconv + sebn + lrelu on [f_abs, dr] (cin+1 -> 1), VPU -------------
    pre = bse_ref[0]
    for m in range(cin):
        pre = pre + ab_ch[m] * wse_ref[m]
    pre = pre + dr * wse_ref[cin]
    tt = _lrelu(pre)                                                   # (TM,kn)

    # --- cosine-weighted neighbor sums ---------------------------------------
    sv_ab = [jnp.sum(cos * ab_ch[c], axis=-1, keepdims=True) for c in range(cin)]
    sv_dr = jnp.sum(cos * dr, axis=-1, keepdims=True)                  # (TM,1)
    sv_tt = jnp.sum(cos * tt, axis=-1, keepdims=True)                  # (TM,1)

    # --- fconv + fbn + relu (feature part on MXU, sv part on VPU) -----------
    ft = ft_ref[...]                                                   # (TM,fin)
    pre = _dot(ft, wf_ft_ref[...]) + bf_ref[...]
    for c in range(cin):
        pre = pre + sv_ab[c] * wf_ab_ref[c:c + 1, :]
    pre = pre + sv_dr * wf_dr_ref[...] + sv_tt * wf_t_ref[...]
    aggf_ref[...] = jnp.maximum(pre, 0.0)                              # (TM,fin)


def pre_aggregate(prep, da, ft2):
    M = da.shape[0]
    fin = ft2.shape[1]
    cin = prep["wbv"].shape[0]
    kn = da.shape[1] // (2 * cin)
    tm = _pick_tile(M)
    mp = ((M + tm - 1) // tm) * tm
    dap = _pad_rows(da, mp)
    ftp = _pad_rows(ft2, mp)
    smem = pl.BlockSpec(memory_space=pltpu.MemorySpace.SMEM)
    aggf = pl.pallas_call(
        functools.partial(_pre_agg_kernel, cin=cin, kn=kn),
        out_shape=jax.ShapeDtypeStruct((mp, fin), jnp.float32),
        grid_spec=pltpu.PrefetchScalarGridSpec(
            num_scalar_prefetch=0,
            grid=(mp // tm,),
            in_specs=[
                pl.BlockSpec((tm, 2 * cin * kn), lambda i: (i, 0)),    # diff|f_abs
                pl.BlockSpec((tm, fin), lambda i: (i, 0)),             # feature
                smem, smem, smem, smem, smem, smem,                    # tiny weights
                pl.BlockSpec((fin, fin), lambda i: (0, 0)),            # wf_ft
                pl.BlockSpec((cin, fin), lambda i: (0, 0)),            # wf_ab
                pl.BlockSpec((1, fin), lambda i: (0, 0)),              # wf_dr
                pl.BlockSpec((1, fin), lambda i: (0, 0)),              # wf_t
                pl.BlockSpec((1, fin), lambda i: (0, 0)),              # bf
            ],
            out_specs=pl.BlockSpec((tm, fin), lambda i: (i, 0)),
        ),
        compiler_params=pltpu.CompilerParams(
            dimension_semantics=("parallel",),
            vmem_limit_bytes=32 * 1024 * 1024),
    )(dap, ftp,
      prep["wbv"], prep["bbv"], prep["wre"], prep["bre"], prep["wse"], prep["bse"],
      prep["wf_ft"], prep["wf_ab"], prep["wf_dr"], prep["wf_t"], prep["bf"])
    return aggf if mp == M else aggf[:M]


# ----------------------------------------------------------------------------
# Kernel 2: fused attention stage (edges + softmax + aggregation + tail)
# ----------------------------------------------------------------------------
def _attn_fused_kernel(nsf_ref, pf_ref, agg_ref, ft_ref,
                       wqm_t_ref, wq_t_ref, wkv_bd_ref, e_am_ref,
                       wp1_bd_ref, bp1_t_ref, wp2_bd_ref,
                       wa2_bd_ref, ba2_t_ref, wa3_sel_ref,
                       ones_exp_ref, r_sel_ref,
                       wcv_ref, bcv_ref, wskd_ref, wskf_ref, bsk_ref,
                       wis_ref, bis_ref, wsch_ref,
                       o_ref, *, cin, fout, k):
    nsf = nsf_ref[...]                                 # (TM, k*fin) neighbor feats
    pf = pf_ref[...]                                   # (TM, k*cin) rel positions
    aggf = agg_ref[...]                                # (TM, fin)
    ft = ft_ref[...]                                   # (TM, fin)

    kf_w = k * fout

    # per-point queries, already tiled across neighbors via tiled weights
    qm_t = _dot(aggf, wqm_t_ref[...])                  # (TM, k*fin)
    q_t = _dot(aggf, wq_t_ref[...])                    # (TM, k*fout)

    # K/V for all k neighbors in one block-diagonal matmul
    kvf = _dot(nsf, wkv_bd_ref[...])                   # (TM, 2*k*fout)
    kf = kvf[:, :kf_w]
    vf = kvf[:, kf_w:]

    # positional encoding: relu(bn(p @ wp1)) @ wp2, block-diagonal over k
    pe1 = jnp.maximum(_dot(pf, wp1_bd_ref[...]) + bp1_t_ref[...], 0.0)
    pef = _dot(pe1, wp2_bd_ref[...])                   # (TM, k*fout)

    # Am = (agg_f Wqm Wkm^T) . nS, expanded by atwa1 in the same matmul
    amw = _dot(qm_t * nsf, e_am_ref[...])              # (TM, k*fout)

    # attention logits
    s = q_t - kf + pef + amw
    a2 = jnp.maximum(_dot(s, wa2_bd_ref[...]) + ba2_t_ref[...], 0.0)
    logits = _dot(a2, wa3_sel_ref[...])                # (TM, k), 1/sqrt(F) folded

    mx = jnp.max(logits, axis=-1, keepdims=True)
    e = jnp.exp(logits - mx)
    att = e * pl.reciprocal(jnp.sum(e, axis=-1, keepdims=True), approx=True)

    # weighted aggregation of (V + pe) over neighbors
    wf = vf + pef                                      # (TM, k*fout)
    att_e = _dot(att, ones_exp_ref[...])               # (TM, k*fout)
    node1 = _dot(att_e * wf, r_sel_ref[...])           # (TM, fout)
    node1 = _lrelu(_dot(node1, wcv_ref[...]) + bcv_ref[...])

    # skeleton branch: relu(sk_bn(sk_conv(cat(max_k p_rel, feature))))
    pm = pf[:, 0:cin]
    for j in range(1, k):
        pm = jnp.maximum(pm, pf[:, j * cin:(j + 1) * cin])             # (TM, cin)
    sk = bsk_ref[...] + _dot(ft, wskf_ref[...])
    for c in range(cin):
        sk = sk + pm[:, c:c + 1] * wskd_ref[c:c + 1, :]
    newpts = jnp.maximum(sk, 0.0)                                      # (TM, fout)

    # merged int|sc matmul on [new_points | node1], then sc_h + bn_h + lrelu
    cat = jnp.concatenate([newpts, node1], axis=-1)                    # (TM, 2F)
    isc = _dot(cat, wis_ref[...]) + bis_ref[...]                       # (TM, 2F)
    self_f = _lrelu(isc[:, :fout])
    pre_out = isc[:, fout:] + _dot(self_f, wsch_ref[...])
    o_ref[...] = _lrelu(pre_out)


def attn_fused(prep, nsf, pf, aggf, ft2, *, k):
    M = nsf.shape[0]
    fin = ft2.shape[1]
    cin = pf.shape[1] // k
    fout = prep["wcv"].shape[0]
    tm = _pick_tile(M)
    mp = ((M + tm - 1) // tm) * tm
    nsfp = _pad_rows(nsf, mp)
    pfp = _pad_rows(pf, mp)
    aggfp = _pad_rows(aggf, mp)
    ftp = _pad_rows(ft2, mp)
    out = pl.pallas_call(
        functools.partial(_attn_fused_kernel, cin=cin, fout=fout, k=k),
        out_shape=jax.ShapeDtypeStruct((mp, fout), jnp.float32),
        grid_spec=pltpu.PrefetchScalarGridSpec(
            num_scalar_prefetch=0,
            grid=(mp // tm,),
            in_specs=[
                pl.BlockSpec((tm, k * fin), lambda i: (i, 0)),          # nS flat
                pl.BlockSpec((tm, k * cin), lambda i: (i, 0)),          # p_rel flat
                pl.BlockSpec((tm, fin), lambda i: (i, 0)),              # agg_f
                pl.BlockSpec((tm, fin), lambda i: (i, 0)),              # feature
                pl.BlockSpec((fin, k * fin), lambda i: (0, 0)),         # wqm_t
                pl.BlockSpec((fin, k * fout), lambda i: (0, 0)),        # wq_t
                pl.BlockSpec((k * fin, 2 * k * fout), lambda i: (0, 0)),# wkv_bd
                pl.BlockSpec((k * fin, k * fout), lambda i: (0, 0)),    # e_am
                pl.BlockSpec((k * cin, k * fout), lambda i: (0, 0)),    # wp1_bd
                pl.BlockSpec((1, k * fout), lambda i: (0, 0)),          # bp1_t
                pl.BlockSpec((k * fout, k * fout), lambda i: (0, 0)),   # wp2_bd
                pl.BlockSpec((k * fout, k * fout), lambda i: (0, 0)),   # wa2_bd
                pl.BlockSpec((1, k * fout), lambda i: (0, 0)),          # ba2_t
                pl.BlockSpec((k * fout, k), lambda i: (0, 0)),          # wa3_sel
                pl.BlockSpec((k, k * fout), lambda i: (0, 0)),          # ones_exp
                pl.BlockSpec((k * fout, fout), lambda i: (0, 0)),       # r_sel
                pl.BlockSpec((fout, fout), lambda i: (0, 0)),           # wcv
                pl.BlockSpec((1, fout), lambda i: (0, 0)),              # bcv
                pl.BlockSpec((cin, fout), lambda i: (0, 0)),            # wsk_d
                pl.BlockSpec((fin, fout), lambda i: (0, 0)),            # wsk_f
                pl.BlockSpec((1, fout), lambda i: (0, 0)),              # bsk
                pl.BlockSpec((2 * fout, 2 * fout), lambda i: (0, 0)),   # w_is
                pl.BlockSpec((1, 2 * fout), lambda i: (0, 0)),          # b_is
                pl.BlockSpec((fout, fout), lambda i: (0, 0)),           # wsch
            ],
            out_specs=pl.BlockSpec((tm, fout), lambda i: (i, 0)),
        ),
        compiler_params=pltpu.CompilerParams(
            dimension_semantics=("parallel",),
            vmem_limit_bytes=32 * 1024 * 1024),
    )(nsfp, pfp, aggfp, ftp,
      prep["wqm_t"], prep["wq_t"], prep["wkv_bd"], prep["e_am"],
      prep["wp1_bd"], prep["bp1_t"], prep["wp2_bd"], prep["wa2_bd"],
      prep["ba2_t"], prep["wa3_sel"], prep["ones_exp"], prep["r_sel"],
      prep["wcv"], prep["bcv"], prep["wsk_d"], prep["wsk_f"], prep["bsk"],
      prep["w_is"], prep["b_is"], prep["wsch"])
    return out if mp == M else out[:M]


# ----------------------------------------------------------------------------
# Plain-JAX glue: kNN + gather.
# TODO(synk): top-k neighbor selection and the data-dependent gathers stay in
#   plain JAX (no clean Pallas TPU equivalent for this dynamic gather at
#   fin=16-sized rows; revisit with scalar-prefetch row DMA at larger fin).
# ----------------------------------------------------------------------------
def gather_neighbors(x_nl, idx):
    """x_nl: (B, N, C), idx: (B, N, k) -> (B, N, k, C)."""
    b = jnp.arange(x_nl.shape[0])[:, None, None]
    return x_nl[b, idx]


# ----------------------------------------------------------------------------
# Parameters: deterministic synthetic, eval-mode BN folded, then prepared
# ----------------------------------------------------------------------------
def _layer_specs(fin, cin, fout):
    # name: (Cin, Cout, has_bn)
    return {
        "bv":     (cin, cin, True),
        "re":     (cin, 1, True),
        "se":     (cin + 1, 1, True),
        "f":      (cin + 2 + fin, fin, True),
        "sk":     (cin + fin, fout, True),
        "atwq_m": (fin, fin, False),
        "atwk_m": (fin, fin, False),
        "atwq":   (fin, fout, False),
        "atwkv":  (fin, 2 * fout, False),
        "atwa1":  (1, fout, False),
        "atwa2":  (fout, fout, True),
        "atwa3":  (fout, 1, False),
        "atwp1":  (cin, fout, True),
        "atwp2":  (fout, fout, False),
        "conv":   (fout, fout, True),
        "int":    (2 * fout, fout, True),
        "sc":     (2 * fout, fout, True),
        "sc_h":   (fout, fout, True),
    }


def init_gc_params(key, fin, cin, fout):
    specs = _layer_specs(fin, cin, fout)
    params = {}
    keys = jax.random.split(key, 2 * len(specs) + 1)
    ki = 0
    eps = 1e-5
    for name, (c_in, c_out, has_bn) in specs.items():
        kw, kb = keys[ki], keys[ki + 1]
        ki += 2
        bound = 1.0 / float(c_in) ** 0.5
        w = jax.random.uniform(kw, (c_in, c_out), jnp.float32, -bound, bound)
        if has_bn:
            g1, g2, g3 = jax.random.split(kb, 3)
            gamma = jax.random.uniform(g1, (c_out,), jnp.float32, 0.5, 1.5)
            beta = jax.random.uniform(g2, (c_out,), jnp.float32, -0.1, 0.1)
            mean = jax.random.uniform(g3, (c_out,), jnp.float32, -0.1, 0.1)
            var = jnp.ones((c_out,), jnp.float32)
            scale = gamma / jnp.sqrt(var + eps)
            bias = beta - mean * scale
        else:
            scale = jnp.ones((c_out,), jnp.float32)
            bias = jnp.zeros((c_out,), jnp.float32)
        params[name] = (w, scale, bias)
    g1, g2 = jax.random.split(keys[ki], 2)
    gamma = jax.random.uniform(g1, (fout,), jnp.float32, 0.5, 1.5)
    beta = jax.random.uniform(g2, (fout,), jnp.float32, -0.1, 0.1)
    params["bn_h"] = (gamma / jnp.sqrt(1.0 + 1e-5), beta)
    return params


def prepare_params(params, fin, cin, fout, k):
    """Fold BN into weights, fold QmKm^T, build block-diagonal / tiled weights
    for the fused attention kernel (one block per neighbor)."""
    def fold(name):
        w, s, b = params[name]
        return w * s[None, :], b

    p = {}
    # ---- stage 1 (pre-aggregation) ------------------------------------------
    wbv, bbv = fold("bv")
    wre, bre = fold("re")
    wse, bse = fold("se")
    wf, bf = fold("f")
    p["wbv"] = wbv                                   # (cin, cin)   SMEM
    p["bbv"] = bbv                                   # (cin,)       SMEM
    p["wre"] = wre[:, 0]                             # (cin,)       SMEM
    p["bre"] = bre                                   # (1,)         SMEM
    p["wse"] = wse[:, 0]                             # (cin+1,)     SMEM
    p["bse"] = bse                                   # (1,)         SMEM
    p["wf_ft"] = wf[:fin]
    p["wf_ab"] = wf[fin:fin + cin]
    p["wf_dr"] = wf[fin + cin:fin + cin + 1]
    p["wf_t"] = wf[fin + cin + 1:]
    p["bf"] = bf.reshape(1, fin)

    # ---- fused attention stage ----------------------------------------------
    eye_k = jnp.eye(k, dtype=jnp.float32)
    bdiag = lambda w: jnp.kron(eye_k, w)             # block-diag, one block/neighbor

    wqm = params["atwq_m"][0]
    wkm = params["atwk_m"][0]
    wq = params["atwq"][0]
    p["wqm_t"] = jnp.tile(wqm @ wkm.T, (1, k))       # (fin, k*fin)
    p["wq_t"] = jnp.tile(wq, (1, k))                 # (fin, k*fout)

    wkv = params["atwkv"][0]                         # (fin, 2*fout)
    p["wkv_bd"] = jnp.concatenate(
        [bdiag(wkv[:, :fout]), bdiag(wkv[:, fout:])], axis=1)  # (k*fin, 2*k*fout)

    wa1 = params["atwa1"][0].reshape(1, fout)
    p["e_am"] = bdiag(jnp.ones((fin, 1), jnp.float32) @ wa1)   # (k*fin, k*fout)

    wp1, bp1 = fold("atwp1")
    p["wp1_bd"] = bdiag(wp1)                                   # (k*cin, k*fout)
    p["bp1_t"] = jnp.tile(bp1.reshape(1, fout), (1, k))
    p["wp2_bd"] = bdiag(params["atwp2"][0])                    # (k*fout, k*fout)

    wa2, ba2 = fold("atwa2")
    p["wa2_bd"] = bdiag(wa2)
    p["ba2_t"] = jnp.tile(ba2.reshape(1, fout), (1, k))

    wa3 = params["atwa3"][0].reshape(fout, 1) / (fout ** 0.5)  # 1/sqrt(F) folded
    p["wa3_sel"] = bdiag(wa3)                                  # (k*fout, k)
    p["ones_exp"] = bdiag(jnp.ones((1, fout), jnp.float32))    # (k, k*fout)
    p["r_sel"] = jnp.tile(jnp.eye(fout, dtype=jnp.float32), (k, 1))  # (k*fout, fout)

    # ---- tail ----------------------------------------------------------------
    wcv, bcv = fold("conv")
    p["wcv"] = wcv
    p["bcv"] = bcv.reshape(1, fout)
    wsk, bsk = fold("sk")
    p["wsk_d"] = wsk[:cin]
    p["wsk_f"] = wsk[cin:]
    p["bsk"] = bsk.reshape(1, fout)
    wint, bint = fold("int")
    wsc, bsc = fold("sc")
    wsch, bsch = fold("sc_h")
    sh, bh = params["bn_h"]
    # merged int|sc matmul on [new_points | node1], bn_h folded into sc / sc_h
    p["w_is"] = jnp.concatenate([wint, wsc * sh[None, :]], axis=1)   # (2F, 2F)
    p["b_is"] = jnp.concatenate([bint, bsc * sh + bsch * sh + bh]).reshape(1, 2 * fout)
    p["wsch"] = wsch * sh[None, :]
    return p


# ----------------------------------------------------------------------------
# GC forward
# ----------------------------------------------------------------------------
def gc_forward(prep, feature, co, *, k=8, as_neighbor=5):
    B, fin, N = feature.shape
    cin = co.shape[1]
    fout = prep["wcv"].shape[0]
    M = B * N
    kn = as_neighbor - 1

    feat = jnp.transpose(feature, (0, 2, 1)).astype(jnp.float32)     # (B,N,fin)
    co_nl = jnp.transpose(co, (0, 2, 1)).astype(jnp.float32)         # (B,N,cin)

    # kNN on coordinates (shared between both graph-feature calls)
    sq = jnp.sum(co_nl * co_nl, axis=-1)
    dmat = sq[:, :, None] - 2.0 * jnp.einsum("bic,bjc->bij", co_nl, co_nl) + sq[:, None, :]
    _, idx_all = jax.lax.top_k(-dmat, max(k, as_neighbor))
    idx0 = idx_all[:, :, 1:as_neighbor]                              # drop self
    idx1 = idx_all[:, :, :k]                                         # keep self

    # ---- get_graph_feature(co, as_neighbor) --------------------------------
    f_abs = gather_neighbors(co_nl, idx0)                            # (B,N,kn,cin)
    diff = f_abs - co_nl[:, :, None, :]

    # lane-flattened (M, 2*cin*kn) operand, channel-major per point
    da = jnp.concatenate(
        [jnp.transpose(diff, (0, 1, 3, 2)).reshape(M, cin * kn),
         jnp.transpose(f_abs, (0, 1, 3, 2)).reshape(M, cin * kn)], axis=-1)

    ft2 = feat.reshape(M, fin)
    aggf = pre_aggregate(prep, da, ft2)                              # Pallas #1

    # ---- get_graph_feature_A(agg_f, co, k) + fused attention ----------------
    nS = gather_neighbors(aggf.reshape(B, N, fin), idx1)             # (B,N,k,fin)
    nxyz = gather_neighbors(co_nl, idx1)
    p_rel = nxyz - co_nl[:, :, None, :]                              # (B,N,k,cin)

    out2 = attn_fused(prep,
                      nS.reshape(M, k * fin),
                      p_rel.reshape(M, k * cin),
                      aggf, ft2, k=k)                                # Pallas #2

    return jnp.transpose(out2.reshape(B, N, fout), (0, 2, 1))        # (B,fout,N)


# ----------------------------------------------------------------------------
if __name__ == "__main__":
    B, N = 2, 64
    fin_dim, cin_dim, fout_dim = 16, 3, 32
    k, as_neighbor = 8, 5

    key = jax.random.PRNGKey(0)
    kp, kf, kc = jax.random.split(key, 3)
    params = init_gc_params(kp, fin_dim, cin_dim, fout_dim)
    prep = prepare_params(params, fin_dim, cin_dim, fout_dim, k)
    feature = jax.random.normal(kf, (B, fin_dim, N), jnp.float32)    # (B, fin, N)
    co = jax.random.normal(kc, (B, cin_dim, N), jnp.float32)         # (B, cin, N)

    fwd = jax.jit(functools.partial(gc_forward, k=k, as_neighbor=as_neighbor))
    out = fwd(prep, feature, co)
    jax.block_until_ready(out)
    assert out.shape == (B, fout_dim, N), out.shape
    assert bool(jnp.all(jnp.isfinite(out)))
    print("KERNEL_OK")
</pallas_src>

<mosaic_0001>
module attributes {stable_mosaic.version = 11 : i64} {
  func.func @_pre_agg_kernel(%arg0: i32, %arg1: memref<128x24xf32, #tpu.memory_space<vmem>>, %arg2: memref<128x16xf32, #tpu.memory_space<vmem>>, %arg3: memref<3x3xf32, #tpu.memory_space<smem>>, %arg4: memref<3xf32, #tpu.memory_space<smem>>, %arg5: memref<3xf32, #tpu.memory_space<smem>>, %arg6: memref<1xf32, #tpu.memory_space<smem>>, %arg7: memref<4xf32, #tpu.memory_space<smem>>, %arg8: memref<1xf32, #tpu.memory_space<smem>>, %arg9: memref<16x16xf32, #tpu.memory_space<vmem>>, %arg10: memref<3x16xf32, #tpu.memory_space<vmem>>, %arg11: memref<1x16xf32, #tpu.memory_space<vmem>>, %arg12: memref<1x16xf32, #tpu.memory_space<vmem>>, %arg13: memref<1x16xf32, #tpu.memory_space<vmem>>, %arg14: memref<128x16xf32, #tpu.memory_space<vmem>>) attributes {dimension_semantics = [#tpu.dimension_semantics<parallel>], iteration_bounds = array<i64: 1>, scalar_prefetch = 0 : i64, scratch_operands = 0 : i64, tpu.core_type = #tpu.core_type<tc>, window_params = [{transform_indices = @transform_0, window_bounds = array<i64: 128, 24>}, {transform_indices = @transform_1, window_bounds = array<i64: 128, 16>}, {transform_indices = @transform_2, window_bounds = array<i64: 3, 3>}, {transform_indices = @transform_3, window_bounds = array<i64: 3>}, {transform_indices = @transform_4, window_bounds = array<i64: 3>}, {transform_indices = @transform_5, window_bounds = array<i64: 1>}, {transform_indices = @transform_6, window_bounds = array<i64: 4>}, {transform_indices = @transform_7, window_bounds = array<i64: 1>}, {pipeline_mode = #tpu.pipeline_mode<synchronous>, transform_indices = @transform_8, window_bounds = array<i64: 16, 16>}, {pipeline_mode = #tpu.pipeline_mode<synchronous>, transform_indices = @transform_9, window_bounds = array<i64: 3, 16>}, {pipeline_mode = #tpu.pipeline_mode<synchronous>, transform_indices = @transform_10, window_bounds = array<i64: 1, 16>}, {pipeline_mode = #tpu.pipeline_mode<synchronous>, transform_indices = @transform_11, window_bounds = array<i64: 1, 16>}, {pipeline_mode = #tpu.pipeline_mode<synchronous>, transform_indices = @transform_12, window_bounds = array<i64: 1, 16>}, {transform_indices = @transform_13, window_bounds = array<i64: 128, 16>}]} {
    %c0 = arith.constant 0 : index
    %c0_0 = arith.constant 0 : index
    %0 = vector.load %arg1[%c0, %c0_0] : memref<128x24xf32, #tpu.memory_space<vmem>>, vector<128x24xf32>
    %1 = vector.extract_strided_slice %0 {offsets = [0, 0], sizes = [128, 4], strides = [1, 1]} : vector<128x24xf32> to vector<128x4xf32>
    %2 = vector.extract_strided_slice %0 {offsets = [0, 4], sizes = [128, 4], strides = [1, 1]} : vector<128x24xf32> to vector<128x4xf32>
    %3 = vector.extract_strided_slice %0 {offsets = [0, 8], sizes = [128, 4], strides = [1, 1]} : vector<128x24xf32> to vector<128x4xf32>
    %4 = vector.extract_strided_slice %0 {offsets = [0, 12], sizes = [128, 4], strides = [1, 1]} : vector<128x24xf32> to vector<128x4xf32>
    %5 = vector.extract_strided_slice %0 {offsets = [0, 16], sizes = [128, 4], strides = [1, 1]} : vector<128x24xf32> to vector<128x4xf32>
    %6 = vector.extract_strided_slice %0 {offsets = [0, 20], sizes = [128, 4], strides = [1, 1]} : vector<128x24xf32> to vector<128x4xf32>
    %c0_1 = arith.constant 0 : index
    %7 = memref.load %arg4[%c0_1] : memref<3xf32, #tpu.memory_space<smem>>
    %c0_2 = arith.constant 0 : index
    %c0_3 = arith.constant 0 : index
    %8 = memref.load %arg3[%c0_2, %c0_3] : memref<3x3xf32, #tpu.memory_space<smem>>
    %9 = vector.broadcast %8 : f32 to vector<128x4xf32>
    %10 = arith.mulf %1, %9 : vector<128x4xf32>
    %11 = vector.broadcast %7 : f32 to vector<128x4xf32>
    %12 = arith.addf %11, %10 : vector<128x4xf32>
    %c1 = arith.constant 1 : index
    %c0_4 = arith.constant 0 : index
    %13 = memref.load %arg3[%c1, %c0_4] : memref<3x3xf32, #tpu.memory_space<smem>>
    %14 = vector.broadcast %13 : f32 to vector<128x4xf32>
    %15 = arith.mulf %2, %14 : vector<128x4xf32>
    %16 = arith.addf %12, %15 : vector<128x4xf32>
    %c2 = arith.constant 2 : index
    %c0_5 = arith.constant 0 : index
    %17 = memref.load %arg3[%c2, %c0_5] : memref<3x3xf32, #tpu.memory_space<smem>>
    %18 = vector.broadcast %17 : f32 to vector<128x4xf32>
    %19 = arith.mulf %3, %18 : vector<128x4xf32>
    %20 = arith.addf %16, %19 : vector<128x4xf32>
    %cst = arith.constant 0.000000e+00 : f32
    %21 = vector.broadcast %cst : f32 to vector<128x4xf32>
    %22 = arith.cmpf ogt, %20, %21 : vector<128x4xf32>
    %cst_6 = arith.constant 2.000000e-01 : f32
    %23 = vector.broadcast %cst_6 : f32 to vector<128x4xf32>
    %24 = arith.mulf %23, %20 : vector<128x4xf32>
    %25 = arith.select %22, %20, %24 : vector<128x4xi1>, vector<128x4xf32>
    %cst_7 = arith.constant dense<0.000000e+00> : vector<128xf32>
    %26 = vector.multi_reduction <add>, %25, %cst_7 [1] : vector<128x4xf32> to vector<128xf32>
    %27 = vector.shape_cast %26 : vector<128xf32> to vector<128x1xf32>
    %cst_8 = arith.constant 4.000000e+00 : f32
    %28 = vector.broadcast %cst_8 : f32 to vector<128x1xf32>
    %29 = arith.divf %27, %28 : vector<128x1xf32>
    %c1_9 = arith.constant 1 : index
    %30 = memref.load %arg4[%c1_9] : memref<3xf32, #tpu.memory_space<smem>>
    %c0_10 = arith.constant 0 : index
    %c1_11 = arith.constant 1 : index
    %31 = memref.load %arg3[%c0_10, %c1_11] : memref<3x3xf32, #tpu.memory_space<smem>>
    %32 = vector.broadcast %31 : f32 to vector<128x4xf32>
    %33 = arith.mulf %1, %32 : vector<128x4xf32>
    %34 = vector.broadcast %30 : f32 to vector<128x4xf32>
    %35 = arith.addf %34, %33 : vector<128x4xf32>
    %c1_12 = arith.constant 1 : index
    %c1_13 = arith.constant 1 : index
    %36 = memref.load %arg3[%c1_12, %c1_13] : memref<3x3xf32, #tpu.memory_space<smem>>
    %37 = vector.broadcast %36 : f32 to vector<128x4xf32>
    %38 = arith.mulf %2, %37 : vector<128x4xf32>
    %39 = arith.addf %35, %38 : vector<128x4xf32>
    %c2_14 = arith.constant 2 : index
    %c1_15 = arith.constant 1 : index
    %40 = memref.load %arg3[%c2_14, %c1_15] : memref<3x3xf32, #tpu.memory_space<smem>>
    %41 = vector.broadcast %40 : f32 to vector<128x4xf32>
    %42 = arith.mulf %3, %41 : vector<128x4xf32>
    %43 = arith.addf %39, %42 : vector<128x4xf32>
    %cst_16 = arith.constant 0.000000e+00 : f32
    %44 = vector.broadcast %cst_16 : f32 to vector<128x4xf32>
    %45 = arith.cmpf ogt, %43, %44 : vector<128x4xf32>
    %cst_17 = arith.constant 2.000000e-01 : f32
    %46 = vector.broadcast %cst_17 : f32 to vector<128x4xf32>
    %47 = arith.mulf %46, %43 : vector<128x4xf32>
    %48 = arith.select %45, %43, %47 : vector<128x4xi1>, vector<128x4xf32>
    %cst_18 = arith.constant dense<0.000000e+00> : vector<128xf32>
    %49 = vector.multi_reduction <add>, %48, %cst_18 [1] : vector<128x4xf32> to vector<128xf32>
    %50 = vector.shape_cast %49 : vector<128xf32> to vector<128x1xf32>
    %cst_19 = arith.constant 4.000000e+00 : f32
    %51 = vector.broadcast %cst_19 : f32 to vector<128x1xf32>
    %52 = arith.divf %50, %51 : vector<128x1xf32>
    %c2_20 = arith.constant 2 : index
    %53 = memref.load %arg4[%c2_20] : memref<3xf32, #tpu.memory_space<smem>>
    %c0_21 = arith.constant 0 : index
    %c2_22 = arith.constant 2 : index
    %54 = memref.load %arg3[%c0_21, %c2_22] : memref<3x3xf32, #tpu.memory_space<smem>>
    %55 = vector.broadcast %54 : f32 to vector<128x4xf32>
    %56 = arith.mulf %1, %55 : vector<128x4xf32>
    %57 = vector.broadcast %53 : f32 to vector<128x4xf32>
    %58 = arith.addf %57, %56 : vector<128x4xf32>
    %c1_23 = arith.constant 1 : index
    %c2_24 = arith.constant 2 : index
    %59 = memref.load %arg3[%c1_23, %c2_24] : memref<3x3xf32, #tpu.memory_space<smem>>
    %60 = vector.broadcast %59 : f32 to vector<128x4xf32>
    %61 = arith.mulf %2, %60 : vector<128x4xf32>
    %62 = arith.addf %58, %61 : vector<128x4xf32>
    %c2_25 = arith.constant 2 : index
    %c2_26 = arith.constant 2 : index
    %63 = memref.load %arg3[%c2_25, %c2_26] : memref<3x3xf32, #tpu.memory_space<smem>>
    %64 = vector.broadcast %63 : f32 to vector<128x4xf32>
    %65 = arith.mulf %3, %64 : vector<128x4xf32>
    %66 = arith.addf %62, %65 : vector<128x4xf32>
    %cst_27 = arith.constant 0.000000e+00 : f32
    %67 = vector.broadcast %cst_27 : f32 to vector<128x4xf32>
    %68 = arith.cmpf ogt, %66, %67 : vector<128x4xf32>
    %cst_28 = arith.constant 2.000000e-01 : f32
    %69 = vector.broadcast %cst_28 : f32 to vector<128x4xf32>
    %70 = arith.mulf %69, %66 : vector<128x4xf32>
    %71 = arith.select %68, %66, %70 : vector<128x4xi1>, vector<128x4xf32>
    %cst_29 = arith.constant dense<0.000000e+00> : vector<128xf32>
    %72 = vector.multi_reduction <add>, %71, %cst_29 [1] : vector<128x4xf32> to vector<128xf32>
    %73 = vector.shape_cast %72 : vector<128xf32> to vector<128x1xf32>
    %cst_30 = arith.constant 4.000000e+00 : f32
    %74 = vector.broadcast %cst_30 : f32 to vector<128x1xf32>
    %75 = arith.divf %73, %74 : vector<128x1xf32>
    %76 = arith.mulf %29, %29 : vector<128x1xf32>
    %cst_31 = arith.constant 0.000000e+00 : f32
    %77 = vector.broadcast %cst_31 : f32 to vector<128x1xf32>
    %78 = arith.addf %77, %76 : vector<128x1xf32>
    %79 = arith.mulf %52, %52 : vector<128x1xf32>
    %80 = arith.addf %78, %79 : vector<128x1xf32>
    %81 = arith.mulf %75, %75 : vector<128x1xf32>
    %82 = arith.addf %80, %81 : vector<128x1xf32>
    %83 = arith.mulf %1, %1 : vector<128x4xf32>
    %cst_32 = arith.constant 0.000000e+00 : f32
    %84 = vector.broadcast %cst_32 : f32 to vector<128x4xf32>
    %85 = arith.addf %84, %83 : vector<128x4xf32>
    %86 = arith.mulf %2, %2 : vector<128x4xf32>
    %87 = arith.addf %85, %86 : vector<128x4xf32>
    %88 = arith.mulf %3, %3 : vector<128x4xf32>
    %89 = arith.addf %87, %88 : vector<128x4xf32>
    %90 = vector.broadcast %29 : vector<128x1xf32> to vector<128x4xf32>
    %91 = arith.mulf %90, %1 : vector<128x4xf32>
    %cst_33 = arith.constant 0.000000e+00 : f32
    %92 = vector.broadcast %cst_33 : f32 to vector<128x4xf32>
    %93 = arith.addf %92, %91 : vector<128x4xf32>
    %94 = vector.broadcast %52 : vector<128x1xf32> to vector<128x4xf32>
    %95 = arith.mulf %94, %2 : vector<128x4xf32>
    %96 = arith.addf %93, %95 : vector<128x4xf32>
    %97 = vector.broadcast %75 : vector<128x1xf32> to vector<128x4xf32>
    %98 = arith.mulf %97, %3 : vector<128x4xf32>
    %99 = arith.addf %96, %98 : vector<128x4xf32>
    %100 = vector.broadcast %82 : vector<128x1xf32> to vector<128x4xf32>
    %101 = arith.mulf %100, %89 : vector<128x4xf32>
    %cst_34 = arith.constant 1.000000e-10 : f32
    %102 = vector.broadcast %cst_34 : f32 to vector<128x4xf32>
    %103 = arith.addf %101, %102 : vector<128x4xf32>
    %104 = math.rsqrt %103 : vector<128x4xf32>
    %105 = arith.mulf %99, %104 : vector<128x4xf32>
    %c0_35 = arith.constant 0 : index
    %106 = memref.load %arg6[%c0_35] : memref<1xf32, #tpu.memory_space<smem>>
    %c0_36 = arith.constant 0 : index
    %107 = memref.load %arg5[%c0_36] : memref<3xf32, #tpu.memory_space<smem>>
    %108 = vector.broadcast %107 : f32 to vector<128x4xf32>
    %109 = arith.mulf %1, %108 : vector<128x4xf32>
    %110 = vector.broadcast %106 : f32 to vector<128x4xf32>
    %111 = arith.addf %110, %109 : vector<128x4xf32>
    %c1_37 = arith.constant 1 : index
    %112 = memref.load %arg5[%c1_37] : memref<3xf32, #tpu.memory_space<smem>>
    %113 = vector.broadcast %112 : f32 to vector<128x4xf32>
    %114 = arith.mulf %2, %113 : vector<128x4xf32>
    %115 = arith.addf %111, %114 : vector<128x4xf32>
    %c2_38 = arith.constant 2 : index
    %116 = memref.load %arg5[%c2_38] : memref<3xf32, #tpu.memory_space<smem>>
    %117 = vector.broadcast %116 : f32 to vector<128x4xf32>
    %118 = arith.mulf %3, %117 : vector<128x4xf32>
    %119 = arith.addf %115, %118 : vector<128x4xf32>
    %cst_39 = arith.constant 0.000000e+00 : f32
    %120 = vector.broadcast %cst_39 : f32 to vector<128x4xf32>
    %121 = arith.cmpf ogt, %119, %120 : vector<128x4xf32>
    %cst_40 = arith.constant 2.000000e-01 : f32
    %122 = vector.broadcast %cst_40 : f32 to vector<128x4xf32>
    %123 = arith.mulf %122, %119 : vector<128x4xf32>
    %124 = arith.select %121, %119, %123 : vector<128x4xi1>, vector<128x4xf32>
    %c0_41 = arith.constant 0 : index
    %125 = memref.load %arg8[%c0_41] : memref<1xf32, #tpu.memory_space<smem>>
    %c0_42 = arith.constant 0 : index
    %126 = memref.load %arg7[%c0_42] : memref<4xf32, #tpu.memory_space<smem>>
    %127 = vector.broadcast %126 : f32 to vector<128x4xf32>
    %128 = arith.mulf %4, %127 : vector<128x4xf32>
    %129 = vector.broadcast %125 : f32 to vector<128x4xf32>
    %130 = arith.addf %129, %128 : vector<128x4xf32>
    %c1_43 = arith.constant 1 : index
    %131 = memref.load %arg7[%c1_43] : memref<4xf32, #tpu.memory_space<smem>>
    %132 = vector.broadcast %131 : f32 to vector<128x4xf32>
    %133 = arith.mulf %5, %132 : vector<128x4xf32>
    %134 = arith.addf %130, %133 : vector<128x4xf32>
    %c2_44 = arith.constant 2 : index
    %135 = memref.load %arg7[%c2_44] : memref<4xf32, #tpu.memory_space<smem>>
    %136 = vector.broadcast %135 : f32 to vector<128x4xf32>
    %137 = arith.mulf %6, %136 : vector<128x4xf32>
    %138 = arith.addf %134, %137 : vector<128x4xf32>
    %c3 = arith.constant 3 : index
    %139 = memref.load %arg7[%c3] : memref<4xf32, #tpu.memory_space<smem>>
    %140 = vector.broadcast %139 : f32 to vector<128x4xf32>
    %141 = arith.mulf %124, %140 : vector<128x4xf32>
    %142 = arith.addf %138, %141 : vector<128x4xf32>
    %cst_45 = arith.constant 0.000000e+00 : f32
    %143 = vector.broadcast %cst_45 : f32 to vector<128x4xf32>
    %144 = arith.cmpf ogt, %142, %143 : vector<128x4xf32>
    %cst_46 = arith.constant 2.000000e-01 : f32
    %145 = vector.broadcast %cst_46 : f32 to vector<128x4xf32>
    %146 = arith.mulf %145, %142 : vector<128x4xf32>
    %147 = arith.select %144, %142, %146 : vector<128x4xi1>, vector<128x4xf32>
    %148 = arith.mulf %105, %4 : vector<128x4xf32>
    %cst_47 = arith.constant dense<0.000000e+00> : vector<128xf32>
    %149 = vector.multi_reduction <add>, %148, %cst_47 [1] : vector<128x4xf32> to vector<128xf32>
    %150 = vector.shape_cast %149 : vector<128xf32> to vector<128x1xf32>
    %151 = arith.mulf %105, %5 : vector<128x4xf32>
    %cst_48 = arith.constant dense<0.000000e+00> : vector<128xf32>
    %152 = vector.multi_reduction <add>, %151, %cst_48 [1] : vector<128x4xf32> to vector<128xf32>
    %153 = vector.shape_cast %152 : vector<128xf32> to vector<128x1xf32>
    %154 = arith.mulf %105, %6 : vector<128x4xf32>
    %cst_49 = arith.constant dense<0.000000e+00> : vector<128xf32>
    %155 = vector.multi_reduction <add>, %154, %cst_49 [1] : vector<128x4xf32> to vector<128xf32>
    %156 = vector.shape_cast %155 : vector<128xf32> to vector<128x1xf32>
    %157 = arith.mulf %105, %124 : vector<128x4xf32>
    %cst_50 = arith.constant dense<0.000000e+00> : vector<128xf32>
    %158 = vector.multi_reduction <add>, %157, %cst_50 [1] : vector<128x4xf32> to vector<128xf32>
    %159 = vector.shape_cast %158 : vector<128xf32> to vector<128x1xf32>
    %160 = arith.mulf %105, %147 : vector<128x4xf32>
    %cst_51 = arith.constant dense<0.000000e+00> : vector<128xf32>
    %161 = vector.multi_reduction <add>, %160, %cst_51 [1] : vector<128x4xf32> to vector<128xf32>
    %162 = vector.shape_cast %161 : vector<128xf32> to vector<128x1xf32>
    %c0_52 = arith.constant 0 : index
    %c0_53 = arith.constant 0 : index
    %163 = vector.load %arg2[%c0_52, %c0_53] : memref<128x16xf32, #tpu.memory_space<vmem>>, vector<128x16xf32>
    %c0_54 = arith.constant 0 : index
    %c0_55 = arith.constant 0 : index
    %164 = vector.load %arg9[%c0_54, %c0_55] : memref<16x16xf32, #tpu.memory_space<vmem>>, vector<16x16xf32>
    %cst_56 = arith.constant dense<0.000000e+00> : vector<128x16xf32>
    %165 = tpu.matmul %163, %164, %cst_56 {dimension_numbers = #tpu.dot_dimension_numbers<[1], [0], [0], [1], [0, 0, 1, 1], [], []>} : vector<128x16xf32>, vector<16x16xf32>, vector<128x16xf32> -> vector<128x16xf32>
    %c0_57 = arith.constant 0 : index
    %c0_58 = arith.constant 0 : index
    %166 = vector.load %arg13[%c0_57, %c0_58] : memref<1x16xf32, #tpu.memory_space<vmem>>, vector<1x16xf32>
    %167 = vector.broadcast %166 : vector<1x16xf32> to vector<128x16xf32>
    %168 = arith.addf %165, %167 : vector<128x16xf32>
    %c0_59 = arith.constant 0 : index
    %c0_60 = arith.constant 0 : index
    %169 = vector.load %arg10[%c0_59, %c0_60] : memref<3x16xf32, #tpu.memory_space<vmem>>, vector<1x16xf32>
    %170 = vector.broadcast %150 : vector<128x1xf32> to vector<128x16xf32>
    %171 = vector.broadcast %169 : vector<1x16xf32> to vector<128x16xf32>
    %172 = arith.mulf %170, %171 : vector<128x16xf32>
    %173 = arith.addf %168, %172 : vector<128x16xf32>
    %c1_61 = arith.constant 1 : index
    %c0_62 = arith.constant 0 : index
    %174 = vector.load %arg10[%c1_61, %c0_62] : memref<3x16xf32, #tpu.memory_space<vmem>>, vector<1x16xf32>
    %175 = vector.broadcast %153 : vector<128x1xf32> to vector<128x16xf32>
    %176 = vector.broadcast %174 : vector<1x16xf32> to vector<128x16xf32>
    %177 = arith.mulf %175, %176 : vector<128x16xf32>
    %178 = arith.addf %173, %177 : vector<128x16xf32>
    %c2_63 = arith.constant 2 : index
    %c0_64 = arith.constant 0 : index
    %179 = vector.load %arg10[%c2_63, %c0_64] : memref<3x16xf32, #tpu.memory_space<vmem>>, vector<1x16xf32>
    %180 = vector.broadcast %156 : vector<128x1xf32> to vector<128x16xf32>
    %181 = vector.broadcast %179 : vector<1x16xf32> to vector<128x16xf32>
    %182 = arith.mulf %180, %181 : vector<128x16xf32>
    %183 = arith.addf %178, %182 : vector<128x16xf32>
    %c0_65 = arith.constant 0 : index
    %c0_66 = arith.constant 0 : index
    %184 = vector.load %arg11[%c0_65, %c0_66] : memref<1x16xf32, #tpu.memory_space<vmem>>, vector<1x16xf32>
    %185 = vector.broadcast %159 : vector<128x1xf32> to vector<128x16xf32>
    %186 = vector.broadcast %184 : vector<1x16xf32> to vector<128x16xf32>
    %187 = arith.mulf %185, %186 : vector<128x16xf32>
    %188 = arith.addf %183, %187 : vector<128x16xf32>
    %c0_67 = arith.constant 0 : index
    %c0_68 = arith.constant 0 : index
    %189 = vector.load %arg12[%c0_67, %c0_68] : memref<1x16xf32, #tpu.memory_space<vmem>>, vector<1x16xf32>
    %190 = vector.broadcast %162 : vector<128x1xf32> to vector<128x16xf32>
    %191 = vector.broadcast %189 : vector<1x16xf32> to vector<128x16xf32>
    %192 = arith.mulf %190, %191 : vector<128x16xf32>
    %193 = arith.addf %188, %192 : vector<128x16xf32>
    %cst_69 = arith.constant 0.000000e+00 : f32
    %194 = vector.broadcast %cst_69 : f32 to vector<128x16xf32>
    %195 = arith.maximumf %193, %194 : vector<128x16xf32>
    %c0_70 = arith.constant 0 : index
    %c0_71 = arith.constant 0 : index
    %196 = vector.load %arg14[%c0_70, %c0_71] : memref<128x16xf32, #tpu.memory_space<vmem>>, vector<128x16xf32>
    tpu.vector_store %arg14[%c0_70, %c0_71], %195 {strides = array<i32>} : memref<128x16xf32, #tpu.memory_space<vmem>>, vector<128x16xf32>,
    return
  }
  func.func @transform_0(%arg0: i32) -> (i32, i32) {
    %c0_i32 = arith.constant 0 : i32
    %c0_i32_0 = arith.constant 0 : i32
    return %arg0, %c0_i32 : i32, i32
  }
  func.func @transform_1(%arg0: i32) -> (i32, i32) {
    %c0_i32 = arith.constant 0 : i32
    %c0_i32_0 = arith.constant 0 : i32
    return %arg0, %c0_i32 : i32, i32
  }
  func.func @transform_2(%arg0: i32) -> (i32, i32) {
    %c0_i32 = arith.constant 0 : i32
    %c0_i32_0 = arith.constant 0 : i32
    %c0_i32_1 = arith.constant 0 : i32
    return %c0_i32, %c0_i32_0 : i32, i32
  }
  func.func @transform_3(%arg0: i32) -> i32 {
    %c0_i32 = arith.constant 0 : i32
    %c0_i32_0 = arith.constant 0 : i32
    return %c0_i32 : i32
  }
  func.func @transform_4(%arg0: i32) -> i32 {
    %c0_i32 = arith.constant 0 : i32
    %c0_i32_0 = arith.constant 0 : i32
    return %c0_i32 : i32
  }
  func.func @transform_5(%arg0: i32) -> i32 {
    %c0_i32 = arith.constant 0 : i32
    %c0_i32_0 = arith.constant 0 : i32
    return %c0_i32 : i32
  }
  func.func @transform_6(%arg0: i32) -> i32 {
    %c0_i32 = arith.constant 0 : i32
    %c0_i32_0 = arith.constant 0 : i32
    return %c0_i32 : i32
  }
  func.func @transform_7(%arg0: i32) -> i32 {
    %c0_i32 = arith.constant 0 : i32
    %c0_i32_0 = arith.constant 0 : i32
    return %c0_i32 : i32
  }
  func.func @transform_8(%arg0: i32) -> (i32, i32) {
    %c0_i32 = arith.constant 0 : i32
    %c0_i32_0 = arith.constant 0 : i32
    %c0_i32_1 = arith.constant 0 : i32
    return %c0_i32, %c0_i32_0 : i32, i32
  }
  func.func @transform_9(%arg0: i32) -> (i32, i32) {
    %c0_i32 = arith.constant 0 : i32
    %c0_i32_0 = arith.constant 0 : i32
    %c0_i32_1 = arith.constant 0 : i32
    return %c0_i32, %c0_i32_0 : i32, i32
  }
  func.func @transform_10(%arg0: i32) -> (i32, i32) {
    %c0_i32 = arith.constant 0 : i32
    %c0_i32_0 = arith.constant 0 : i32
    %c0_i32_1 = arith.constant 0 : i32
    return %c0_i32, %c0_i32_0 : i32, i32
  }
  func.func @transform_11(%arg0: i32) -> (i32, i32) {
    %c0_i32 = arith.constant 0 : i32
    %c0_i32_0 = arith.constant 0 : i32
    %c0_i32_1 = arith.constant 0 : i32
    return %c0_i32, %c0_i32_0 : i32, i32
  }
  func.func @transform_12(%arg0: i32) -> (i32, i32) {
    %c0_i32 = arith.constant 0 : i32
    %c0_i32_0 = arith.constant 0 : i32
    %c0_i32_1 = arith.constant 0 : i32
    return %c0_i32, %c0_i32_0 : i32, i32
  }
  func.func @transform_13(%arg0: i32) -> (i32, i32) {
    %c0_i32 = arith.constant 0 : i32
    %c0_i32_0 = arith.constant 0 : i32
    return %arg0, %c0_i32 : i32, i32
  }
}

module attributes {stable_mosaic.version = 11 : i64} {
  func.func @_attn_fused_kernel(%arg0: i32, %arg1: memref<128x128xf32, #tpu.memory_space<vmem>>, %arg2: memref<128x24xf32, #tpu.memory_space<vmem>>, %arg3: memref<128x16xf32, #tpu.memory_space<vmem>>, %arg4: memref<128x16xf32, #tpu.memory_space<vmem>>, %arg5: memref<16x128xf32, #tpu.memory_space<vmem>>, %arg6: memref<16x256xf32, #tpu.memory_space<vmem>>, %arg7: memref<128x512xf32, #tpu.memory_space<vmem>>, %arg8: memref<128x256xf32, #tpu.memory_space<vmem>>, %arg9: memref<24x256xf32, #tpu.memory_space<vmem>>, %arg10: memref<1x256xf32, #tpu.memory_space<vmem>>, %arg11: memref<256x256xf32, #tpu.memory_space<vmem>>, %arg12: memref<256x256xf32, #tpu.memory_space<vmem>>, %arg13: memref<1x256xf32, #tpu.memory_space<vmem>>, %arg14: memref<256x8xf32, #tpu.memory_space<vmem>>, %arg15: memref<8x256xf32, #tpu.memory_space<vmem>>, %arg16: memref<256x32xf32, #tpu.memory_space<vmem>>, %arg17: memref<32x32xf32, #tpu.memory_space<vmem>>, %arg18: memref<1x32xf32, #tpu.memory_space<vmem>>, %arg19: memref<3x32xf32, #tpu.memory_space<vmem>>, %arg20: memref<16x32xf32, #tpu.memory_space<vmem>>, %arg21: memref<1x32xf32, #tpu.memory_space<vmem>>, %arg22: memref<64x64xf32, #tpu.memory_space<vmem>>, %arg23: memref<1x64xf32, #tpu.memory_space<vmem>>, %arg24: memref<32x32xf32, #tpu.memory_space<vmem>>, %arg25: memref<128x32xf32, #tpu.memory_space<vmem>>) attributes {dimension_semantics = [#tpu.dimension_semantics<parallel>], iteration_bounds = array<i64: 1>, scalar_prefetch = 0 : i64, scratch_operands = 0 : i64, tpu.core_type = #tpu.core_type<tc>, window_params = [{transform_indices = @transform_0, window_bounds = array<i64: 128, 128>}, {transform_indices = @transform_1, window_bounds = array<i64: 128, 24>}, {transform_indices = @transform_2, window_bounds = array<i64: 128, 16>}, {transform_indices = @transform_3, window_bounds = array<i64: 128, 16>}, {pipeline_mode = #tpu.pipeline_mode<synchronous>, transform_indices = @transform_4, window_bounds = array<i64: 16, 128>}, {pipeline_mode = #tpu.pipeline_mode<synchronous>, transform_indices = @transform_5, window_bounds = array<i64: 16, 256>}, {pipeline_mode = #tpu.pipeline_mode<synchronous>, transform_indices = @transform_6, window_bounds = array<i64: 128, 512>}, {pipeline_mode = #tpu.pipeline_mode<synchronous>, transform_indices = @transform_7, window_bounds = array<i64: 128, 256>}, {pipeline_mode = #tpu.pipeline_mode<synchronous>, transform_indices = @transform_8, window_bounds = array<i64: 24, 256>}, {pipeline_mode = #tpu.pipeline_mode<synchronous>, transform_indices = @transform_9, window_bounds = array<i64: 1, 256>}, {pipeline_mode = #tpu.pipeline_mode<synchronous>, transform_indices = @transform_10, window_bounds = array<i64: 256, 256>}, {pipeline_mode = #tpu.pipeline_mode<synchronous>, transform_indices = @transform_11, window_bounds = array<i64: 256, 256>}, {pipeline_mode = #tpu.pipeline_mode<synchronous>, transform_indices = @transform_12, window_bounds = array<i64: 1, 256>}, {pipeline_mode = #tpu.pipeline_mode<synchronous>, transform_indices = @transform_13, window_bounds = array<i64: 256, 8>}, {pipeline_mode = #tpu.pipeline_mode<synchronous>, transform_indices = @transform_14, window_bounds = array<i64: 8, 256>}, {pipeline_mode = #tpu.pipeline_mode<synchronous>, transform_indices = @transform_15, window_bounds = array<i64: 256, 32>}, {pipeline_mode = #tpu.pipeline_mode<synchronous>, transform_indices = @transform_16, window_bounds = array<i64: 32, 32>}, {pipeline_mode = #tpu.pipeline_mode<synchronous>, transform_indices = @transform_17, window_bounds = array<i64: 1, 32>}, {pipeline_mode = #tpu.pipeline_mode<synchronous>, transform_indices = @transform_18, window_bounds = array<i64: 3, 32>}, {pipeline_mode = #tpu.pipeline_mode<synchronous>, transform_indices = @transform_19, window_bounds = array<i64: 16, 32>}, {pipeline_mode = #tpu.pipeline_mode<synchronous>, transform_indices = @transform_20, window_bounds = array<i64: 1, 32>}, {pipeline_mode = #tpu.pipeline_mode<synchronous>, transform_indices = @transform_21, window_bounds = array<i64: 64, 64>}, {pipeline_mode = #tpu.pipeline_mode<synchronous>, transform_indices = @transform_22, window_bounds = array<i64: 1, 64>}, {pipeline_mode = #tpu.pipeline_mode<synchronous>, transform_indices = @transform_23, window_bounds = array<i64: 32, 32>}, {transform_indices = @transform_24, window_bounds = array<i64: 128, 32>}]} {
    %c0 = arith.constant 0 : index
    %c0_0 = arith.constant 0 : index
    %0 = vector.load %arg1[%c0, %c0_0] : memref<128x128xf32, #tpu.memory_space<vmem>>, vector<128x128xf32>
    %c0_1 = arith.constant 0 : index
    %c0_2 = arith.constant 0 : index
    %1 = vector.load %arg2[%c0_1, %c0_2] : memref<128x24xf32, #tpu.memory_space<vmem>>, vector<128x24xf32>
    %c0_3 = arith.constant 0 : index
    %c0_4 = arith.constant 0 : index
    %2 = vector.load %arg3[%c0_3, %c0_4] : memref<128x16xf32, #tpu.memory_space<vmem>>, vector<128x16xf32>
    %c0_5 = arith.constant 0 : index
    %c0_6 = arith.constant 0 : index
    %3 = vector.load %arg4[%c0_5, %c0_6] : memref<128x16xf32, #tpu.memory_space<vmem>>, vector<128x16xf32>
    %c0_7 = arith.constant 0 : index
    %c0_8 = arith.constant 0 : index
    %4 = vector.load %arg5[%c0_7, %c0_8] : memref<16x128xf32, #tpu.memory_space<vmem>>, vector<16x128xf32>
    %cst = arith.constant dense<0.000000e+00> : vector<128x128xf32>
    %5 = tpu.matmul %2, %4, %cst {dimension_numbers = #tpu.dot_dimension_numbers<[1], [0], [0], [1], [0, 0, 1, 1], [], []>} : vector<128x16xf32>, vector<16x128xf32>, vector<128x128xf32> -> vector<128x128xf32>
    %c0_9 = arith.constant 0 : index
    %c0_10 = arith.constant 0 : index
    %6 = vector.load %arg6[%c0_9, %c0_10] : memref<16x256xf32, #tpu.memory_space<vmem>>, vector<16x256xf32>
    %cst_11 = arith.constant dense<0.000000e+00> : vector<128x256xf32>
    %7 = tpu.matmul %2, %6, %cst_11 {dimension_numbers = #tpu.dot_dimension_numbers<[1], [0], [0], [1], [0, 0, 1, 1], [], []>} : vector<128x16xf32>, vector<16x256xf32>, vector<128x256xf32> -> vector<128x256xf32>
    %c0_12 = arith.constant 0 : index
    %c0_13 = arith.constant 0 : index
    %8 = vector.load %arg7[%c0_12, %c0_13] : memref<128x512xf32, #tpu.memory_space<vmem>>, vector<128x512xf32>
    %cst_14 = arith.constant dense<0.000000e+00> : vector<128x512xf32>
    %9 = tpu.matmul %0, %8, %cst_14 {dimension_numbers = #tpu.dot_dimension_numbers<[1], [0], [0], [1], [0, 0, 1, 1], [], []>} : vector<128x128xf32>, vector<128x512xf32>, vector<128x512xf32> -> vector<128x512xf32>
    %10 = vector.extract_strided_slice %9 {offsets = [0, 0], sizes = [128, 256], strides = [1, 1]} : vector<128x512xf32> to vector<128x256xf32>
    %11 = vector.extract_strided_slice %9 {offsets = [0, 256], sizes = [128, 256], strides = [1, 1]} : vector<128x512xf32> to vector<128x256xf32>
    %c0_15 = arith.constant 0 : index
    %c0_16 = arith.constant 0 : index
    %12 = vector.load %arg9[%c0_15, %c0_16] : memref<24x256xf32, #tpu.memory_space<vmem>>, vector<24x256xf32>
    %cst_17 = arith.constant dense<0.000000e+00> : vector<128x256xf32>
    %13 = tpu.matmul %1, %12, %cst_17 {dimension_numbers = #tpu.dot_dimension_numbers<[1], [0], [0], [1], [0, 0, 1, 1], [], []>} : vector<128x24xf32>, vector<24x256xf32>, vector<128x256xf32> -> vector<128x256xf32>
    %c0_18 = arith.constant 0 : index
    %c0_19 = arith.constant 0 : index
    %14 = vector.load %arg10[%c0_18, %c0_19] : memref<1x256xf32, #tpu.memory_space<vmem>>, vector<1x256xf32>
    %15 = vector.broadcast %14 : vector<1x256xf32> to vector<128x256xf32>
    %16 = arith.addf %13, %15 : vector<128x256xf32>
    %cst_20 = arith.constant 0.000000e+00 : f32
    %17 = vector.broadcast %cst_20 : f32 to vector<128x256xf32>
    %18 = arith.maximumf %16, %17 : vector<128x256xf32>
    %c0_21 = arith.constant 0 : index
    %c0_22 = arith.constant 0 : index
    %19 = vector.load %arg11[%c0_21, %c0_22] : memref<256x256xf32, #tpu.memory_space<vmem>>, vector<256x256xf32>
    %cst_23 = arith.constant dense<0.000000e+00> : vector<128x256xf32>
    %20 = tpu.matmul %18, %19, %cst_23 {dimension_numbers = #tpu.dot_dimension_numbers<[1], [0], [0], [1], [0, 0, 1, 1], [], []>} : vector<128x256xf32>, vector<256x256xf32>, vector<128x256xf32> -> vector<128x256xf32>
    %21 = arith.mulf %5, %0 : vector<128x128xf32>
    %c0_24 = arith.constant 0 : index
    %c0_25 = arith.constant 0 : index
    %22 = vector.load %arg8[%c0_24, %c0_25] : memref<128x256xf32, #tpu.memory_space<vmem>>, vector<128x256xf32>
    %cst_26 = arith.constant dense<0.000000e+00> : vector<128x256xf32>
    %23 = tpu.matmul %21, %22, %cst_26 {dimension_numbers = #tpu.dot_dimension_numbers<[1], [0], [0], [1], [0, 0, 1, 1], [], []>} : vector<128x128xf32>, vector<128x256xf32>, vector<128x256xf32> -> vector<128x256xf32>
    %24 = arith.subf %7, %10 : vector<128x256xf32>
    %25 = arith.addf %24, %20 : vector<128x256xf32>
    %26 = arith.addf %25, %23 : vector<128x256xf32>
    %c0_27 = arith.constant 0 : index
    %c0_28 = arith.constant 0 : index
    %27 = vector.load %arg12[%c0_27, %c0_28] : memref<256x256xf32, #tpu.memory_space<vmem>>, vector<256x256xf32>
    %cst_29 = arith.constant dense<0.000000e+00> : vector<128x256xf32>
    %28 = tpu.matmul %26, %27, %cst_29 {dimension_numbers = #tpu.dot_dimension_numbers<[1], [0], [0], [1], [0, 0, 1, 1], [], []>} : vector<128x256xf32>, vector<256x256xf32>, vector<128x256xf32> -> vector<128x256xf32>
    %c0_30 = arith.constant 0 : index
    %c0_31 = arith.constant 0 : index
    %29 = vector.load %arg13[%c0_30, %c0_31] : memref<1x256xf32, #tpu.memory_space<vmem>>, vector<1x256xf32>
    %30 = vector.broadcast %29 : vector<1x256xf32> to vector<128x256xf32>
    %31 = arith.addf %28, %30 : vector<128x256xf32>
    %cst_32 = arith.constant 0.000000e+00 : f32
    %32 = vector.broadcast %cst_32 : f32 to vector<128x256xf32>
    %33 = arith.maximumf %31, %32 : vector<128x256xf32>
    %c0_33 = arith.constant 0 : index
    %c0_34 = arith.constant 0 : index
    %34 = vector.load %arg14[%c0_33, %c0_34] : memref<256x8xf32, #tpu.memory_space<vmem>>, vector<256x8xf32>
    %cst_35 = arith.constant dense<0.000000e+00> : vector<128x8xf32>
    %35 = tpu.matmul %33, %34, %cst_35 {dimension_numbers = #tpu.dot_dimension_numbers<[1], [0], [0], [1], [0, 0, 1, 1], [], []>} : vector<128x256xf32>, vector<256x8xf32>, vector<128x8xf32> -> vector<128x8xf32>
    %cst_36 = arith.constant dense<0xFF800000> : vector<128xf32>
    %36 = vector.multi_reduction <maximumf>, %35, %cst_36 [1] : vector<128x8xf32> to vector<128xf32>
    %37 = vector.shape_cast %36 : vector<128xf32> to vector<128x1xf32>
    %38 = vector.broadcast %37 : vector<128x1xf32> to vector<128x8xf32>
    %39 = arith.subf %35, %38 : vector<128x8xf32>
    %40 = math.exp %39 : vector<128x8xf32>
    %cst_37 = arith.constant dense<0.000000e+00> : vector<128xf32>
    %41 = vector.multi_reduction <add>, %40, %cst_37 [1] : vector<128x8xf32> to vector<128xf32>
    %42 = vector.shape_cast %41 : vector<128xf32> to vector<128x1xf32>
    %43 = tpu.reciprocal %42 {approx = true} : vector<128x1xf32> -> vector<128x1xf32>
    %44 = vector.broadcast %43 : vector<128x1xf32> to vector<128x8xf32>
    %45 = arith.mulf %40, %44 : vector<128x8xf32>
    %46 = arith.addf %11, %20 : vector<128x256xf32>
    %c0_38 = arith.constant 0 : index
    %c0_39 = arith.constant 0 : index
    %47 = vector.load %arg15[%c0_38, %c0_39] : memref<8x256xf32, #tpu.memory_space<vmem>>, vector<8x256xf32>
    %cst_40 = arith.constant dense<0.000000e+00> : vector<128x256xf32>
    %48 = tpu.matmul %45, %47, %cst_40 {dimension_numbers = #tpu.dot_dimension_numbers<[1], [0], [0], [1], [0, 0, 1, 1], [], []>} : vector<128x8xf32>, vector<8x256xf32>, vector<128x256xf32> -> vector<128x256xf32>
    %49 = arith.mulf %48, %46 : vector<128x256xf32>
    %c0_41 = arith.constant 0 : index
    %c0_42 = arith.constant 0 : index
    %50 = vector.load %arg16[%c0_41, %c0_42] : memref<256x32xf32, #tpu.memory_space<vmem>>, vector<256x32xf32>
    %cst_43 = arith.constant dense<0.000000e+00> : vector<128x32xf32>
    %51 = tpu.matmul %49, %50, %cst_43 {dimension_numbers = #tpu.dot_dimension_numbers<[1], [0], [0], [1], [0, 0, 1, 1], [], []>} : vector<128x256xf32>, vector<256x32xf32>, vector<128x32xf32> -> vector<128x32xf32>
    %c0_44 = arith.constant 0 : index
    %c0_45 = arith.constant 0 : index
    %52 = vector.load %arg17[%c0_44, %c0_45] : memref<32x32xf32, #tpu.memory_space<vmem>>, vector<32x32xf32>
    %cst_46 = arith.constant dense<0.000000e+00> : vector<128x32xf32>
    %53 = tpu.matmul %51, %52, %cst_46 {dimension_numbers = #tpu.dot_dimension_numbers<[1], [0], [0], [1], [0, 0, 1, 1], [], []>} : vector<128x32xf32>, vector<32x32xf32>, vector<128x32xf32> -> vector<128x32xf32>
    %c0_47 = arith.constant 0 : index
    %c0_48 = arith.constant 0 : index
    %54 = vector.load %arg18[%c0_47, %c0_48] : memref<1x32xf32, #tpu.memory_space<vmem>>, vector<1x32xf32>
    %55 = vector.broadcast %54 : vector<1x32xf32> to vector<128x32xf32>
    %56 = arith.addf %53, %55 : vector<128x32xf32>
    %cst_49 = arith.constant 0.000000e+00 : f32
    %57 = vector.broadcast %cst_49 : f32 to vector<128x32xf32>
    %58 = arith.cmpf ogt, %56, %57 : vector<128x32xf32>
    %cst_50 = arith.constant 2.000000e-01 : f32
    %59 = vector.broadcast %cst_50 : f32 to vector<128x32xf32>
    %60 = arith.mulf %59, %56 : vector<128x32xf32>
    %61 = arith.select %58, %56, %60 : vector<128x32xi1>, vector<128x32xf32>
    %62 = vector.extract_strided_slice %1 {offsets = [0, 0], sizes = [128, 3], strides = [1, 1]} : vector<128x24xf32> to vector<128x3xf32>
    %63 = vector.extract_strided_slice %1 {offsets = [0, 3], sizes = [128, 3], strides = [1, 1]} : vector<128x24xf32> to vector<128x3xf32>
    %64 = arith.maximumf %62, %63 : vector<128x3xf32>
    %65 = vector.extract_strided_slice %1 {offsets = [0, 6], sizes = [128, 3], strides = [1, 1]} : vector<128x24xf32> to vector<128x3xf32>
    %66 = arith.maximumf %64, %65 : vector<128x3xf32>
    %67 = vector.extract_strided_slice %1 {offsets = [0, 9], sizes = [128, 3], strides = [1, 1]} : vector<128x24xf32> to vector<128x3xf32>
    %68 = arith.maximumf %66, %67 : vector<128x3xf32>
    %69 = vector.extract_strided_slice %1 {offsets = [0, 12], sizes = [128, 3], strides = [1, 1]} : vector<128x24xf32> to vector<128x3xf32>
    %70 = arith.maximumf %68, %69 : vector<128x3xf32>
    %71 = vector.extract_strided_slice %1 {offsets = [0, 15], sizes = [128, 3], strides = [1, 1]} : vector<128x24xf32> to vector<128x3xf32>
    %72 = arith.maximumf %70, %71 : vector<128x3xf32>
    %73 = vector.extract_strided_slice %1 {offsets = [0, 18], sizes = [128, 3], strides = [1, 1]} : vector<128x24xf32> to vector<128x3xf32>
    %74 = arith.maximumf %72, %73 : vector<128x3xf32>
    %75 = vector.extract_strided_slice %1 {offsets = [0, 21], sizes = [128, 3], strides = [1, 1]} : vector<128x24xf32> to vector<128x3xf32>
    %76 = arith.maximumf %74, %75 : vector<128x3xf32>
    %c0_51 = arith.constant 0 : index
    %c0_52 = arith.constant 0 : index
    %77 = vector.load %arg21[%c0_51, %c0_52] : memref<1x32xf32, #tpu.memory_space<vmem>>, vector<1x32xf32>
    %c0_53 = arith.constant 0 : index
    %c0_54 = arith.constant 0 : index
    %78 = vector.load %arg20[%c0_53, %c0_54] : memref<16x32xf32, #tpu.memory_space<vmem>>, vector<16x32xf32>
    %cst_55 = arith.constant dense<0.000000e+00> : vector<128x32xf32>
    %79 = tpu.matmul %3, %78, %cst_55 {dimension_numbers = #tpu.dot_dimension_numbers<[1], [0], [0], [1], [0, 0, 1, 1], [], []>} : vector<128x16xf32>, vector<16x32xf32>, vector<128x32xf32> -> vector<128x32xf32>
    %80 = vector.broadcast %77 : vector<1x32xf32> to vector<128x32xf32>
    %81 = arith.addf %80, %79 : vector<128x32xf32>
    %82 = vector.extract_strided_slice %76 {offsets = [0, 0], sizes = [128, 1], strides = [1, 1]} : vector<128x3xf32> to vector<128x1xf32>
    %c0_56 = arith.constant 0 : index
    %c0_57 = arith.constant 0 : index
    %83 = vector.load %arg19[%c0_56, %c0_57] : memref<3x32xf32, #tpu.memory_space<vmem>>, vector<1x32xf32>
    %84 = vector.broadcast %82 : vector<128x1xf32> to vector<128x32xf32>
    %85 = vector.broadcast %83 : vector<1x32xf32> to vector<128x32xf32>
    %86 = arith.mulf %84, %85 : vector<128x32xf32>
    %87 = arith.addf %81, %86 : vector<128x32xf32>
    %88 = vector.extract_strided_slice %76 {offsets = [0, 1], sizes = [128, 1], strides = [1, 1]} : vector<128x3xf32> to vector<128x1xf32>
    %c1 = arith.constant 1 : index
    %c0_58 = arith.constant 0 : index
    %89 = vector.load %arg19[%c1, %c0_58] : memref<3x32xf32, #tpu.memory_space<vmem>>, vector<1x32xf32>
    %90 = vector.broadcast %88 : vector<128x1xf32> to vector<128x32xf32>
    %91 = vector.broadcast %89 : vector<1x32xf32> to vector<128x32xf32>
    %92 = arith.mulf %90, %91 : vector<128x32xf32>
    %93 = arith.addf %87, %92 : vector<128x32xf32>
    %94 = vector.extract_strided_slice %76 {offsets = [0, 2], sizes = [128, 1], strides = [1, 1]} : vector<128x3xf32> to vector<128x1xf32>
    %c2 = arith.constant 2 : index
    %c0_59 = arith.constant 0 : index
    %95 = vector.load %arg19[%c2, %c0_59] : memref<3x32xf32, #tpu.memory_space<vmem>>, vector<1x32xf32>
    %96 = vector.broadcast %94 : vector<128x1xf32> to vector<128x32xf32>
    %97 = vector.broadcast %95 : vector<1x32xf32> to vector<128x32xf32>
    %98 = arith.mulf %96, %97 : vector<128x32xf32>
    %99 = arith.addf %93, %98 : vector<128x32xf32>
    %cst_60 = arith.constant 0.000000e+00 : f32
    %100 = vector.broadcast %cst_60 : f32 to vector<128x32xf32>
    %101 = arith.maximumf %99, %100 : vector<128x32xf32>
    %102 = tpu.concatenate %101, %61 in 1 : vector<128x32xf32>, vector<128x32xf32> -> vector<128x64xf32>
    %c0_61 = arith.constant 0 : index
    %c0_62 = arith.constant 0 : index
    %103 = vector.load %arg22[%c0_61, %c0_62] : memref<64x64xf32, #tpu.memory_space<vmem>>, vector<64x64xf32>
    %cst_63 = arith.constant dense<0.000000e+00> : vector<128x64xf32>
    %104 = tpu.matmul %102, %103, %cst_63 {dimension_numbers = #tpu.dot_dimension_numbers<[1], [0], [0], [1], [0, 0, 1, 1], [], []>} : vector<128x64xf32>, vector<64x64xf32>, vector<128x64xf32> -> vector<128x64xf32>
    %c0_64 = arith.constant 0 : index
    %c0_65 = arith.constant 0 : index
    %105 = vector.load %arg23[%c0_64, %c0_65] : memref<1x64xf32, #tpu.memory_space<vmem>>, vector<1x64xf32>
    %106 = vector.broadcast %105 : vector<1x64xf32> to vector<128x64xf32>
    %107 = arith.addf %104, %106 : vector<128x64xf32>
    %108 = vector.extract_strided_slice %107 {offsets = [0, 0], sizes = [128, 32], strides = [1, 1]} : vector<128x64xf32> to vector<128x32xf32>
    %cst_66 = arith.constant 0.000000e+00 : f32
    %109 = vector.broadcast %cst_66 : f32 to vector<128x32xf32>
    %110 = arith.cmpf ogt, %108, %109 : vector<128x32xf32>
    %cst_67 = arith.constant 2.000000e-01 : f32
    %111 = vector.broadcast %cst_67 : f32 to vector<128x32xf32>
    %112 = arith.mulf %111, %108 : vector<128x32xf32>
    %113 = arith.select %110, %108, %112 : vector<128x32xi1>, vector<128x32xf32>
    %114 = vector.extract_strided_slice %107 {offsets = [0, 32], sizes = [128, 32], strides = [1, 1]} : vector<128x64xf32> to vector<128x32xf32>
    %c0_68 = arith.constant 0 : index
    %c0_69 = arith.constant 0 : index
    %115 = vector.load %arg24[%c0_68, %c0_69] : memref<32x32xf32, #tpu.memory_space<vmem>>, vector<32x32xf32>
    %cst_70 = arith.constant dense<0.000000e+00> : vector<128x32xf32>
    %116 = tpu.matmul %113, %115, %cst_70 {dimension_numbers = #tpu.dot_dimension_numbers<[1], [0], [0], [1], [0, 0, 1, 1], [], []>} : vector<128x32xf32>, vector<32x32xf32>, vector<128x32xf32> -> vector<128x32xf32>
    %117 = arith.addf %114, %116 : vector<128x32xf32>
    %cst_71 = arith.constant 0.000000e+00 : f32
    %118 = vector.broadcast %cst_71 : f32 to vector<128x32xf32>
    %119 = arith.cmpf ogt, %117, %118 : vector<128x32xf32>
    %cst_72 = arith.constant 2.000000e-01 : f32
    %120 = vector.broadcast %cst_72 : f32 to vector<128x32xf32>
    %121 = arith.mulf %120, %117 : vector<128x32xf32>
    %122 = arith.select %119, %117, %121 : vector<128x32xi1>, vector<128x32xf32>
    %c0_73 = arith.constant 0 : index
    %c0_74 = arith.constant 0 : index
    %123 = vector.load %arg25[%c0_73, %c0_74] : memref<128x32xf32, #tpu.memory_space<vmem>>, vector<128x32xf32>
    tpu.vector_store %arg25[%c0_73, %c0_74], %122 {strides = array<i32>} : memref<128x32xf32, #tpu.memory_space<vmem>>, vector<128x32xf32>,
    return
  }
  func.func @transform_0(%arg0: i32) -> (i32, i32) {
    %c0_i32 = arith.constant 0 : i32
    %c0_i32_0 = arith.constant 0 : i32
    return %arg0, %c0_i32 : i32, i32
  }
  func.func @transform_1(%arg0: i32) -> (i32, i32) {
    %c0_i32 = arith.constant 0 : i32
    %c0_i32_0 = arith.constant 0 : i32
    return %arg0, %c0_i32 : i32, i32
  }
  func.func @transform_2(%arg0: i32) -> (i32, i32) {
    %c0_i32 = arith.constant 0 : i32
    %c0_i32_0 = arith.constant 0 : i32
    return %arg0, %c0_i32 : i32, i32
  }
  func.func @transform_3(%arg0: i32) -> (i32, i32) {
    %c0_i32 = arith.constant 0 : i32
    %c0_i32_0 = arith.constant 0 : i32
    return %arg0, %c0_i32 : i32, i32
  }
  func.func @transform_4(%arg0: i32) -> (i32, i32) {
    %c0_i32 = arith.constant 0 : i32
    %c0_i32_0 = arith.constant 0 : i32
    %c0_i32_1 = arith.constant 0 : i32
    return %c0_i32, %c0_i32_0 : i32, i32
  }
  func.func @transform_5(%arg0: i32) -> (i32, i32) {
    %c0_i32 = arith.constant 0 : i32
    %c0_i32_0 = arith.constant 0 : i32
    %c0_i32_1 = arith.constant 0 : i32
    return %c0_i32, %c0_i32_0 : i32, i32
  }
  func.func @transform_6(%arg0: i32) -> (i32, i32) {
    %c0_i32 = arith.constant 0 : i32
    %c0_i32_0 = arith.constant 0 : i32
    %c0_i32_1 = arith.constant 0 : i32
    return %c0_i32, %c0_i32_0 : i32, i32
  }
  func.func @transform_7(%arg0: i32) -> (i32, i32) {
    %c0_i32 = arith.constant 0 : i32
    %c0_i32_0 = arith.constant 0 : i32
    %c0_i32_1 = arith.constant 0 : i32
    return %c0_i32, %c0_i32_0 : i32, i32
  }
  func.func @transform_8(%arg0: i32) -> (i32, i32) {
    %c0_i32 = arith.constant 0 : i32
    %c0_i32_0 = arith.constant 0 : i32
    %c0_i32_1 = arith.constant 0 : i32
    return %c0_i32, %c0_i32_0 : i32, i32
  }
  func.func @transform_9(%arg0: i32) -> (i32, i32) {
    %c0_i32 = arith.constant 0 : i32
    %c0_i32_0 = arith.constant 0 : i32
    %c0_i32_1 = arith.constant 0 : i32
    return %c0_i32, %c0_i32_0 : i32, i32
  }
  func.func @transform_10(%arg0: i32) -> (i32, i32) {
    %c0_i32 = arith.constant 0 : i32
    %c0_i32_0 = arith.constant 0 : i32
    %c0_i32_1 = arith.constant 0 : i32
    return %c0_i32, %c0_i32_0 : i32, i32
  }
  func.func @transform_11(%arg0: i32) -> (i32, i32) {
    %c0_i32 = arith.constant 0 : i32
    %c0_i32_0 = arith.constant 0 : i32
    %c0_i32_1 = arith.constant 0 : i32
    return %c0_i32, %c0_i32_0 : i32, i32
  }
  func.func @transform_12(%arg0: i32) -> (i32, i32) {
    %c0_i32 = arith.constant 0 : i32
    %c0_i32_0 = arith.constant 0 : i32
    %c0_i32_1 = arith.constant 0 : i32
    return %c0_i32, %c0_i32_0 : i32, i32
  }
  func.func @transform_13(%arg0: i32) -> (i32, i32) {
    %c0_i32 = arith.constant 0 : i32
    %c0_i32_0 = arith.constant 0 : i32
    %c0_i32_1 = arith.constant 0 : i32
    return %c0_i32, %c0_i32_0 : i32, i32
  }
  func.func @transform_14(%arg0: i32) -> (i32, i32) {
    %c0_i32 = arith.constant 0 : i32
    %c0_i32_0 = arith.constant 0 : i32
    %c0_i32_1 = arith.constant 0 : i32
    return %c0_i32, %c0_i32_0 : i32, i32
  }
  func.func @transform_15(%arg0: i32) -> (i32, i32) {
    %c0_i32 = arith.constant 0 : i32
    %c0_i32_0 = arith.constant 0 : i32
    %c0_i32_1 = arith.constant 0 : i32
    return %c0_i32, %c0_i32_0 : i32, i32
  }
  func.func @transform_16(%arg0: i32) -> (i32, i32) {
    %c0_i32 = arith.constant 0 : i32
    %c0_i32_0 = arith.constant 0 : i32
    %c0_i32_1 = arith.constant 0 : i32
    return %c0_i32, %c0_i32_0 : i32, i32
  }
  func.func @transform_17(%arg0: i32) -> (i32, i32) {
    %c0_i32 = arith.constant 0 : i32
    %c0_i32_0 = arith.constant 0 : i32
    %c0_i32_1 = arith.constant 0 : i32
    return %c0_i32, %c0_i32_0 : i32, i32
  }
  func.func @transform_18(%arg0: i32) -> (i32, i32) {
    %c0_i32 = arith.constant 0 : i32
    %c0_i32_0 = arith.constant 0 : i32
    %c0_i32_1 = arith.constant 0 : i32
    return %c0_i32, %c0_i32_0 : i32, i32
  }
  func.func @transform_19(%arg0: i32) -> (i32, i32) {
    %c0_i32 = arith.constant 0 : i32
    %c0_i32_0 = arith.constant 0 : i32
    %c0_i32_1 = arith.constant 0 : i32
    return %c0_i32, %c0_i32_0 : i32, i32
  }
  func.func @transform_20(%arg0: i32) -> (i32, i32) {
    %c0_i32 = arith.constant 0 : i32
    %c0_i32_0 = arith.constant 0 : i32
    %c0_i32_1 = arith.constant 0 : i32
    return %c0_i32, %c0_i32_0 : i32, i32
  }
  func.func @transform_21(%arg0: i32) -> (i32, i32) {
    %c0_i32 = arith.constant 0 : i32
    %c0_i32_0 = arith.constant 0 : i32
    %c0_i32_1 = arith.constant 0 : i32
    return %c0_i32, %c0_i32_0 : i32, i32
  }
  func.func @transform_22(%arg0: i32) -> (i32, i32) {
    %c0_i32 = arith.constant 0 : i32
    %c0_i32_0 = arith.constant 0 : i32
    %c0_i32_1 = arith.constant 0 : i32
    return %c0_i32, %c0_i32_0 : i32, i32
  }
  func.func @transform_23(%arg0: i32) -> (i32, i32) {
    %c0_i32 = arith.constant 0 : i32
    %c0_i32_0 = arith.constant 0 : i32
    %c0_i32_1 = arith.constant 0 : i32
    return %c0_i32, %c0_i32_0 : i32, i32
  }
  func.func @transform_24(%arg0: i32) -> (i32, i32) {
    %c0_i32 = arith.constant 0 : i32
    %c0_i32_0 = arith.constant 0 : i32
    return %arg0, %c0_i32 : i32, i32
  }
}

</mosaic_0001>

<bundles_post_ra>
// kernel: gc_forward.2
= control target key start
LH: loop header
LB: loop body
LE: loop exit
PB: predicated region body
PF: predicated region fallthrough
CT: control target
= control target key end

     0   :  { %20 = vsyncpa [#allocation5], 0  ;;  %s6481_s0 = inlined_call_operand.vmem [shape: f32[128,24], index: 0, kind: input, shape index: {}]   ;;  %s6482_s1 = inlined_call_operand.vmem [shape: f32[128,16], index: 1, kind: input, shape index: {}]   ;;  %s6483_s2 = inlined_call_operand.vmem [shape: f32[3,3], index: 2, kind: input, shape index: {}]   ;;  %s6484_s3 = inlined_call_operand.vmem [shape: f32[3], index: 3, kind: input, shape index: {}]   ;;  %s6485_s4 = inlined_call_operand.vmem [shape: f32[3], index: 4, kind: input, shape index: {}]   ;;  %s6486_s5 = inlined_call_operand.<no memory space> [shape: f32[1], index: 5, kind: input, shape index: {}]   ;;  %s6487_s6 = inlined_call_operand.vmem [shape: f32[4], index: 6, kind: input, shape index: {}]   ;;  %s6488_s7 = inlined_call_operand.<no memory space> [shape: f32[1], index: 7, kind: input, shape index: {}]   ;;  %s6489_s8 = inlined_call_operand.vmem [shape: f32[16,16], index: 8, kind: input, shape index: {}]   ;;  %s6490_s9 = inlined_call_operand.vmem [shape: f32[3,16], index: 9, kind: input, shape index: {}]   ;;  %s6491_s10 = inlined_call_operand.vmem [shape: f32[1,16], index: 10, kind: input, shape index: {}]   ;;  %s6492_s11 = inlined_call_operand.vmem [shape: f32[1,16], index: 11, kind: input, shape index: {}]   ;;  %s6493_s12 = inlined_call_operand.vmem [shape: f32[1,16], index: 12, kind: input, shape index: {}]   ;;  %s6494_s13 = inlined_call_operand.vmem [shape: f32[128,16], index: 13, kind: output, shape index: {}]  }
   0x1   :  { %21 = vsyncpa [#allocation7], 0  ;;  %s43_s27 = sshll.u32 %s6484_s3, 4  ;;  %s44_s27 = int_to_ptr.vmem [resolvable:$true] %s43_s27 }
   0x2   :  { %22 = vsyncpa [#allocation10], 0  ;;  %s33_s30 = sshll.u32 %s6483_s2, 4  ;;  %s3532_s14 = scalar_lea.vmem %s44_s27, 16  ;;  %s34_s30 = int_to_ptr.vmem [resolvable:$true] %s33_s30 }
   0x3   :  { %p3533_p0 = scmp.ne.s32.totalorder %s44_s27, %s3532_s14  ;;  %p3537_p1 = scmp.lt.s32.totalorder %s44_s27, %s44_s27 }
   0x4   :  { %p3538_p2 = scmp.lt.s32.totalorder %s3532_s14, %s3532_s14 }
   0x6   :  { %p3539_p3 = por %p3538_p2, %p3537_p1 }
   0x8   :  { %p3540_p4 = pnand %p3539_p3, %p3533_p0 }
   0xa   :  { %3543 = shalt.err (!%p3540_p4)
}
   0xb   :  { %s3586_s15 = smov [#allocation6]   ;;  %s3544_s16 = scalar_lea.vmem %s34_s30, 64 }
   0xc   :  { %46 = dma.vmem_to_smem %s44_s27, 16, %s3586_s15, [#allocation7]  }
   0xd   :  { %p3545_p5 = scmp.ne.s32.totalorder %s34_s30, %s3544_s16  ;;  %p3549_p6 = scmp.lt.s32.totalorder %s34_s30, %s34_s30 }
   0xe   :  { %p3550_p7 = scmp.lt.s32.totalorder %s3544_s16, %s3544_s16 }
  0x10   :  { %p3551_p8 = por %p3550_p7, %p3549_p6 }
  0x12   :  { %p3552_p9 = pnand %p3551_p8, %p3545_p5 }
  0x14   :  { %3555 = shalt.err (!%p3552_p9)
}
  0x15   :  { %s3587_s3 = smov [#allocation4]   ;;  %s53_s18 = sshll.u32 %s6485_s4, 4  ;;  %s54_s18 = int_to_ptr.vmem [resolvable:$true] %s53_s18 }
  0x16   :  { %36 = dma.vmem_to_smem %s34_s30, 64, %s3587_s3, [#allocation5]  }
  0x17   :  { %s65_s21 = sshll.u32 %s6487_s6, 4  ;;  %s3556_s22 = scalar_lea.vmem %s54_s18, 16  ;;  %s66_s21 = int_to_ptr.vmem [resolvable:$true] %s65_s21 }
  0x18   :  { %p3557_p10 = scmp.ne.s32.totalorder %s54_s18, %s3556_s22  ;;  %p3561_p11 = scmp.lt.s32.totalorder %s54_s18, %s54_s18 }
  0x19   :  { %p3562_p12 = scmp.lt.s32.totalorder %s3556_s22, %s3556_s22 }
  0x1b   :  { %p3563_p13 = por %p3562_p12, %p3561_p11 }
  0x1d   :  { %p3564_p0 = pnand %p3563_p13, %p3557_p10 }
  0x1f   :  { %3567 = shalt.err (!%p3564_p0)
}
  0x20   :  { %s3588_s23 = smov [#allocation8]   ;;  %s3568_s24 = scalar_lea.vmem %s66_s21, 16 }
  0x21   :  { %56 = dma.vmem_to_smem %s54_s18, 16, %s3588_s23, [#allocation7]  }
  0x22   :  { %p3569_p1 = scmp.ne.s32.totalorder %s66_s21, %s3568_s24  ;;  %p3573_p2 = scmp.lt.s32.totalorder %s66_s21, %s66_s21 }
  0x23   :  { %p3574_p3 = scmp.lt.s32.totalorder %s3568_s24, %s3568_s24 }
  0x25   :  { %p3575_p4 = por %p3574_p3, %p3573_p2 }
  0x27   :  { %p3576_p5 = pnand %p3575_p4, %p3569_p1 }
  0x29   :  { %3579 = shalt.err (!%p3576_p5)
}
  0x2a   :  { %s3589_s4 = smov [#allocation9]  }
  0x2b   :  { %68 = dma.vmem_to_smem %s66_s21, 16, %s3589_s4, [#allocation10]  }
  0x2c   :  { %3580 = dma.done.wait [#allocation5], 64  }
  0x2d   :  { %3581 = vsyncadd [#allocation5], 4294967232 }
  0x2e   :  { %3582 = dma.done.wait [#allocation7], 32  }
  0x2f   :  { %3583 = vsyncadd [#allocation7], 4294967264 }
  0x30   :  { %3584 = dma.done.wait [#allocation10], 16  }
  0x31   :  { %3585 = vsyncadd [#allocation10], 4294967280 }
  0x32   :  { %93 = sfence }
  0x33   :  { %s3353_s6 = sld [smem:[#allocation4 + $0x80]]  ;;  %v3681_v0 = vld [vmem:[%s6481_s0 + $0x10] sm:$0xff]  ;;  %v3686_v1 = vld [vmem:[%s6481_s0] sm:$0xff]  ;;  %v3691_v3 = vld [vmem:[%s6481_s0 + $0x18] sm:$0xff]  ;;  %s3590_s16 = smov 124   ;;  %vm390_vm0 = vcmask 31744  }
  0x34   :  { %v3696_v4 = vld [vmem:[%s6481_s0 + $0x8] sm:$0xff]  ;;  %v3712_v10 = vld [vmem:[%s6481_s0 + $0x20] sm:$0xff]  ;;  %v3721_v13 = vld [vmem:[%s6481_s0 + $0x38] sm:$0xff]  ;;  %s3354_s3 = sld [smem:[#allocation4 + $0x100]]  ;;  %s3591_s20 = smov 120  }
  0x35   :  { %v3707_v9 = vld [vmem:[%s6481_s0 + $0x28] sm:$0xff]  ;;  %v3726_v14 = vld [vmem:[%s6481_s0 + $0x30] sm:$0xff]  ;;  %v3740_v18 = vld [vmem:[%s6481_s0 + $0x40] sm:$0xff]  ;;  %s111_s21 = sld [smem:[#allocation4]]  ;;  %s3357_s23 = sld [smem:[#allocation4 + $0x81]] }
  0x36   :  { %v3735_v17 = vld [vmem:[%s6481_s0 + $0x48] sm:$0xff]  ;;  %v3749_v21 = vld [vmem:[%s6481_s0 + $0x58] sm:$0xff]  ;;  %v3754_v22 = vld [vmem:[%s6481_s0 + $0x50] sm:$0xff]  ;;  %s110_s22 = sld [smem:[#allocation6]]  ;;  %s3358_s24 = sld [smem:[#allocation4 + $0x101]] }
  0x37   :  { %v3763_v25 = vld [vmem:[%s6481_s0 + $0x68] sm:$0xff]  ;;  %v3768_v26 = vld [vmem:[%s6481_s0 + $0x60] sm:$0xff]  ;;  %v3777_v29 = vld [vmem:[%s6481_s0 + $0x78] sm:$0xff]  ;;  %s3356_s4 = sld [smem:[#allocation4 + $0x1]]  ;;  %s3361_s25 = sld [smem:[#allocation4 + $0x82]] }
  0x38   :  { %v3782_v30 = vld [vmem:[%s6481_s0 + $0x70] sm:$0xff]  ;;  %s3362_s14 = sld [smem:[#allocation4 + $0x102]]  ;;  %s3593_s18 = smov 116  }
  0x39   :  { %v147_v2 = vstv %s3353_s6  ;;  %s3355_s6 = sld [smem:[#allocation6 + $0x1]]  ;;  %s3364_s27 = sld [smem:[#allocation8 + $0x2]] }
  0x3a   :  { %v150_v5 = vmul.f32 %v147_v2, %v3681_v0  ;;  %v148_v6 = vmul.f32 %v147_v2, %v3686_v1  ;;  %v151_v7 = vmul.f32 %v147_v2, %v3691_v3  ;;  %v149_v8 = vmul.f32 %v147_v2, %v3696_v4  ;;  %s3594_s29 = smov 112  }
  0x3b   :  { %v153_v11 = vmul.f32 %v147_v2, %v3707_v9  ;;  %v152_v12 = vmul.f32 %v147_v2, %v3712_v10  ;;  %v155_v15 = vmul.f32 %v147_v2, %v3721_v13  ;;  %v154_v16 = vmul.f32 %v147_v2, %v3726_v14 }
  0x3c   :  { %184 = vrot.lane.b32.xlu1 %v150_v5, %s3590_s16  ;;  %180 = vrot.lane.b32.xlu0 %v148_v6, %s3590_s16  ;;  %v157_v19 = vmul.f32 %v147_v2, %v3735_v17  ;;  %v156_v20 = vmul.f32 %v147_v2, %v3740_v18  ;;  %v159_v23 = vmul.f32 %v147_v2, %v3749_v21  ;;  %v245_v33 = vstv %s3354_s3 }
  0x3d   :  { %v158_v24 = vmul.f32 %v147_v2, %v3754_v22  ;;  %v161_v27 = vmul.f32 %v147_v2, %v3763_v25  ;;  %v160_v28 = vmul.f32 %v147_v2, %v3768_v26  ;;  %v163_v31 = vmul.f32 %v147_v2, %v3777_v29 }
  0x3e   :  { %v162_v32 = vmul.f32 %v147_v2, %v3782_v30  ;;  %v247_v34 = vmul.f32 %v245_v33, %v3696_v4  ;;  %v246_v35 = vmul.f32 %v245_v33, %v3686_v1  ;;  %v249_v36 = vmul.f32 %v245_v33, %v3691_v3 }
  0x3f   :  { %v248_v37 = vmul.f32 %v245_v33, %v3681_v0  ;;  %v251_v38 = vmul.f32 %v245_v33, %v3707_v9  ;;  %v250_v39 = vmul.f32 %v245_v33, %v3712_v10  ;;  %v253_v40 = vmul.f32 %v245_v33, %v3721_v13 }
  0x40   :  { %186 = vrot.lane.b32.xlu1 %v151_v7, %s3590_s16  ;;  %182 = vrot.lane.b32.xlu0 %v149_v8, %s3590_s16  ;;  %v252_v41 = vmul.f32 %v245_v33, %v3726_v14  ;;  %v255_v42 = vmul.f32 %v245_v33, %v3735_v17  ;;  %v254_v43 = vmul.f32 %v245_v33, %v3740_v18  ;;  %v3830_v60 = vstv %s111_s21  ;;  %s3365_s21 = sld [smem:[#allocation9 + $0x1]] }
  0x41   :  { %v257_v44 = vmul.f32 %v245_v33, %v3749_v21  ;;  %v256_v45 = vmul.f32 %v245_v33, %v3754_v22  ;;  %v259_v46 = vmul.f32 %v245_v33, %v3763_v25  ;;  %v258_v47 = vmul.f32 %v245_v33, %v3768_v26 }
  0x42   :  { %v261_v48 = vmul.f32 %v245_v33, %v3777_v29  ;;  %v260_v49 = vmul.f32 %v245_v33, %v3782_v30  ;;  %v113_v63 = vmul.f32 %v3830_v60, %v3686_v1  ;;  %v114_v2 = vmul.f32 %v3830_v60, %v3696_v4 }
  0x43   :  { %v3840_v5 = vstv %s110_s22  ;;  %v115_v8 = vmul.f32 %v3830_v60, %v3681_v0  ;;  %s3366_s22 = sld [smem:[#allocation9 + $0x2]] }
  0x44   :  { %190 = vrot.lane.b32.xlu1 %v153_v11, %s3590_s16  ;;  %188 = vrot.lane.b32.xlu0 %v152_v12, %s3590_s16  ;;  %v116_v11 = vmul.f32 %v3830_v60, %v3691_v3  ;;  %v130_v12 = vadd.f32 %v3840_v5, %v113_v63 }
  0x48   :  { %194 = vrot.lane.b32.xlu1 %v155_v15, %s3590_s16  ;;  %192 = vrot.lane.b32.xlu0 %v154_v16, %s3590_s16  ;;  %v131_v15 = vadd.f32 %v3840_v5, %v114_v2 }
  0x4c   :  { %198 = vrot.lane.b32.xlu1 %v157_v19, %s3590_s16  ;;  %196 = vrot.lane.b32.xlu0 %v156_v20, %s3590_s16  ;;  %v118_v20 = vmul.f32 %v3830_v60, %v3707_v9 }
  0x50   :  { %202 = vrot.lane.b32.xlu1 %v159_v23, %s3590_s16  ;;  %200 = vrot.lane.b32.xlu0 %v158_v24, %s3590_s16  ;;  %v117_v23 = vmul.f32 %v3830_v60, %v3712_v10  ;;  %v132_v24 = vadd.f32 %v3840_v5, %v115_v8 }
  0x54   :  { %206 = vrot.lane.b32.xlu1 %v161_v27, %s3590_s16  ;;  %204 = vrot.lane.b32.xlu0 %v160_v28, %s3590_s16  ;;  %v133_v27 = vadd.f32 %v3840_v5, %v116_v11 }
  0x58   :  { %210 = vrot.lane.b32.xlu1 %v163_v31, %s3590_s16  ;;  %208 = vrot.lane.b32.xlu0 %v162_v32, %s3590_s16  ;;  %v120_v32 = vmul.f32 %v3830_v60, %v3721_v13 }
  0x5c   :  { %280 = vrot.lane.b32.xlu1 %v247_v34, %s3591_s20  ;;  %278 = vrot.lane.b32.xlu0 %v246_v35, %s3591_s20  ;;  %v135_v35 = vadd.f32 %v3840_v5, %v118_v20  ;;  %v124_v20 = vmul.f32 %v3830_v60, %v3749_v21 }
  0x60   :  { %284 = vrot.lane.b32.xlu1 %v249_v36, %s3591_s20  ;;  %282 = vrot.lane.b32.xlu0 %v248_v37, %s3591_s20  ;;  %v134_v36 = vadd.f32 %v3840_v5, %v117_v23  ;;  %v123_v23 = vmul.f32 %v3830_v60, %v3754_v22 }
  0x64   :  { %288 = vrot.lane.b32.xlu1 %v251_v38, %s3591_s20  ;;  %286 = vrot.lane.b32.xlu0 %v250_v39, %s3591_s20 }
  0x68   :  { %292 = vrot.lane.b32.xlu1 %v253_v40, %s3591_s20  ;;  %290 = vrot.lane.b32.xlu0 %v252_v41, %s3591_s20  ;;  %v119_v41 = vmul.f32 %v3830_v60, %v3726_v14 }
  0x6a   :  { %v136_v63 = vadd.f32 %v3840_v5, %v119_v41  ;;  %v125_v41 = vmul.f32 %v3830_v60, %v3768_v26 }
  0x6c   :  { %296 = vrot.lane.b32.xlu1 %v255_v42, %s3591_s20  ;;  %294 = vrot.lane.b32.xlu0 %v254_v43, %s3591_s20 }
  0x70   :  { %300 = vrot.lane.b32.xlu1 %v257_v44, %s3591_s20  ;;  %298 = vrot.lane.b32.xlu0 %v256_v45, %s3591_s20  ;;  %v137_v44 = vadd.f32 %v3840_v5, %v120_v32  ;;  %v122_v45 = vmul.f32 %v3830_v60, %v3735_v17 }
  0x74   :  { %304 = vrot.lane.b32.xlu1 %v259_v46, %s3591_s20  ;;  %302 = vrot.lane.b32.xlu0 %v258_v47, %s3591_s20  ;;  %v121_v46 = vmul.f32 %v3830_v60, %v3740_v18 }
  0x78   :  { %308 = vrot.lane.b32.xlu1 %v261_v48, %s3591_s20  ;;  %306 = vrot.lane.b32.xlu0 %v260_v49, %s3591_s20 }
  0xae   :  { %v185_v50 = vpop.permute.xlu1 %184  ;;  %v181_v51 = vpop.permute.xlu0 %180 }
  0xaf   :  { %v228_v28 = vadd.f32 %v181_v51, %v130_v12  ;;  %v230_v39 = vadd.f32 %v185_v50, %v132_v24 }
  0xb2   :  { %v187_v52 = vpop.permute.xlu1 %186  ;;  %v183_v53 = vpop.permute.xlu0 %182 }
  0xb3   :  { %v229_v31 = vadd.f32 %v183_v53, %v131_v15  ;;  %v231_v40 = vadd.f32 %v187_v52, %v133_v27  ;;  %v139_v27 = vadd.f32 %v3840_v5, %v122_v45 }
  0xb6   :  { %v191_v54 = vpop.permute.xlu1 %190  ;;  %v189_v55 = vpop.permute.xlu0 %188 }
  0xb7   :  { %v233_v53 = vadd.f32 %v191_v54, %v135_v35  ;;  %v232_v11 = vadd.f32 %v189_v55, %v134_v36 }
  0xba   :  { %v3822_v56 = vpop.permute.xlu1 %194  ;;  %v3824_v57 = vpop.permute.xlu0 %192 }
  0xbb   :  { %v235_v55 = vadd.f32 %v3822_v56, %v137_v44 }
  0xbe   :  { %v3826_v58 = vpop.permute.xlu1 %198  ;;  %v3828_v59 = vpop.permute.xlu0 %196 }
  0xc2   :  { %v3832_v61 = vpop.permute.xlu1 %202  ;;  %v3834_v62 = vpop.permute.xlu0 %200 }
  0xc6   :  { %v3842_v6 = vpop.permute.xlu1 %206  ;;  %v3844_v7 = vpop.permute.xlu0 %204 }
  0xca   :  { %v3852_v16 = vpop.permute.xlu1 %210  ;;  %v3854_v19 = vpop.permute.xlu0 %208 }
  0xce   :  { %v281_v33 = vpop.permute.xlu1 %280  ;;  %v279_v34 = vpop.permute.xlu0 %278 }
  0xcf   :  { %v327_v37 = vadd.f32 %v281_v33, %v229_v31  ;;  %v326_v38 = vadd.f32 %v279_v34, %v228_v28  ;;  %v234_v33 = vadd.f32 %v3824_v57, %v136_v63  ;;  %v138_v34 = vadd.f32 %v3840_v5, %v121_v46 }
  0xd0   :  { %v140_v57 = vadd.f32 %v3840_v5, %v123_v23  ;;  %v237_v46 = vadd.f32 %v3826_v58, %v139_v27  ;;  %v142_v63 = vadd.f32 %v3840_v5, %v125_v41 }
  0xd1   :  { %vm343_vm1 = vcmp.gt.f32.partialorder %v327_v37, 0.0  ;;  %v359_v42 = vmul.f32 0.2, %v327_v37  ;;  %vm342_vm2 = vcmp.gt.f32.partialorder %v326_v38, 0.0  ;;  %v358_v43 = vmul.f32 0.2, %v326_v38 }
  0xd2   :  { %v285_v47 = vpop.permute.xlu1 %284  ;;  %v283_v48 = vpop.permute.xlu0 %282  ;;  %v238_v23 = vadd.f32 %v3834_v62, %v140_v57 }
  0xd3   :  { %v329_v49 = vadd.f32 %v285_v47, %v231_v40  ;;  %v328_v50 = vadd.f32 %v283_v48, %v230_v39  ;;  %v375_v51 = vsel %vm343_vm1, %v327_v37, %v359_v42  ;;  %v374_v52 = vsel %vm342_vm2, %v326_v38, %v358_v43 }
  0xd4   :  { %v394_v2 = vsel %vm390_vm0, %v375_v51, 0.0  ;;  %v391_v8 = vsel %vm390_vm0, %v374_v52, 0.0  ;;  %v141_v39 = vadd.f32 %v3840_v5, %v124_v20  ;;  %v126_v40 = vmul.f32 %v3830_v60, %v3763_v25 }
  0xd5   :  { %395 = vadd.xlane.f32.xlu1 %v394_v2  ;;  %392 = vadd.xlane.f32.xlu0 %v391_v8  ;;  %vm344_vm3 = vcmp.gt.f32.partialorder %v328_v50, 0.0  ;;  %v360_v12 = vmul.f32 0.2, %v328_v50  ;;  %v361_v15 = vmul.f32 0.2, %v329_v49  ;;  %vm345_vm4 = vcmp.gt.f32.partialorder %v329_v49, 0.0 }
  0xd6   :  { %v289_v24 = vpop.permute.xlu1 %288  ;;  %v287_v54 = vpop.permute.xlu0 %286  ;;  %v236_v47 = vadd.f32 %v3828_v59, %v138_v34  ;;  %v128_v2 = vmul.f32 %v3830_v60, %v3777_v29  ;;  %v127_v59 = vmul.f32 %v3830_v60, %v3782_v30  ;;  %v239_v20 = vadd.f32 %v3832_v61, %v141_v39 }
  0xd7   :  { %v331_v28 = vadd.f32 %v289_v24, %v233_v53  ;;  %v330_v31 = vadd.f32 %v287_v54, %v232_v11  ;;  %v376_v32 = vsel %vm344_vm3, %v328_v50, %v360_v12  ;;  %v377_v37 = vsel %vm345_vm4, %v329_v49, %v361_v15 }
  0xd8   :  { %v397_v35 = vsel %vm390_vm0, %v376_v32, 0.0  ;;  %v400_v49 = vsel %vm390_vm0, %v377_v37, 0.0  ;;  %v143_v53 = vadd.f32 %v3840_v5, %v126_v40  ;;  %v145_v32 = vadd.f32 %v3840_v5, %v128_v2 }
  0xd9   :  { %398 = vadd.xlane.f32.xlu0 %v397_v35  ;;  %vm346_vm5 = vcmp.gt.f32.partialorder %v330_v31, 0.0  ;;  %v362_v36 = vmul.f32 0.2, %v330_v31  ;;  %v363_v38 = vmul.f32 0.2, %v331_v28  ;;  %vm347_vm6 = vcmp.gt.f32.partialorder %v331_v28, 0.0 }
  0xda   :  { %v293_v56 = vpop.permute.xlu1 %292  ;;  %v291_v42 = vpop.permute.xlu0 %290  ;;  %v241_v35 = vadd.f32 %v3842_v6, %v143_v53  ;;  %v243_v6 = vadd.f32 %v3852_v16, %v145_v32 }
  0xdb   :  { %v333_v43 = vadd.f32 %v293_v56, %v235_v55  ;;  %v332_v44 = vadd.f32 %v291_v42, %v234_v33  ;;  %v378_v45 = vsel %vm346_vm5, %v330_v31, %v362_v36  ;;  %v379_v51 = vsel %vm347_vm6, %v331_v28, %v363_v38 }
  0xdc   :  { %v403_v48 = vsel %vm390_vm0, %v378_v45, 0.0  ;;  %v406_v54 = vsel %vm390_vm0, %v379_v51, 0.0  ;;  %v144_v33 = vadd.f32 %v3840_v5, %v127_v59  ;;  %v240_v36 = vadd.f32 %v3844_v7, %v142_v63 }
  0xdd   :  { %404 = vadd.xlane.f32.xlu1 %v403_v48  ;;  %401 = vadd.xlane.f32.xlu0 %v400_v49  ;;  %vm348_vm7 = vcmp.gt.f32.partialorder %v332_v44, 0.0  ;;  %v364_v50 = vmul.f32 0.2, %v332_v44  ;;  %v365_v52 = vmul.f32 0.2, %v333_v43  ;;  %vm349_vm8 = vcmp.gt.f32.partialorder %v333_v43, 0.0 }
  0xde   :  { %v297_v58 = vpop.permute.xlu1 %296  ;;  %v295_v8 = vpop.permute.xlu0 %294  ;;  %v242_v7 = vadd.f32 %v3854_v19, %v144_v33 }
  0xdf   :  { %v335_v11 = vadd.f32 %v297_v58, %v237_v46  ;;  %v334_v12 = vadd.f32 %v295_v8, %v236_v47  ;;  %v380_v15 = vsel %vm348_vm7, %v332_v44, %v364_v50  ;;  %v381_v28 = vsel %vm349_vm8, %v333_v43, %v365_v52 }
  0xe0   :  { %v409_v24 = vsel %vm390_vm0, %v380_v15, 0.0  ;;  %v412_v38 = vsel %vm390_vm0, %v381_v28, 0.0 }
  0xe1   :  { %410 = vadd.xlane.f32.xlu1 %v409_v24  ;;  %407 = vadd.xlane.f32.xlu0 %v406_v54  ;;  %vm350_vm9 = vcmp.gt.f32.partialorder %v334_v12, 0.0  ;;  %v366_v27 = vmul.f32 0.2, %v334_v12  ;;  %v367_v31 = vmul.f32 0.2, %v335_v11  ;;  %vm351_vm10 = vcmp.gt.f32.partialorder %v335_v11, 0.0 }
  0xe2   :  { %v301_v60 = vpop.permute.xlu1 %300  ;;  %v299_v55 = vpop.permute.xlu0 %298 }
  0xe3   :  { %v337_v61 = vadd.f32 %v301_v60, %v239_v20  ;;  %v336_v34 = vadd.f32 %v299_v55, %v238_v23  ;;  %v382_v62 = vsel %vm350_vm9, %v334_v12, %v366_v27  ;;  %v383_v40 = vsel %vm351_vm10, %v335_v11, %v367_v31 }
  0xe4   :  { %v415_v37 = vsel %vm390_vm0, %v382_v62, 0.0  ;;  %v418_v45 = vsel %vm390_vm0, %v383_v40, 0.0  ;;  %v493_v20 = vstv %s3357_s23  ;;  %s3360_s23 = sld [smem:[#allocation4 + $0x2]] }
  0xe5   :  { %416 = vadd.xlane.f32.xlu1 %v415_v37  ;;  %413 = vadd.xlane.f32.xlu0 %v412_v38  ;;  %vm352_vm11 = vcmp.gt.f32.partialorder %v336_v34, 0.0  ;;  %v368_v39 = vmul.f32 0.2, %v336_v34  ;;  %v369_v41 = vmul.f32 0.2, %v337_v61  ;;  %vm353_vm12 = vcmp.gt.f32.partialorder %v337_v61, 0.0 }
  0xe6   :  { %v305_v56 = vpop.permute.xlu1 %304  ;;  %v303_v42 = vpop.permute.xlu0 %302  ;;  %v494_v23 = vmul.f32 %v493_v20, %v3686_v1  ;;  %v496_v24 = vmul.f32 %v493_v20, %v3681_v0  ;;  %v497_v54 = vmul.f32 %v493_v20, %v3691_v3  ;;  %v495_v27 = vmul.f32 %v493_v20, %v3696_v4 }
  0xe7   :  { %v339_v5 = vadd.f32 %v305_v56, %v241_v35  ;;  %v338_v57 = vadd.f32 %v303_v42, %v240_v36  ;;  %v384_v43 = vsel %vm352_vm11, %v336_v34, %v368_v39  ;;  %v385_v47 = vsel %vm353_vm12, %v337_v61, %v369_v41 }
  0xe8   :  { %v421_v44 = vsel %vm390_vm0, %v384_v43, 0.0  ;;  %v424_v19 = vsel %vm390_vm0, %v385_v47, 0.0  ;;  %v499_v28 = vmul.f32 %v493_v20, %v3707_v9  ;;  %v498_v31 = vmul.f32 %v493_v20, %v3712_v10 }
  0xe9   :  { %422 = vadd.xlane.f32.xlu1 %v421_v44  ;;  %419 = vadd.xlane.f32.xlu0 %v418_v45  ;;  %vm354_vm13 = vcmp.gt.f32.partialorder %v338_v57, 0.0  ;;  %v370_v46 = vmul.f32 0.2, %v338_v57  ;;  %v371_v48 = vmul.f32 0.2, %v339_v5  ;;  %vm355_vm14 = vcmp.gt.f32.partialorder %v339_v5, 0.0 }
  0xea   :  { %v309_v49 = vpop.permute.xlu1 %308  ;;  %v307_v50 = vpop.permute.xlu0 %306  ;;  %v501_v32 = vmul.f32 %v493_v20, %v3721_v13  ;;  %v500_v60 = vmul.f32 %v493_v20, %v3726_v14  ;;  %v503_v55 = vmul.f32 %v493_v20, %v3735_v17  ;;  %v502_v33 = vmul.f32 %v493_v20, %v3740_v18 }
  0xeb   :  { %v341_v51 = vadd.f32 %v309_v49, %v243_v6  ;;  %v340_v52 = vadd.f32 %v307_v50, %v242_v7  ;;  %v386_v53 = vsel %vm354_vm13, %v338_v57, %v370_v46  ;;  %v387_v2 = vsel %vm355_vm14, %v339_v5, %v371_v48 }
  0xec   :  { %v427_v16 = vsel %vm390_vm0, %v386_v53, 0.0  ;;  %v430_v11 = vsel %vm390_vm0, %v387_v2, 0.0  ;;  %v505_v61 = vmul.f32 %v493_v20, %v3749_v21  ;;  %v504_v34 = vmul.f32 %v493_v20, %v3754_v22 }
  0xed   :  { %428 = vadd.xlane.f32.xlu1 %v427_v16  ;;  %425 = vadd.xlane.f32.xlu0 %v424_v19  ;;  %vm356_vm15 = vcmp.gt.f32.partialorder %v340_v52, 0.0  ;;  %v372_v63 = vmul.f32 0.2, %v340_v52  ;;  %v373_v58 = vmul.f32 0.2, %v341_v51  ;;  %vm357_vm1 = vcmp.gt.f32.partialorder %v341_v51, 0.0 }
  0xee   :  { %v507_v62 = vmul.f32 %v493_v20, %v3763_v25  ;;  %v506_v35 = vmul.f32 %v493_v20, %v3768_v26  ;;  %v509_v36 = vmul.f32 %v493_v20, %v3777_v29  ;;  %v508_v37 = vmul.f32 %v493_v20, %v3782_v30 }
  0xef   :  { %v388_v8 = vsel %vm356_vm15, %v340_v52, %v372_v63  ;;  %v389_v12 = vsel %vm357_vm1, %v341_v51, %v373_v58  ;;  %v591_v38 = vstv %s3358_s24  ;;  %s3359_s24 = sld [smem:[#allocation6 + $0x2]] }
  0xf0   :  { %v433_v59 = vsel %vm390_vm0, %v388_v8, 0.0  ;;  %v436_v15 = vsel %vm390_vm0, %v389_v12, 0.0  ;;  %v593_v39 = vmul.f32 %v591_v38, %v3696_v4  ;;  %v592_v40 = vmul.f32 %v591_v38, %v3686_v1 }
  0xf1   :  { %434 = vadd.xlane.f32.xlu1 %v433_v59  ;;  %431 = vadd.xlane.f32.xlu0 %v430_v11  ;;  %v595_v41 = vmul.f32 %v591_v38, %v3691_v3  ;;  %v594_v56 = vmul.f32 %v591_v38, %v3681_v0  ;;  %v597_v42 = vmul.f32 %v591_v38, %v3707_v9 }
  0xf2   :  { %v596_v5 = vmul.f32 %v591_v38, %v3712_v10  ;;  %v599_v57 = vmul.f32 %v591_v38, %v3721_v13  ;;  %v598_v43 = vmul.f32 %v591_v38, %v3726_v14  ;;  %v601_v6 = vmul.f32 %v591_v38, %v3735_v17 }
  0xf3   :  { %v600_v7 = vmul.f32 %v591_v38, %v3740_v18  ;;  %v603_v44 = vmul.f32 %v591_v38, %v3749_v21  ;;  %v602_v45 = vmul.f32 %v591_v38, %v3754_v22  ;;  %v605_v46 = vmul.f32 %v591_v38, %v3763_v25 }
  0xf4   :  { %v604_v47 = vmul.f32 %v591_v38, %v3768_v26  ;;  %v607_v48 = vmul.f32 %v591_v38, %v3777_v29  ;;  %v606_v49 = vmul.f32 %v591_v38, %v3782_v30 }
  0xf5   :  { %437 = vadd.xlane.f32.xlu0 %v436_v15 }
 0x102   :  { %526 = vrot.lane.b32.xlu1 %v494_v23, %s3590_s16 }
 0x106   :  { %530 = vrot.lane.b32.xlu1 %v496_v24, %s3590_s16 }
 0x10a   :  { %532 = vrot.lane.b32.xlu1 %v497_v54, %s3590_s16 }
 0x10b   :  { %528 = vrot.lane.b32.xlu0 %v495_v27, %s3590_s16 }
 0x10e   :  { %536 = vrot.lane.b32.xlu1 %v499_v28, %s3590_s16 }
 0x10f   :  { %534 = vrot.lane.b32.xlu0 %v498_v31, %s3590_s16 }
 0x112   :  { %540 = vrot.lane.b32.xlu1 %v501_v32, %s3590_s16 }
 0x113   :  { %538 = vrot.lane.b32.xlu0 %v500_v60, %s3590_s16 }
 0x116   :  { %544 = vrot.lane.b32.xlu1 %v503_v55, %s3590_s16 }
 0x117   :  { %542 = vrot.lane.b32.xlu0 %v502_v33, %s3590_s16 }
 0x11a   :  { %548 = vrot.lane.b32.xlu1 %v505_v61, %s3590_s16  ;;  %v4020_v61 = vstv %s3356_s4  ;;  %s4709_s4 = sld [smem:[#allocation8 + $0x1]] }
 0x11b   :  { %546 = vrot.lane.b32.xlu0 %v504_v34, %s3590_s16 }
 0x11e   :  { %552 = vrot.lane.b32.xlu1 %v507_v62, %s3590_s16 }
 0x11f   :  { %550 = vrot.lane.b32.xlu0 %v506_v35, %s3590_s16  ;;  %v459_v35 = vmul.f32 %v4020_v61, %v3686_v1  ;;  %v462_v1 = vmul.f32 %v4020_v61, %v3691_v3  ;;  %v465_v3 = vmul.f32 %v4020_v61, %v3726_v14 }
 0x122   :  { %556 = vrot.lane.b32.xlu1 %v509_v36, %s3590_s16  ;;  %v4028_v36 = vstv %s3355_s6 }
 0x123   :  { %554 = vrot.lane.b32.xlu0 %v508_v37, %s3590_s16  ;;  %v482_v14 = vadd.f32 %v4028_v36, %v465_v3 }
 0x126   :  { %626 = vrot.lane.b32.xlu1 %v593_v39, %s3591_s20  ;;  %v476_v39 = vadd.f32 %v4028_v36, %v459_v35 }
 0x127   :  { %624 = vrot.lane.b32.xlu0 %v592_v40, %s3591_s20  ;;  %v461_v40 = vmul.f32 %v4020_v61, %v3681_v0 }
 0x12a   :  { %630 = vrot.lane.b32.xlu1 %v595_v41, %s3591_s20  ;;  %v460_v41 = vmul.f32 %v4020_v61, %v3696_v4  ;;  %v464_v4 = vmul.f32 %v4020_v61, %v3707_v9 }
 0x12b   :  { %628 = vrot.lane.b32.xlu0 %v594_v56, %s3591_s20 }
 0x12e   :  { %634 = vrot.lane.b32.xlu1 %v597_v42, %s3591_s20 }
 0x12f   :  { %632 = vrot.lane.b32.xlu0 %v596_v5, %s3591_s20  ;;  %v463_v5 = vmul.f32 %v4020_v61, %v3712_v10 }
 0x132   :  { %638 = vrot.lane.b32.xlu1 %v599_v57, %s3591_s20 }
 0x133   :  { %636 = vrot.lane.b32.xlu0 %v598_v43, %s3591_s20  ;;  %v478_v43 = vadd.f32 %v4028_v36, %v461_v40 }
 0x136   :  { %642 = vrot.lane.b32.xlu1 %v601_v6, %s3591_s20  ;;  %v477_v6 = vadd.f32 %v4028_v36, %v460_v41 }
 0x137   :  { %640 = vrot.lane.b32.xlu0 %v600_v7, %s3591_s20 }
 0x13a   :  { %646 = vrot.lane.b32.xlu1 %v603_v44, %s3591_s20 }
 0x13b   :  { %644 = vrot.lane.b32.xlu0 %v602_v45, %s3591_s20  ;;  %v479_v45 = vadd.f32 %v4028_v36, %v462_v1 }
 0x13e   :  { %650 = vrot.lane.b32.xlu1 %v605_v46, %s3591_s20  ;;  %v480_v46 = vadd.f32 %v4028_v36, %v463_v5 }
 0x13f   :  { %648 = vrot.lane.b32.xlu0 %v604_v47, %s3591_s20 }
 0x142   :  { %654 = vrot.lane.b32.xlu1 %v607_v48, %s3591_s20 }
 0x143   :  { %652 = vrot.lane.b32.xlu0 %v606_v49, %s3591_s20  ;;  %v466_v49 = vmul.f32 %v4020_v61, %v3721_v13 }
 0x162   :  { %v3984_v50 = vpop.xlane.xlu0 %392  ;;  %v3986_v51 = vpop.xlane.xlu1 %395 }
 0x163   :  { %6542 = vst [vmem:[#allocation14_spill] sm:$0xff] %v3984_v50  ;;  %6543 = vst [vmem:[#allocation15_spill] sm:$0xff] %v3986_v51 }
 0x166   :  { %v3988_v52 = vpop.xlane.xlu0 %398 }
 0x167   :  { %6544 = vst [vmem:[#allocation16_spill] sm:$0xff] %v3988_v52 }
 0x16a   :  { %v3990_v53 = vpop.xlane.xlu1 %404  ;;  %v3992_v16 = vpop.xlane.xlu0 %401 }
 0x16b   :  { %6545 = vst [vmem:[#allocation17_spill] sm:$0xff] %v3990_v53  ;;  %6546 = vst [vmem:[#allocation18_spill] sm:$0xff] %v3992_v16 }
 0x16e   :  { %v3994_v19 = vpop.xlane.xlu1 %410  ;;  %v3996_v63 = vpop.xlane.xlu0 %407 }
 0x16f   :  { %6547 = vst [vmem:[#allocation19_spill] sm:$0xff] %v3994_v19  ;;  %6548 = vst [vmem:[#allocation20_spill] sm:$0xff] %v3996_v63 }
 0x172   :  { %v3998_v2 = vpop.xlane.xlu1 %416  ;;  %v4000_v58 = vpop.xlane.xlu0 %413 }
 0x173   :  { %6549 = vst [vmem:[#allocation21_spill] sm:$0xff] %v3998_v2  ;;  %6550 = vst [vmem:[#allocation22_spill] sm:$0xff] %v4000_v58 }
 0x176   :  { %v4002_v8 = vpop.xlane.xlu1 %422  ;;  %v4004_v59 = vpop.xlane.xlu0 %419 }
 0x177   :  { %6551 = vst [vmem:[#allocation23_spill] sm:$0xff] %v4002_v8  ;;  %6552 = vst [vmem:[#allocation24_spill] sm:$0xff] %v4004_v59 }
 0x17a   :  { %v4006_v11 = vpop.xlane.xlu1 %428  ;;  %v4008_v12 = vpop.xlane.xlu0 %425 }
 0x17b   :  { %6553 = vst [vmem:[#allocation25_spill] sm:$0xff] %v4006_v11  ;;  %6554 = vst [vmem:[#allocation26_spill] sm:$0xff] %v4008_v12 }
 0x17e   :  { %v4010_v15 = vpop.xlane.xlu1 %434  ;;  %v4012_v20 = vpop.xlane.xlu0 %431 }
 0x17f   :  { %6555 = vst [vmem:[#allocation27_spill] sm:$0xff] %v4010_v15  ;;  %6556 = vst [vmem:[#allocation28_spill] sm:$0xff] %v4012_v20 }
 0x182   :  { %v527_v23 = vpop.permute.xlu1 %526  ;;  %v4014_v24 = vpop.xlane.xlu0 %437 }
 0x183   :  { %6557 = vst [vmem:[#allocation29_spill] sm:$0xff] %v4014_v24  ;;  %v574_v57 = vadd.f32 %v527_v23, %v476_v39  ;;  %v467_v23 = vmul.f32 %v4020_v61, %v3740_v18  ;;  %v481_v39 = vadd.f32 %v4028_v36, %v464_v4  ;;  %v483_v18 = vadd.f32 %v4028_v36, %v466_v49 }
 0x186   :  { %v531_v54 = vpop.permute.xlu1 %530  ;;  %v529_v27 = vpop.permute.xlu0 %528 }
 0x187   :  { %v576_v10 = vadd.f32 %v531_v54, %v478_v43  ;;  %v575_v47 = vadd.f32 %v529_v27, %v477_v6  ;;  %v484_v43 = vadd.f32 %v4028_v36, %v467_v23  ;;  %v468_v6 = vmul.f32 %v4020_v61, %v3735_v17 }
 0x18a   :  { %v533_v28 = vpop.permute.xlu1 %532  ;;  %v535_v31 = vpop.permute.xlu0 %534 }
 0x18b   :  { %v577_v5 = vadd.f32 %v533_v28, %v479_v45  ;;  %v469_v28 = vmul.f32 %v4020_v61, %v3754_v22  ;;  %v485_v22 = vadd.f32 %v4028_v36, %v468_v6  ;;  %v472_v6 = vmul.f32 %v4020_v61, %v3763_v25 }
 0x18d   :  { %v486_v23 = vadd.f32 %v4028_v36, %v469_v28 }
 0x18e   :  { %v537_v32 = vpop.permute.xlu1 %536  ;;  %v539_v60 = vpop.permute.xlu0 %538 }
 0x18f   :  { %v579_v3 = vadd.f32 %v537_v32, %v481_v39  ;;  %v471_v32 = vmul.f32 %v4020_v61, %v3768_v26 }
 0x192   :  { %v4016_v55 = vpop.permute.xlu1 %540  ;;  %v4018_v33 = vpop.permute.xlu0 %542 }
 0x196   :  { %v4022_v34 = vpop.permute.xlu1 %544  ;;  %v4024_v62 = vpop.permute.xlu0 %546 }
 0x19a   :  { %v4030_v37 = vpop.permute.xlu1 %548  ;;  %v4032_v38 = vpop.permute.xlu0 %550 }
 0x19e   :  { %v4039_v56 = vpop.permute.xlu1 %552  ;;  %v4041_v42 = vpop.permute.xlu0 %554 }
 0x1a2   :  { %v4049_v7 = vpop.permute.xlu1 %556  ;;  %v625_v0 = vpop.permute.xlu0 %624 }
 0x1a3   :  { %v672_v44 = vadd.f32 %v625_v0, %v574_v57  ;;  %v578_v57 = vadd.f32 %v535_v31, %v480_v46 }
 0x1a5   :  { %vm688_vm2 = vcmp.gt.f32.partialorder %v672_v44, 0.0  ;;  %v704_v48 = vmul.f32 0.2, %v672_v44 }
 0x1a6   :  { %v627_v35 = vpop.permute.xlu1 %626  ;;  %v629_v9 = vpop.permute.xlu0 %628 }
 0x1a7   :  { %v673_v40 = vadd.f32 %v627_v35, %v575_v47  ;;  %v674_v41 = vadd.f32 %v629_v9, %v576_v10  ;;  %v720_v1 = vsel %vm688_vm2, %v672_v44, %v704_v48  ;;  %v580_v10 = vadd.f32 %v539_v60, %v482_v14 }
 0x1a8   :  { %v736_v54 = vsel %vm390_vm0, %v720_v1, 0.0  ;;  %v470_v35 = vmul.f32 %v4020_v61, %v3749_v21 }
 0x1a9   :  { %737 = vadd.xlane.f32.xlu0 %v736_v54  ;;  %vm689_vm3 = vcmp.gt.f32.partialorder %v673_v40, 0.0  ;;  %v705_v27 = vmul.f32 0.2, %v673_v40  ;;  %vm690_vm4 = vcmp.gt.f32.partialorder %v674_v41, 0.0  ;;  %v706_v13 = vmul.f32 0.2, %v674_v41 }
 0x1aa   :  { %v631_v31 = vpop.permute.xlu1 %630  ;;  %v633_v0 = vpop.permute.xlu0 %632 }
 0x1ab   :  { %v675_v4 = vadd.f32 %v631_v31, %v577_v5  ;;  %v676_v44 = vadd.f32 %v633_v0, %v578_v57  ;;  %v721_v45 = vsel %vm689_vm3, %v673_v40, %v705_v27  ;;  %v722_v46 = vsel %vm690_vm4, %v674_v41, %v706_v13 }
 0x1ac   :  { %v739_v47 = vsel %vm390_vm0, %v721_v45, 0.0  ;;  %v742_v48 = vsel %vm390_vm0, %v722_v46, 0.0  ;;  %v581_v5 = vadd.f32 %v4016_v55, %v483_v18  ;;  %v582_v57 = vadd.f32 %v4018_v33, %v484_v43 }
 0x1ad   :  { %740 = vadd.xlane.f32.xlu1 %v739_v47  ;;  %743 = vadd.xlane.f32.xlu0 %v742_v48  ;;  %vm691_vm5 = vcmp.gt.f32.partialorder %v675_v4, 0.0  ;;  %v707_v49 = vmul.f32 0.2, %v675_v4  ;;  %vm692_vm6 = vcmp.gt.f32.partialorder %v676_v44, 0.0  ;;  %v708_v17 = vmul.f32 0.2, %v676_v44 }
 0x1ae   :  { %v635_v60 = vpop.permute.xlu1 %634  ;;  %v637_v9 = vpop.permute.xlu0 %636  ;;  %v487_v27 = vadd.f32 %v4028_v36, %v470_v35  ;;  %v488_v13 = vadd.f32 %v4028_v36, %v471_v32  ;;  %v473_v55 = vmul.f32 %v4020_v61, %v3782_v30  ;;  %v474_v47 = vmul.f32 %v4020_v61, %v3777_v29 }
 0x1af   :  { %v677_v39 = vadd.f32 %v635_v60, %v579_v3  ;;  %v678_v40 = vadd.f32 %v637_v9, %v580_v10  ;;  %v723_v41 = vsel %vm691_vm5, %v675_v4, %v707_v49  ;;  %v724_v1 = vsel %vm692_vm6, %v676_v44, %v708_v17 }
 0x1b0   :  { %v745_v14 = vsel %vm390_vm0, %v723_v41, 0.0  ;;  %v748_v54 = vsel %vm390_vm0, %v724_v1, 0.0  ;;  %v583_v4 = vadd.f32 %v4022_v34, %v485_v22  ;;  %v584_v44 = vadd.f32 %v4024_v62, %v486_v23 }
 0x1b1   :  { %746 = vadd.xlane.f32.xlu0 %v745_v14  ;;  %749 = vadd.xlane.f32.xlu1 %v748_v54  ;;  %vm693_vm7 = vcmp.gt.f32.partialorder %v677_v39, 0.0  ;;  %v709_v21 = vmul.f32 0.2, %v677_v39  ;;  %vm694_vm8 = vcmp.gt.f32.partialorder %v678_v40, 0.0  ;;  %v710_v26 = vmul.f32 0.2, %v678_v40 }
 0x1b2   :  { %v639_v33 = vpop.permute.xlu1 %638  ;;  %v641_v18 = vpop.permute.xlu0 %640  ;;  %v489_v3 = vadd.f32 %v4028_v36, %v472_v6  ;;  %v490_v10 = vadd.f32 %v4028_v36, %v473_v55  ;;  %v585_v23 = vadd.f32 %v4030_v37, %v487_v27  ;;  %v586_v35 = vadd.f32 %v4032_v38, %v488_v13 }
 0x1b3   :  { %v679_v43 = vadd.f32 %v639_v33, %v581_v5  ;;  %v680_v28 = vadd.f32 %v641_v18, %v582_v57  ;;  %v725_v31 = vsel %vm693_vm7, %v677_v39, %v709_v21  ;;  %v726_v0 = vsel %vm694_vm8, %v678_v40, %v710_v26 }
 0x1b4   :  { %v751_v45 = vsel %vm390_vm0, %v725_v31, 0.0  ;;  %v754_v46 = vsel %vm390_vm0, %v726_v0, 0.0  ;;  %v491_v61 = vadd.f32 %v4028_v36, %v474_v47  ;;  %v587_v38 = vadd.f32 %v4039_v56, %v489_v3 }
 0x1b5   :  { %752 = vadd.xlane.f32.xlu0 %v751_v45  ;;  %755 = vadd.xlane.f32.xlu1 %v754_v46  ;;  %vm695_vm9 = vcmp.gt.f32.partialorder %v679_v43, 0.0  ;;  %v711_v25 = vmul.f32 0.2, %v679_v43  ;;  %vm696_vm10 = vcmp.gt.f32.partialorder %v680_v28, 0.0  ;;  %v712_v30 = vmul.f32 0.2, %v680_v28 }
 0x1b6   :  { %v643_v34 = vpop.permute.xlu1 %642  ;;  %v645_v48 = vpop.permute.xlu0 %644  ;;  %v588_v57 = vadd.f32 %v4041_v42, %v490_v10  ;;  %v589_v56 = vadd.f32 %v4049_v7, %v491_v61  ;;  %v837_v3 = vstv %s3361_s25  ;;  %v4114_v10 = vld [vmem:[%s6481_s0] sm:$0xff]  ;;  %v4162_v61 = vld [vmem:[%s6481_s0 + $0x30] sm:$0xff] }
 0x1b7   :  { %v681_v62 = vadd.f32 %v643_v34, %v583_v4  ;;  %v682_v49 = vadd.f32 %v645_v48, %v584_v44  ;;  %v727_v17 = vsel %vm695_vm9, %v679_v43, %v711_v25  ;;  %v728_v22 = vsel %vm696_vm10, %v680_v28, %v712_v30  ;;  %v4121_v34 = vld [vmem:[%s6481_s0 + $0x10] sm:$0xff] }
 0x1b8   :  { %v757_v32 = vsel %vm390_vm0, %v727_v17, 0.0  ;;  %v760_v60 = vsel %vm390_vm0, %v728_v22, 0.0  ;;  %v838_v47 = vmul.f32 %v4114_v10, %v837_v3  ;;  %v840_v48 = vmul.f32 %v4121_v34, %v837_v3  ;;  %v4134_v17 = vld [vmem:[%s6481_s0 + $0x8] sm:$0xff] }
 0x1b9   :  { %758 = vadd.xlane.f32.xlu0 %v757_v32  ;;  %761 = vadd.xlane.f32.xlu1 %v760_v60  ;;  %vm697_vm11 = vcmp.gt.f32.partialorder %v681_v62, 0.0  ;;  %v713_v9 = vmul.f32 0.2, %v681_v62  ;;  %vm698_vm12 = vcmp.gt.f32.partialorder %v682_v49, 0.0  ;;  %v714_v29 = vmul.f32 0.2, %v682_v49 }
 0x1ba   :  { %v647_v39 = vpop.permute.xlu1 %646  ;;  %v649_v40 = vpop.permute.xlu0 %648  ;;  %v839_v22 = vmul.f32 %v4134_v17, %v837_v3  ;;  %v4148_v32 = vld [vmem:[%s6481_s0 + $0x20] sm:$0xff] }
 0x1bb   :  { %v683_v41 = vadd.f32 %v647_v39, %v585_v23  ;;  %v684_v1 = vadd.f32 %v649_v40, %v586_v35  ;;  %v729_v5 = vsel %vm697_vm11, %v681_v62, %v713_v9  ;;  %v730_v37 = vsel %vm698_vm12, %v682_v49, %v714_v29  ;;  %v4128_v62 = vld [vmem:[%s6481_s0 + $0x18] sm:$0xff]  ;;  %v4141_v23 = vld [vmem:[%s6481_s0 + $0x28] sm:$0xff] }
 0x1bc   :  { %v763_v14 = vsel %vm390_vm0, %v729_v5, 0.0  ;;  %v766_v54 = vsel %vm390_vm0, %v730_v37, 0.0  ;;  %v841_v49 = vmul.f32 %v4128_v62, %v837_v3  ;;  %v843_v35 = vmul.f32 %v4141_v23, %v837_v3  ;;  %v4155_v9 = vld [vmem:[%s6481_s0 + $0x38] sm:$0xff]  ;;  %v4169_v40 = vld [vmem:[%s6481_s0 + $0x48] sm:$0xff] }
 0x1bd   :  { %764 = vadd.xlane.f32.xlu0 %v763_v14  ;;  %767 = vadd.xlane.f32.xlu1 %v766_v54  ;;  %vm699_vm13 = vcmp.gt.f32.partialorder %v683_v41, 0.0  ;;  %v715_v21 = vmul.f32 0.2, %v683_v41  ;;  %vm700_vm14 = vcmp.gt.f32.partialorder %v684_v1, 0.0  ;;  %v716_v36 = vmul.f32 0.2, %v684_v1 }
 0x1be   :  { %v651_v26 = vpop.permute.xlu1 %650  ;;  %v653_v27 = vpop.permute.xlu0 %652  ;;  %v842_v60 = vmul.f32 %v4148_v32, %v837_v3  ;;  %v845_v29 = vmul.f32 %v4155_v9, %v837_v3  ;;  %v844_v39 = vmul.f32 %v4162_v61, %v837_v3  ;;  %v4183_v37 = vld [vmem:[%s6481_s0 + $0x58] sm:$0xff]  ;;  %v4197_v54 = vld [vmem:[%s6481_s0 + $0x68] sm:$0xff] }
 0x1bf   :  { %v685_v13 = vadd.f32 %v651_v26, %v587_v38  ;;  %v686_v6 = vadd.f32 %v653_v27, %v588_v57  ;;  %v731_v55 = vsel %vm699_vm13, %v683_v41, %v715_v21  ;;  %v732_v33 = vsel %vm700_vm14, %v684_v1, %v716_v36  ;;  %v4176_v1 = vld [vmem:[%s6481_s0 + $0x40] sm:$0xff]  ;;  %v4190_v57 = vld [vmem:[%s6481_s0 + $0x50] sm:$0xff]  ;;  %v4211_v27 = vld [vmem:[%s6481_s0 + $0x78] sm:$0xff] }
 0x1c0   :  { %v769_v42 = vsel %vm390_vm0, %v731_v55, 0.0  ;;  %v772_v18 = vsel %vm390_vm0, %v732_v33, 0.0  ;;  %v847_v41 = vmul.f32 %v4169_v40, %v837_v3  ;;  %v846_v5 = vmul.f32 %v4176_v1, %v837_v3  ;;  %v4204_v36 = vld [vmem:[%s6481_s0 + $0x60] sm:$0xff] }
 0x1c1   :  { %770 = vadd.xlane.f32.xlu0 %v769_v42  ;;  %773 = vadd.xlane.f32.xlu1 %v772_v18  ;;  %vm701_vm15 = vcmp.gt.f32.partialorder %v685_v13, 0.0  ;;  %v717_v43 = vmul.f32 0.2, %v685_v13  ;;  %vm702_vm1 = vcmp.gt.f32.partialorder %v686_v6, 0.0  ;;  %v718_v28 = vmul.f32 0.2, %v686_v6 }
 0x1c2   :  { %v655_v31 = vpop.permute.xlu1 %654  ;;  %v849_v38 = vmul.f32 %v4183_v37, %v837_v3  ;;  %v848_v14 = vmul.f32 %v4190_v57, %v837_v3  ;;  %v851_v21 = vmul.f32 %v4197_v54, %v837_v3  ;;  %v850_v26 = vmul.f32 %v4204_v36, %v837_v3 }
 0x1c3   :  { %v687_v0 = vadd.f32 %v655_v31, %v589_v56  ;;  %v733_v4 = vsel %vm701_vm15, %v685_v13, %v717_v43  ;;  %v734_v44 = vsel %vm702_vm1, %v686_v6, %v718_v28  ;;  %v853_v13 = vmul.f32 %v4211_v27, %v837_v3  ;;  %v4218_v6 = vld [vmem:[%s6481_s0 + $0x70] sm:$0xff] }
 0x1c4   :  { %v775_v45 = vsel %vm390_vm0, %v733_v4, 0.0  ;;  %v778_v46 = vsel %vm390_vm0, %v734_v44, 0.0  ;;  %v852_v55 = vmul.f32 %v4218_v6, %v837_v3  ;;  %v935_v33 = vstv %s3362_s14  ;;  %s1705_s14 = sld [smem:[#allocation8]] }
 0x1c5   :  { %776 = vadd.xlane.f32.xlu0 %v775_v45  ;;  %779 = vadd.xlane.f32.xlu1 %v778_v46  ;;  %vm703_vm2 = vcmp.gt.f32.partialorder %v687_v0, 0.0  ;;  %v719_v7 = vmul.f32 0.2, %v687_v0  ;;  %v937_v56 = vmul.f32 %v4134_v17, %v935_v33  ;;  %v936_v42 = vmul.f32 %v4114_v10, %v935_v33 }
 0x1c6   :  { %v939_v18 = vmul.f32 %v4128_v62, %v935_v33  ;;  %v938_v43 = vmul.f32 %v4121_v34, %v935_v33  ;;  %v941_v28 = vmul.f32 %v4141_v23, %v935_v33  ;;  %v940_v31 = vmul.f32 %v4148_v32, %v935_v33 }
 0x1c7   :  { %v735_v25 = vsel %vm703_vm2, %v687_v0, %v719_v7  ;;  %v943_v0 = vmul.f32 %v4155_v9, %v935_v33  ;;  %v942_v4 = vmul.f32 %v4162_v61, %v935_v33  ;;  %v945_v44 = vmul.f32 %v4169_v40, %v935_v33 }
 0x1c8   :  { %v781_v30 = vsel %vm390_vm0, %v735_v25, 0.0  ;;  %v944_v45 = vmul.f32 %v4176_v1, %v935_v33  ;;  %v947_v46 = vmul.f32 %v4183_v37, %v935_v33  ;;  %v946_v7 = vmul.f32 %v4190_v57, %v935_v33 }
 0x1c9   :  { %782 = vadd.xlane.f32.xlu0 %v781_v30  ;;  %v949_v25 = vmul.f32 %v4197_v54, %v935_v33  ;;  %v948_v30 = vmul.f32 %v4204_v36, %v935_v33  ;;  %v951_v3 = vmul.f32 %v4211_v27, %v935_v33 }
 0x1d6   :  { %870 = vrot.lane.b32.xlu1 %v838_v47, %s3590_s16  ;;  %v950_v47 = vmul.f32 %v4218_v6, %v935_v33 }
 0x1da   :  { %874 = vrot.lane.b32.xlu1 %v840_v48, %s3590_s16 }
 0x1de   :  { %876 = vrot.lane.b32.xlu1 %v841_v49, %s3590_s16 }
 0x1df   :  { %872 = vrot.lane.b32.xlu0 %v839_v22, %s3590_s16 }
 0x1e2   :  { %880 = vrot.lane.b32.xlu1 %v843_v35, %s3590_s16 }
 0x1e3   :  { %878 = vrot.lane.b32.xlu0 %v842_v60, %s3590_s16 }
 0x1e6   :  { %884 = vrot.lane.b32.xlu1 %v845_v29, %s3590_s16 }
 0x1e7   :  { %882 = vrot.lane.b32.xlu0 %v844_v39, %s3590_s16 }
 0x1ea   :  { %888 = vrot.lane.b32.xlu1 %v847_v41, %s3590_s16 }
 0x1eb   :  { %886 = vrot.lane.b32.xlu0 %v846_v5, %s3590_s16 }
 0x1ee   :  { %892 = vrot.lane.b32.xlu1 %v849_v38, %s3590_s16 }
 0x1ef   :  { %890 = vrot.lane.b32.xlu0 %v848_v14, %s3590_s16 }
 0x1f2   :  { %896 = vrot.lane.b32.xlu1 %v851_v21, %s3590_s16 }
 0x1f3   :  { %894 = vrot.lane.b32.xlu0 %v850_v26, %s3590_s16 }
 0x1f6   :  { %900 = vrot.lane.b32.xlu1 %v853_v13, %s3590_s16 }
 0x1f7   :  { %898 = vrot.lane.b32.xlu0 %v852_v55, %s3590_s16 }
 0x1fa   :  { %970 = vrot.lane.b32.xlu1 %v937_v56, %s3591_s20 }
 0x1fb   :  { %968 = vrot.lane.b32.xlu0 %v936_v42, %s3591_s20 }
 0x1fe   :  { %974 = vrot.lane.b32.xlu1 %v939_v18, %s3591_s20 }
 0x1ff   :  { %972 = vrot.lane.b32.xlu0 %v938_v43, %s3591_s20 }
 0x202   :  { %978 = vrot.lane.b32.xlu1 %v941_v28, %s3591_s20 }
 0x203   :  { %976 = vrot.lane.b32.xlu0 %v940_v31, %s3591_s20 }
 0x206   :  { %982 = vrot.lane.b32.xlu1 %v943_v0, %s3591_s20 }
 0x207   :  { %980 = vrot.lane.b32.xlu0 %v942_v4, %s3591_s20 }
 0x20a   :  { %986 = vrot.lane.b32.xlu1 %v945_v44, %s3591_s20 }
 0x20b   :  { %984 = vrot.lane.b32.xlu0 %v944_v45, %s3591_s20  ;;  %v4291_v45 = vstv %s3360_s23 }
 0x20c   :  { %v805_v20 = vmul.f32 %v4121_v34, %v4291_v45  ;;  %v804_v15 = vmul.f32 %v4134_v17, %v4291_v45  ;;  %v806_v59 = vmul.f32 %v4128_v62, %v4291_v45  ;;  %v807_v8 = vmul.f32 %v4148_v32, %v4291_v45 }
 0x20d   :  { %v808_v16 = vmul.f32 %v4141_v23, %v4291_v45  ;;  %v809_v50 = vmul.f32 %v4162_v61, %v4291_v45 }
 0x20e   :  { %990 = vrot.lane.b32.xlu1 %v947_v46, %s3591_s20 }
 0x20f   :  { %988 = vrot.lane.b32.xlu0 %v946_v7, %s3591_s20 }
 0x212   :  { %994 = vrot.lane.b32.xlu1 %v949_v25, %s3591_s20  ;;  %v803_v25 = vmul.f32 %v4114_v10, %v4291_v45 }
 0x213   :  { %992 = vrot.lane.b32.xlu0 %v948_v30, %s3591_s20  ;;  %v4299_v30 = vstv %s3359_s24 }
 0x214   :  { %v820_v24 = vadd.f32 %v4299_v30, %v803_v25  ;;  %v822_v2 = vadd.f32 %v4299_v30, %v805_v20  ;;  %v821_v25 = vadd.f32 %v4299_v30, %v804_v15  ;;  %v823_v52 = vadd.f32 %v4299_v30, %v806_v59 }
 0x215   :  { %v824_v51 = vadd.f32 %v4299_v30, %v807_v8  ;;  %v810_v15 = vmul.f32 %v4155_v9, %v4291_v45  ;;  %v811_v20 = vmul.f32 %v4176_v1, %v4291_v45 }
 0x216   :  { %998 = vrot.lane.b32.xlu1 %v951_v3, %s3591_s20 }
 0x217   :  { %996 = vrot.lane.b32.xlu0 %v950_v47, %s3591_s20 }
 0x236   :  { %v4255_v48 = vpop.xlane.xlu0 %737 }
 0x23a   :  { %v4257_v49 = vpop.xlane.xlu1 %740  ;;  %v4259_v22 = vpop.xlane.xlu0 %743 }
 0x23e   :  { %v4261_v35 = vpop.xlane.xlu1 %749  ;;  %v4263_v60 = vpop.xlane.xlu0 %746 }
 0x242   :  { %v4265_v29 = vpop.xlane.xlu1 %755  ;;  %v4267_v39 = vpop.xlane.xlu0 %752 }
 0x246   :  { %v4269_v41 = vpop.xlane.xlu1 %761  ;;  %v4271_v5 = vpop.xlane.xlu0 %758 }
 0x247   :  { %6558 = vst [vmem:[#allocation30_spill] sm:$0xff] %v4269_v41  ;;  %v828_v41 = vadd.f32 %v4299_v30, %v811_v20 }
 0x24a   :  { %v4273_v38 = vpop.xlane.xlu1 %767  ;;  %v4275_v14 = vpop.xlane.xlu0 %764 }
 0x24b   :  { %6559 = vst [vmem:[#allocation31_spill] sm:$0xff] %v4273_v38 }
 0x24e   :  { %v4277_v21 = vpop.xlane.xlu1 %773  ;;  %v4279_v26 = vpop.xlane.xlu0 %770 }
 0x24f   :  { %6560 = vst [vmem:[#allocation32_spill] sm:$0xff] %v4277_v21  ;;  %6561 = vst [vmem:[#allocation33_spill] sm:$0xff] %v4279_v26  ;;  %v827_v26 = vadd.f32 %v4299_v30, %v810_v15 }
 0x252   :  { %v4281_v13 = vpop.xlane.xlu1 %779  ;;  %v4283_v55 = vpop.xlane.xlu0 %776 }
 0x253   :  { %6562 = vst [vmem:[#allocation34_spill] sm:$0xff] %v4281_v13  ;;  %6563 = vst [vmem:[#allocation35_spill] sm:$0xff] %v4283_v55 }
 0x256   :  { %v871_v33 = vpop.permute.xlu1 %870  ;;  %v4285_v56 = vpop.xlane.xlu0 %782 }
 0x257   :  { %6564 = vst [vmem:[#allocation36_spill] sm:$0xff] %v4285_v56  ;;  %v918_v58 = vadd.f32 %v871_v33, %v820_v24 }
 0x25a   :  { %v875_v42 = vpop.permute.xlu1 %874  ;;  %v873_v18 = vpop.permute.xlu0 %872 }
 0x25b   :  { %v920_v13 = vadd.f32 %v875_v42, %v822_v2  ;;  %v919_v24 = vadd.f32 %v873_v18, %v821_v25  ;;  %v826_v2 = vadd.f32 %v4299_v30, %v809_v50 }
 0x25e   :  { %v877_v43 = vpop.permute.xlu1 %876  ;;  %v879_v28 = vpop.permute.xlu0 %878 }
 0x25f   :  { %v921_v55 = vadd.f32 %v877_v43, %v823_v52  ;;  %v922_v38 = vadd.f32 %v879_v28, %v824_v51  ;;  %v813_v52 = vmul.f32 %v4190_v57, %v4291_v45 }
 0x262   :  { %v881_v31 = vpop.permute.xlu1 %880  ;;  %v883_v0 = vpop.permute.xlu0 %882 }
 0x263   :  { %v924_v28 = vadd.f32 %v883_v0, %v826_v2 }
 0x266   :  { %v4287_v4 = vpop.permute.xlu1 %884  ;;  %v4289_v44 = vpop.permute.xlu0 %886 }
 0x26a   :  { %v4293_v46 = vpop.permute.xlu1 %888  ;;  %v4295_v7 = vpop.permute.xlu0 %890 }
 0x26e   :  { %v4301_v3 = vpop.permute.xlu1 %892  ;;  %v4303_v47 = vpop.permute.xlu0 %894 }
 0x272   :  { %v4310_v12 = vpop.permute.xlu1 %896  ;;  %v4312_v11 = vpop.permute.xlu0 %898 }
 0x276   :  { %v4320_v63 = vpop.permute.xlu1 %900  ;;  %v969_v19 = vpop.permute.xlu0 %968 }
 0x277   :  { %v1016_v53 = vadd.f32 %v969_v19, %v918_v58  ;;  %v825_v19 = vadd.f32 %v4299_v30, %v808_v16  ;;  %v812_v16 = vmul.f32 %v4169_v40, %v4291_v45 }
 0x279   :  { %v1048_v33 = vmul.f32 0.2, %v1016_v53  ;;  %vm1032_vm3 = vcmp.gt.f32.partialorder %v1016_v53, 0.0  ;;  %v923_v43 = vadd.f32 %v881_v31, %v825_v19 }
 0x27a   :  { %v971_v56 = vpop.permute.xlu1 %970  ;;  %v973_v21 = vpop.permute.xlu0 %972 }
 0x27b   :  { %v1017_v58 = vadd.f32 %v971_v56, %v919_v24  ;;  %v1018_v59 = vadd.f32 %v973_v21, %v920_v13  ;;  %v1064_v8 = vsel %vm1032_vm3, %v1016_v53, %v1048_v33 }
 0x27c   :  { %v1080_v42 = vsel %vm390_vm0, %v1064_v8, 0.0  ;;  %v829_v8 = vadd.f32 %v4299_v30, %v812_v16 }
 0x27d   :  { %v1049_v18 = vmul.f32 0.2, %v1017_v58  ;;  %v1050_v25 = vmul.f32 0.2, %v1018_v59  ;;  %1081 = vadd.xlane.f32.xlu0 %v1080_v42  ;;  %vm1033_vm4 = vcmp.gt.f32.partialorder %v1017_v58, 0.0  ;;  %vm1034_vm5 = vcmp.gt.f32.partialorder %v1018_v59, 0.0 }
 0x27e   :  { %v975_v51 = vpop.permute.xlu1 %974  ;;  %v977_v53 = vpop.permute.xlu0 %976  ;;  %v830_v42 = vadd.f32 %v4299_v30, %v813_v52 }
 0x27f   :  { %v1019_v50 = vadd.f32 %v975_v51, %v921_v55  ;;  %v1020_v21 = vadd.f32 %v977_v53, %v922_v38  ;;  %v1065_v13 = vsel %vm1033_vm4, %v1017_v58, %v1049_v18  ;;  %v1066_v56 = vsel %vm1034_vm5, %v1018_v59, %v1050_v25 }
 0x280   :  { %v1083_v24 = vsel %vm390_vm0, %v1065_v13, 0.0  ;;  %v1086_v33 = vsel %vm390_vm0, %v1066_v56, 0.0  ;;  %v814_v38 = vmul.f32 %v4183_v37, %v4291_v45  ;;  %v815_v55 = vmul.f32 %v4204_v36, %v4291_v45 }
 0x281   :  { %v1051_v15 = vmul.f32 0.2, %v1019_v50  ;;  %v1052_v20 = vmul.f32 0.2, %v1020_v21  ;;  %1084 = vadd.xlane.f32.xlu1 %v1083_v24  ;;  %1087 = vadd.xlane.f32.xlu0 %v1086_v33  ;;  %vm1035_vm6 = vcmp.gt.f32.partialorder %v1019_v50, 0.0  ;;  %vm1036_vm7 = vcmp.gt.f32.partialorder %v1020_v21, 0.0 }
 0x282   :  { %v979_v31 = vpop.permute.xlu1 %978  ;;  %v981_v0 = vpop.permute.xlu0 %980  ;;  %v925_v18 = vadd.f32 %v4287_v4, %v827_v26  ;;  %v926_v25 = vadd.f32 %v4289_v44, %v828_v41  ;;  %v831_v13 = vadd.f32 %v4299_v30, %v814_v38  ;;  %v832_v56 = vadd.f32 %v4299_v30, %v815_v55 }
 0x283   :  { %v1021_v19 = vadd.f32 %v979_v31, %v923_v43  ;;  %v1022_v58 = vadd.f32 %v981_v0, %v924_v28  ;;  %v1067_v59 = vsel %vm1035_vm6, %v1019_v50, %v1051_v15  ;;  %v1068_v2 = vsel %vm1036_vm7, %v1020_v21, %v1052_v20 }
 0x284   :  { %v1089_v16 = vsel %vm390_vm0, %v1067_v59, 0.0  ;;  %v1092_v52 = vsel %vm390_vm0, %v1068_v2, 0.0  ;;  %v816_v50 = vmul.f32 %v4197_v54, %v4291_v45  ;;  %v817_v41 = vmul.f32 %v4218_v6, %v4291_v45 }
 0x285   :  { %v1053_v51 = vmul.f32 0.2, %v1021_v19  ;;  %v1054_v53 = vmul.f32 0.2, %v1022_v58  ;;  %1090 = vadd.xlane.f32.xlu0 %v1089_v16  ;;  %1093 = vadd.xlane.f32.xlu1 %v1092_v52  ;;  %vm1037_vm8 = vcmp.gt.f32.partialorder %v1021_v19, 0.0  ;;  %vm1038_vm9 = vcmp.gt.f32.partialorder %v1022_v58, 0.0 }
 0x286   :  { %v983_v26 = vpop.permute.xlu1 %982  ;;  %v985_v4 = vpop.permute.xlu0 %984  ;;  %v927_v24 = vadd.f32 %v4293_v46, %v829_v8  ;;  %v928_v33 = vadd.f32 %v4295_v7, %v830_v42  ;;  %v833_v31 = vadd.f32 %v4299_v30, %v816_v50  ;;  %v834_v0 = vadd.f32 %v4299_v30, %v817_v41 }
 0x287   :  { %v1023_v44 = vadd.f32 %v983_v26, %v925_v18  ;;  %v1024_v21 = vadd.f32 %v985_v4, %v926_v25  ;;  %v1069_v43 = vsel %vm1037_vm8, %v1021_v19, %v1053_v51  ;;  %v1070_v28 = vsel %vm1038_vm9, %v1022_v58, %v1054_v53 }
 0x288   :  { %v1095_v15 = vsel %vm390_vm0, %v1069_v43, 0.0  ;;  %v1098_v20 = vsel %vm390_vm0, %v1070_v28, 0.0  ;;  %v818_v19 = vmul.f32 %v4211_v27, %v4291_v45  ;;  %v929_v2 = vadd.f32 %v4301_v3, %v831_v13 }
 0x289   :  { %v1055_v38 = vmul.f32 0.2, %v1023_v44  ;;  %v1056_v55 = vmul.f32 0.2, %v1024_v21  ;;  %1096 = vadd.xlane.f32.xlu0 %v1095_v15  ;;  %1099 = vadd.xlane.f32.xlu1 %v1098_v20  ;;  %vm1039_vm10 = vcmp.gt.f32.partialorder %v1023_v44, 0.0  ;;  %vm1040_vm11 = vcmp.gt.f32.partialorder %v1024_v21, 0.0 }
 0x28a   :  { %v987_v46 = vpop.permute.xlu1 %986  ;;  %v989_v8 = vpop.permute.xlu0 %988  ;;  %v930_v18 = vadd.f32 %v4303_v47, %v832_v56  ;;  %v835_v45 = vadd.f32 %v4299_v30, %v818_v19  ;;  %v931_v47 = vadd.f32 %v4310_v12, %v833_v31  ;;  %v932_v13 = vadd.f32 %v4312_v11, %v834_v0 }
 0x28b   :  { %v1025_v7 = vadd.f32 %v987_v46, %v927_v24  ;;  %v1026_v42 = vadd.f32 %v989_v8, %v928_v33  ;;  %v1071_v58 = vsel %vm1039_vm10, %v1023_v44, %v1055_v38  ;;  %v1072_v59 = vsel %vm1040_vm11, %v1024_v21, %v1056_v55 }
 0x28c   :  { %v1101_v25 = vsel %vm390_vm0, %v1071_v58, 0.0  ;;  %v1104_v16 = vsel %vm390_vm0, %v1072_v59, 0.0  ;;  %v933_v12 = vadd.f32 %v4320_v63, %v835_v45  ;;  %v4418_v45 = vmul.f32 %v4155_v9, %v4155_v9 }
 0x28d   :  { %v1057_v52 = vmul.f32 0.2, %v1025_v7  ;;  %v1058_v51 = vmul.f32 0.2, %v1026_v42  ;;  %1102 = vadd.xlane.f32.xlu0 %v1101_v25  ;;  %1105 = vadd.xlane.f32.xlu1 %v1104_v16  ;;  %vm1041_vm12 = vcmp.gt.f32.partialorder %v1025_v7, 0.0  ;;  %vm1042_vm13 = vcmp.gt.f32.partialorder %v1026_v42, 0.0 }
 0x28e   :  { %v991_v53 = vpop.permute.xlu1 %990  ;;  %v993_v50 = vpop.permute.xlu0 %992  ;;  %v4396_v25 = vmul.f32 %v4128_v62, %v4128_v62  ;;  %v4400_v16 = vmul.f32 %v4134_v17, %v4134_v17  ;;  %6568 = vst [vmem:[#allocation40_spill] sm:$0xff] %v4418_v45  ;;  %vm2931_vm4 = vcmask 130048  }
 0x28f   :  { %v1027_v41 = vadd.f32 %v991_v53, %v929_v2  ;;  %v1028_v26 = vadd.f32 %v993_v50, %v930_v18  ;;  %v1073_v4 = vsel %vm1041_vm12, %v1025_v7, %v1057_v52  ;;  %v1074_v3 = vsel %vm1042_vm13, %v1026_v42, %v1058_v51 }
 0x290   :  { %v1107_v56 = vsel %vm390_vm0, %v1073_v4, 0.0  ;;  %v1110_v44 = vsel %vm390_vm0, %v1074_v3, 0.0  ;;  %v4384_v2 = vmul.f32 %v4114_v10, %v4114_v10  ;;  %v4390_v18 = vmul.f32 %v4121_v34, %v4121_v34  ;;  %6565 = vst [vmem:[#allocation37_spill] sm:$0xff] %v4396_v25 }
 0x291   :  { %v1059_v21 = vmul.f32 0.2, %v1027_v41  ;;  %v1060_v43 = vmul.f32 0.2, %v1028_v26  ;;  %1108 = vadd.xlane.f32.xlu0 %v1107_v56  ;;  %1111 = vadd.xlane.f32.xlu1 %v1110_v44  ;;  %vm1043_vm14 = vcmp.gt.f32.partialorder %v1027_v41, 0.0  ;;  %vm1044_vm15 = vcmp.gt.f32.partialorder %v1028_v26, 0.0 }
 0x292   :  { %v995_v30 = vpop.permute.xlu1 %994  ;;  %v997_v28 = vpop.permute.xlu0 %996  ;;  %v4406_v52 = vmul.f32 %v4141_v23, %v4141_v23  ;;  %v4412_v51 = vmul.f32 %v4148_v32, %v4148_v32  ;;  %v4424_v53 = vmul.f32 %v4162_v61, %v4162_v61  ;;  %v4430_v50 = vmul.f32 %v4169_v40, %v4169_v40 }
 0x293   :  { %v1029_v24 = vadd.f32 %v995_v30, %v931_v47  ;;  %v1030_v33 = vadd.f32 %v997_v28, %v932_v13  ;;  %v1075_v15 = vsel %vm1043_vm14, %v1027_v41, %v1059_v21  ;;  %v1076_v20 = vsel %vm1044_vm15, %v1028_v26, %v1060_v43 }
 0x294   :  { %v1113_v11 = vsel %vm390_vm0, %v1075_v15, 0.0  ;;  %v1116_v38 = vsel %vm390_vm0, %v1076_v20, 0.0  ;;  %6566 = vst [vmem:[#allocation38_spill] sm:$0xff] %v4406_v52  ;;  %6567 = vst [vmem:[#allocation39_spill] sm:$0xff] %v4412_v51  ;;  %v4436_v41 = vmul.f32 %v4176_v1, %v4176_v1  ;;  %v4442_v26 = vmul.f32 %v4183_v37, %v4183_v37 }
 0x295   :  { %v1061_v55 = vmul.f32 0.2, %v1029_v24  ;;  %v1062_v31 = vmul.f32 0.2, %v1030_v33  ;;  %1114 = vadd.xlane.f32.xlu0 %v1113_v11  ;;  %1117 = vadd.xlane.f32.xlu1 %v1116_v38  ;;  %vm1045_vm1 = vcmp.gt.f32.partialorder %v1029_v24, 0.0  ;;  %vm1046_vm2 = vcmp.gt.f32.partialorder %v1030_v33, 0.0 }
 0x296   :  { %v999_v0 = vpop.permute.xlu1 %998  ;;  %6569 = vst [vmem:[#allocation41_spill] sm:$0xff] %v4424_v53  ;;  %6570 = vst [vmem:[#allocation42_spill] sm:$0xff] %v4430_v50  ;;  %v4448_v4 = vmul.f32 %v4190_v57, %v4190_v57  ;;  %v4454_v3 = vmul.f32 %v4197_v54, %v4197_v54  ;;  %v4460_v47 = vmul.f32 %v4204_v36, %v4204_v36  ;;  %v785_v44 = vmul.f32 0.25, %v4257_v49 }
 0x297   :  { %v1031_v19 = vadd.f32 %v999_v0, %v933_v12  ;;  %v1077_v46 = vsel %vm1045_vm1, %v1029_v24, %v1061_v55  ;;  %v1078_v8 = vsel %vm1046_vm2, %v1030_v33, %v1062_v31  ;;  %6571 = vst [vmem:[#allocation43_spill] sm:$0xff] %v4436_v41  ;;  %6572 = vst [vmem:[#allocation44_spill] sm:$0xff] %v4442_v26  ;;  %v784_v21 = vmul.f32 0.25, %v4255_v48  ;;  %v6579_v55 = vld [vmem:[#allocation33_spill] sm:$0xff]  ;;  %v6580_v0 = vld [vmem:[#allocation31_spill] sm:$0xff] }
 0x298   :  { %v1119_v7 = vsel %vm390_vm0, %v1077_v46, 0.0  ;;  %v1122_v42 = vsel %vm390_vm0, %v1078_v8, 0.0  ;;  %6573 = vst [vmem:[#allocation45_spill] sm:$0xff] %v4448_v4  ;;  %6574 = vst [vmem:[#allocation46_spill] sm:$0xff] %v4454_v3  ;;  %v4466_v13 = vmul.f32 %v4211_v27, %v4211_v27  ;;  %v4472_v56 = vmul.f32 %v4218_v6, %v4218_v6  ;;  %v6581_v8 = vld [vmem:[#allocation35_spill] sm:$0xff] }
 0x299   :  { %v1063_v58 = vmul.f32 0.2, %v1031_v19  ;;  %1120 = vadd.xlane.f32.xlu0 %v1119_v7  ;;  %1123 = vadd.xlane.f32.xlu1 %v1122_v42  ;;  %vm1047_vm3 = vcmp.gt.f32.partialorder %v1031_v19, 0.0  ;;  %6575 = vst [vmem:[#allocation47_spill] sm:$0xff] %v4460_v47  ;;  %v1449_v43 = vmul.f32 %v4134_v17, %v785_v44  ;;  %v4514_v30 = vmul.f32 0.25, %v4263_v60 }
 0x29a   :  { %6576 = vst [vmem:[#allocation48_spill] sm:$0xff] %v4466_v13  ;;  %6577 = vst [vmem:[#allocation49_spill] sm:$0xff] %v4472_v56  ;;  %v1448_v28 = vmul.f32 %v4114_v10, %v784_v21  ;;  %v786_v24 = vmul.f32 0.25, %v4259_v22  ;;  %v4523_v49 = vmul.f32 0.25, %v4267_v39  ;;  %v788_v15 = vmul.f32 0.25, %v4261_v35 }
 0x29b   :  { %v1079_v63 = vsel %vm1047_vm3, %v1031_v19, %v1063_v58  ;;  %v1451_v48 = vmul.f32 %v4128_v62, %v4514_v30  ;;  %v4532_v60 = vmul.f32 0.25, %v4271_v5  ;;  %v4536_v12 = vmul.f32 0.25, %v4265_v29  ;;  %v6578_v5 = vld [vmem:[#allocation30_spill] sm:$0xff]  ;;  %v6582_v58 = vld [vmem:[#allocation32_spill] sm:$0xff] }
 0x29c   :  { %v1125_v59 = vsel %vm390_vm0, %v1079_v63, 0.0  ;;  %v1450_v33 = vmul.f32 %v4121_v34, %v786_v24  ;;  %v1453_v22 = vmul.f32 %v4141_v23, %v4523_v49  ;;  %v1452_v20 = vmul.f32 %v4148_v32, %v788_v15 }
 0x29d   :  { %1126 = vadd.xlane.f32.xlu0 %v1125_v59  ;;  %v1455_v35 = vmul.f32 %v4155_v9, %v4532_v60  ;;  %v4543_v39 = vmul.f32 0.25, %v4275_v14  ;;  %v1454_v11 = vmul.f32 %v4162_v61, %v4536_v12  ;;  %v4548_v38 = vmul.f32 0.25, %v6578_v5 }
 0x29e   :  { %v4555_v31 = vmul.f32 0.25, %v6579_v55  ;;  %v4560_v19 = vmul.f32 0.25, %v6580_v0  ;;  %v4567_v7 = vmul.f32 0.25, %v6581_v8  ;;  %v4572_v63 = vmul.f32 0.25, %v6582_v58  ;;  %v6587_v55 = vld [vmem:[#allocation15_spill] sm:$0xff]  ;;  %v6589_v0 = vld [vmem:[#allocation16_spill] sm:$0xff] }
 0x29f   :  { %v1457_v29 = vmul.f32 %v4169_v40, %v4543_v39  ;;  %v1456_v14 = vmul.f32 %v4176_v1, %v4548_v38  ;;  %v1176_v5 = vmul.f32 %v784_v21, %v784_v21  ;;  %v1178_v21 = vmul.f32 %v786_v24, %v786_v24 }
 0x2a0   :  { %v1459_v46 = vmul.f32 %v4183_v37, %v4555_v31  ;;  %v1458_v42 = vmul.f32 %v4190_v57, %v4560_v19  ;;  %v1461_v59 = vmul.f32 %v4197_v54, %v4567_v7 }
 0x2aa   :  { %1288 = vrot.lane.b32.xlu1 %v4384_v2, %s3590_s16 }
 0x2ae   :  { %1292 = vrot.lane.b32.xlu1 %v4390_v18, %s3590_s16 }
 0x2b2   :  { %1294 = vrot.lane.b32.xlu1 %v4396_v25, %s3590_s16 }
 0x2b3   :  { %1290 = vrot.lane.b32.xlu0 %v4400_v16, %s3590_s16 }
 0x2b6   :  { %1298 = vrot.lane.b32.xlu1 %v4406_v52, %s3590_s16 }
 0x2b7   :  { %1296 = vrot.lane.b32.xlu0 %v4412_v51, %s3590_s16 }
 0x2ba   :  { %1302 = vrot.lane.b32.xlu1 %v4418_v45, %s3590_s16 }
 0x2bb   :  { %1300 = vrot.lane.b32.xlu0 %v4424_v53, %s3590_s16 }
 0x2be   :  { %1306 = vrot.lane.b32.xlu1 %v4430_v50, %s3590_s16 }
 0x2bf   :  { %1304 = vrot.lane.b32.xlu0 %v4436_v41, %s3590_s16 }
 0x2c2   :  { %1310 = vrot.lane.b32.xlu1 %v4442_v26, %s3590_s16 }
 0x2c3   :  { %1308 = vrot.lane.b32.xlu0 %v4448_v4, %s3590_s16 }
 0x2c6   :  { %1314 = vrot.lane.b32.xlu1 %v4454_v3, %s3590_s16 }
 0x2c7   :  { %1312 = vrot.lane.b32.xlu0 %v4460_v47, %s3590_s16 }
 0x2ca   :  { %1318 = vrot.lane.b32.xlu1 %v4466_v13, %s3590_s16 }
 0x2cb   :  { %1316 = vrot.lane.b32.xlu0 %v4472_v56, %s3590_s16 }
 0x2ce   :  { %1354 = vrot.lane.b32.xlu1 %v4400_v16, %s3591_s20 }
 0x2cf   :  { %1352 = vrot.lane.b32.xlu0 %v4384_v2, %s3591_s20 }
 0x2d2   :  { %1358 = vrot.lane.b32.xlu1 %v4396_v25, %s3591_s20 }
 0x2d3   :  { %1356 = vrot.lane.b32.xlu0 %v4390_v18, %s3591_s20 }
 0x2d6   :  { %1362 = vrot.lane.b32.xlu1 %v4406_v52, %s3591_s20 }
 0x2d7   :  { %1360 = vrot.lane.b32.xlu0 %v4412_v51, %s3591_s20 }
 0x2da   :  { %1366 = vrot.lane.b32.xlu1 %v4418_v45, %s3591_s20 }
 0x2db   :  { %1364 = vrot.lane.b32.xlu0 %v4424_v53, %s3591_s20 }
 0x2de   :  { %1370 = vrot.lane.b32.xlu1 %v4430_v50, %s3591_s20 }
 0x2df   :  { %1368 = vrot.lane.b32.xlu0 %v4436_v41, %s3591_s20 }
 0x2e2   :  { %1374 = vrot.lane.b32.xlu1 %v4442_v26, %s3591_s20 }
 0x2e3   :  { %1372 = vrot.lane.b32.xlu0 %v4448_v4, %s3591_s20 }
 0x2e6   :  { %1378 = vrot.lane.b32.xlu1 %v4454_v3, %s3591_s20  ;;  %v1179_v3 = vmul.f32 %v4514_v30, %v4514_v30 }
 0x2e7   :  { %1376 = vrot.lane.b32.xlu0 %v4460_v47, %s3591_s20 }
 0x2ea   :  { %1382 = vrot.lane.b32.xlu1 %v4466_v13, %s3591_s20  ;;  %v6593_v13 = vld [vmem:[#allocation18_spill] sm:$0xff] }
 0x2eb   :  { %1380 = vrot.lane.b32.xlu0 %v4472_v56, %s3591_s20  ;;  %v4614_v56 = vmul.f32 0.25, %v6593_v13 }
 0x2ed   :  { %6594 = vst [vmem:[#allocation32_spill] sm:$0xff] %v4614_v56 }
 0x2ee   :  { %1482 = vrot.lane.b32.xlu1 %v1449_v43, %s3590_s16  ;;  %v6583_v43 = vld [vmem:[#allocation36_spill] sm:$0xff] }
 0x2ef   :  { %1480 = vrot.lane.b32.xlu0 %v1448_v28, %s3590_s16  ;;  %v4579_v28 = vmul.f32 0.25, %v6583_v43 }
 0x2f2   :  { %1486 = vrot.lane.b32.xlu1 %v1451_v48, %s3590_s16  ;;  %v1460_v48 = vmul.f32 %v4204_v36, %v4572_v63 }
 0x2f3   :  { %1484 = vrot.lane.b32.xlu0 %v1450_v33, %s3590_s16  ;;  %v6584_v33 = vld [vmem:[#allocation34_spill] sm:$0xff] }
 0x2f6   :  { %1490 = vrot.lane.b32.xlu1 %v1453_v22, %s3590_s16  ;;  %v4584_v22 = vmul.f32 0.25, %v6584_v33 }
 0x2f7   :  { %1488 = vrot.lane.b32.xlu0 %v1452_v20, %s3590_s16  ;;  %v6585_v20 = vld [vmem:[#allocation14_spill] sm:$0xff] }
 0x2fa   :  { %1494 = vrot.lane.b32.xlu1 %v1455_v35, %s3590_s16  ;;  %v4588_v35 = vmul.f32 0.25, %v6585_v20 }
 0x2fb   :  { %1492 = vrot.lane.b32.xlu0 %v1454_v11, %s3590_s16  ;;  %v1463_v11 = vmul.f32 %v4211_v27, %v4579_v28 }
 0x2fc   :  { %6586 = vst [vmem:[#allocation30_spill] sm:$0xff] %v4588_v35 }
 0x2fe   :  { %1498 = vrot.lane.b32.xlu1 %v1457_v29, %s3590_s16  ;;  %v1462_v29 = vmul.f32 %v4218_v6, %v4584_v22 }
 0x2ff   :  { %1496 = vrot.lane.b32.xlu0 %v1456_v14, %s3590_s16  ;;  %v4596_v14 = vmul.f32 0.25, %v6587_v55 }
 0x301   :  { %6588 = vst [vmem:[#allocation33_spill] sm:$0xff] %v4596_v14  ;;  %v1145_v20 = vmul.f32 %v4596_v14, %v4596_v14 }
 0x302   :  { %1502 = vrot.lane.b32.xlu1 %v1459_v46, %s3590_s16  ;;  %v4599_v46 = vmul.f32 0.25, %v6589_v0 }
 0x303   :  { %1500 = vrot.lane.b32.xlu0 %v1458_v42, %s3590_s16  ;;  %v1144_v42 = vmul.f32 %v4588_v35, %v4588_v35 }
 0x304   :  { %6590 = vst [vmem:[#allocation31_spill] sm:$0xff] %v4599_v46  ;;  %v1146_v55 = vmul.f32 %v4599_v46, %v4599_v46 }
 0x305   :  { %v1192_v43 = vadd.f32 %v1176_v5, %v1144_v42 }
 0x306   :  { %1506 = vrot.lane.b32.xlu1 %v1461_v59, %s3590_s16  ;;  %v1177_v59 = vmul.f32 %v785_v44, %v785_v44  ;;  %v1194_v42 = vadd.f32 %v1178_v21, %v1146_v55 }
 0x307   :  { %1504 = vrot.lane.b32.xlu0 %v1460_v48, %s3590_s16 }
 0x30a   :  { %1510 = vrot.lane.b32.xlu1 %v1463_v11, %s3590_s16  ;;  %v1082_v8 = vpop.xlane.xlu0 %1081  ;;  %v6591_v11 = vld [vmem:[#allocation17_spill] sm:$0xff] }
 0x30b   :  { %v1128_v58 = vmul.f32 0.25, %v1082_v8  ;;  %1508 = vrot.lane.b32.xlu0 %v1462_v29, %s3590_s16  ;;  %v4611_v0 = vmul.f32 0.25, %v6591_v11 }
 0x30d   :  { %v1208_v48 = vmul.f32 %v1128_v58, %v1128_v58  ;;  %v1544_v33 = vmul.f32 %v4114_v10, %v1128_v58  ;;  %6592 = vst [vmem:[#allocation35_spill] sm:$0xff] %v4611_v0  ;;  %v1193_v10 = vadd.f32 %v1177_v59, %v1145_v20  ;;  %v1180_v58 = vmul.f32 %v788_v15, %v788_v15  ;;  %v6598_v59 = vld [vmem:[#allocation20_spill] sm:$0xff] }
 0x30e   :  { %v1085_v8 = vpop.xlane.xlu1 %1084  ;;  %v1088_v29 = vpop.xlane.xlu0 %1087  ;;  %v4631_v15 = vmul.f32 0.25, %v6598_v59 }
 0x30f   :  { %v1129_v44 = vmul.f32 0.25, %v1085_v8  ;;  %v1130_v24 = vmul.f32 0.25, %v1088_v29  ;;  %1576 = vrot.lane.b32.xlu0 %v1544_v33, %s3591_s20  ;;  %v4617_v5 = vadd.f32 %v1208_v48, %v1192_v43  ;;  %v1148_v8 = vmul.f32 %v4611_v0, %v4611_v0  ;;  %v6596_v43 = vld [vmem:[#allocation19_spill] sm:$0xff] }
 0x310   :  { %v1147_v33 = vmul.f32 %v4614_v56, %v4614_v56  ;;  %v4628_v48 = vmul.f32 0.25, %v6596_v43  ;;  %6599 = vst [vmem:[#allocation14_spill] sm:$0xff] %v4631_v15  ;;  %v1181_v43 = vmul.f32 %v4523_v49, %v4523_v49  ;;  %v5215_v0 = vstv %s1705_s14 }
 0x311   :  { %6595 = vst [vmem:[#allocation36_spill] sm:$0xff] %v4617_v5  ;;  %v1209_v47 = vmul.f32 %v1129_v44, %v1129_v44  ;;  %v1545_v11 = vmul.f32 %v4134_v17, %v1129_v44  ;;  %v1210_v26 = vmul.f32 %v1130_v24, %v1130_v24  ;;  %v1546_v13 = vmul.f32 %v4121_v34, %v1130_v24 }
 0x312   :  { %6597 = vst [vmem:[#allocation34_spill] sm:$0xff] %v4628_v48  ;;  %v1094_v21 = vpop.xlane.xlu1 %1093  ;;  %v1091_v30 = vpop.xlane.xlu0 %1090  ;;  %v1196_v29 = vadd.f32 %v1180_v58, %v1148_v8  ;;  %v1195_v44 = vadd.f32 %v1179_v3, %v1147_v33  ;;  %v1182_v24 = vmul.f32 %v4536_v12, %v4536_v12 }
 0x313   :  { %v1132_v20 = vmul.f32 0.25, %v1094_v21  ;;  %v1131_v55 = vmul.f32 0.25, %v1091_v30  ;;  %1578 = vrot.lane.b32.xlu1 %v1545_v11, %s3591_s20  ;;  %1580 = vrot.lane.b32.xlu0 %v1546_v13, %s3591_s20  ;;  %v4635_v34 = vadd.f32 %v1209_v47, %v1193_v10  ;;  %v4637_v17 = vadd.f32 %v1210_v26, %v1194_v42  ;;  %v6602_v10 = vld [vmem:[#allocation21_spill] sm:$0xff]  ;;  %v6604_v42 = vld [vmem:[#allocation22_spill] sm:$0xff] }
 0x314   :  { %v1150_v47 = vmul.f32 %v4628_v48, %v4628_v48  ;;  %v1149_v26 = vmul.f32 %v4631_v15, %v4631_v15  ;;  %v4650_v3 = vmul.f32 0.25, %v6602_v10  ;;  %v4653_v12 = vmul.f32 0.25, %v6604_v42 }
 0x315   :  { %6600 = vst [vmem:[#allocation15_spill] sm:$0xff] %v4635_v34  ;;  %6601 = vst [vmem:[#allocation16_spill] sm:$0xff] %v4637_v17  ;;  %v1212_v59 = vmul.f32 %v1132_v20, %v1132_v20  ;;  %v1548_v21 = vmul.f32 %v4148_v32, %v1132_v20  ;;  %v1211_v30 = vmul.f32 %v1131_v55, %v1131_v55 }
 0x316   :  { %v1547_v11 = vmul.f32 %v4128_v62, %v1131_v55  ;;  %6603 = vst [vmem:[#allocation17_spill] sm:$0xff] %v4650_v3  ;;  %6605 = vst [vmem:[#allocation18_spill] sm:$0xff] %v4653_v12  ;;  %v1100_v58 = vpop.xlane.xlu1 %1099  ;;  %v1097_v49 = vpop.xlane.xlu0 %1096  ;;  %v1198_v33 = vadd.f32 %v1182_v24, %v1150_v47  ;;  %v1197_v20 = vadd.f32 %v1181_v43, %v1149_v26  ;;  %v6608_v24 = vld [vmem:[#allocation23_spill] sm:$0xff] }
 0x317   :  { %v1134_v13 = vmul.f32 0.25, %v1100_v58  ;;  %v1133_v8 = vmul.f32 0.25, %v1097_v49  ;;  %1584 = vrot.lane.b32.xlu0 %v1548_v21, %s3591_s20  ;;  %v4657_v62 = vadd.f32 %v1211_v30, %v1195_v44  ;;  %v4659_v32 = vadd.f32 %v1212_v59, %v1196_v29  ;;  %v6610_v59 = vld [vmem:[#allocation24_spill] sm:$0xff] }
 0x318   :  { %1582 = vrot.lane.b32.xlu1 %v1547_v11, %s3591_s20  ;;  %v1184_v55 = vmul.f32 %v4548_v38, %v4548_v38  ;;  %v1183_v10 = vmul.f32 %v4532_v60, %v4532_v60  ;;  %v1152_v44 = vmul.f32 %v4650_v3, %v4650_v3  ;;  %v1151_v29 = vmul.f32 %v4653_v12, %v4653_v12 }
 0x319   :  { %6606 = vst [vmem:[#allocation19_spill] sm:$0xff] %v4657_v62  ;;  %6607 = vst [vmem:[#allocation20_spill] sm:$0xff] %v4659_v32  ;;  %v1214_v42 = vmul.f32 %v1134_v13, %v1134_v13  ;;  %v1550_v58 = vmul.f32 %v4162_v61, %v1134_v13  ;;  %v1213_v49 = vmul.f32 %v1133_v8, %v1133_v8  ;;  %v4672_v43 = vmul.f32 0.25, %v6608_v24 }
 0x31a   :  { %v1549_v21 = vmul.f32 %v4141_v23, %v1133_v8  ;;  %v4675_v38 = vmul.f32 0.25, %v6610_v59  ;;  %v1106_v30 = vpop.xlane.xlu1 %1105  ;;  %v1103_v60 = vpop.xlane.xlu0 %1102  ;;  %v1200_v26 = vadd.f32 %v1184_v55, %v1152_v44  ;;  %v1199_v13 = vadd.f32 %v1183_v10, %v1151_v29  ;;  %v6614_v55 = vld [vmem:[#allocation25_spill] sm:$0xff] }
 0x31b   :  { %6609 = vst [vmem:[#allocation21_spill] sm:$0xff] %v4672_v43  ;;  %v1136_v11 = vmul.f32 0.25, %v1106_v30  ;;  %v1135_v47 = vmul.f32 0.25, %v1103_v60  ;;  %1588 = vrot.lane.b32.xlu0 %v1550_v58, %s3591_s20  ;;  %v4679_v23 = vadd.f32 %v1213_v49, %v1197_v20  ;;  %v4681_v61 = vadd.f32 %v1214_v42, %v1198_v33  ;;  %v6616_v42 = vld [vmem:[#allocation26_spill] sm:$0xff] }
 0x31c   :  { %6611 = vst [vmem:[#allocation22_spill] sm:$0xff] %v4675_v38  ;;  %1586 = vrot.lane.b32.xlu1 %v1549_v21, %s3591_s20  ;;  %v1186_v8 = vmul.f32 %v4560_v19, %v4560_v19  ;;  %v1185_v24 = vmul.f32 %v4543_v39, %v4543_v39  ;;  %v1154_v20 = vmul.f32 %v4672_v43, %v4672_v43  ;;  %v4694_v10 = vmul.f32 0.25, %v6614_v55  ;;  %v4884_v43 = vld [vmem:[%s6481_s0 + $0x60] sm:$0xff] }
 0x31d   :  { %6612 = vst [vmem:[#allocation23_spill] sm:$0xff] %v4679_v23  ;;  %6613 = vst [vmem:[#allocation24_spill] sm:$0xff] %v4681_v61  ;;  %v1216_v59 = vmul.f32 %v1136_v11, %v1136_v11  ;;  %v1552_v30 = vmul.f32 %v4176_v1, %v1136_v11  ;;  %v1215_v60 = vmul.f32 %v1135_v47, %v1135_v47  ;;  %v4697_v19 = vmul.f32 0.25, %v6616_v42 }
 0x31e   :  { %v1551_v58 = vmul.f32 %v4155_v9, %v1135_v47  ;;  %v1153_v33 = vmul.f32 %v4675_v38, %v4675_v38  ;;  %6615 = vst [vmem:[#allocation25_spill] sm:$0xff] %v4694_v10  ;;  %v1112_v49 = vpop.xlane.xlu1 %1111  ;;  %v1109_v39 = vpop.xlane.xlu0 %1108  ;;  %v1202_v29 = vadd.f32 %v1186_v8, %v1154_v20  ;;  %v1188_v47 = vmul.f32 %v4572_v63, %v4572_v63  ;;  %v6620_v8 = vld [vmem:[#allocation27_spill] sm:$0xff]  ;;  %v6622_v63 = vld [vmem:[#allocation28_spill] sm:$0xff]  ;;  %v4925_v38 = vld [vmem:[%s6481_s0 + $0x78] sm:$0xff] }
 0x31f   :  { %6617 = vst [vmem:[#allocation26_spill] sm:$0xff] %v4697_v19  ;;  %v1138_v21 = vmul.f32 0.25, %v1112_v49  ;;  %v1137_v44 = vmul.f32 0.25, %v1109_v39  ;;  %1592 = vrot.lane.b32.xlu0 %v1552_v30, %s3591_s20  ;;  %v4701_v9 = vadd.f32 %v1215_v60, %v1199_v13  ;;  %v4703_v1 = vadd.f32 %v1216_v59, %v1200_v26 }
 0x320   :  { %1590 = vrot.lane.b32.xlu1 %v1551_v58, %s3591_s20  ;;  %v1201_v11 = vadd.f32 %v1185_v24, %v1153_v33  ;;  %v1187_v55 = vmul.f32 %v4555_v31, %v4555_v31  ;;  %v1156_v26 = vmul.f32 %v4694_v10, %v4694_v10  ;;  %v1155_v13 = vmul.f32 %v4697_v19, %v4697_v19  ;;  %v4871_v19 = vld [vmem:[%s6481_s0 + $0x48] sm:$0xff] }
 0x321   :  { %6618 = vst [vmem:[#allocation50_spill] sm:$0xff] %v4701_v9  ;;  %6619 = vst [vmem:[#allocation51_spill] sm:$0xff] %v4703_v1  ;;  %v1218_v42 = vmul.f32 %v1138_v21, %v1138_v21  ;;  %v1554_v49 = vmul.f32 %v4190_v57, %v1138_v21  ;;  %v1217_v30 = vmul.f32 %v1137_v44, %v1137_v44  ;;  %v4718_v24 = vmul.f32 0.25, %v6620_v8 }
 0x322   :  { %v1553_v58 = vmul.f32 %v4169_v40, %v1137_v44  ;;  %v4721_v59 = vmul.f32 0.25, %v6622_v63  ;;  %v1118_v31 = vpop.xlane.xlu1 %1117  ;;  %v1115_v60 = vpop.xlane.xlu0 %1114  ;;  %v1204_v39 = vadd.f32 %v1188_v47, %v1156_v26  ;;  %v1203_v21 = vadd.f32 %v1187_v55, %v1155_v13  ;;  %v6626_v47 = vld [vmem:[#allocation29_spill] sm:$0xff] }
 0x323   :  { %6621 = vst [vmem:[#allocation27_spill] sm:$0xff] %v4718_v24  ;;  %v1140_v20 = vmul.f32 0.25, %v1118_v31  ;;  %v1139_v33 = vmul.f32 0.25, %v1115_v60  ;;  %1596 = vrot.lane.b32.xlu0 %v1554_v49, %s3591_s20  ;;  %v4725_v40 = vadd.f32 %v1217_v30, %v1201_v11  ;;  %v4727_v57 = vadd.f32 %v1218_v42, %v1202_v29 }
 0x324   :  { %6623 = vst [vmem:[#allocation28_spill] sm:$0xff] %v4721_v59  ;;  %1594 = vrot.lane.b32.xlu1 %v1553_v58, %s3591_s20  ;;  %v1190_v44 = vmul.f32 %v4584_v22, %v4584_v22  ;;  %v1189_v8 = vmul.f32 %v4567_v7, %v4567_v7  ;;  %v1158_v11 = vmul.f32 %v4718_v24, %v4718_v24  ;;  %v4740_v55 = vmul.f32 0.25, %v6626_v47 }
 0x325   :  { %6624 = vst [vmem:[#allocation52_spill] sm:$0xff] %v4725_v40  ;;  %6625 = vst [vmem:[#allocation53_spill] sm:$0xff] %v4727_v57  ;;  %v1220_v63 = vmul.f32 %v1140_v20, %v1140_v20  ;;  %v1556_v31 = vmul.f32 %v4204_v36, %v1140_v20  ;;  %v1219_v60 = vmul.f32 %v1139_v33, %v1139_v33  ;;  %v4751_v20 = vstv %s4709_s4  ;;  %v4911_v40 = vld [vmem:[%s6481_s0 + $0x68] sm:$0xff] }
 0x326   :  { %v1555_v49 = vmul.f32 %v4183_v37, %v1139_v33  ;;  %v1157_v29 = vmul.f32 %v4721_v59, %v4721_v59  ;;  %6627 = vst [vmem:[#allocation29_spill] sm:$0xff] %v4740_v55  ;;  %v1124_v22 = vpop.xlane.xlu1 %1123  ;;  %v1121_v42 = vpop.xlane.xlu0 %1120  ;;  %v1206_v58 = vadd.f32 %v1190_v44, %v1158_v11  ;;  %v1191_v13 = vmul.f32 %v4579_v28, %v4579_v28  ;;  %v4764_v28 = vld [vmem:[%s6481_s0] sm:$0xff] }
 0x327   :  { %v1142_v30 = vmul.f32 0.25, %v1124_v22  ;;  %v1141_v7 = vmul.f32 0.25, %v1121_v42  ;;  %1600 = vrot.lane.b32.xlu0 %v1556_v31, %s3591_s20  ;;  %v4744_v36 = vadd.f32 %v1219_v60, %v1203_v21  ;;  %v4746_v37 = vadd.f32 %v1220_v63, %v1204_v39 }
 0x328   :  { %1598 = vrot.lane.b32.xlu1 %v1555_v49, %s3591_s20  ;;  %v1205_v26 = vadd.f32 %v1189_v8, %v1157_v29  ;;  %v1159_v31 = vmul.f32 %v4740_v55, %v4740_v55  ;;  %v4851_v55 = vld [vmem:[%s6481_s0 + $0x38] sm:$0xff]  ;;  %v1757_v3 = vmul.f32 %v4925_v38, %v4751_v20 }
 0x329   :  { %6628 = vst [vmem:[#allocation54_spill] sm:$0xff] %v4744_v36  ;;  %6629 = vst [vmem:[#allocation55_spill] sm:$0xff] %v4746_v37  ;;  %v1222_v33 = vmul.f32 %v1142_v30, %v1142_v30  ;;  %v1558_v47 = vmul.f32 %v4218_v6, %v1142_v30  ;;  %v1221_v22 = vmul.f32 %v1141_v7, %v1141_v7  ;;  %v4782_v30 = vld [vmem:[%s6481_s0 + $0x10] sm:$0xff] }
 0x32a   :  { %v1557_v42 = vmul.f32 %v4197_v54, %v1141_v7  ;;  %v4757_v21 = vpop.permute.xlu1 %1288  ;;  %v1127_v39 = vpop.xlane.xlu0 %1126  ;;  %v1742_v6 = vmul.f32 %v4764_v28, %v4751_v20  ;;  %v1207_v8 = vadd.f32 %v1191_v13, %v1159_v31  ;;  %v1744_v7 = vmul.f32 %v4782_v30, %v4751_v20 }
 0x32b   :  { %v1143_v63 = vmul.f32 0.25, %v1127_v39  ;;  %1604 = vrot.lane.b32.xlu0 %v1558_v47, %s3591_s20  ;;  %v4768_v54 = vadd.f32 %v1221_v22, %v1205_v26  ;;  %v4770_v44 = vadd.f32 %v1222_v33, %v1206_v58  ;;  %v4804_v47 = vld [vmem:[%s6481_s0 + $0x20] sm:$0xff]  ;;  %v1749_v24 = vmul.f32 %v4851_v55, %v4751_v20 }
 0x32c   :  { %1602 = vrot.lane.b32.xlu1 %v1557_v42, %s3591_s20  ;;  %v1746_v22 = vmul.f32 %v4804_v47, %v4751_v20  ;;  %v4811_v42 = vld [vmem:[%s6481_s0 + $0x18] sm:$0xff]  ;;  %v1711_v14 = vmul.f32 %v4804_v47, %v5215_v0 }
 0x32d   :  { %6630 = vst [vmem:[#allocation56_spill] sm:$0xff] %v4768_v54  ;;  %6631 = vst [vmem:[#allocation57_spill] sm:$0xff] %v4770_v44  ;;  %v1223_v60 = vmul.f32 %v1143_v63, %v1143_v63  ;;  %v1559_v49 = vmul.f32 %v4211_v27, %v1143_v63  ;;  %v4789_v27 = vld [vmem:[%s6481_s0 + $0x8] sm:$0xff]  ;;  %v1745_v31 = vmul.f32 %v4811_v42, %v4751_v20  ;;  %v4891_v54 = vld [vmem:[%s6481_s0 + $0x58] sm:$0xff] }
 0x32e   :  { %v4773_v11 = vpop.permute.xlu1 %1292  ;;  %v4775_v29 = vpop.permute.xlu0 %1290  ;;  %v1743_v58 = vmul.f32 %v4789_v27, %v4751_v20  ;;  %v1754_v44 = vmul.f32 %v4884_v43, %v4751_v20  ;;  %v1753_v37 = vmul.f32 %v4891_v54, %v4751_v20  ;;  %v1708_v32 = vmul.f32 %v4789_v27, %v5215_v0 }
 0x32f   :  { %1774 = vrot.lane.b32.xlu0 %v1742_v6, %s3590_s16  ;;  %v4793_v26 = vadd.f32 %v1223_v60, %v1207_v8  ;;  %v4824_v6 = vld [vmem:[%s6481_s0 + $0x30] sm:$0xff]  ;;  %v4831_v60 = vld [vmem:[%s6481_s0 + $0x28] sm:$0xff]  ;;  %v1710_v41 = vmul.f32 %v4811_v42, %v5215_v0 }
 0x330   :  { %1606 = vrot.lane.b32.xlu1 %v1559_v49, %s3591_s20  ;;  %v1748_v8 = vmul.f32 %v4824_v6, %v4751_v20  ;;  %v1747_v49 = vmul.f32 %v4831_v60, %v4751_v20  ;;  %v1712_v45 = vmul.f32 %v4831_v60, %v5215_v0 }
 0x331   :  { %6632 = vst [vmem:[#allocation58_spill] sm:$0xff] %v4793_v26  ;;  %v1751_v26 = vmul.f32 %v4871_v19, %v4751_v20 }
 0x332   :  { %v4795_v13 = vpop.permute.xlu1 %1294  ;;  %v4797_v33 = vpop.permute.xlu0 %1296 }
 0x333   :  { %6633 = vst [vmem:[#allocation59_spill] sm:$0xff] %v4795_v13  ;;  %6634 = vst [vmem:[#allocation60_spill] sm:$0xff] %v4797_v33  ;;  %1778 = vrot.lane.b32.xlu0 %v1744_v7, %s3590_s16 }
 0x334   :  { %1776 = vrot.lane.b32.xlu1 %v1743_v58, %s3590_s16 }
 0x336   :  { %v4815_v39 = vpop.permute.xlu1 %1298  ;;  %v4817_v63 = vpop.permute.xlu0 %1300 }
 0x337   :  { %6635 = vst [vmem:[#allocation61_spill] sm:$0xff] %v4815_v39  ;;  %6636 = vst [vmem:[#allocation62_spill] sm:$0xff] %v4817_v63  ;;  %1782 = vrot.lane.b32.xlu0 %v1746_v22, %s3590_s16  ;;  %v4844_v22 = vld [vmem:[%s6481_s0 + $0x40] sm:$0xff]  ;;  %v1713_v39 = vmul.f32 %v4824_v6, %v5215_v0 }
 0x338   :  { %1780 = vrot.lane.b32.xlu1 %v1745_v31, %s3590_s16  ;;  %v1750_v31 = vmul.f32 %v4844_v22, %v4751_v20  ;;  %v1715_v33 = vmul.f32 %v4844_v22, %v5215_v0 }
 0x33a   :  { %v4835_v7 = vpop.permute.xlu1 %1302  ;;  %v4837_v58 = vpop.permute.xlu0 %1304 }
 0x33b   :  { %6637 = vst [vmem:[#allocation63_spill] sm:$0xff] %v4835_v7  ;;  %6638 = vst [vmem:[#allocation64_spill] sm:$0xff] %v4837_v58  ;;  %1786 = vrot.lane.b32.xlu0 %v1748_v8, %s3590_s16 }
 0x33c   :  { %1784 = vrot.lane.b32.xlu1 %v1747_v49, %s3590_s16  ;;  %v4864_v49 = vld [vmem:[%s6481_s0 + $0x50] sm:$0xff] }
 0x33d   :  { %v1752_v10 = vmul.f32 %v4864_v49, %v4751_v20 }
 0x33e   :  { %v4855_v59 = vpop.permute.xlu1 %1306  ;;  %v4857_v8 = vpop.permute.xlu0 %1308 }
 0x33f   :  { %6639 = vst [vmem:[#allocation65_spill] sm:$0xff] %v4855_v59  ;;  %6640 = vst [vmem:[#allocation66_spill] sm:$0xff] %v4857_v8  ;;  %1790 = vrot.lane.b32.xlu0 %v1750_v31, %s3590_s16 }
 0x340   :  { %1788 = vrot.lane.b32.xlu1 %v1749_v24, %s3590_s16 }
 0x342   :  { %v4875_v31 = vpop.permute.xlu1 %1310  ;;  %v4877_v24 = vpop.permute.xlu0 %1312 }
 0x343   :  { %6641 = vst [vmem:[#allocation67_spill] sm:$0xff] %v4875_v31  ;;  %6642 = vst [vmem:[#allocation68_spill] sm:$0xff] %v4877_v24  ;;  %1794 = vrot.lane.b32.xlu0 %v1752_v10, %s3590_s16 }
 0x344   :  { %1792 = vrot.lane.b32.xlu1 %v1751_v26, %s3590_s16  ;;  %v4904_v26 = vld [vmem:[%s6481_s0 + $0x70] sm:$0xff] }
 0x345   :  { %v1756_v57 = vmul.f32 %v4904_v26, %v4751_v20 }
 0x346   :  { %v4895_v36 = vpop.permute.xlu1 %1314  ;;  %v4897_v10 = vpop.permute.xlu0 %1316 }
 0x347   :  { %6643 = vst [vmem:[#allocation69_spill] sm:$0xff] %v4895_v36  ;;  %6644 = vst [vmem:[#allocation70_spill] sm:$0xff] %v4897_v10  ;;  %1798 = vrot.lane.b32.xlu0 %v1754_v44, %s3590_s16  ;;  %v1755_v10 = vmul.f32 %v4911_v40, %v4751_v20  ;;  %v1839_v36 = vstv %s3364_s27 }
 0x348   :  { %1796 = vrot.lane.b32.xlu1 %v1753_v37, %s3590_s16  ;;  %v1840_v24 = vmul.f32 %v4764_v28, %v1839_v36  ;;  %v1844_v20 = vmul.f32 %v4804_v47, %v1839_v36  ;;  %v1843_v9 = vmul.f32 %v4811_v42, %v1839_v36  ;;  %v1845_v23 = vmul.f32 %v4831_v60, %v1839_v36 }
 0x349   :  { %v1847_v4 = vmul.f32 %v4851_v55, %v1839_v36  ;;  %v1849_v15 = vmul.f32 %v4871_v19, %v1839_v36 }
 0x34a   :  { %v4915_v44 = vpop.permute.xlu1 %1318  ;;  %v4917_v37 = vpop.permute.xlu0 %1352 }
 0x34b   :  { %6645 = vst [vmem:[#allocation71_spill] sm:$0xff] %v4915_v44  ;;  %1802 = vrot.lane.b32.xlu0 %v1756_v57, %s3590_s16  ;;  %v1842_v57 = vmul.f32 %v4782_v30, %v1839_v36 }
 0x34c   :  { %1800 = vrot.lane.b32.xlu1 %v1755_v10, %s3590_s16  ;;  %v1841_v10 = vmul.f32 %v4789_v27, %v1839_v36 }
 0x34e   :  { %v4929_v1 = vpop.permute.xlu1 %1354  ;;  %v4931_v31 = vpop.permute.xlu0 %1356 }
 0x34f   :  { %6646 = vst [vmem:[#allocation72_spill] sm:$0xff] %v4929_v1  ;;  %6647 = vst [vmem:[#allocation73_spill] sm:$0xff] %v4931_v31  ;;  %1872 = vrot.lane.b32.xlu0 %v1840_v24, %s3591_s20 }
 0x350   :  { %1804 = vrot.lane.b32.xlu1 %v1757_v3, %s3590_s16  ;;  %v1846_v3 = vmul.f32 %v4824_v6, %v1839_v36 }
 0x352   :  { %v4937_v44 = vpop.permute.xlu1 %1358  ;;  %v4939_v12 = vpop.permute.xlu0 %1360 }
 0x353   :  { %6648 = vst [vmem:[#allocation74_spill] sm:$0xff] %v4937_v44  ;;  %6649 = vst [vmem:[#allocation75_spill] sm:$0xff] %v4939_v12  ;;  %1876 = vrot.lane.b32.xlu0 %v1842_v57, %s3591_s20 }
 0x354   :  { %1874 = vrot.lane.b32.xlu1 %v1841_v10, %s3591_s20  ;;  %v1848_v10 = vmul.f32 %v4844_v22, %v1839_v36 }
 0x356   :  { %v4945_v61 = vpop.permute.xlu1 %1362  ;;  %v4947_v24 = vpop.permute.xlu0 %1364 }
 0x357   :  { %6650 = vst [vmem:[#allocation76_spill] sm:$0xff] %v4945_v61  ;;  %6651 = vst [vmem:[#allocation77_spill] sm:$0xff] %v4947_v24  ;;  %1880 = vrot.lane.b32.xlu0 %v1844_v20, %s3591_s20  ;;  %v1709_v61 = vmul.f32 %v4782_v30, %v5215_v0 }
 0x358   :  { %1878 = vrot.lane.b32.xlu1 %v1843_v9, %s3591_s20  ;;  %v1850_v9 = vmul.f32 %v4864_v49, %v1839_v36 }
 0x35a   :  { %v4953_v8 = vpop.permute.xlu1 %1366  ;;  %v4955_v57 = vpop.permute.xlu0 %1368 }
 0x35b   :  { %6652 = vst [vmem:[#allocation78_spill] sm:$0xff] %v4953_v8  ;;  %6653 = vst [vmem:[#allocation79_spill] sm:$0xff] %v4955_v57  ;;  %1884 = vrot.lane.b32.xlu0 %v1846_v3, %s3591_s20  ;;  %v2021_v57 = vstv %s3365_s21 }
 0x35c   :  { %1882 = vrot.lane.b32.xlu1 %v1845_v23, %s3591_s20 }
 0x35e   :  { %v4961_v48 = vpop.permute.xlu1 %1370  ;;  %v4963_v20 = vpop.permute.xlu0 %1372 }
 0x35f   :  { %6654 = vst [vmem:[#allocation80_spill] sm:$0xff] %v4961_v48  ;;  %6655 = vst [vmem:[#allocation81_spill] sm:$0xff] %v4963_v20  ;;  %1888 = vrot.lane.b32.xlu0 %v1848_v10, %s3591_s20  ;;  %v1852_v48 = vmul.f32 %v4884_v43, %v1839_v36  ;;  %v1851_v20 = vmul.f32 %v4891_v54, %v1839_v36 }
 0x360   :  { %1886 = vrot.lane.b32.xlu1 %v1847_v4, %s3591_s20 }
 0x362   :  { %v4969_v3 = vpop.permute.xlu1 %1374  ;;  %v4971_v23 = vpop.permute.xlu0 %1376 }
 0x363   :  { %6656 = vst [vmem:[#allocation82_spill] sm:$0xff] %v4969_v3  ;;  %6657 = vst [vmem:[#allocation83_spill] sm:$0xff] %v4971_v23  ;;  %1892 = vrot.lane.b32.xlu0 %v1850_v9, %s3591_s20  ;;  %v1854_v3 = vmul.f32 %v4904_v26, %v1839_v36  ;;  %v1853_v23 = vmul.f32 %v4911_v40, %v1839_v36 }
 0x364   :  { %1890 = vrot.lane.b32.xlu1 %v1849_v15, %s3591_s20 }
 0x366   :  { %v4977_v10 = vpop.permute.xlu1 %1378  ;;  %v4979_v4 = vpop.permute.xlu0 %1380 }
 0x367   :  { %6658 = vst [vmem:[#allocation84_spill] sm:$0xff] %v4977_v10  ;;  %6659 = vst [vmem:[#allocation85_spill] sm:$0xff] %v4979_v4  ;;  %1896 = vrot.lane.b32.xlu0 %v1852_v48, %s3591_s20  ;;  %v2022_v10 = vmul.f32 %v4764_v28, %v2021_v57  ;;  %v1855_v4 = vmul.f32 %v4925_v38, %v1839_v36  ;;  %v2025_v36 = vmul.f32 %v4811_v42, %v2021_v57 }
 0x368   :  { %1894 = vrot.lane.b32.xlu1 %v1851_v20, %s3591_s20 }
 0x36a   :  { %v4985_v9 = vpop.permute.xlu1 %1382  ;;  %v4987_v15 = vpop.permute.xlu0 %1480 }
 0x36b   :  { %6660 = vst [vmem:[#allocation86_spill] sm:$0xff] %v4985_v9  ;;  %6661 = vst [vmem:[#allocation87_spill] sm:$0xff] %v4987_v15  ;;  %1900 = vrot.lane.b32.xlu0 %v1854_v3, %s3591_s20  ;;  %v2023_v9 = vmul.f32 %v4789_v27, %v2021_v57  ;;  %v2024_v15 = vmul.f32 %v4782_v30, %v2021_v57 }
 0x36c   :  { %1898 = vrot.lane.b32.xlu1 %v1853_v23, %s3591_s20  ;;  %v2026_v23 = vmul.f32 %v4804_v47, %v2021_v57 }
 0x36e   :  { %v4993_v48 = vpop.permute.xlu1 %1482  ;;  %v4995_v20 = vpop.permute.xlu0 %1484 }
 0x36f   :  { %6662 = vst [vmem:[#allocation88_spill] sm:$0xff] %v4993_v48  ;;  %6663 = vst [vmem:[#allocation89_spill] sm:$0xff] %v4995_v20  ;;  %2054 = vrot.lane.b32.xlu0 %v2022_v10, %s3590_s16 }
 0x370   :  { %1902 = vrot.lane.b32.xlu1 %v1855_v4, %s3591_s20  ;;  %v2027_v4 = vmul.f32 %v4831_v60, %v2021_v57 }
 0x372   :  { %v5001_v59 = vpop.permute.xlu1 %1486  ;;  %v5003_v3 = vpop.permute.xlu0 %1488 }
 0x373   :  { %6664 = vst [vmem:[#allocation90_spill] sm:$0xff] %v5001_v59  ;;  %6665 = vst [vmem:[#allocation91_spill] sm:$0xff] %v5003_v3  ;;  %2058 = vrot.lane.b32.xlu0 %v2024_v15, %s3590_s16  ;;  %v2028_v3 = vmul.f32 %v4824_v6, %v2021_v57  ;;  %v2029_v15 = vmul.f32 %v4851_v55, %v2021_v57 }
 0x374   :  { %2056 = vrot.lane.b32.xlu1 %v2023_v9, %s3590_s16 }
 0x376   :  { %v5009_v20 = vpop.permute.xlu1 %1490  ;;  %v5011_v10 = vpop.permute.xlu0 %1492 }
 0x377   :  { %6666 = vst [vmem:[#allocation92_spill] sm:$0xff] %v5009_v20  ;;  %6667 = vst [vmem:[#allocation93_spill] sm:$0xff] %v5011_v10  ;;  %2062 = vrot.lane.b32.xlu0 %v2026_v23, %s3590_s16  ;;  %v2030_v10 = vmul.f32 %v4844_v22, %v2021_v57  ;;  %v2031_v23 = vmul.f32 %v4871_v19, %v2021_v57 }
 0x378   :  { %2060 = vrot.lane.b32.xlu1 %v2025_v36, %s3590_s16 }
 0x37a   :  { %v5017_v59 = vpop.permute.xlu1 %1494  ;;  %v5019_v9 = vpop.permute.xlu0 %1496 }
 0x37b   :  { %6668 = vst [vmem:[#allocation94_spill] sm:$0xff] %v5017_v59  ;;  %6669 = vst [vmem:[#allocation95_spill] sm:$0xff] %v5019_v9  ;;  %2066 = vrot.lane.b32.xlu0 %v2028_v3, %s3590_s16  ;;  %v2032_v9 = vmul.f32 %v4864_v49, %v2021_v57  ;;  %v5049_v59 = vstv %s3366_s22 }
 0x37c   :  { %2064 = vrot.lane.b32.xlu1 %v2027_v4, %s3590_s16  ;;  %v2130_v48 = vmul.f32 %v4864_v49, %v5049_v59 }
 0x37e   :  { %v5025_v20 = vpop.permute.xlu1 %1498  ;;  %v5027_v36 = vpop.permute.xlu0 %1500 }
 0x37f   :  { %6670 = vst [vmem:[#allocation96_spill] sm:$0xff] %v5025_v20  ;;  %6671 = vst [vmem:[#allocation97_spill] sm:$0xff] %v5027_v36  ;;  %2070 = vrot.lane.b32.xlu0 %v2030_v10, %s3590_s16  ;;  %v2033_v20 = vmul.f32 %v4891_v54, %v2021_v57  ;;  %v2034_v36 = vmul.f32 %v4884_v43, %v2021_v57 }
 0x380   :  { %2068 = vrot.lane.b32.xlu1 %v2029_v15, %s3590_s16 }
 0x382   :  { %v5033_v4 = vpop.permute.xlu1 %1502  ;;  %v5035_v3 = vpop.permute.xlu0 %1504 }
 0x383   :  { %6672 = vst [vmem:[#allocation98_spill] sm:$0xff] %v5033_v4  ;;  %6673 = vst [vmem:[#allocation99_spill] sm:$0xff] %v5035_v3  ;;  %2074 = vrot.lane.b32.xlu0 %v2032_v9, %s3590_s16  ;;  %v2035_v4 = vmul.f32 %v4911_v40, %v2021_v57  ;;  %v2036_v3 = vmul.f32 %v4904_v26, %v2021_v57 }
 0x384   :  { %2072 = vrot.lane.b32.xlu1 %v2031_v23, %s3590_s16 }
 0x386   :  { %v5041_v15 = vpop.permute.xlu1 %1506  ;;  %v5043_v10 = vpop.permute.xlu0 %1508 }
 0x387   :  { %6674 = vst [vmem:[#allocation100_spill] sm:$0xff] %v5041_v15  ;;  %6675 = vst [vmem:[#allocation101_spill] sm:$0xff] %v5043_v10  ;;  %2078 = vrot.lane.b32.xlu0 %v2034_v36, %s3590_s16  ;;  %v2037_v10 = vmul.f32 %v4925_v38, %v2021_v57 }
 0x388   :  { %2076 = vrot.lane.b32.xlu1 %v2033_v20, %s3590_s16  ;;  %v2120_v20 = vmul.f32 %v4764_v28, %v5049_v59 }
 0x38a   :  { %v5051_v23 = vpop.permute.xlu1 %1510  ;;  %v5053_v9 = vpop.permute.xlu0 %1576 }
 0x38b   :  { %6676 = vst [vmem:[#allocation102_spill] sm:$0xff] %v5051_v23  ;;  %6677 = vst [vmem:[#allocation103_spill] sm:$0xff] %v5053_v9  ;;  %2082 = vrot.lane.b32.xlu0 %v2036_v3, %s3590_s16  ;;  %v2121_v23 = vmul.f32 %v4789_v27, %v5049_v59 }
 0x38c   :  { %2080 = vrot.lane.b32.xlu1 %v2035_v4, %s3590_s16  ;;  %v2122_v4 = vmul.f32 %v4782_v30, %v5049_v59 }
 0x38e   :  { %v5060_v36 = vpop.permute.xlu1 %1578  ;;  %v5062_v15 = vpop.permute.xlu0 %1580 }
 0x38f   :  { %6678 = vst [vmem:[#allocation104_spill] sm:$0xff] %v5060_v36  ;;  %6679 = vst [vmem:[#allocation105_spill] sm:$0xff] %v5062_v15  ;;  %2152 = vrot.lane.b32.xlu0 %v2120_v20, %s3591_s20  ;;  %v2123_v15 = vmul.f32 %v4811_v42, %v5049_v59 }
 0x390   :  { %2084 = vrot.lane.b32.xlu1 %v2037_v10, %s3590_s16  ;;  %v2124_v10 = vmul.f32 %v4804_v47, %v5049_v59 }
 0x392   :  { %v5070_v3 = vpop.permute.xlu1 %1582  ;;  %v5072_v57 = vpop.permute.xlu0 %1584 }
 0x393   :  { %6680 = vst [vmem:[#allocation106_spill] sm:$0xff] %v5070_v3  ;;  %6681 = vst [vmem:[#allocation107_spill] sm:$0xff] %v5072_v57  ;;  %2156 = vrot.lane.b32.xlu0 %v2122_v4, %s3591_s20  ;;  %v2125_v57 = vmul.f32 %v4831_v60, %v5049_v59 }
 0x394   :  { %2154 = vrot.lane.b32.xlu1 %v2121_v23, %s3591_s20  ;;  %v2126_v23 = vmul.f32 %v4824_v6, %v5049_v59 }
 0x396   :  { %v5080_v20 = vpop.permute.xlu1 %1586  ;;  %v5082_v36 = vpop.permute.xlu0 %1588 }
 0x397   :  { %6682 = vst [vmem:[#allocation108_spill] sm:$0xff] %v5080_v20  ;;  %6683 = vst [vmem:[#allocation109_spill] sm:$0xff] %v5082_v36  ;;  %2160 = vrot.lane.b32.xlu0 %v2124_v10, %s3591_s20  ;;  %v2127_v36 = vmul.f32 %v4851_v55, %v5049_v59  ;;  %v2922_v10 = vld [vmem:[%s6489_s8] sm:$0xff] }
 0x398   :  { %2158 = vrot.lane.b32.xlu1 %v2123_v15, %s3591_s20  ;;  %v2128_v15 = vmul.f32 %v4844_v22, %v5049_v59 }
 0x39a   :  { %v5090_v4 = vpop.permute.xlu1 %1590  ;;  %v5092_v3 = vpop.permute.xlu0 %1592 }
 0x39b   :  { %6684 = vst [vmem:[#allocation110_spill] sm:$0xff] %v5090_v4  ;;  %6685 = vst [vmem:[#allocation111_spill] sm:$0xff] %v5092_v3  ;;  %2164 = vrot.lane.b32.xlu0 %v2126_v23, %s3591_s20  ;;  %v2923_v4 = vld [vmem:[%s6489_s8 + $0x8] sm:$0xff]  ;;  %v2129_v23 = vmul.f32 %v4871_v19, %v5049_v59 }
 0x39c   :  { %2162 = vrot.lane.b32.xlu1 %v2125_v57, %s3591_s20  ;;  %v3436_v20 = vpack.c.bf16 %v2923_v4, %v2922_v10  ;;  %v2906_v4 = vld [vmem:[%s6482_s1] sm:$0xff] }
 0x39d   :  { %3412 = vmatprep.mubr.msk.f32.mxu0 %vm2931_vm4, %v2906_v4  ;;  %v2908_v4 = vld [vmem:[%s6482_s1 + $0x10] sm:$0xff] }
 0x39e   :  { %v5106_v3 = vpop.permute.xlu1 %1594  ;;  %v5108_v57 = vpop.permute.xlu0 %1596  ;;  %3437 = vmatprep.subr.bf16.mxu0 %v3436_v20  ;;  %3440 = vmatprep.subr.bf16.mxu1 %v3436_v20 }
 0x39f   :  { %6686 = vst [vmem:[#allocation112_spill] sm:$0xff] %v5106_v3  ;;  %6687 = vst [vmem:[#allocation113_spill] sm:$0xff] %v5108_v57  ;;  %2168 = vrot.lane.b32.xlu0 %v2128_v15, %s3591_s20  ;;  %3439 = vmatpush3.bf16.msra.mxu0 %v3436_v20  ;;  %v2131_v57 = vmul.f32 %v4891_v54, %v5049_v59  ;;  %v2132_v3 = vmul.f32 %v4884_v43, %v5049_v59 }
 0x3a0   :  { %2166 = vrot.lane.b32.xlu1 %v2127_v36, %s3591_s20  ;;  %v2907_v36 = vld [vmem:[%s6482_s1 + $0x8] sm:$0xff]  ;;  %3441 = vmatpush3.bf16.msra.mxu1 %v3436_v20  ;;  %v2909_v20 = vld [vmem:[%s6482_s1 + $0x18] sm:$0xff] }
 0x3a2   :  { %v5123_v15 = vpop.permute.xlu1 %1598  ;;  %v5125_v10 = vpop.permute.xlu0 %1600  ;;  %3413 = vmatmul.mubr.msk.f32.vlgmr.msra.gmra.mrb[0].mxu0 %vm2931_vm4, %v2907_v36  ;;  %v2134_v36 = vmul.f32 %v4904_v26, %v5049_v59 }
 0x3a3   :  { %6688 = vst [vmem:[#allocation114_spill] sm:$0xff] %v5123_v15  ;;  %6689 = vst [vmem:[#allocation115_spill] sm:$0xff] %v5125_v10  ;;  %2172 = vrot.lane.b32.xlu0 %v2130_v48, %s3591_s20  ;;  %3415 = vmatprep.mubr.msk.f32.mxu0 %vm2931_vm4, %v2908_v4  ;;  %v2133_v10 = vmul.f32 %v4911_v40, %v5049_v59  ;;  %v2910_v4 = vld [vmem:[%s6482_s1 + $0x20] sm:$0xff]  ;;  %v2917_v15 = vld [vmem:[%s6482_s1 + $0x58] sm:$0xff] }
 0x3a4   :  { %2170 = vrot.lane.b32.xlu1 %v2129_v23, %s3591_s20 }
 0x3a6   :  { %v5141_v23 = vpop.permute.xlu1 %1602  ;;  %v5143_v48 = vpop.permute.xlu0 %1604  ;;  %3416 = vmatmul.mubr.msk.f32.gmra.mrb[2].mxu0 %vm2931_vm4, %v2909_v20  ;;  %v2912_v20 = vld [vmem:[%s6482_s1 + $0x30] sm:$0xff] }
 0x3a7   :  { %6690 = vst [vmem:[#allocation116_spill] sm:$0xff] %v5141_v23  ;;  %6691 = vst [vmem:[#allocation117_spill] sm:$0xff] %v5143_v48  ;;  %2176 = vrot.lane.b32.xlu0 %v2132_v3, %s3591_s20  ;;  %3418 = vmatprep.mubr.msk.f32.mxu0 %vm2931_vm4, %v2910_v4  ;;  %v2135_v23 = vmul.f32 %v4925_v38, %v5049_v59  ;;  %v2914_v4 = vld [vmem:[%s6482_s1 + $0x40] sm:$0xff]  ;;  %v2913_v59 = vld [vmem:[%s6482_s1 + $0x38] sm:$0xff] }
 0x3a8   :  { %2174 = vrot.lane.b32.xlu1 %v2131_v57, %s3591_s20  ;;  %v2911_v57 = vld [vmem:[%s6482_s1 + $0x28] sm:$0xff]  ;;  %3424 = vmatprep.mubr.msk.f32.mxu1 %vm2931_vm4, %v2914_v4 }
 0x3aa   :  { %v5159_v48 = vpop.permute.xlu1 %1606  ;;  %v1775_v3 = vpop.permute.xlu0 %1774  ;;  %3419 = vmatmul.mubr.msk.f32.gmra.mrb[4].mxu0 %vm2931_vm4, %v2911_v57 }
 0x3ab   :  { %6692 = vst [vmem:[#allocation118_spill] sm:$0xff] %v5159_v48  ;;  %2180 = vrot.lane.b32.xlu0 %v2134_v36, %s3591_s20  ;;  %v2915_v48 = vld [vmem:[%s6482_s1 + $0x48] sm:$0xff]  ;;  %3421 = vmatprep.mubr.msk.f32.mxu0 %vm2931_vm4, %v2912_v20  ;;  %v2918_v20 = vld [vmem:[%s6482_s1 + $0x60] sm:$0xff] }
 0x3ac   :  { %2178 = vrot.lane.b32.xlu1 %v2133_v10, %s3591_s20  ;;  %v2916_v10 = vld [vmem:[%s6482_s1 + $0x50] sm:$0xff]  ;;  %3425 = vmatmul.mubr.msk.f32.vlgmr.msra.gmra.mrb[0].mxu1 %vm2931_vm4, %v2915_v48 }
 0x3ad   :  { %3427 = vmatprep.mubr.msk.f32.mxu1 %vm2931_vm4, %v2916_v10  ;;  %v2920_v48 = vld [vmem:[%s6482_s1 + $0x70] sm:$0xff] }
 0x3ae   :  { %v1777_v36 = vpop.permute.xlu1 %1776  ;;  %v1779_v57 = vpop.permute.xlu0 %1778  ;;  %3422 = vmatmul.mubr.msk.f32.gmra.mrb[6].mxu0 %vm2931_vm4, %v2913_v59 }
 0x3b0   :  { %2182 = vrot.lane.b32.xlu1 %v2135_v23, %s3591_s20  ;;  %3428 = vmatmul.mubr.msk.f32.gmra.mrb[2].mxu1 %vm2931_vm4, %v2917_v15  ;;  %v2919_v23 = vld [vmem:[%s6482_s1 + $0x68] sm:$0xff]  ;;  %v2921_v15 = vld [vmem:[%s6482_s1 + $0x78] sm:$0xff]  ;;  %s3367_s1 = sld [smem:[#allocation9 + $0x3]] }
 0x3b1   :  { %3430 = vmatprep.mubr.msk.f32.mxu1 %vm2931_vm4, %v2918_v20 }
 0x3b2   :  { %v1781_v9 = vpop.permute.xlu1 %1780  ;;  %v1783_v4 = vpop.permute.xlu0 %1782 }
 0x3b4   :  { %3431 = vmatmul.mubr.msk.f32.gmra.mrb[4].mxu1 %vm2931_vm4, %v2919_v23  ;;  %v1707_v23 = vmul.f32 %v4764_v28, %v5215_v0 }
 0x3b5   :  { %3433 = vmatprep.mubr.msk.f32.mxu1 %vm2931_vm4, %v2920_v48  ;;  %v5226_v48 = vstv %s6486_s5  ;;  %s3592_s5 = smov 12  }
 0x3b6   :  { %v5201_v10 = vpop.permute.xlu1 %1784  ;;  %v5203_v59 = vpop.permute.xlu0 %1786  ;;  %v1725_v7 = vadd.f32 %v5226_v48, %v1708_v32  ;;  %v1727_v12 = vadd.f32 %v5226_v48, %v1710_v41  ;;  %v1728_v17 = vadd.f32 %v5226_v48, %v1711_v14  ;;  %v5257_v32 = vstv %s3367_s1 }
 0x3b7   :  { %v1729_v34 = vadd.f32 %v5226_v48, %v1712_v45  ;;  %v1730_v14 = vadd.f32 %v5226_v48, %v1713_v39  ;;  %v1732_v5 = vadd.f32 %v5226_v48, %v1715_v33 }
 0x3b8   :  { %3434 = vmatmul.mubr.msk.f32.gmra.mrb[6].mxu1 %vm2931_vm4, %v2921_v15  ;;  %v1724_v15 = vadd.f32 %v5226_v48, %v1707_v23  ;;  %v1726_v23 = vadd.f32 %v5226_v48, %v1709_v61  ;;  %v1823_v61 = vadd.f32 %v1777_v36, %v1725_v7  ;;  %v1825_v7 = vadd.f32 %v1781_v9, %v1727_v12 }
 0x3b9   :  { %v1826_v36 = vadd.f32 %v1783_v4, %v1728_v17  ;;  %v1718_v12 = vmul.f32 %v4891_v54, %v5215_v0  ;;  %v1827_v33 = vadd.f32 %v5201_v10, %v1729_v34 }
 0x3ba   :  { %v5210_v20 = vpop.permute.xlu1 %1788  ;;  %v5212_v50 = vpop.permute.xlu0 %1790  ;;  %v1822_v35 = vadd.f32 %v1775_v3, %v1724_v15  ;;  %v1714_v3 = vmul.f32 %v4851_v55, %v5215_v0  ;;  %v1824_v15 = vadd.f32 %v1779_v57, %v1726_v23 }
 0x3bc   :  { %v1731_v57 = vadd.f32 %v5226_v48, %v1714_v3 }
 0x3be   :  { %v5217_v56 = vpop.permute.xlu1 %1792  ;;  %v5219_v46 = vpop.permute.xlu0 %1794 }
 0x3c2   :  { %v5228_v8 = vpop.permute.xlu1 %1796  ;;  %v5230_v24 = vpop.permute.xlu0 %1798 }
 0x3c6   :  { %v5237_v62 = vpop.permute.xlu1 %1800  ;;  %v5239_v58 = vpop.permute.xlu0 %1802 }
 0x3ca   :  { %v5249_v63 = vpop.permute.xlu1 %1804  ;;  %v1873_v53 = vpop.permute.xlu0 %1872 }
 0x3cb   :  { %v1920_v52 = vadd.f32 %v1873_v53, %v1822_v35  ;;  %v1716_v53 = vmul.f32 %v4871_v19, %v5215_v0 }
 0x3cd   :  { %vm1936_vm5 = vcmp.gt.f32.partialorder %v1920_v52, 0.0  ;;  %v1952_v44 = vmul.f32 0.2, %v1920_v52  ;;  %v1733_v1 = vadd.f32 %v5226_v48, %v1716_v53 }
 0x3ce   :  { %v1875_v41 = vpop.permute.xlu1 %1874  ;;  %v1877_v35 = vpop.permute.xlu0 %1876 }
 0x3cf   :  { %v5265_v51 = vsel %vm1936_vm5, %v1920_v52, %v1952_v44  ;;  %v1921_v13 = vadd.f32 %v1875_v41, %v1823_v61  ;;  %v1922_v25 = vadd.f32 %v1877_v35, %v1824_v15  ;;  %v1717_v52 = vmul.f32 %v4864_v49, %v5215_v0 }
 0x3d0   :  { %6693 = vst [vmem:[#allocation119_spill] sm:$0xff] %v5265_v51  ;;  %v2218_v45 = vmul.f32 %v5257_v32, %v5265_v51  ;;  %v1828_v61 = vadd.f32 %v5203_v59, %v1730_v14 }
 0x3d1   :  { %vm1937_vm6 = vcmp.gt.f32.partialorder %v1921_v13, 0.0  ;;  %v1953_v23 = vmul.f32 0.2, %v1921_v13  ;;  %vm1938_vm7 = vcmp.gt.f32.partialorder %v1922_v25, 0.0  ;;  %v1954_v31 = vmul.f32 0.2, %v1922_v25 }
 0x3d2   :  { %v1879_v17 = vpop.permute.xlu1 %1878  ;;  %2250 = vrot.lane.b32.xlu0 %v2218_v45, %s3592_s5  ;;  %v1881_v39 = vpop.permute.xlu0 %1880  ;;  %v1829_v45 = vadd.f32 %v5210_v20, %v1731_v57  ;;  %v1721_v20 = vmul.f32 %v4904_v26, %v5215_v0 }
 0x3d3   :  { %v5277_v44 = vsel %vm1937_vm6, %v1921_v13, %v1953_v23  ;;  %v5279_v9 = vsel %vm1938_vm7, %v1922_v25, %v1954_v31  ;;  %v1923_v4 = vadd.f32 %v1879_v17, %v1825_v7  ;;  %v1924_v3 = vadd.f32 %v1881_v39, %v1826_v36 }
 0x3d4   :  { %6694 = vst [vmem:[#allocation120_spill] sm:$0xff] %v5277_v44  ;;  %6695 = vst [vmem:[#allocation121_spill] sm:$0xff] %v5279_v9  ;;  %v2219_v15 = vmul.f32 %v5257_v32, %v5277_v44  ;;  %v2220_v53 = vmul.f32 %v5257_v32, %v5279_v9  ;;  %v1734_v13 = vadd.f32 %v5226_v48, %v1717_v52  ;;  %v6748_v44 = vld [vmem:[#allocation73_spill] sm:$0xff] }
 0x3d5   :  { %vm1939_vm8 = vcmp.gt.f32.partialorder %v1923_v4, 0.0  ;;  %v1955_v41 = vmul.f32 0.2, %v1923_v4  ;;  %vm1940_vm9 = vcmp.gt.f32.partialorder %v1924_v3, 0.0  ;;  %v1956_v35 = vmul.f32 0.2, %v1924_v3 }
 0x3d6   :  { %v1735_v25 = vadd.f32 %v5226_v48, %v1718_v12  ;;  %v1719_v31 = vmul.f32 %v4884_v43, %v5215_v0  ;;  %2252 = vrot.lane.b32.xlu1 %v2219_v15, %s3592_s5  ;;  %v1883_v34 = vpop.permute.xlu1 %1882  ;;  %2254 = vrot.lane.b32.xlu0 %v2220_v53, %s3592_s5  ;;  %v1885_v10 = vpop.permute.xlu0 %1884  ;;  %v1830_v23 = vadd.f32 %v5212_v50, %v1732_v5 }
 0x3d7   :  { %v5293_v59 = vsel %vm1939_vm8, %v1923_v4, %v1955_v41  ;;  %v5295_v14 = vsel %vm1940_vm9, %v1924_v3, %v1956_v35  ;;  %v1925_v7 = vadd.f32 %v1883_v34, %v1827_v33  ;;  %v1926_v36 = vadd.f32 %v1885_v10, %v1828_v61 }
 0x3d8   :  { %6696 = vst [vmem:[#allocation122_spill] sm:$0xff] %v5293_v59  ;;  %6697 = vst [vmem:[#allocation123_spill] sm:$0xff] %v5295_v14  ;;  %v2221_v52 = vmul.f32 %v5257_v32, %v5293_v59  ;;  %v2222_v12 = vmul.f32 %v5257_v32, %v5295_v14  ;;  %v1736_v4 = vadd.f32 %v5226_v48, %v1719_v31  ;;  %v6747_v59 = vld [vmem:[#allocation36_spill] sm:$0xff] }
 0x3d9   :  { %vm1941_vm10 = vcmp.gt.f32.partialorder %v1925_v7, 0.0  ;;  %v1957_v17 = vmul.f32 0.2, %v1925_v7  ;;  %vm1942_vm11 = vcmp.gt.f32.partialorder %v1926_v36, 0.0  ;;  %v1958_v39 = vmul.f32 0.2, %v1926_v36 }
 0x3da   :  { %v1720_v3 = vmul.f32 %v4911_v40, %v5215_v0  ;;  %2256 = vrot.lane.b32.xlu1 %v2221_v52, %s3592_s5  ;;  %v1887_v50 = vpop.permute.xlu1 %1886  ;;  %2258 = vrot.lane.b32.xlu0 %v2222_v12, %s3592_s5  ;;  %v1889_v5 = vpop.permute.xlu0 %1888  ;;  %v1831_v53 = vadd.f32 %v5217_v56, %v1733_v1  ;;  %v1832_v41 = vadd.f32 %v5219_v46, %v1734_v13 }
 0x3db   :  { %v5310_v57 = vsel %vm1941_vm10, %v1925_v7, %v1957_v17  ;;  %v5312_v33 = vsel %vm1942_vm11, %v1926_v36, %v1958_v39  ;;  %v1927_v61 = vadd.f32 %v1887_v50, %v1829_v45  ;;  %v1928_v15 = vadd.f32 %v1889_v5, %v1830_v23 }
 0x3dc   :  { %6698 = vst [vmem:[#allocation124_spill] sm:$0xff] %v5310_v57  ;;  %6699 = vst [vmem:[#allocation125_spill] sm:$0xff] %v5312_v33  ;;  %v2223_v35 = vmul.f32 %v5257_v32, %v5310_v57  ;;  %v2224_v31 = vmul.f32 %v5257_v32, %v5312_v33  ;;  %v1737_v7 = vadd.f32 %v5226_v48, %v1720_v3  ;;  %v6746_v57 = vld [vmem:[#allocation72_spill] sm:$0xff] }
 0x3dd   :  { %vm1943_vm12 = vcmp.gt.f32.partialorder %v1927_v61, 0.0  ;;  %v1959_v34 = vmul.f32 0.2, %v1927_v61  ;;  %vm1944_vm13 = vcmp.gt.f32.partialorder %v1928_v15, 0.0  ;;  %v1960_v10 = vmul.f32 0.2, %v1928_v15 }
 0x3de   :  { %v1738_v36 = vadd.f32 %v5226_v48, %v1721_v20  ;;  %v1722_v45 = vmul.f32 %v4925_v38, %v5215_v0  ;;  %2260 = vrot.lane.b32.xlu1 %v2223_v35, %s3592_s5  ;;  %v1891_v56 = vpop.permute.xlu1 %1890  ;;  %2262 = vrot.lane.b32.xlu0 %v2224_v31, %s3592_s5  ;;  %v1893_v46 = vpop.permute.xlu0 %1892  ;;  %v1833_v12 = vadd.f32 %v5228_v8, %v1735_v25 }
 0x3df   :  { %v5326_v1 = vsel %vm1943_vm12, %v1927_v61, %v1959_v34  ;;  %v5328_v13 = vsel %vm1944_vm13, %v1928_v15, %v1960_v10  ;;  %v1929_v23 = vadd.f32 %v1891_v56, %v1831_v53  ;;  %v1930_v52 = vadd.f32 %v1893_v46, %v1832_v41 }
 0x3e0   :  { %6700 = vst [vmem:[#allocation126_spill] sm:$0xff] %v5326_v1  ;;  %6701 = vst [vmem:[#allocation127_spill] sm:$0xff] %v5328_v13  ;;  %v1834_v17 = vadd.f32 %v5230_v24, %v1736_v4  ;;  %v2225_v39 = vmul.f32 %v5257_v32, %v5326_v1  ;;  %v2226_v0 = vmul.f32 %v5257_v32, %v5328_v13 }
 0x3e1   :  { %vm1945_vm14 = vcmp.gt.f32.partialorder %v1929_v23, 0.0  ;;  %v1961_v3 = vmul.f32 0.2, %v1929_v23  ;;  %vm1946_vm15 = vcmp.gt.f32.partialorder %v1930_v52, 0.0  ;;  %v1962_v20 = vmul.f32 0.2, %v1930_v52 }
 0x3e2   :  { %v1739_v50 = vadd.f32 %v5226_v48, %v1722_v45  ;;  %2264 = vrot.lane.b32.xlu1 %v2225_v39, %s3592_s5  ;;  %v1895_v5 = vpop.permute.xlu1 %1894  ;;  %2266 = vrot.lane.b32.xlu0 %v2226_v0, %s3592_s5  ;;  %v1897_v8 = vpop.permute.xlu0 %1896  ;;  %v1835_v15 = vadd.f32 %v5237_v62, %v1737_v7  ;;  %v1836_v53 = vadd.f32 %v5239_v58, %v1738_v36 }
 0x3e3   :  { %v5339_v25 = vsel %vm1945_vm14, %v1929_v23, %v1961_v3  ;;  %v5341_v24 = vsel %vm1946_vm15, %v1930_v52, %v1962_v20  ;;  %v1931_v4 = vadd.f32 %v1895_v5, %v1833_v12  ;;  %v1932_v61 = vadd.f32 %v1897_v8, %v1834_v17 }
 0x3e4   :  { %6702 = vst [vmem:[#allocation128_spill] sm:$0xff] %v5339_v25  ;;  %6703 = vst [vmem:[#allocation129_spill] sm:$0xff] %v5341_v24  ;;  %v2227_v41 = vmul.f32 %v5257_v32, %v5339_v25  ;;  %v2228_v48 = vmul.f32 %v5257_v32, %v5341_v24  ;;  %v1837_v36 = vadd.f32 %v5249_v63, %v1739_v50 }
 0x3e5   :  { %vm1947_vm1 = vcmp.gt.f32.partialorder %v1931_v4, 0.0  ;;  %v1963_v35 = vmul.f32 0.2, %v1931_v4  ;;  %vm1948_vm2 = vcmp.gt.f32.partialorder %v1932_v61, 0.0  ;;  %v1964_v31 = vmul.f32 0.2, %v1932_v61 }
 0x3e6   :  { %2268 = vrot.lane.b32.xlu1 %v2227_v41, %s3592_s5  ;;  %v1899_v34 = vpop.permute.xlu1 %1898  ;;  %2270 = vrot.lane.b32.xlu0 %v2228_v48, %s3592_s5  ;;  %v1901_v10 = vpop.permute.xlu0 %1900  ;;  %v1337_v1 = vadd.f32 %v4775_v29, %v4400_v16  ;;  %v1338_v33 = vadd.f32 %v4773_v11, %v4390_v18  ;;  %v6755_v16 = vld [vmem:[#allocation15_spill] sm:$0xff] }
 0x3e7   :  { %v5351_v45 = vsel %vm1947_vm1, %v1931_v4, %v1963_v35  ;;  %v5353_v62 = vsel %vm1948_vm2, %v1932_v61, %v1964_v31  ;;  %v1933_v58 = vadd.f32 %v1899_v34, %v1835_v15  ;;  %v1934_v7 = vadd.f32 %v1901_v10, %v1836_v53 }
 0x3e8   :  { %6704 = vst [vmem:[#allocation130_spill] sm:$0xff] %v5351_v45  ;;  %6705 = vst [vmem:[#allocation131_spill] sm:$0xff] %v5353_v62  ;;  %v2229_v56 = vmul.f32 %v5257_v32, %v5351_v45  ;;  %v2230_v46 = vmul.f32 %v5257_v32, %v5353_v62  ;;  %v1336_v45 = vadd.f32 %v4757_v21, %v4384_v2  ;;  %v6751_v21 = vld [vmem:[#allocation37_spill] sm:$0xff] }
 0x3e9   :  { %vm1949_vm3 = vcmp.gt.f32.partialorder %v1933_v58, 0.0  ;;  %v1965_v23 = vmul.f32 0.2, %v1933_v58  ;;  %vm1950_vm5 = vcmp.gt.f32.partialorder %v1934_v7, 0.0  ;;  %v1966_v52 = vmul.f32 0.2, %v1934_v7 }
 0x3ea   :  { %2272 = vrot.lane.b32.xlu1 %v2229_v56, %s3592_s5  ;;  %v1903_v12 = vpop.permute.xlu1 %1902  ;;  %2274 = vrot.lane.b32.xlu0 %v2230_v46, %s3592_s5  ;;  %v5362_v17 = vpop.permute.xlu0 %2054  ;;  %v1400_v24 = vadd.f32 %v4917_v37, %v1336_v45  ;;  %v1401_v14 = vadd.f32 %v6746_v57, %v1337_v1  ;;  %v1402_v51 = vadd.f32 %v6748_v44, %v1338_v33  ;;  %v6752_v37 = vld [vmem:[#allocation59_spill] sm:$0xff]  ;;  %v6757_v57 = vld [vmem:[#allocation16_spill] sm:$0xff] }
 0x3eb   :  { %6706 = vst [vmem:[#allocation132_spill] sm:$0xff] %v5362_v17  ;;  %v5364_v39 = vsel %vm1949_vm3, %v1933_v58, %v1965_v23  ;;  %v5366_v63 = vsel %vm1950_vm5, %v1934_v7, %v1966_v52  ;;  %v1935_v0 = vadd.f32 %v1903_v12, %v1837_v36  ;;  %v1339_v45 = vadd.f32 %v6752_v37, %v6751_v21  ;;  %v6763_v21 = vld [vmem:[#allocation41_spill] sm:$0xff]  ;;  %v6764_v37 = vld [vmem:[#allocation62_spill] sm:$0xff] }
 0x3ec   :  { %6707 = vst [vmem:[#allocation133_spill] sm:$0xff] %v5364_v39  ;;  %6708 = vst [vmem:[#allocation134_spill] sm:$0xff] %v5366_v63  ;;  %v2231_v3 = vmul.f32 %v5257_v32, %v5364_v39  ;;  %v2232_v20 = vmul.f32 %v5257_v32, %v5366_v63  ;;  %v1640_v9 = vmul.f32 %v1400_v24, %v6747_v59  ;;  %v6758_v59 = vld [vmem:[#allocation75_spill] sm:$0xff] }
 0x3ed   :  { %vm1951_vm6 = vcmp.gt.f32.partialorder %v1935_v0, 0.0  ;;  %v1967_v50 = vmul.f32 0.2, %v1935_v0  ;;  %v1641_v29 = vmul.f32 %v1401_v14, %v6755_v16  ;;  %v1642_v1 = vmul.f32 %v1402_v51, %v6757_v57  ;;  %v6767_v16 = vld [vmem:[#allocation30_spill] sm:$0xff] }
 0x3ee   :  { %2276 = vrot.lane.b32.xlu1 %v2231_v3, %s3592_s5  ;;  %v5373_v5 = vpop.permute.xlu1 %2056  ;;  %2278 = vrot.lane.b32.xlu0 %v2232_v20, %s3592_s5  ;;  %v5376_v8 = vpop.permute.xlu0 %2058  ;;  %v1656_v11 = vadd.f32 1e-10, %v1640_v9  ;;  %v1416_v9 = vmul.f32 %v4764_v28, %v6767_v16  ;;  %v6777_v16 = vld [vmem:[#allocation78_spill] sm:$0xff] }
 0x3ef   :  { %6709 = vst [vmem:[#allocation135_spill] sm:$0xff] %v5373_v5  ;;  %6710 = vst [vmem:[#allocation136_spill] sm:$0xff] %v5376_v8  ;;  %v5378_v4 = vsel %vm1951_vm6, %v1935_v0, %v1967_v50 }
 0x3f0   :  { %6711 = vst [vmem:[#allocation137_spill] sm:$0xff] %v5378_v4  ;;  %v2233_v61 = vmul.f32 %v5257_v32, %v5378_v4  ;;  %3452 = vrsqrt.f32 %v1656_v11  ;;  %v6782_v11 = vld [vmem:[#allocation65_spill] sm:$0xff] }
 0x3f2   :  { %2280 = vrot.lane.b32.xlu1 %v2233_v61, %s3592_s5  ;;  %v5383_v15 = vpop.permute.xlu1 %2060  ;;  %2378 = vrot.lane.b32.xlu0 %v4764_v28, %s3593_s18  ;;  %v5387_v53 = vpop.permute.xlu0 %2062 }
 0x3f3   :  { %6712 = vst [vmem:[#allocation138_spill] sm:$0xff] %v5383_v15  ;;  %6713 = vst [vmem:[#allocation139_spill] sm:$0xff] %v5387_v53 }
 0x3f6   :  { %2380 = vrot.lane.b32.xlu1 %v4789_v27, %s3593_s18  ;;  %v5391_v41 = vpop.permute.xlu1 %2064  ;;  %2382 = vrot.lane.b32.xlu0 %v4782_v30, %s3593_s18  ;;  %v5395_v48 = vpop.permute.xlu0 %2066 }
 0x3f7   :  { %6714 = vst [vmem:[#allocation140_spill] sm:$0xff] %v5391_v41  ;;  %6715 = vst [vmem:[#allocation141_spill] sm:$0xff] %v5395_v48  ;;  %v5819_v48 = vld [vmem:[%s6481_s0 + $0x30] sm:$0xff] }
 0x3fa   :  { %2384 = vrot.lane.b32.xlu1 %v4811_v42, %s3593_s18  ;;  %2386 = vrot.lane.b32.xlu0 %v4804_v47, %s3593_s18  ;;  %v5401_v32 = vpop.permute.xlu1 %2068  ;;  %v5403_v35 = vpop.permute.xlu0 %2070 }
 0x3fb   :  { %6716 = vst [vmem:[#allocation142_spill] sm:$0xff] %v5401_v32  ;;  %6717 = vst [vmem:[#allocation143_spill] sm:$0xff] %v5403_v35  ;;  %v5801_v35 = vld [vmem:[%s6481_s0 + $0x28] sm:$0xff]  ;;  %v5831_v32 = vld [vmem:[%s6481_s0 + $0x40] sm:$0xff] }
 0x3fe   :  { %2388 = vrot.lane.b32.xlu1 %v4831_v60, %s3593_s18  ;;  %2390 = vrot.lane.b32.xlu0 %v4824_v6, %s3593_s18  ;;  %v5409_v31 = vpop.permute.xlu1 %2072  ;;  %v5415_v34 = vpop.permute.xlu0 %2074 }
 0x3ff   :  { %6718 = vst [vmem:[#allocation144_spill] sm:$0xff] %v5409_v31  ;;  %6719 = vst [vmem:[#allocation145_spill] sm:$0xff] %v5415_v34  ;;  %v6795_v34 = vld [vmem:[#allocation87_spill] sm:$0xff] }
 0x402   :  { %2392 = vrot.lane.b32.xlu1 %v4851_v55, %s3593_s18  ;;  %2394 = vrot.lane.b32.xlu0 %v4844_v22, %s3593_s18  ;;  %v5421_v10 = vpop.permute.xlu1 %2076  ;;  %v5423_v58 = vpop.permute.xlu0 %2078 }
 0x403   :  { %6720 = vst [vmem:[#allocation146_spill] sm:$0xff] %v5421_v10  ;;  %6721 = vst [vmem:[#allocation147_spill] sm:$0xff] %v5423_v58  ;;  %v1342_v58 = vadd.f32 %v6764_v37, %v6763_v21  ;;  %v6772_v10 = vld [vmem:[#allocation76_spill] sm:$0xff] }
 0x404   :  { %v6773_v21 = vld [vmem:[#allocation20_spill] sm:$0xff] }
 0x406   :  { %2396 = vrot.lane.b32.xlu1 %v4871_v19, %s3593_s18  ;;  %2398 = vrot.lane.b32.xlu0 %v4864_v49, %s3593_s18  ;;  %v5429_v7 = vpop.permute.xlu1 %2080  ;;  %v5435_v36 = vpop.permute.xlu0 %2082 }
 0x407   :  { %6722 = vst [vmem:[#allocation148_spill] sm:$0xff] %v5429_v7  ;;  %6723 = vst [vmem:[#allocation149_spill] sm:$0xff] %v5435_v36  ;;  %v6756_v36 = vld [vmem:[#allocation74_spill] sm:$0xff]  ;;  %v6762_v7 = vld [vmem:[#allocation61_spill] sm:$0xff] }
 0x408   :  { %v1403_v18 = vadd.f32 %v6756_v36, %v1339_v45  ;;  %v6768_v36 = vld [vmem:[#allocation33_spill] sm:$0xff]  ;;  %v6770_v45 = vld [vmem:[#allocation64_spill] sm:$0xff] }
 0x409   :  { %v1417_v51 = vmul.f32 %v4789_v27, %v6768_v36  ;;  %v6778_v36 = vld [vmem:[#allocation31_spill] sm:$0xff] }
 0x40a   :  { %2400 = vrot.lane.b32.xlu1 %v4891_v54, %s3593_s18  ;;  %2402 = vrot.lane.b32.xlu0 %v4884_v43, %s3593_s18  ;;  %v5439_v49 = vpop.permute.xlu1 %2084  ;;  %v5441_v56 = vpop.permute.xlu0 %2152 }
 0x40b   :  { %6724 = vst [vmem:[#allocation150_spill] sm:$0xff] %v5439_v49  ;;  %6725 = vst [vmem:[#allocation151_spill] sm:$0xff] %v5441_v56  ;;  %v6754_v49 = vld [vmem:[#allocation60_spill] sm:$0xff] }
 0x40e   :  { %2404 = vrot.lane.b32.xlu1 %v4911_v40, %s3593_s18  ;;  %2406 = vrot.lane.b32.xlu0 %v4904_v26, %s3593_s18  ;;  %v5443_v54 = vpop.permute.xlu1 %2154  ;;  %v5445_v43 = vpop.permute.xlu0 %2156 }
 0x40f   :  { %6726 = vst [vmem:[#allocation152_spill] sm:$0xff] %v5443_v54  ;;  %6727 = vst [vmem:[#allocation153_spill] sm:$0xff] %v5445_v43 }
 0x412   :  { %2408 = vrot.lane.b32.xlu1 %v4925_v38, %s3593_s18  ;;  %v5447_v46 = vpop.permute.xlu1 %2158  ;;  %v5449_v23 = vpop.permute.xlu0 %2160 }
 0x413   :  { %6728 = vst [vmem:[#allocation154_spill] sm:$0xff] %v5447_v46  ;;  %6729 = vst [vmem:[#allocation155_spill] sm:$0xff] %v5449_v23 }
 0x416   :  { %v5451_v40 = vpop.permute.xlu1 %2162  ;;  %v5453_v26 = vpop.permute.xlu0 %2164 }
 0x417   :  { %6730 = vst [vmem:[#allocation156_spill] sm:$0xff] %v5451_v40  ;;  %6731 = vst [vmem:[#allocation157_spill] sm:$0xff] %v5453_v26  ;;  %v5795_v26 = vld [vmem:[%s6481_s0 + $0x8] sm:$0xff] }
 0x41a   :  { %v5455_v52 = vpop.permute.xlu1 %2166  ;;  %v5457_v12 = vpop.permute.xlu0 %2168 }
 0x41b   :  { %6732 = vst [vmem:[#allocation158_spill] sm:$0xff] %v5455_v52  ;;  %6733 = vst [vmem:[#allocation159_spill] sm:$0xff] %v5457_v12  ;;  %v6774_v12 = vld [vmem:[#allocation77_spill] sm:$0xff]  ;;  %v5807_v52 = vld [vmem:[%s6481_s0 + $0x20] sm:$0xff] }
 0x41e   :  { %v5459_v38 = vpop.permute.xlu1 %2170  ;;  %v5461_v0 = vpop.permute.xlu0 %2172 }
 0x41f   :  { %6734 = vst [vmem:[#allocation160_spill] sm:$0xff] %v5459_v38  ;;  %6735 = vst [vmem:[#allocation161_spill] sm:$0xff] %v5461_v0 }
 0x422   :  { %v5463_v3 = vpop.permute.xlu1 %2174  ;;  %v5465_v20 = vpop.permute.xlu0 %2176 }
 0x423   :  { %6736 = vst [vmem:[#allocation162_spill] sm:$0xff] %v5463_v3  ;;  %6737 = vst [vmem:[#allocation163_spill] sm:$0xff] %v5465_v20  ;;  %v6771_v3 = vld [vmem:[#allocation19_spill] sm:$0xff] }
 0x426   :  { %v5467_v50 = vpop.permute.xlu1 %2178  ;;  %v5469_v61 = vpop.permute.xlu0 %2180 }
 0x427   :  { %6738 = vst [vmem:[#allocation164_spill] sm:$0xff] %v5467_v50  ;;  %6739 = vst [vmem:[#allocation165_spill] sm:$0xff] %v5469_v61  ;;  %v6761_v50 = vld [vmem:[#allocation38_spill] sm:$0xff] }
 0x428   :  { %v1341_v0 = vadd.f32 %v6762_v7, %v6761_v50  ;;  %v1658_v50 = vadd.f32 1e-10, %v1642_v1 }
 0x42a   :  { %v5471_v4 = vpop.permute.xlu1 %2182  ;;  %v1405_v7 = vadd.f32 %v6772_v10, %v1341_v0  ;;  %v6781_v0 = vld [vmem:[#allocation42_spill] sm:$0xff] }
 0x42b   :  { %6740 = vst [vmem:[#allocation166_spill] sm:$0xff] %v5471_v4  ;;  %v6753_v4 = vld [vmem:[#allocation39_spill] sm:$0xff]  ;;  %v1345_v1 = vadd.f32 %v6782_v11, %v6781_v0  ;;  %v6789_v0 = vld [vmem:[#allocation24_spill] sm:$0xff] }
 0x42c   :  { %v1340_v20 = vadd.f32 %v6754_v49, %v6753_v4  ;;  %v6765_v4 = vld [vmem:[#allocation40_spill] sm:$0xff]  ;;  %v6766_v49 = vld [vmem:[#allocation63_spill] sm:$0xff] }
 0x42d   :  { %v1343_v14 = vadd.f32 %v6766_v49, %v6765_v4  ;;  %v1406_v4 = vadd.f32 %v6774_v12, %v1342_v58  ;;  %v6784_v12 = vld [vmem:[#allocation14_spill] sm:$0xff] }
 0x42e   :  { %v1404_v24 = vadd.f32 %v6758_v59, %v1340_v20  ;;  %v6769_v20 = vld [vmem:[#allocation43_spill] sm:$0xff]  ;;  %v1657_v59 = vadd.f32 1e-10, %v1641_v29  ;;  %v6779_v29 = vld [vmem:[#allocation32_spill] sm:$0xff] }
 0x42f   :  { %v1344_v57 = vadd.f32 %v6770_v45, %v6769_v20  ;;  %v1407_v27 = vadd.f32 %v6777_v16, %v1343_v14  ;;  %v1418_v20 = vmul.f32 %v4782_v30, %v6778_v36  ;;  %v5541_v45 = vmul.f32 %v4831_v60, %v6784_v12  ;;  %v6786_v30 = vld [vmem:[#allocation45_spill] sm:$0xff]  ;;  %v6787_v16 = vld [vmem:[#allocation66_spill] sm:$0xff] }
 0x430   :  { %v1644_v37 = vmul.f32 %v1404_v24, %v6773_v21  ;;  %v6783_v24 = vld [vmem:[#allocation79_spill] sm:$0xff]  ;;  %v6785_v21 = vld [vmem:[#allocation34_spill] sm:$0xff]  ;;  %v1346_v36 = vadd.f32 %v6787_v16, %v6786_v30  ;;  %3454 = vrsqrt.f32 %v1657_v59  ;;  %v1646_v11 = vmul.f32 %v1406_v4, %v6789_v0 }
 0x431   :  { %v1408_v58 = vadd.f32 %v6783_v24, %v1344_v57  ;;  %v5545_v14 = vmul.f32 %v4824_v6, %v6785_v21  ;;  %3456 = vrsqrt.f32 %v1658_v50  ;;  %v6790_v57 = vld [vmem:[#allocation80_spill] sm:$0xff]  ;;  %v6793_v12 = vld [vmem:[#allocation50_spill] sm:$0xff]  ;;  %v6794_v21 = vld [vmem:[#allocation81_spill] sm:$0xff]  ;;  %v1528_v30 = vadd.f32 %v6795_v34, %v1416_v9 }
 0x432   :  { %v1409_v24 = vadd.f32 %v6790_v57, %v1345_v1  ;;  %v1647_v6 = vmul.f32 %v1407_v27, %v6793_v12  ;;  %v6796_v59 = vld [vmem:[#allocation18_spill] sm:$0xff]  ;;  %v6798_v50 = vld [vmem:[#allocation67_spill] sm:$0xff]  ;;  %v6800_v1 = vld [vmem:[#allocation17_spill] sm:$0xff] }
 0x433   :  { %v6799_v4 = vld [vmem:[#allocation51_spill] sm:$0xff]  ;;  %v6801_v0 = vld [vmem:[#allocation22_spill] sm:$0xff]  ;;  %v6803_v57 = vld [vmem:[#allocation68_spill] sm:$0xff] }
 0x434   :  { %v1648_v16 = vmul.f32 %v1408_v58, %v6799_v4  ;;  %v5572_v27 = vmul.f32 %v4871_v19, %v6801_v0  ;;  %v1662_v58 = vadd.f32 1e-10, %v1646_v11  ;;  %v1663_v19 = vadd.f32 1e-10, %v1647_v6  ;;  %v6810_v0 = vld [vmem:[#allocation53_spill] sm:$0xff]  ;;  %v6818_v6 = vld [vmem:[#allocation104_spill] sm:$0xff] }
 0x444   :  { %v5473_v63 = vpop.permute.xlu0 %2250 }
 0x445   :  { %6741 = vst [vmem:[#allocation167_spill] sm:$0xff] %v5473_v63 }
 0x448   :  { %v5475_v39 = vpop.permute.xlu1 %2252  ;;  %v5477_v62 = vpop.permute.xlu0 %2254 }
 0x449   :  { %6742 = vst [vmem:[#allocation168_spill] sm:$0xff] %v5475_v39  ;;  %6743 = vst [vmem:[#allocation169_spill] sm:$0xff] %v5477_v62 }
 0x44c   :  { %v5482_v25 = vpop.permute.xlu1 %2256  ;;  %v5484_v13 = vpop.permute.xlu0 %2258 }
 0x44d   :  { %6744 = vst [vmem:[#allocation170_spill] sm:$0xff] %v5482_v25  ;;  %6745 = vst [vmem:[#allocation171_spill] sm:$0xff] %v5484_v13  ;;  %v5813_v13 = vld [vmem:[%s6481_s0 + $0x38] sm:$0xff] }
 0x450   :  { %v5493_v61 = vpop.permute.xlu1 %2260  ;;  %v5495_v2 = vpop.permute.xlu0 %2262 }
 0x451   :  { %6749 = vst [vmem:[#allocation72_spill] sm:$0xff] %v5493_v61  ;;  %6750 = vst [vmem:[#allocation36_spill] sm:$0xff] %v5495_v2  ;;  %v5825_v61 = vld [vmem:[%s6481_s0 + $0x48] sm:$0xff] }
 0x454   :  { %v5505_v44 = vpop.permute.xlu1 %2264  ;;  %v5507_v33 = vpop.permute.xlu0 %2266 }
 0x455   :  { %6759 = vst [vmem:[#allocation73_spill] sm:$0xff] %v5505_v44  ;;  %6760 = vst [vmem:[#allocation37_spill] sm:$0xff] %v5507_v33  ;;  %v1643_v33 = vmul.f32 %v1403_v18, %v6771_v3  ;;  %v1419_v3 = vmul.f32 %v4811_v42, %v6779_v29  ;;  %v6780_v18 = vld [vmem:[#allocation35_spill] sm:$0xff] }
 0x456   :  { %v1420_v10 = vmul.f32 %v4804_v47, %v6780_v18  ;;  %v6788_v29 = vld [vmem:[#allocation23_spill] sm:$0xff]  ;;  %v1660_v18 = vadd.f32 1e-10, %v1644_v37 }
 0x457   :  { %v1659_v42 = vadd.f32 1e-10, %v1643_v33  ;;  %v1645_v47 = vmul.f32 %v1405_v7, %v6788_v29  ;;  %v5561_v33 = vmul.f32 %v4851_v55, %v6796_v59  ;;  %v6797_v7 = vld [vmem:[#allocation44_spill] sm:$0xff]  ;;  %v5568_v29 = vmul.f32 %v4844_v22, %v6800_v1  ;;  %v6804_v55 = vld [vmem:[#allocation103_spill] sm:$0xff]  ;;  %v6806_v59 = vld [vmem:[#allocation69_spill] sm:$0xff] }
 0x458   :  { %v5525_v49 = vpop.permute.xlu1 %2268  ;;  %v5527_v28 = vpop.permute.xlu0 %2270  ;;  %v1347_v37 = vadd.f32 %v6798_v50, %v6797_v7  ;;  %v1624_v12 = vadd.f32 %v6804_v55, %v1528_v30  ;;  %v6807_v50 = vld [vmem:[#allocation52_spill] sm:$0xff]  ;;  %v6813_v30 = vld [vmem:[#allocation49_spill] sm:$0xff]  ;;  %v6814_v55 = vld [vmem:[#allocation70_spill] sm:$0xff] }
 0x459   :  { %6775 = vst [vmem:[#allocation59_spill] sm:$0xff] %v5525_v49  ;;  %6776 = vst [vmem:[#allocation39_spill] sm:$0xff] %v5527_v28  ;;  %v1410_v49 = vadd.f32 %v6794_v21, %v1346_v36  ;;  %v6802_v36 = vld [vmem:[#allocation47_spill] sm:$0xff]  ;;  %3458 = vrsqrt.f32 %v1659_v42  ;;  %v1661_v9 = vadd.f32 1e-10, %v1645_v47  ;;  %v6805_v21 = vld [vmem:[#allocation46_spill] sm:$0xff]  ;;  %v1649_v4 = vmul.f32 %v1409_v24, %v6807_v50 }
 0x45a   :  { %v1348_v34 = vadd.f32 %v6803_v57, %v6802_v36  ;;  %v1349_v7 = vadd.f32 %v6806_v59, %v6805_v21  ;;  %3460 = vrsqrt.f32 %v1660_v18  ;;  %v6812_v42 = vld [vmem:[#allocation89_spill] sm:$0xff]  ;;  %v3453_v57 = vpop.eup %3452  ;;  %v1350_v38 = vadd.f32 %v6814_v55, %v6813_v30  ;;  %v6815_v21 = vld [vmem:[#allocation48_spill] sm:$0xff]  ;;  %v6816_v18 = vld [vmem:[#allocation71_spill] sm:$0xff] }
 0x45b   :  { %v1530_v47 = vadd.f32 %v6812_v42, %v1418_v20  ;;  %v1351_v11 = vadd.f32 %v6816_v18, %v6815_v21  ;;  %v1664_v59 = vadd.f32 1e-10, %v1648_v16  ;;  %v6817_v24 = vld [vmem:[#allocation82_spill] sm:$0xff]  ;;  %3462 = vrsqrt.f32 %v1661_v9  ;;  %v3455_v21 = vpop.eup %3454 }
 0x45c   :  { %v5552_v28 = vpop.permute.xlu1 %2272  ;;  %v5554_v60 = vpop.permute.xlu0 %2274  ;;  %v1411_v50 = vadd.f32 %v6817_v24, %v1347_v37  ;;  %3464 = vrsqrt.f32 %v1662_v58  ;;  %v6821_v42 = vld [vmem:[#allocation90_spill] sm:$0xff]  ;;  %v6823_v37 = vld [vmem:[#allocation91_spill] sm:$0xff]  ;;  %v6825_v58 = vld [vmem:[#allocation84_spill] sm:$0xff] }
 0x45d   :  { %6791 = vst [vmem:[#allocation60_spill] sm:$0xff] %v5552_v28  ;;  %6792 = vst [vmem:[#allocation15_spill] sm:$0xff] %v5554_v60  ;;  %v1650_v60 = vmul.f32 %v1410_v49, %v6810_v0  ;;  %v6811_v28 = vld [vmem:[#allocation88_spill] sm:$0xff]  ;;  %v6819_v49 = vld [vmem:[#allocation105_spill] sm:$0xff]  ;;  %v1531_v2 = vadd.f32 %v6821_v42, %v1419_v3  ;;  %3466 = vrsqrt.f32 %v1663_v19  ;;  %v1532_v9 = vadd.f32 %v6823_v37, %v1420_v10 }
 0x45e   :  { %v1529_v36 = vadd.f32 %v6811_v28, %v1417_v51  ;;  %v1626_v0 = vadd.f32 %v6819_v49, %v1530_v47  ;;  %v1665_v51 = vadd.f32 1e-10, %v1649_v4  ;;  %v6820_v28 = vld [vmem:[#allocation83_spill] sm:$0xff]  ;;  %3468 = vrsqrt.f32 %v1664_v59  ;;  %v6826_v18 = vld [vmem:[#allocation106_spill] sm:$0xff]  ;;  %v6830_v59 = vld [vmem:[#allocation92_spill] sm:$0xff] }
 0x45f   :  { %v1412_v20 = vadd.f32 %v6820_v28, %v1348_v34  ;;  %v1666_v16 = vadd.f32 1e-10, %v1650_v60  ;;  %v1413_v4 = vadd.f32 %v6825_v58, %v1349_v7  ;;  %v1627_v34 = vadd.f32 %v6826_v18, %v1531_v2  ;;  %v6828_v10 = vld [vmem:[#allocation55_spill] sm:$0xff]  ;;  %v6829_v28 = vld [vmem:[#allocation85_spill] sm:$0xff] }
 0x460   :  { %v5580_v22 = vpop.permute.xlu1 %2276  ;;  %v5582_v1 = vpop.permute.xlu0 %2278  ;;  %3470 = vrsqrt.f32 %v1665_v51  ;;  %v1414_v42 = vadd.f32 %v6829_v28, %v1350_v38  ;;  %v6834_v58 = vld [vmem:[#allocation109_spill] sm:$0xff]  ;;  %v6836_v28 = vld [vmem:[#allocation86_spill] sm:$0xff] }
 0x461   :  { %6808 = vst [vmem:[#allocation74_spill] sm:$0xff] %v5580_v22  ;;  %6809 = vst [vmem:[#allocation16_spill] sm:$0xff] %v5582_v1  ;;  %v5592_v22 = vmul.f32 %v3453_v57, %v1624_v12  ;;  %v1625_v1 = vadd.f32 %v6818_v6, %v1529_v36  ;;  %v3457_v57 = vpop.eup %3456  ;;  %v6824_v36 = vld [vmem:[#allocation54_spill] sm:$0xff]  ;;  %v6827_v6 = vld [vmem:[#allocation107_spill] sm:$0xff]  ;;  %v1652_v19 = vmul.f32 %v1412_v20, %v6828_v10  ;;  %3472 = vrsqrt.f32 %v1666_v16 }
 0x462   :  { %v1651_v47 = vmul.f32 %v1411_v50, %v6824_v36  ;;  %v5607_v3 = vmul.f32 %v3457_v57, %v1626_v0  ;;  %v1628_v49 = vadd.f32 %v6827_v6, %v1532_v9  ;;  %v1533_v50 = vadd.f32 %v6830_v59, %v5541_v45  ;;  %v6832_v20 = vld [vmem:[#allocation56_spill] sm:$0xff] }
 0x463   :  { %v5605_v24 = vmul.f32 %v3455_v21, %v1625_v1  ;;  %v3459_v2 = vpop.eup %3458  ;;  %v6831_v1 = vld [vmem:[#allocation93_spill] sm:$0xff]  ;;  %v6833_v57 = vld [vmem:[#allocation108_spill] sm:$0xff]  ;;  %v1668_v6 = vadd.f32 1e-10, %v1652_v19  ;;  %v1415_v59 = vadd.f32 %v6836_v28, %v1351_v11 }
 0x464   :  { %v5598_v30 = vpop.permute.xlu1 %2280  ;;  %v2379_v55 = vpop.permute.xlu0 %2378  ;;  %v1534_v0 = vadd.f32 %v6831_v1, %v5545_v14  ;;  %v1667_v9 = vadd.f32 1e-10, %v1651_v47  ;;  %v5620_v38 = vmul.f32 %v3459_v2, %v1627_v34  ;;  %v1629_v45 = vadd.f32 %v6833_v57, %v1533_v50  ;;  %v6837_v47 = vld [vmem:[#allocation94_spill] sm:$0xff]  ;;  %v5637_v2 = vld [vmem:[%s6481_s0 + $0x50] sm:$0xff]  ;;  %v6839_v19 = vld [vmem:[#allocation21_spill] sm:$0xff] }
 0x465   :  { %6822 = vst [vmem:[#allocation75_spill] sm:$0xff] %v5598_v30  ;;  %v2426_v12 = vmul.f32 %v2379_v55, %v5592_v22  ;;  %v3461_v51 = vpop.eup %3460  ;;  %v6841_v57 = vld [vmem:[#allocation111_spill] sm:$0xff] }
 0x466   :  { %v5623_v36 = vmul.f32 %v3461_v51, %v1628_v49  ;;  %v1630_v18 = vadd.f32 %v6834_v58, %v1534_v0  ;;  %v3463_v49 = vpop.eup %3462  ;;  %3474 = vrsqrt.f32 %v1667_v9  ;;  %v6843_v9 = vld [vmem:[#allocation96_spill] sm:$0xff] }
 0x467   :  { %v2442_v60 = vsel %vm390_vm0, %v2426_v12, 0.0  ;;  %v1653_v12 = vmul.f32 %v1413_v4, %v6832_v20  ;;  %v1535_v4 = vadd.f32 %v6837_v47, %v5561_v33  ;;  %v3465_v1 = vpop.eup %3464  ;;  %3476 = vrsqrt.f32 %v1668_v6  ;;  %v6842_v47 = vld [vmem:[#allocation58_spill] sm:$0xff] }
 0x468   :  { %v2381_v55 = vpop.permute.xlu1 %2380  ;;  %2443 = vadd.xlane.f32.xlu0 %v2442_v60  ;;  %v2383_v7 = vpop.permute.xlu0 %2382  ;;  %v6835_v60 = vld [vmem:[#allocation57_spill] sm:$0xff]  ;;  %v5646_v20 = vmul.f32 %v3465_v1, %v1630_v18 }
 0x469   :  { %v2427_v21 = vmul.f32 %v2381_v55, %v5605_v24  ;;  %v2428_v37 = vmul.f32 %v2383_v7, %v5607_v3  ;;  %v1654_v10 = vmul.f32 %v1414_v42, %v6835_v60  ;;  %v6838_v55 = vld [vmem:[#allocation95_spill] sm:$0xff]  ;;  %v1426_v42 = vmul.f32 %v5637_v2, %v6839_v19  ;;  %v6844_v18 = vld [vmem:[#allocation97_spill] sm:$0xff] }
 0x46a   :  { %v1536_v7 = vadd.f32 %v6838_v55, %v5568_v29  ;;  %v1669_v0 = vadd.f32 1e-10, %v1653_v12  ;;  %v3467_v29 = vpop.eup %3466  ;;  %v1537_v12 = vadd.f32 %v6843_v9, %v5572_v27  ;;  %v6845_v55 = vld [vmem:[#allocation26_spill] sm:$0xff]  ;;  %v6846_v19 = vld [vmem:[#allocation25_spill] sm:$0xff] }
 0x46b   :  { %v2445_v16 = vsel %vm390_vm0, %v2427_v21, 0.0  ;;  %v2448_v14 = vsel %vm390_vm0, %v2428_v37, 0.0  ;;  %v5643_v21 = vmul.f32 %v3463_v49, %v1629_v45  ;;  %v6840_v37 = vld [vmem:[#allocation110_spill] sm:$0xff]  ;;  %v3469_v60 = vpop.eup %3468  ;;  %v1670_v28 = vadd.f32 1e-10, %v1654_v10  ;;  %v5658_v49 = vld [vmem:[%s6481_s0 + $0x58] sm:$0xff] }
 0x46c   :  { %v2385_v34 = vpop.permute.xlu1 %2384  ;;  %2446 = vadd.xlane.f32.xlu1 %v2445_v16  ;;  %2449 = vadd.xlane.f32.xlu0 %v2448_v14  ;;  %v2387_v50 = vpop.permute.xlu0 %2386  ;;  %v1631_v51 = vadd.f32 %v6840_v37, %v1535_v4  ;;  %v1632_v58 = vadd.f32 %v6841_v57, %v1536_v7  ;;  %v1427_v6 = vmul.f32 %v5658_v49, %v6845_v55  ;;  %3478 = vrsqrt.f32 %v1669_v0  ;;  %v5667_v27 = vld [vmem:[%s6481_s0 + $0x60] sm:$0xff] }
 0x46d   :  { %v2429_v11 = vmul.f32 %v2385_v34, %v5620_v38  ;;  %v2430_v33 = vmul.f32 %v2387_v50, %v5623_v36  ;;  %v1655_v34 = vmul.f32 %v1415_v59, %v6842_v47  ;;  %v1538_v50 = vadd.f32 %v6844_v18, %v1426_v42  ;;  %v3471_v7 = vpop.eup %3470 }
 0x46e   :  { %v1428_v42 = vmul.f32 %v5667_v27, %v6846_v19  ;;  %v3473_v37 = vpop.eup %3472  ;;  %v5674_v57 = vmul.f32 %v3469_v60, %v1632_v58  ;;  %3480 = vrsqrt.f32 %v1670_v28  ;;  %v5686_v60 = vld [vmem:[%s6481_s0 + $0x68] sm:$0xff]  ;;  %v6853_v19 = vld [vmem:[#allocation114_spill] sm:$0xff] }
 0x46f   :  { %v2451_v16 = vsel %vm390_vm0, %v2429_v11, 0.0  ;;  %v2454_v14 = vsel %vm390_vm0, %v2430_v33, 0.0  ;;  %v5671_v11 = vmul.f32 %v3467_v29, %v1631_v51  ;;  %v6847_v33 = vld [vmem:[#allocation112_spill] sm:$0xff]  ;;  %v1671_v9 = vadd.f32 1e-10, %v1655_v34  ;;  %v6850_v29 = vld [vmem:[#allocation99_spill] sm:$0xff] }
 0x470   :  { %v2389_v45 = vpop.permute.xlu1 %2388  ;;  %2452 = vadd.xlane.f32.xlu0 %v2451_v16  ;;  %2455 = vadd.xlane.f32.xlu1 %v2454_v14  ;;  %v2391_v4 = vpop.permute.xlu0 %2390  ;;  %v1633_v1 = vadd.f32 %v6847_v33, %v1537_v12  ;;  %v6848_v16 = vld [vmem:[#allocation113_spill] sm:$0xff]  ;;  %v1540_v55 = vadd.f32 %v6850_v29, %v1428_v42  ;;  %v5693_v34 = vld [vmem:[%s6481_s0 + $0x70] sm:$0xff] }
 0x471   :  { %v2431_v10 = vmul.f32 %v2389_v45, %v5643_v21  ;;  %v2432_v59 = vmul.f32 %v2391_v4, %v5646_v20  ;;  %v1634_v14 = vadd.f32 %v6848_v16, %v1538_v50  ;;  %v6849_v45 = vld [vmem:[#allocation98_spill] sm:$0xff]  ;;  %v6851_v50 = vld [vmem:[#allocation28_spill] sm:$0xff]  ;;  %v6854_v16 = vld [vmem:[#allocation115_spill] sm:$0xff]  ;;  %3482 = vrsqrt.f32 %v1671_v9 }
 0x472   :  { %v1539_v4 = vadd.f32 %v6849_v45, %v1427_v6  ;;  %v1429_v28 = vmul.f32 %v5686_v60, %v6851_v50  ;;  %v6852_v6 = vld [vmem:[#allocation27_spill] sm:$0xff]  ;;  %v6855_v29 = vld [vmem:[#allocation100_spill] sm:$0xff]  ;;  %v6857_v9 = vld [vmem:[#allocation29_spill] sm:$0xff] }
 0x473   :  { %v2457_v47 = vsel %vm390_vm0, %v2431_v10, 0.0  ;;  %v2460_v0 = vsel %vm390_vm0, %v2432_v59, 0.0  ;;  %v1430_v10 = vmul.f32 %v5693_v34, %v6852_v6  ;;  %v5697_v59 = vmul.f32 %v3471_v7, %v1633_v1  ;;  %v6856_v1 = vld [vmem:[#allocation101_spill] sm:$0xff] }
 0x474   :  { %v2393_v18 = vpop.permute.xlu1 %2392  ;;  %2458 = vadd.xlane.f32.xlu0 %v2457_v47  ;;  %2461 = vadd.xlane.f32.xlu1 %v2460_v0  ;;  %v2395_v51 = vpop.permute.xlu0 %2394  ;;  %v1635_v42 = vadd.f32 %v6853_v19, %v1539_v4  ;;  %v5700_v33 = vmul.f32 %v3473_v37, %v1634_v14  ;;  %v1636_v47 = vadd.f32 %v6854_v16, %v1540_v55  ;;  %v6858_v19 = vld [vmem:[#allocation116_spill] sm:$0xff] }
 0x475   :  { %v2433_v12 = vmul.f32 %v2393_v18, %v5671_v11  ;;  %v2434_v58 = vmul.f32 %v2395_v51, %v5674_v57  ;;  %v5705_v18 = vpop.f32.mrb[0].mxu0  ;;  %v3475_v51 = vpop.eup %3474  ;;  %v1541_v50 = vadd.f32 %v6855_v29, %v1429_v28  ;;  %v1542_v4 = vadd.f32 %v6856_v1, %v1430_v10 }
 0x476   :  { %v5711_v55 = vpop.f32.mrb[1].mxu0  ;;  %v5720_v6 = vmul.f32 %v3475_v51, %v1635_v42 }
 0x477   :  { %v2463_v0 = vsel %vm390_vm0, %v2433_v12, 0.0  ;;  %v2466_v45 = vsel %vm390_vm0, %v2434_v58, 0.0  ;;  %v3477_v12 = vpop.eup %3476  ;;  %v5716_v58 = vld [vmem:[%s6481_s0 + $0x78] sm:$0xff]  ;;  %v1637_v16 = vadd.f32 %v6858_v19, %v1541_v50 }
 0x478   :  { %v2397_v30 = vpop.permute.xlu1 %2396  ;;  %2464 = vadd.xlane.f32.xlu0 %v2463_v0  ;;  %2467 = vadd.xlane.f32.xlu1 %v2466_v45  ;;  %v2399_v7 = vpop.permute.xlu0 %2398  ;;  %v1431_v28 = vmul.f32 %v5716_v58, %v6857_v9  ;;  %v5723_v10 = vmul.f32 %v3477_v12, %v1636_v47  ;;  %v6860_v9 = vld [vmem:[#allocation102_spill] sm:$0xff] }
 0x479   :  { %v2435_v37 = vmul.f32 %v2397_v30, %v5697_v59  ;;  %v2436_v14 = vmul.f32 %v2399_v7, %v5700_v33  ;;  %v6859_v30 = vld [vmem:[#allocation117_spill] sm:$0xff]  ;;  %v5728_v7 = vpop.f32.mrb[2].mxu0  ;;  %v3479_v1 = vpop.eup %3478 }
 0x47a   :  { %v1638_v0 = vadd.f32 %v6859_v30, %v1542_v4  ;;  %v1543_v42 = vadd.f32 %v6860_v9, %v1431_v28  ;;  %v5733_v50 = vpop.f32.mrb[3].mxu0  ;;  %v3481_v4 = vpop.eup %3480  ;;  %v5735_v12 = vmul.f32 %v3479_v1, %v1637_v16 }
 0x47b   :  { %v2469_v45 = vsel %vm390_vm0, %v2435_v37, 0.0  ;;  %v2472_v29 = vsel %vm390_vm0, %v2436_v14, 0.0  ;;  %v6861_v14 = vld [vmem:[#allocation118_spill] sm:$0xff] }
 0x47c   :  { %v2401_v44 = vpop.permute.xlu1 %2400  ;;  %2470 = vadd.xlane.f32.xlu0 %v2469_v45  ;;  %2473 = vadd.xlane.f32.xlu1 %v2472_v29  ;;  %v2403_v31 = vpop.permute.xlu0 %2402  ;;  %v5737_v37 = vmul.f32 %v3481_v4, %v1638_v0  ;;  %v1639_v19 = vadd.f32 %v6861_v14, %v1543_v42 }
 0x47d   :  { %v2437_v51 = vmul.f32 %v2401_v44, %v5720_v6  ;;  %v2438_v47 = vmul.f32 %v2403_v31, %v5723_v10  ;;  %v5742_v29 = vpop.f32.mrb[4].mxu0  ;;  %v3483_v0 = vpop.eup %3482 }
 0x47e   :  { %v5746_v16 = vpop.f32.mrb[5].mxu0  ;;  %v5748_v1 = vmul.f32 %v3483_v0, %v1639_v19 }
 0x47f   :  { %v2475_v30 = vsel %vm390_vm0, %v2437_v51, 0.0  ;;  %v2478_v45 = vsel %vm390_vm0, %v2438_v47, 0.0 }
 0x480   :  { %v2405_v28 = vpop.permute.xlu1 %2404  ;;  %2476 = vadd.xlane.f32.xlu0 %v2475_v30  ;;  %2479 = vadd.xlane.f32.xlu1 %v2478_v45  ;;  %v2407_v44 = vpop.permute.xlu0 %2406  ;;  %6862 = vst [vmem:[#allocation38_spill] sm:$0xff] %v5748_v1 }
 0x481   :  { %v2439_v31 = vmul.f32 %v2405_v28, %v5735_v12  ;;  %v2440_v9 = vmul.f32 %v2407_v44, %v5737_v37  ;;  %v5752_v47 = vpop.f32.mrb[6].mxu0  ;;  %v5757_v45 = vpop.f32.mrb[0].mxu1 }
 0x482   :  { %v5754_v14 = vpop.f32.mrb[7].mxu0  ;;  %v5759_v28 = vpop.f32.mrb[1].mxu1 }
 0x483   :  { %v2481_v42 = vsel %vm390_vm0, %v2439_v31, 0.0  ;;  %v2484_v51 = vsel %vm390_vm0, %v2440_v9, 0.0  ;;  %v5762_v44 = vpop.f32.mrb[2].mxu1 }
 0x484   :  { %v2409_v4 = vpop.permute.xlu1 %2408  ;;  %2482 = vadd.xlane.f32.xlu0 %v2481_v42  ;;  %2485 = vadd.xlane.f32.xlu1 %v2484_v51  ;;  %6863 = vst [vmem:[#allocation61_spill] sm:$0xff] %v5762_v44  ;;  %v5764_v31 = vpop.f32.mrb[3].mxu1 }
 0x485   :  { %v2441_v30 = vmul.f32 %v2409_v4, %v5748_v1  ;;  %v5777_v4 = vld [vmem:[%s6481_s0] sm:$0xff] }
 0x487   :  { %v2487_v19 = vsel %vm390_vm0, %v2441_v30, 0.0  ;;  %v5766_v9 = vpop.f32.mrb[4].mxu1  ;;  %v5783_v30 = vld [vmem:[%s6481_s0 + $0x10] sm:$0xff] }
 0x488   :  { %2488 = vadd.xlane.f32.xlu0 %v2487_v19  ;;  %6864 = vst [vmem:[#allocation41_spill] sm:$0xff] %v5766_v9  ;;  %v5768_v0 = vpop.f32.mrb[5].mxu1  ;;  %v5789_v19 = vld [vmem:[%s6481_s0 + $0x18] sm:$0xff]  ;;  %s3595_s0 = smov 108  }
 0x489   :  { %6865 = vst [vmem:[#allocation62_spill] sm:$0xff] %v5768_v0 }
 0x48b   :  { %v5770_v42 = vpop.f32.mrb[6].mxu1 }
 0x48c   :  { %6866 = vst [vmem:[#allocation40_spill] sm:$0xff] %v5770_v42  ;;  %v5772_v51 = vpop.f32.mrb[7].mxu1 }
 0x48d   :  { %6867 = vst [vmem:[#allocation63_spill] sm:$0xff] %v5772_v51 }
 0x495   :  { %2490 = vrot.lane.b32.xlu1 %v5777_v4, %s3594_s29 }
 0x499   :  { %2494 = vrot.lane.b32.xlu1 %v5783_v30, %s3594_s29 }
 0x49d   :  { %2496 = vrot.lane.b32.xlu1 %v5789_v19, %s3594_s29 }
 0x49e   :  { %2492 = vrot.lane.b32.xlu0 %v5795_v26, %s3594_s29 }
 0x4a1   :  { %2500 = vrot.lane.b32.xlu1 %v5801_v35, %s3594_s29 }
 0x4a2   :  { %2498 = vrot.lane.b32.xlu0 %v5807_v52, %s3594_s29 }
 0x4a5   :  { %2504 = vrot.lane.b32.xlu1 %v5813_v13, %s3594_s29 }
 0x4a6   :  { %2502 = vrot.lane.b32.xlu0 %v5819_v48, %s3594_s29 }
 0x4a9   :  { %2508 = vrot.lane.b32.xlu1 %v5825_v61, %s3594_s29 }
 0x4aa   :  { %2506 = vrot.lane.b32.xlu0 %v5831_v32, %s3594_s29 }
 0x4ad   :  { %2512 = vrot.lane.b32.xlu1 %v5658_v49, %s3594_s29 }
 0x4ae   :  { %2510 = vrot.lane.b32.xlu0 %v5637_v2, %s3594_s29 }
 0x4b1   :  { %2516 = vrot.lane.b32.xlu1 %v5686_v60, %s3594_s29 }
 0x4b2   :  { %2514 = vrot.lane.b32.xlu0 %v5667_v27, %s3594_s29 }
 0x4b5   :  { %2520 = vrot.lane.b32.xlu1 %v5716_v58, %s3594_s29 }
 0x4b6   :  { %2518 = vrot.lane.b32.xlu0 %v5693_v34, %s3594_s29 }
 0x4f5   :  { %v5840_v23 = vpop.xlane.xlu0 %2443 }
 0x4f9   :  { %v5842_v40 = vpop.xlane.xlu1 %2446  ;;  %v5844_v39 = vpop.xlane.xlu0 %2449 }
 0x4fd   :  { %v5846_v53 = vpop.xlane.xlu1 %2455  ;;  %v5848_v25 = vpop.xlane.xlu0 %2452 }
 0x501   :  { %v5850_v41 = vpop.xlane.xlu1 %2461  ;;  %v5852_v54 = vpop.xlane.xlu0 %2458 }
 0x505   :  { %v5854_v46 = vpop.xlane.xlu1 %2467  ;;  %v5856_v5 = vpop.xlane.xlu0 %2464 }
 0x509   :  { %v5858_v62 = vpop.xlane.xlu1 %2473  ;;  %v5860_v15 = vpop.xlane.xlu0 %2470 }
 0x50a   :  { %6868 = vst [vmem:[#allocation30_spill] sm:$0xff] %v5858_v62  ;;  %6869 = vst [vmem:[#allocation33_spill] sm:$0xff] %v5860_v15 }
 0x50d   :  { %v5862_v43 = vpop.xlane.xlu1 %2479  ;;  %v5864_v63 = vpop.xlane.xlu0 %2476 }
 0x50e   :  { %6870 = vst [vmem:[#allocation43_spill] sm:$0xff] %v5862_v43  ;;  %6871 = vst [vmem:[#allocation64_spill] sm:$0xff] %v5864_v63 }
 0x511   :  { %v5866_v8 = vpop.xlane.xlu1 %2485  ;;  %v5868_v56 = vpop.xlane.xlu0 %2482 }
 0x512   :  { %6872 = vst [vmem:[#allocation19_spill] sm:$0xff] %v5866_v8  ;;  %6873 = vst [vmem:[#allocation76_spill] sm:$0xff] %v5868_v56 }
 0x515   :  { %v2491_v17 = vpop.permute.xlu1 %2490  ;;  %v5870_v42 = vpop.xlane.xlu0 %2488 }
 0x516   :  { %6874 = vst [vmem:[#allocation20_spill] sm:$0xff] %v5870_v42  ;;  %v2538_v51 = vmul.f32 %v2491_v17, %v5592_v22 }
 0x518   :  { %v2554_v9 = vsel %vm390_vm0, %v2538_v51, 0.0 }
 0x519   :  { %2555 = vadd.xlane.f32.xlu0 %v2554_v9  ;;  %v2495_v0 = vpop.permute.xlu1 %2494  ;;  %v2493_v44 = vpop.permute.xlu0 %2492 }
 0x51a   :  { %v2540_v15 = vmul.f32 %v2495_v0, %v5607_v3  ;;  %v2539_v43 = vmul.f32 %v2493_v44, %v5605_v24 }
 0x51c   :  { %v2560_v63 = vsel %vm390_vm0, %v2540_v15, 0.0  ;;  %v2557_v8 = vsel %vm390_vm0, %v2539_v43, 0.0 }
 0x51d   :  { %2561 = vadd.xlane.f32.xlu0 %v2560_v63  ;;  %v2497_v56 = vpop.permute.xlu1 %2496  ;;  %2558 = vadd.xlane.f32.xlu1 %v2557_v8  ;;  %v2499_v62 = vpop.permute.xlu0 %2498 }
 0x51e   :  { %v2541_v42 = vmul.f32 %v2497_v56, %v5620_v38  ;;  %v2542_v17 = vmul.f32 %v2499_v62, %v5623_v36 }
 0x520   :  { %v2563_v9 = vsel %vm390_vm0, %v2541_v42, 0.0  ;;  %v2566_v51 = vsel %vm390_vm0, %v2542_v17, 0.0 }
 0x521   :  { %2564 = vadd.xlane.f32.xlu0 %v2563_v9  ;;  %v2501_v0 = vpop.permute.xlu1 %2500  ;;  %2567 = vadd.xlane.f32.xlu1 %v2566_v51  ;;  %v2503_v44 = vpop.permute.xlu0 %2502 }
 0x522   :  { %v2543_v15 = vmul.f32 %v2501_v0, %v5643_v21  ;;  %v2544_v43 = vmul.f32 %v2503_v44, %v5646_v20 }
 0x524   :  { %v2569_v63 = vsel %vm390_vm0, %v2543_v15, 0.0  ;;  %v2572_v8 = vsel %vm390_vm0, %v2544_v43, 0.0 }
 0x525   :  { %2570 = vadd.xlane.f32.xlu0 %v2569_v63  ;;  %v2505_v56 = vpop.permute.xlu1 %2504  ;;  %2573 = vadd.xlane.f32.xlu1 %v2572_v8  ;;  %v2507_v62 = vpop.permute.xlu0 %2506 }
 0x526   :  { %v2545_v42 = vmul.f32 %v2505_v56, %v5671_v11  ;;  %v2546_v17 = vmul.f32 %v2507_v62, %v5674_v57 }
 0x528   :  { %v2575_v9 = vsel %vm390_vm0, %v2545_v42, 0.0  ;;  %v2578_v51 = vsel %vm390_vm0, %v2546_v17, 0.0 }
 0x529   :  { %2576 = vadd.xlane.f32.xlu0 %v2575_v9  ;;  %v2509_v0 = vpop.permute.xlu1 %2508  ;;  %2579 = vadd.xlane.f32.xlu1 %v2578_v51  ;;  %v2511_v44 = vpop.permute.xlu0 %2510 }
 0x52a   :  { %v2547_v15 = vmul.f32 %v2509_v0, %v5697_v59  ;;  %v2548_v43 = vmul.f32 %v2511_v44, %v5700_v33 }
 0x52c   :  { %v2581_v63 = vsel %vm390_vm0, %v2547_v15, 0.0  ;;  %v2584_v8 = vsel %vm390_vm0, %v2548_v43, 0.0 }
 0x52d   :  { %2582 = vadd.xlane.f32.xlu0 %v2581_v63  ;;  %v2513_v56 = vpop.permute.xlu1 %2512  ;;  %2585 = vadd.xlane.f32.xlu1 %v2584_v8  ;;  %v2515_v62 = vpop.permute.xlu0 %2514 }
 0x52e   :  { %v2549_v42 = vmul.f32 %v2513_v56, %v5720_v6  ;;  %v2550_v17 = vmul.f32 %v2515_v62, %v5723_v10 }
 0x530   :  { %v2587_v9 = vsel %vm390_vm0, %v2549_v42, 0.0  ;;  %v2590_v51 = vsel %vm390_vm0, %v2550_v17, 0.0  ;;  %v5923_v17 = vld [vmem:[%s6493_s12] ss:$0 sm:$0xff]  ;;  %s1985_s12 = sld [smem:[#allocation9]] }
 0x531   :  { %2588 = vadd.xlane.f32.xlu0 %v2587_v9  ;;  %v2517_v0 = vpop.permute.xlu1 %2516  ;;  %2591 = vadd.xlane.f32.xlu1 %v2590_v51  ;;  %v2519_v44 = vpop.permute.xlu0 %2518  ;;  %v5928_v9 = vld [vmem:[%s6490_s9] ss:$0 sm:$0xff]  ;;  %v3047_v51 = vadd.f32 %v5923_v17, %v5711_v55 }
 0x532   :  { %v2551_v15 = vmul.f32 %v2517_v0, %v5735_v12  ;;  %v2552_v43 = vmul.f32 %v2519_v44, %v5737_v37  ;;  %v3130_v0 = vmul.f32 %v5928_v9, %v5840_v23  ;;  %v5937_v44 = vld [vmem:[%s6490_s9 + $0x1] ss:$0 sm:$0xff]  ;;  %v3132_v55 = vmul.f32 %v5928_v9, %v5844_v39 }
 0x533   :  { %v3133_v39 = vmul.f32 %v5928_v9, %v5848_v25 }
 0x534   :  { %v2593_v63 = vsel %vm390_vm0, %v2551_v15, 0.0  ;;  %v2596_v8 = vsel %vm390_vm0, %v2552_v43, 0.0  ;;  %v3052_v15 = vadd.f32 %v5705_v18, %v5923_v17  ;;  %v3131_v43 = vmul.f32 %v5928_v9, %v5842_v40 }
 0x535   :  { %2594 = vadd.xlane.f32.xlu0 %v2593_v63  ;;  %v2521_v56 = vpop.permute.xlu1 %2520  ;;  %2597 = vadd.xlane.f32.xlu1 %v2596_v8  ;;  %v3146_v8 = vadd.f32 %v3130_v0, %v3047_v51  ;;  %v3067_v18 = vadd.f32 %v5923_v17, %v5746_v16  ;;  %v3134_v40 = vmul.f32 %v5928_v9, %v5846_v53 }
 0x536   :  { %v2553_v62 = vmul.f32 %v2521_v56, %v5748_v1  ;;  %v3057_v56 = vadd.f32 %v5923_v17, %v5733_v50  ;;  %v3147_v1 = vadd.f32 %v3131_v43, %v3052_v15  ;;  %v3072_v16 = vadd.f32 %v5742_v29, %v5923_v17 }
 0x537   :  { %v3150_v15 = vadd.f32 %v3134_v40, %v3067_v18  ;;  %v3077_v53 = vadd.f32 %v5923_v17, %v5754_v14  ;;  %v3136_v43 = vmul.f32 %v5928_v9, %v5850_v41  ;;  %v3082_v14 = vadd.f32 %v5752_v47, %v5923_v17 }
 0x538   :  { %v2599_v42 = vsel %vm390_vm0, %v2553_v62, 0.0  ;;  %v3148_v50 = vadd.f32 %v3132_v55, %v3057_v56  ;;  %v3087_v41 = vadd.f32 %v5923_v17, %v5759_v28  ;;  %v3092_v28 = vadd.f32 %v5757_v45, %v5923_v17 }
 0x539   :  { %2600 = vadd.xlane.f32.xlu0 %v2599_v42  ;;  %v3062_v42 = vadd.f32 %v5728_v7, %v5923_v17  ;;  %v3152_v18 = vadd.f32 %v3136_v43, %v3077_v53  ;;  %v6875_v43 = vld [vmem:[#allocation30_spill] sm:$0xff] }
 0x53b   :  { %v3149_v55 = vadd.f32 %v3133_v39, %v3062_v42  ;;  %v3138_v42 = vmul.f32 %v5928_v9, %v5854_v46  ;;  %v3097_v46 = vadd.f32 %v5923_v17, %v5764_v31 }
 0x53d   :  { %v3154_v53 = vadd.f32 %v3138_v42, %v3087_v41  ;;  %v6878_v41 = vld [vmem:[#allocation61_spill] sm:$0xff] }
 0x53e   :  { %v3102_v31 = vadd.f32 %v6878_v41, %v5923_v17  ;;  %v6884_v41 = vld [vmem:[#allocation63_spill] sm:$0xff] }
 0x546   :  { %2602 = vrot.lane.b32.xlu1 %v5777_v4, %s3595_s0 }
 0x54a   :  { %2606 = vrot.lane.b32.xlu1 %v5783_v30, %s3595_s0 }
 0x54e   :  { %2608 = vrot.lane.b32.xlu1 %v5789_v19, %s3595_s0 }
 0x54f   :  { %2604 = vrot.lane.b32.xlu0 %v5795_v26, %s3595_s0 }
 0x552   :  { %2612 = vrot.lane.b32.xlu1 %v5801_v35, %s3595_s0 }
 0x553   :  { %2610 = vrot.lane.b32.xlu0 %v5807_v52, %s3595_s0 }
 0x556   :  { %2616 = vrot.lane.b32.xlu1 %v5813_v13, %s3595_s0 }
 0x557   :  { %2614 = vrot.lane.b32.xlu0 %v5819_v48, %s3595_s0 }
 0x55a   :  { %2620 = vrot.lane.b32.xlu1 %v5825_v61, %s3595_s0 }
 0x55b   :  { %2618 = vrot.lane.b32.xlu0 %v5831_v32, %s3595_s0 }
 0x55e   :  { %2624 = vrot.lane.b32.xlu1 %v5658_v49, %s3595_s0 }
 0x55f   :  { %2622 = vrot.lane.b32.xlu0 %v5637_v2, %s3595_s0 }
 0x562   :  { %2628 = vrot.lane.b32.xlu1 %v5686_v60, %s3595_s0 }
 0x563   :  { %2626 = vrot.lane.b32.xlu0 %v5667_v27, %s3595_s0 }
 0x566   :  { %2632 = vrot.lane.b32.xlu1 %v5716_v58, %s3595_s0 }
 0x567   :  { %2630 = vrot.lane.b32.xlu0 %v5693_v34, %s3595_s0 }
 0x5a6   :  { %v2556_v63 = vpop.xlane.xlu0 %2555 }
 0x5a7   :  { %v3167_v23 = vmul.f32 %v5937_v44, %v2556_v63 }
 0x5a9   :  { %v5948_v62 = vadd.f32 %v3167_v23, %v3146_v8 }
 0x5aa   :  { %v2559_v51 = vpop.xlane.xlu1 %2558  ;;  %v2562_v0 = vpop.xlane.xlu0 %2561 }
 0x5ab   :  { %v3168_v63 = vmul.f32 %v5937_v44, %v2559_v51  ;;  %v3169_v8 = vmul.f32 %v5937_v44, %v2562_v0  ;;  %v3135_v51 = vmul.f32 %v5928_v9, %v5852_v54 }
 0x5ad   :  { %v5960_v23 = vadd.f32 %v3168_v63, %v3147_v1  ;;  %v5962_v7 = vadd.f32 %v3169_v8, %v3148_v50  ;;  %v3151_v39 = vadd.f32 %v3135_v51, %v3072_v16  ;;  %v3137_v63 = vmul.f32 %v5928_v9, %v5856_v5  ;;  %v6876_v51 = vld [vmem:[#allocation33_spill] sm:$0xff] }
 0x5ae   :  { %v2568_v56 = vpop.xlane.xlu1 %2567  ;;  %v2565_v25 = vpop.xlane.xlu0 %2564  ;;  %v3140_v16 = vmul.f32 %v5928_v9, %v6875_v43 }
 0x5af   :  { %v3171_v1 = vmul.f32 %v5937_v44, %v2568_v56  ;;  %v3170_v0 = vmul.f32 %v5937_v44, %v2565_v25 }
 0x5b0   :  { %v3156_v42 = vadd.f32 %v3140_v16, %v3097_v46  ;;  %v6883_v46 = vld [vmem:[#allocation41_spill] sm:$0xff] }
 0x5b1   :  { %v5974_v50 = vadd.f32 %v3171_v1, %v3150_v15  ;;  %v5976_v29 = vadd.f32 %v3170_v0, %v3149_v55  ;;  %v3153_v55 = vadd.f32 %v3137_v63, %v3082_v14  ;;  %v3139_v1 = vmul.f32 %v5928_v9, %v6876_v51 }
 0x5b2   :  { %v2574_v40 = vpop.xlane.xlu1 %2573  ;;  %v2571_v54 = vpop.xlane.xlu0 %2570  ;;  %v3112_v16 = vadd.f32 %v6883_v46, %v5923_v17 }
 0x5b3   :  { %v3173_v8 = vmul.f32 %v5937_v44, %v2574_v40  ;;  %v3172_v15 = vmul.f32 %v5937_v44, %v2571_v54  ;;  %v6879_v54 = vld [vmem:[#allocation62_spill] sm:$0xff]  ;;  %v3155_v43 = vadd.f32 %v3139_v1, %v3092_v28 }
 0x5b5   :  { %v5988_v56 = vadd.f32 %v3173_v8, %v3152_v18  ;;  %v5990_v47 = vadd.f32 %v3172_v15, %v3151_v39  ;;  %v3107_v39 = vadd.f32 %v5923_v17, %v6879_v54  ;;  %v6880_v8 = vld [vmem:[#allocation43_spill] sm:$0xff]  ;;  %v3117_v54 = vadd.f32 %v5923_v17, %v6884_v41 }
 0x5b6   :  { %v2580_v25 = vpop.xlane.xlu1 %2579  ;;  %v2577_v5 = vpop.xlane.xlu0 %2576  ;;  %v3142_v14 = vmul.f32 %v5928_v9, %v6880_v8  ;;  %v6885_v8 = vld [vmem:[#allocation19_spill] sm:$0xff] }
 0x5b7   :  { %v3175_v0 = vmul.f32 %v5937_v44, %v2580_v25  ;;  %v3174_v18 = vmul.f32 %v5937_v44, %v2577_v5  ;;  %v6881_v25 = vld [vmem:[#allocation64_spill] sm:$0xff]  ;;  %v3144_v28 = vmul.f32 %v5928_v9, %v6885_v8 }
 0x5b8   :  { %v3141_v5 = vmul.f32 %v5928_v9, %v6881_v25 }
 0x5b9   :  { %v6002_v40 = vadd.f32 %v3175_v0, %v3154_v53  ;;  %v6004_v45 = vadd.f32 %v3174_v18, %v3153_v55  ;;  %v3158_v18 = vadd.f32 %v3142_v14, %v3107_v39  ;;  %v6887_v39 = vld [vmem:[#allocation40_spill] sm:$0xff]  ;;  %v3160_v46 = vadd.f32 %v3144_v28, %v3117_v54 }
 0x5ba   :  { %v2586_v63 = vpop.xlane.xlu1 %2585  ;;  %v2583_v15 = vpop.xlane.xlu0 %2582  ;;  %v3122_v14 = vadd.f32 %v6887_v39, %v5923_v17  ;;  %v6049_v39 = vstv %s1985_s12 }
 0x5bb   :  { %6877 = vst [vmem:[#allocation77_spill] sm:$0xff] %v6002_v40  ;;  %v3177_v53 = vmul.f32 %v5937_v44, %v2586_v63  ;;  %v3176_v55 = vmul.f32 %v5937_v44, %v2583_v15  ;;  %v3157_v40 = vadd.f32 %v3141_v5, %v3102_v31  ;;  %v6886_v63 = vld [vmem:[#allocation76_spill] sm:$0xff] }
 0x5bc   :  { %v3143_v15 = vmul.f32 %v5928_v9, %v6886_v63  ;;  %v6888_v31 = vld [vmem:[#allocation20_spill] sm:$0xff] }
 0x5bd   :  { %v6016_v51 = vadd.f32 %v3177_v53, %v3156_v42  ;;  %v6018_v0 = vadd.f32 %v3176_v55, %v3155_v43  ;;  %v3145_v5 = vmul.f32 %v5928_v9, %v6888_v31 }
 0x5be   :  { %v2592_v1 = vpop.xlane.xlu1 %2591  ;;  %v2589_v25 = vpop.xlane.xlu0 %2588 }
 0x5bf   :  { %6882 = vst [vmem:[#allocation78_spill] sm:$0xff] %v6018_v0  ;;  %v3179_v42 = vmul.f32 %v5937_v44, %v2592_v1  ;;  %v3178_v43 = vmul.f32 %v5937_v44, %v2589_v25  ;;  %v3159_v0 = vadd.f32 %v3143_v15, %v3112_v16 }
 0x5c1   :  { %v6030_v53 = vadd.f32 %v3179_v42, %v3158_v18  ;;  %v6032_v55 = vadd.f32 %v3178_v43, %v3157_v40  ;;  %v3161_v43 = vadd.f32 %v3145_v5, %v3122_v14  ;;  %v6060_v5 = vstv %s6488_s7 }
 0x5c2   :  { %v2598_v41 = vpop.xlane.xlu1 %2597  ;;  %v2595_v8 = vpop.xlane.xlu0 %2594 }
 0x5c3   :  { %v3181_v63 = vmul.f32 %v5937_v44, %v2598_v41  ;;  %v3180_v1 = vmul.f32 %v5937_v44, %v2595_v8 }
 0x5c5   :  { %v6040_v25 = vadd.f32 %v3181_v63, %v3160_v46  ;;  %v6042_v18 = vadd.f32 %v3180_v1, %v3159_v0 }
 0x5c6   :  { %v2603_v40 = vpop.permute.xlu1 %2602  ;;  %v2601_v42 = vpop.xlane.xlu0 %2600 }
 0x5c7   :  { %v2650_v17 = vmul.f32 %v2603_v40, %v5592_v22  ;;  %v3182_v54 = vmul.f32 %v5937_v44, %v2601_v42  ;;  %v1987_v44 = vmul.f32 %v5777_v4, %v6049_v39  ;;  %v1989_v4 = vmul.f32 %v5783_v30, %v6049_v39 }
 0x5c9   :  { %v6046_v28 = vadd.f32 %v3182_v54, %v3161_v43  ;;  %v2666_v16 = vsel %vm390_vm0, %v2650_v17, 0.0  ;;  %v2004_v43 = vadd.f32 %v6060_v5, %v1987_v44  ;;  %v6891_v44 = vld [vmem:[#allocation136_spill] sm:$0xff] }
 0x5ca   :  { %2667 = vadd.xlane.f32.xlu0 %v2666_v16  ;;  %v2607_v9 = vpop.permute.xlu1 %2606  ;;  %v2605_v15 = vpop.permute.xlu0 %2604 }
 0x5cb   :  { %v2652_v46 = vmul.f32 %v2607_v9, %v5607_v3  ;;  %v2651_v0 = vmul.f32 %v2605_v15, %v5605_v24  ;;  %v6889_v9 = vld [vmem:[#allocation132_spill] sm:$0xff] }
 0x5cc   :  { %v2102_v15 = vadd.f32 %v6889_v9, %v2004_v43  ;;  %v6893_v43 = vld [vmem:[#allocation153_spill] sm:$0xff] }
 0x5cd   :  { %v2672_v41 = vsel %vm390_vm0, %v2652_v46, 0.0  ;;  %v2669_v14 = vsel %vm390_vm0, %v2651_v0, 0.0  ;;  %v2006_v46 = vadd.f32 %v6060_v5, %v1989_v4  ;;  %v1990_v0 = vmul.f32 %v5789_v19, %v6049_v39 }
 0x5ce   :  { %2673 = vadd.xlane.f32.xlu0 %v2672_v41  ;;  %v2609_v8 = vpop.permute.xlu1 %2608  ;;  %2670 = vadd.xlane.f32.xlu1 %v2669_v14  ;;  %v2611_v31 = vpop.permute.xlu0 %2610  ;;  %v1988_v41 = vmul.f32 %v5795_v26, %v6049_v39  ;;  %v6890_v14 = vld [vmem:[#allocation151_spill] sm:$0xff]  ;;  %v1991_v19 = vmul.f32 %v5807_v52, %v6049_v39  ;;  %v1994_v26 = vmul.f32 %v5813_v13, %v6049_v39  ;;  %v6897_v52 = vld [vmem:[#allocation154_spill] sm:$0xff] }
 0x5cf   :  { %v2653_v63 = vmul.f32 %v2609_v8, %v5620_v38  ;;  %v2654_v1 = vmul.f32 %v2611_v31, %v5623_v36  ;;  %v2200_v30 = vadd.f32 %v6890_v14, %v2102_v15  ;;  %v2104_v8 = vadd.f32 %v6891_v44, %v2006_v46  ;;  %v6895_v15 = vld [vmem:[#allocation169_spill] sm:$0xff] }
 0x5d0   :  { %v2007_v31 = vadd.f32 %v6060_v5, %v1990_v0  ;;  %v2008_v14 = vadd.f32 %v6060_v5, %v1991_v19  ;;  %v2011_v44 = vadd.f32 %v6060_v5, %v1994_v26  ;;  %v1995_v13 = vmul.f32 %v5831_v32, %v6049_v39  ;;  %v6900_v19 = vld [vmem:[#allocation170_spill] sm:$0xff] }
 0x5d1   :  { %v2675_v40 = vsel %vm390_vm0, %v2653_v63, 0.0  ;;  %v2678_v42 = vsel %vm390_vm0, %v2654_v1, 0.0  ;;  %v1992_v63 = vmul.f32 %v5801_v35, %v6049_v39  ;;  %v6892_v1 = vld [vmem:[#allocation167_spill] sm:$0xff]  ;;  %v2202_v4 = vadd.f32 %v6893_v43, %v2104_v8 }
 0x5d2   :  { %2676 = vadd.xlane.f32.xlu0 %v2675_v40  ;;  %v2613_v17 = vpop.permute.xlu1 %2612  ;;  %2679 = vadd.xlane.f32.xlu1 %v2678_v42  ;;  %v2298_v40 = vadd.f32 %v6892_v1, %v2200_v30  ;;  %v2005_v42 = vadd.f32 %v6060_v5, %v1988_v41  ;;  %v6896_v35 = vld [vmem:[#allocation135_spill] sm:$0xff]  ;;  %v1993_v41 = vmul.f32 %v5819_v48, %v6049_v39  ;;  %v6899_v1 = vld [vmem:[#allocation140_spill] sm:$0xff] }
 0x5d3   :  { %v2655_v54 = vmul.f32 %v2613_v17, %v5643_v21  ;;  %v6894_v17 = vld [vmem:[#allocation138_spill] sm:$0xff]  ;;  %v2300_v46 = vadd.f32 %v6895_v15, %v2202_v4  ;;  %v1996_v8 = vmul.f32 %v5825_v61, %v6049_v39  ;;  %v6901_v48 = vld [vmem:[#allocation139_spill] sm:$0xff]  ;;  %v1997_v32 = vmul.f32 %v5637_v2, %v6049_v39  ;;  %v6903_v61 = vld [vmem:[#allocation156_spill] sm:$0xff] }
 0x5d4   :  { %v2330_v9 = vmul.f32 0.2, %v2298_v40  ;;  %v2103_v0 = vadd.f32 %v6896_v35, %v2005_v42  ;;  %vm2314_vm7 = vcmp.gt.f32.partialorder %v2298_v40, 0.0  ;;  %v2106_v15 = vadd.f32 %v6901_v48, %v2008_v14  ;;  %v6902_v35 = vld [vmem:[#allocation168_spill] sm:$0xff] }
 0x5d5   :  { %v2681_v16 = vsel %vm390_vm0, %v2655_v54, 0.0  ;;  %v2105_v54 = vadd.f32 %v6894_v17, %v2007_v31  ;;  %v6898_v31 = vld [vmem:[#allocation152_spill] sm:$0xff]  ;;  %v2332_v43 = vmul.f32 0.2, %v2300_v46  ;;  %vm2316_vm8 = vcmp.gt.f32.partialorder %v2300_v46, 0.0 }
 0x5d6   :  { %2682 = vadd.xlane.f32.xlu0 %v2681_v16  ;;  %v2009_v16 = vadd.f32 %v6060_v5, %v1992_v63  ;;  %v2201_v63 = vadd.f32 %v6898_v31, %v2103_v0  ;;  %v2346_v17 = vsel %vm2314_vm7, %v2298_v40, %v2330_v9  ;;  %v1998_v40 = vmul.f32 %v5658_v49, %v6049_v39  ;;  %v6904_v9 = vld [vmem:[#allocation155_spill] sm:$0xff] }
 0x5d7   :  { %v2203_v30 = vadd.f32 %v6897_v52, %v2105_v54  ;;  %v2010_v54 = vadd.f32 %v6060_v5, %v1993_v41  ;;  %v2013_v52 = vadd.f32 %v6060_v5, %v1996_v8  ;;  %v2204_v14 = vadd.f32 %v6904_v9, %v2106_v15  ;;  %v6905_v41 = vld [vmem:[#allocation142_spill] sm:$0xff]  ;;  %v6912_v9 = vld [vmem:[#allocation144_spill] sm:$0xff] }
 0x5d8   :  { %v2107_v42 = vadd.f32 %v6899_v1, %v2009_v16  ;;  %v2299_v26 = vadd.f32 %v6902_v35, %v2201_v63  ;;  %v2012_v16 = vadd.f32 %v6060_v5, %v1995_v13  ;;  %v6906_v63 = vld [vmem:[#allocation72_spill] sm:$0xff]  ;;  %v6908_v35 = vld [vmem:[#allocation171_spill] sm:$0xff]  ;;  %v2014_v13 = vadd.f32 %v6060_v5, %v1997_v32  ;;  %v6909_v8 = vld [vmem:[#allocation158_spill] sm:$0xff] }
 0x5d9   :  { %v2301_v4 = vadd.f32 %v6900_v19, %v2203_v30  ;;  %v2109_v30 = vadd.f32 %v6905_v41, %v2011_v44  ;;  %v2348_v19 = vsel %vm2316_vm8, %v2300_v46, %v2332_v43  ;;  %v1999_v49 = vmul.f32 %v5667_v27, %v6049_v39  ;;  %v6910_v44 = vld [vmem:[#allocation143_spill] sm:$0xff]  ;;  %v6914_v27 = vld [vmem:[#allocation36_spill] sm:$0xff] }
 0x5da   :  { %v2205_v0 = vadd.f32 %v6903_v61, %v2107_v42  ;;  %v2331_v2 = vmul.f32 0.2, %v2299_v26  ;;  %v2302_v42 = vadd.f32 %v6908_v35, %v2204_v14  ;;  %vm2315_vm10 = vcmp.gt.f32.partialorder %v2299_v26, 0.0 }
 0x5db   :  { %v2333_v31 = vmul.f32 0.2, %v2301_v4  ;;  %vm2317_vm9 = vcmp.gt.f32.partialorder %v2301_v4, 0.0  ;;  %v2207_v15 = vadd.f32 %v6909_v8, %v2109_v30  ;;  %v2110_v61 = vadd.f32 %v6910_v44, %v2012_v16 }
 0x5dc   :  { %v2303_v1 = vadd.f32 %v6906_v63, %v2205_v0  ;;  %v2015_v46 = vadd.f32 %v6060_v5, %v1998_v40  ;;  %v2000_v43 = vmul.f32 %v5686_v60, %v6049_v39  ;;  %v2111_v14 = vadd.f32 %v6912_v9, %v2013_v52  ;;  %v6913_v63 = vld [vmem:[#allocation73_spill] sm:$0xff]  ;;  %v6915_v40 = vld [vmem:[#allocation160_spill] sm:$0xff] }
 0x5dd   :  { %v2305_v32 = vadd.f32 %v6913_v63, %v2207_v15  ;;  %v2347_v30 = vsel %vm2315_vm10, %v2299_v26, %v2331_v2  ;;  %v2016_v16 = vadd.f32 %v6060_v5, %v1999_v49  ;;  %v2001_v60 = vmul.f32 %v5693_v34, %v6049_v39  ;;  %v6916_v52 = vld [vmem:[#allocation145_spill] sm:$0xff]  ;;  %v6917_v15 = vld [vmem:[#allocation159_spill] sm:$0xff]  ;;  %v6918_v2 = vld [vmem:[#allocation146_spill] sm:$0xff] }
 0x5de   :  { %v2335_v41 = vmul.f32 0.2, %v2303_v1  ;;  %vm2319_vm11 = vcmp.gt.f32.partialorder %v2303_v1, 0.0  ;;  %vm2318_vm12 = vcmp.gt.f32.partialorder %v2302_v42, 0.0  ;;  %v2112_v8 = vadd.f32 %v6916_v52, %v2014_v13  ;;  %v6921_v13 = vld [vmem:[#allocation162_spill] sm:$0xff] }
 0x5df   :  { %v2208_v26 = vadd.f32 %v6917_v15, %v2110_v61  ;;  %v2113_v44 = vadd.f32 %v6918_v2, %v2015_v46  ;;  %v2337_v49 = vmul.f32 0.2, %v2305_v32  ;;  %vm2321_vm13 = vcmp.gt.f32.partialorder %v2305_v32, 0.0  ;;  %v6926_v15 = vld [vmem:[#allocation39_spill] sm:$0xff] }
 0x5e0   :  { %v2351_v34 = vsel %vm2319_vm11, %v2303_v1, %v2335_v41  ;;  %v2018_v61 = vadd.f32 %v6060_v5, %v2001_v60  ;;  %v6924_v41 = vld [vmem:[#allocation148_spill] sm:$0xff] }
 0x5e3   :  { %2794 = vrot.lane.b32.xlu1 %v2346_v17, %s3593_s18  ;;  %v6907_v17 = vld [vmem:[#allocation141_spill] sm:$0xff] }
 0x5e4   :  { %v2108_v48 = vadd.f32 %v6907_v17, %v2010_v54  ;;  %v6911_v54 = vld [vmem:[#allocation157_spill] sm:$0xff]  ;;  %v2334_v17 = vmul.f32 0.2, %v2302_v42 }
 0x5e6   :  { %v2206_v0 = vadd.f32 %v6911_v54, %v2108_v48  ;;  %v2209_v48 = vadd.f32 %v6915_v40, %v2111_v14  ;;  %v6919_v54 = vld [vmem:[#allocation59_spill] sm:$0xff]  ;;  %v6920_v14 = vld [vmem:[#allocation37_spill] sm:$0xff] }
 0x5e7   :  { %2798 = vrot.lane.b32.xlu1 %v2348_v19, %s3593_s18  ;;  %v2349_v19 = vsel %vm2317_vm9, %v2301_v4, %v2333_v31  ;;  %v2017_v4 = vadd.f32 %v6060_v5, %v2000_v43  ;;  %v2002_v31 = vmul.f32 %v5716_v58, %v6049_v39  ;;  %v2306_v63 = vadd.f32 %v6920_v14, %v2208_v26  ;;  %v6922_v58 = vld [vmem:[#allocation147_spill] sm:$0xff] }
 0x5e8   :  { %v2304_v35 = vadd.f32 %v6914_v27, %v2206_v0  ;;  %v2307_v0 = vadd.f32 %v6919_v54, %v2209_v48  ;;  %v2211_v43 = vadd.f32 %v6921_v13, %v2113_v44  ;;  %v2114_v39 = vadd.f32 %v6922_v58, %v2016_v16  ;;  %v6923_v27 = vld [vmem:[#allocation161_spill] sm:$0xff]  ;;  %v6925_v48 = vld [vmem:[#allocation60_spill] sm:$0xff]  ;;  %v6932_v13 = vld [vmem:[#allocation15_spill] sm:$0xff] }
 0x5e9   :  { %v2019_v46 = vadd.f32 %v6060_v5, %v2002_v31  ;;  %v2210_v1 = vadd.f32 %v6923_v27, %v2112_v8  ;;  %v6927_v16 = vld [vmem:[#allocation164_spill] sm:$0xff]  ;;  %vm2322_vm1 = vcmp.gt.f32.partialorder %v2306_v63, 0.0  ;;  %v6928_v5 = vld [vmem:[#allocation149_spill] sm:$0xff]  ;;  %v6929_v8 = vld [vmem:[#allocation163_spill] sm:$0xff] }
 0x5ea   :  { %v2336_v9 = vmul.f32 0.2, %v2304_v35  ;;  %vm2320_vm14 = vcmp.gt.f32.partialorder %v2304_v35, 0.0  ;;  %v2339_v40 = vmul.f32 0.2, %v2307_v0  ;;  %v2309_v52 = vadd.f32 %v6925_v48, %v2211_v43  ;;  %v6930_v31 = vld [vmem:[#allocation150_spill] sm:$0xff] }
 0x5eb   :  { %2800 = vrot.lane.b32.xlu1 %v2349_v19, %s3593_s18  ;;  %v2350_v19 = vsel %vm2318_vm12, %v2302_v42, %v2334_v17  ;;  %v2353_v42 = vsel %vm2321_vm13, %v2305_v32, %v2337_v49  ;;  %v2338_v17 = vmul.f32 0.2, %v2306_v63  ;;  %v2308_v26 = vadd.f32 %v6926_v15, %v2210_v1  ;;  %v6931_v32 = vld [vmem:[#allocation74_spill] sm:$0xff] }
 0x5ec   :  { %2796 = vrot.lane.b32.xlu0 %v2347_v30, %s3593_s18  ;;  %v2115_v30 = vadd.f32 %v6924_v41, %v2017_v4  ;;  %v2352_v2 = vsel %vm2320_vm14, %v2304_v35, %v2336_v9  ;;  %vm2323_vm15 = vcmp.gt.f32.partialorder %v2307_v0, 0.0  ;;  %v2116_v60 = vadd.f32 %v6928_v5, %v2018_v61  ;;  %v6933_v9 = vld [vmem:[#allocation166_spill] sm:$0xff]  ;;  %v6934_v61 = vld [vmem:[#allocation165_spill] sm:$0xff] }
 0x5ed   :  { %v2212_v4 = vadd.f32 %v6929_v8, %v2114_v39  ;;  %v2117_v54 = vadd.f32 %v6930_v31, %v2019_v46  ;;  %v2355_v14 = vsel %vm2323_vm15, %v2307_v0, %v2339_v40  ;;  %v2354_v35 = vsel %vm2322_vm1, %v2306_v63, %v2338_v17  ;;  %v6935_v46 = vld [vmem:[#allocation75_spill] sm:$0xff]  ;;  %v6936_v0 = vld [vmem:[#allocation16_spill] sm:$0xff] }
 0x5ee   :  { %v2213_v44 = vadd.f32 %v6927_v16, %v2115_v30  ;;  %vm2325_vm2 = vcmp.gt.f32.partialorder %v2309_v52, 0.0  ;;  %vm2324_vm3 = vcmp.gt.f32.partialorder %v2308_v26, 0.0  ;;  %v2214_v39 = vadd.f32 %v6934_v61, %v2116_v60  ;;  %v2617_v16 = vpop.permute.xlu1 %2616 }
 0x5ef   :  { %2804 = vrot.lane.b32.xlu1 %v2351_v34, %s3593_s18  ;;  %v2341_v34 = vmul.f32 0.2, %v2309_v52  ;;  %v2310_v43 = vadd.f32 %v6932_v13, %v2212_v4  ;;  %v2215_v58 = vadd.f32 %v6933_v9, %v2117_v54  ;;  %v2657_v4 = vmul.f32 %v2617_v16, %v5671_v11  ;;  %v6940_v16 = vld [vmem:[#allocation121_spill] sm:$0xff] }
 0x5f0   :  { %2802 = vrot.lane.b32.xlu0 %v2350_v19, %s3593_s18  ;;  %v2311_v49 = vadd.f32 %v6931_v32, %v2213_v44  ;;  %v2340_v19 = vmul.f32 0.2, %v2308_v26  ;;  %v2312_v40 = vadd.f32 %v6936_v0, %v2214_v39  ;;  %v6937_v0 = vld [vmem:[#allocation38_spill] sm:$0xff] }
 0x5f1   :  { %v2313_v1 = vadd.f32 %v6935_v46, %v2215_v58  ;;  %v2357_v41 = vsel %vm2325_vm2, %v2309_v52, %v2341_v34  ;;  %v2342_v30 = vmul.f32 0.2, %v2310_v43  ;;  %vm2326_vm6 = vcmp.gt.f32.partialorder %v2310_v43, 0.0 }
 0x5f2   :  { %v2343_v27 = vmul.f32 0.2, %v2311_v49  ;;  %v2356_v48 = vsel %vm2324_vm3, %v2308_v26, %v2340_v19  ;;  %vm2327_vm5 = vcmp.gt.f32.partialorder %v2311_v49, 0.0  ;;  %v2344_v17 = vmul.f32 0.2, %v2312_v40  ;;  %v2615_v26 = vpop.permute.xlu0 %2614  ;;  %v2621_v5 = vpop.permute.xlu1 %2620 }
 0x5f3   :  { %2808 = vrot.lane.b32.xlu1 %v2353_v42, %s3593_s18  ;;  %v2345_v63 = vmul.f32 0.2, %v2313_v1  ;;  %v2358_v15 = vsel %vm2326_vm6, %v2310_v43, %v2342_v30  ;;  %vm2329_vm7 = vcmp.gt.f32.partialorder %v2313_v1, 0.0  ;;  %vm2328_vm8 = vcmp.gt.f32.partialorder %v2312_v40, 0.0 }
 0x5f4   :  { %2806 = vrot.lane.b32.xlu0 %v2352_v2, %s3593_s18  ;;  %v2359_v42 = vsel %vm2327_vm5, %v2311_v49, %v2343_v27  ;;  %v2360_v2 = vsel %vm2328_vm8, %v2312_v40, %v2344_v17  ;;  %v2656_v60 = vmul.f32 %v2615_v26, %v5646_v20  ;;  %v2659_v49 = vmul.f32 %v2621_v5, %v5697_v59 }
 0x5f5   :  { %v2361_v52 = vsel %vm2329_vm7, %v2313_v1, %v2345_v63  ;;  %v2687_v19 = vsel %vm390_vm0, %v2657_v4, 0.0 }
 0x5f6   :  { %v2619_v44 = vpop.permute.xlu0 %2618  ;;  %v2684_v54 = vsel %vm390_vm0, %v2656_v60, 0.0  ;;  %v2625_v34 = vpop.permute.xlu1 %2624  ;;  %v2693_v58 = vsel %vm390_vm0, %v2659_v49, 0.0  ;;  %v6943_v49 = vld [vmem:[#allocation124_spill] sm:$0xff] }
 0x5f7   :  { %2812 = vrot.lane.b32.xlu1 %v2355_v14, %s3593_s18  ;;  %v2658_v31 = vmul.f32 %v2619_v44, %v5674_v57  ;;  %v2716_v44 = vmul.f32 %v6940_v16, %v5607_v3  ;;  %v6951_v16 = vld [vmem:[#allocation133_spill] sm:$0xff] }
 0x5f8   :  { %2810 = vrot.lane.b32.xlu0 %v2354_v35, %s3593_s18  ;;  %v2661_v35 = vmul.f32 %v2625_v34, %v5720_v6 }
 0x5f9   :  { %v2690_v13 = vsel %vm390_vm0, %v2658_v31, 0.0  ;;  %v2736_v60 = vsel %vm390_vm0, %v2716_v44, 0.0  ;;  %v6942_v31 = vld [vmem:[#allocation123_spill] sm:$0xff]  ;;  %v2727_v44 = vmul.f32 %v6951_v16, %v5735_v12 }
 0x5fa   :  { %v2623_v8 = vpop.permute.xlu0 %2622  ;;  %v2629_v43 = vpop.permute.xlu1 %2628  ;;  %v2699_v1 = vsel %vm390_vm0, %v2661_v35, 0.0 }
 0x5fb   :  { %2816 = vrot.lane.b32.xlu1 %v2357_v41, %s3593_s18  ;;  %v2660_v14 = vmul.f32 %v2623_v8, %v5700_v33  ;;  %v2663_v27 = vmul.f32 %v2629_v43, %v5735_v12  ;;  %v6941_v8 = vld [vmem:[#allocation122_spill] sm:$0xff] }
 0x5fc   :  { %2814 = vrot.lane.b32.xlu0 %v2356_v48, %s3593_s18  ;;  %v2717_v4 = vmul.f32 %v6941_v8, %v5620_v38  ;;  %v2769_v8 = vsel %vm390_vm0, %v2727_v44, 0.0 }
 0x5fd   :  { %v2696_v61 = vsel %vm390_vm0, %v2660_v14, 0.0  ;;  %v2705_v48 = vsel %vm390_vm0, %v2663_v27, 0.0  ;;  %v2719_v14 = vmul.f32 %v6943_v49, %v5643_v21 }
 0x5fe   :  { %v2627_v32 = vpop.permute.xlu0 %2626  ;;  %v2633_v30 = vpop.permute.xlu1 %2632  ;;  %v2739_v34 = vsel %vm390_vm0, %v2717_v4, 0.0 }
 0x5ff   :  { %2820 = vrot.lane.b32.xlu1 %v2359_v42, %s3593_s18  ;;  %v2662_v9 = vmul.f32 %v2627_v32, %v5723_v10  ;;  %v2665_v40 = vmul.f32 %v2633_v30, %v6937_v0  ;;  %v6938_v42 = vld [vmem:[#allocation119_spill] sm:$0xff]  ;;  %v2745_v43 = vsel %vm390_vm0, %v2719_v14, 0.0  ;;  %v6948_v30 = vld [vmem:[#allocation129_spill] sm:$0xff] }
 0x600   :  { %2818 = vrot.lane.b32.xlu0 %v2358_v15, %s3593_s18  ;;  %v2714_v17 = vmul.f32 %v6938_v42, %v5592_v22  ;;  %v6949_v42 = vld [vmem:[#allocation130_spill] sm:$0xff] }
 0x601   :  { %v2702_v41 = vsel %vm390_vm0, %v2662_v9, 0.0  ;;  %v2711_v15 = vsel %vm390_vm0, %v2665_v40, 0.0  ;;  %v6945_v9 = vld [vmem:[#allocation126_spill] sm:$0xff]  ;;  %v2724_v40 = vmul.f32 %v6948_v30, %v5700_v33 }
 0x602   :  { %v2631_v39 = vpop.permute.xlu0 %2630 }
 0x603   :  { %2824 = vrot.lane.b32.xlu1 %v2361_v52, %s3593_s18  ;;  %v2664_v46 = vmul.f32 %v2631_v39, %v5737_v37  ;;  %v2730_v52 = vsel %vm390_vm0, %v2714_v17, 0.0  ;;  %v2725_v17 = vmul.f32 %v6949_v42, %v5720_v6 }
 0x604   :  { %2822 = vrot.lane.b32.xlu0 %v2360_v2, %s3593_s18  ;;  %v6939_v2 = vld [vmem:[#allocation120_spill] sm:$0xff] }
 0x605   :  { %v2708_v63 = vsel %vm390_vm0, %v2664_v46, 0.0  ;;  %v2715_v26 = vmul.f32 %v6939_v2, %v5605_v24  ;;  %v2763_v2 = vsel %vm390_vm0, %v2725_v17, 0.0 }
 0x607   :  { %v2733_v5 = vsel %vm390_vm0, %v2715_v26, 0.0 }
 0x623   :  { %2685 = vadd.xlane.f32.xlu0 %v2684_v54  ;;  %v2718_v54 = vmul.f32 %v6942_v31, %v5623_v36  ;;  %v6953_v31 = vld [vmem:[#allocation137_spill] sm:$0xff] }
 0x625   :  { %v2742_v32 = vsel %vm390_vm0, %v2718_v54, 0.0  ;;  %v2729_v54 = vmul.f32 %v6953_v31, %v6937_v0 }
 0x627   :  { %2688 = vadd.xlane.f32.xlu1 %v2687_v19  ;;  %2691 = vadd.xlane.f32.xlu0 %v2690_v13  ;;  %v6944_v19 = vld [vmem:[#allocation125_spill] sm:$0xff] }
 0x628   :  { %v2720_v13 = vmul.f32 %v6944_v19, %v5646_v20 }
 0x62a   :  { %v2748_v35 = vsel %vm390_vm0, %v2720_v13, 0.0 }
 0x62b   :  { %2694 = vadd.xlane.f32.xlu0 %v2693_v58  ;;  %2697 = vadd.xlane.f32.xlu1 %v2696_v61  ;;  %v2721_v58 = vmul.f32 %v6945_v9, %v5671_v11  ;;  %v6946_v61 = vld [vmem:[#allocation127_spill] sm:$0xff] }
 0x62c   :  { %v2722_v39 = vmul.f32 %v6946_v61, %v5674_v57 }
 0x62d   :  { %v2751_v27 = vsel %vm390_vm0, %v2721_v58, 0.0 }
 0x62e   :  { %v2754_v46 = vsel %vm390_vm0, %v2722_v39, 0.0 }
 0x62f   :  { %2700 = vadd.xlane.f32.xlu0 %v2699_v1  ;;  %2703 = vadd.xlane.f32.xlu1 %v2702_v41  ;;  %v6947_v1 = vld [vmem:[#allocation128_spill] sm:$0xff] }
 0x630   :  { %v2723_v41 = vmul.f32 %v6947_v1, %v5697_v59 }
 0x633   :  { %2706 = vadd.xlane.f32.xlu0 %v2705_v48  ;;  %2709 = vadd.xlane.f32.xlu1 %v2708_v63  ;;  %v2757_v48 = vsel %vm390_vm0, %v2723_v41, 0.0  ;;  %v2760_v63 = vsel %vm390_vm0, %v2724_v40, 0.0 }
 0x637   :  { %2712 = vadd.xlane.f32.xlu0 %v2711_v15  ;;  %2731 = vadd.xlane.f32.xlu1 %v2730_v52  ;;  %v6950_v15 = vld [vmem:[#allocation131_spill] sm:$0xff] }
 0x638   :  { %v2726_v52 = vmul.f32 %v6950_v15, %v5723_v10 }
 0x63a   :  { %v2766_v26 = vsel %vm390_vm0, %v2726_v52, 0.0 }
 0x63b   :  { %2734 = vadd.xlane.f32.xlu0 %v2733_v5  ;;  %2737 = vadd.xlane.f32.xlu1 %v2736_v60  ;;  %v6952_v5 = vld [vmem:[#allocation134_spill] sm:$0xff] }
 0x63c   :  { %v2728_v60 = vmul.f32 %v6952_v5, %v5737_v37 }
 0x63e   :  { %v2772_v4 = vsel %vm390_vm0, %v2728_v60, 0.0 }
 0x63f   :  { %2740 = vadd.xlane.f32.xlu0 %v2739_v34  ;;  %2743 = vadd.xlane.f32.xlu1 %v2742_v32  ;;  %v6248_v34 = vld [vmem:[%s6490_s9 + $0x2] ss:$0 sm:$0xff]  ;;  %v2775_v32 = vsel %vm390_vm0, %v2729_v54, 0.0 }
 0x643   :  { %2746 = vadd.xlane.f32.xlu0 %v2745_v43  ;;  %2749 = vadd.xlane.f32.xlu1 %v2748_v35 }
 0x647   :  { %2752 = vadd.xlane.f32.xlu0 %v2751_v27  ;;  %2755 = vadd.xlane.f32.xlu1 %v2754_v46 }
 0x64b   :  { %2758 = vadd.xlane.f32.xlu0 %v2757_v48  ;;  %2761 = vadd.xlane.f32.xlu1 %v2760_v63 }
 0x64f   :  { %2764 = vadd.xlane.f32.xlu0 %v2763_v2  ;;  %2767 = vadd.xlane.f32.xlu1 %v2766_v26 }
 0x653   :  { %2770 = vadd.xlane.f32.xlu0 %v2769_v8  ;;  %2773 = vadd.xlane.f32.xlu1 %v2772_v4 }
 0x657   :  { %2776 = vadd.xlane.f32.xlu0 %v2775_v32  ;;  %v2668_v49 = vpop.xlane.xlu0 %2667 }
 0x658   :  { %v3204_v14 = vmul.f32 %v6248_v34, %v2668_v49 }
 0x65a   :  { %v6253_v19 = vadd.f32 %v3204_v14, %v5948_v62 }
 0x65b   :  { %v2671_v13 = vpop.xlane.xlu1 %2670  ;;  %v2674_v43 = vpop.xlane.xlu0 %2673 }
 0x65c   :  { %v3205_v35 = vmul.f32 %v6248_v34, %v2671_v13  ;;  %v3206_v9 = vmul.f32 %v6248_v34, %v2674_v43 }
 0x65e   :  { %v6258_v58 = vadd.f32 %v3205_v35, %v5960_v23  ;;  %v6261_v61 = vadd.f32 %v3206_v9, %v5962_v7 }
 0x65f   :  { %v2680_v39 = vpop.xlane.xlu1 %2679  ;;  %v2677_v27 = vpop.xlane.xlu0 %2676 }
 0x660   :  { %v3208_v46 = vmul.f32 %v6248_v34, %v2680_v39  ;;  %v3207_v1 = vmul.f32 %v6248_v34, %v2677_v27 }
 0x662   :  { %v6266_v62 = vadd.f32 %v3208_v46, %v5974_v50  ;;  %v6269_v41 = vadd.f32 %v3207_v1, %v5976_v29 }
 0x663   :  { %v2795_v30 = vpop.permute.xlu1 %2794  ;;  %v2683_v40 = vpop.xlane.xlu0 %2682 }
 0x664   :  { %v2842_v23 = vmul.f32 %v2795_v30, %v5592_v22  ;;  %v3209_v48 = vmul.f32 %v6248_v34, %v2683_v40 }
 0x666   :  { %v6274_v7 = vadd.f32 %v3209_v48, %v5990_v47  ;;  %v2858_v63 = vsel %vm390_vm0, %v2842_v23, 0.0 }
 0x667   :  { %v2799_v42 = vpop.permute.xlu1 %2798  ;;  %2859 = vadd.xlane.f32.xlu1 %v2858_v63  ;;  %v2797_v17 = vpop.permute.xlu0 %2796 }
 0x668   :  { %v2844_v50 = vmul.f32 %v2799_v42, %v5607_v3  ;;  %v2843_v15 = vmul.f32 %v2797_v17, %v5605_v24 }
 0x66a   :  { %v2864_v29 = vsel %vm390_vm0, %v2844_v50, 0.0  ;;  %v2861_v52 = vsel %vm390_vm0, %v2843_v15, 0.0 }
 0x66b   :  { %v2801_v2 = vpop.permute.xlu1 %2800  ;;  %2865 = vadd.xlane.f32.xlu1 %v2864_v29  ;;  %2862 = vadd.xlane.f32.xlu0 %v2861_v52  ;;  %v2803_v22 = vpop.permute.xlu0 %2802 }
 0x66c   :  { %v2845_v47 = vmul.f32 %v2801_v2, %v5620_v38  ;;  %v2846_v26 = vmul.f32 %v2803_v22, %v5623_v36 }
 0x66e   :  { %v2867_v16 = vsel %vm390_vm0, %v2845_v47, 0.0  ;;  %v2870_v44 = vsel %vm390_vm0, %v2846_v26, 0.0 }
 0x66f   :  { %v2805_v5 = vpop.permute.xlu1 %2804  ;;  %2868 = vadd.xlane.f32.xlu0 %v2867_v16  ;;  %2871 = vadd.xlane.f32.xlu1 %v2870_v44  ;;  %v2807_v24 = vpop.permute.xlu0 %2806 }
 0x670   :  { %v2847_v3 = vmul.f32 %v2805_v5, %v5643_v21  ;;  %v2848_v60 = vmul.f32 %v2807_v24, %v5646_v20 }
 0x672   :  { %v2873_v8 = vsel %vm390_vm0, %v2847_v3, 0.0  ;;  %v2876_v4 = vsel %vm390_vm0, %v2848_v60, 0.0 }
 0x673   :  { %v2809_v31 = vpop.permute.xlu1 %2808  ;;  %2874 = vadd.xlane.f32.xlu0 %v2873_v8  ;;  %2877 = vadd.xlane.f32.xlu1 %v2876_v4  ;;  %v2811_v38 = vpop.permute.xlu0 %2810 }
 0x674   :  { %v2849_v36 = vmul.f32 %v2809_v31, %v5671_v11  ;;  %v2850_v54 = vmul.f32 %v2811_v38, %v5674_v57  ;;  %v6332_v38 = vld [vmem:[%s6491_s10] ss:$0 sm:$0xff] }
 0x676   :  { %v2879_v32 = vsel %vm390_vm0, %v2849_v36, 0.0  ;;  %v2882_v49 = vsel %vm390_vm0, %v2850_v54, 0.0 }
 0x677   :  { %v2813_v14 = vpop.permute.xlu1 %2812  ;;  %2880 = vadd.xlane.f32.xlu0 %v2879_v32  ;;  %2883 = vadd.xlane.f32.xlu1 %v2882_v49  ;;  %v2815_v21 = vpop.permute.xlu0 %2814  ;;  %v6342_v49 = vld [vmem:[%s6492_s11] ss:$0 sm:$0xff] }
 0x678   :  { %v2851_v20 = vmul.f32 %v2813_v14, %v5697_v59  ;;  %v2852_v13 = vmul.f32 %v2815_v21, %v5700_v33 }
 0x67a   :  { %v2885_v43 = vsel %vm390_vm0, %v2851_v20, 0.0  ;;  %v2888_v35 = vsel %vm390_vm0, %v2852_v13, 0.0 }
 0x67b   :  { %v2817_v9 = vpop.permute.xlu1 %2816  ;;  %2886 = vadd.xlane.f32.xlu0 %v2885_v43  ;;  %2889 = vadd.xlane.f32.xlu1 %v2888_v35  ;;  %v2819_v11 = vpop.permute.xlu0 %2818 }
 0x67c   :  { %v2853_v57 = vmul.f32 %v2817_v9, %v5720_v6  ;;  %v2854_v39 = vmul.f32 %v2819_v11, %v5723_v10 }
 0x67e   :  { %v2891_v27 = vsel %vm390_vm0, %v2853_v57, 0.0  ;;  %v2894_v46 = vsel %vm390_vm0, %v2854_v39, 0.0 }
 0x67f   :  { %v2821_v1 = vpop.permute.xlu1 %2820  ;;  %2892 = vadd.xlane.f32.xlu0 %v2891_v27  ;;  %2895 = vadd.xlane.f32.xlu1 %v2894_v46  ;;  %v2823_v59 = vpop.permute.xlu0 %2822 }
 0x680   :  { %v2855_v33 = vmul.f32 %v2821_v1, %v5735_v12  ;;  %v2856_v30 = vmul.f32 %v2823_v59, %v5737_v37 }
 0x682   :  { %v2897_v40 = vsel %vm390_vm0, %v2855_v33, 0.0  ;;  %v2900_v23 = vsel %vm390_vm0, %v2856_v30, 0.0 }
 0x683   :  { %v2825_v48 = vpop.permute.xlu1 %2824  ;;  %2898 = vadd.xlane.f32.xlu0 %v2897_v40  ;;  %2901 = vadd.xlane.f32.xlu1 %v2900_v23 }
 0x684   :  { %v2857_v6 = vmul.f32 %v2825_v48, %v6937_v0 }
 0x686   :  { %v2903_v10 = vsel %vm390_vm0, %v2857_v6, 0.0 }
 0x687   :  { %2904 = vadd.xlane.f32.xlu0 %v2903_v10 }
 0x6b0   :  { %v2686_v63 = vpop.xlane.xlu0 %2685 }
 0x6b1   :  { %v3210_v30 = vmul.f32 %v6248_v34, %v2686_v63 }
 0x6b4   :  { %v2689_v42 = vpop.xlane.xlu1 %2688  ;;  %v2692_v17 = vpop.xlane.xlu0 %2691 }
 0x6b8   :  { %v6307_v50 = vpop.xlane.xlu1 %2697  ;;  %v6309_v12 = vpop.xlane.xlu0 %2694 }
 0x6bc   :  { %v6311_v37 = vpop.xlane.xlu1 %2703  ;;  %v6313_v15 = vpop.xlane.xlu0 %2700 }
 0x6c0   :  { %v6315_v29 = vpop.xlane.xlu1 %2709  ;;  %v6317_v52 = vpop.xlane.xlu0 %2706 }
 0x6c4   :  { %v6319_v2 = vpop.xlane.xlu0 %2712  ;;  %v2732_v0 = vpop.xlane.xlu1 %2731 }
 0x6c5   :  { %v3243_v32 = vmul.f32 %v6332_v38, %v2732_v0 }
 0x6c7   :  { %v3259_v13 = vadd.f32 %v3243_v32, %v6253_v19  ;;  %v3211_v32 = vmul.f32 %v6248_v34, %v2689_v42 }
 0x6c8   :  { %v2735_v22 = vpop.xlane.xlu0 %2734  ;;  %v2738_v47 = vpop.xlane.xlu1 %2737 }
 0x6c9   :  { %v3245_v14 = vmul.f32 %v6332_v38, %v2738_v47  ;;  %v3244_v43 = vmul.f32 %v6332_v38, %v2735_v22 }
 0x6cb   :  { %v3261_v11 = vadd.f32 %v3245_v14, %v6261_v61  ;;  %v3260_v1 = vadd.f32 %v3244_v43, %v6258_v58 }
 0x6cc   :  { %v2741_v26 = vpop.xlane.xlu0 %2740  ;;  %v2744_v16 = vpop.xlane.xlu1 %2743 }
 0x6cd   :  { %v3247_v57 = vmul.f32 %v6332_v38, %v2744_v16  ;;  %v3246_v39 = vmul.f32 %v6332_v38, %v2741_v26  ;;  %v3226_v16 = vadd.f32 %v3210_v30, %v5988_v56 }
 0x6cf   :  { %v3263_v23 = vadd.f32 %v3247_v57, %v6266_v62  ;;  %v3262_v48 = vadd.f32 %v3246_v39, %v6269_v41  ;;  %v3212_v62 = vmul.f32 %v6248_v34, %v2692_v17  ;;  %v6954_v57 = vld [vmem:[#allocation77_spill] sm:$0xff] }
 0x6d0   :  { %v2747_v44 = vpop.xlane.xlu0 %2746  ;;  %v2750_v5 = vpop.xlane.xlu1 %2749 }
 0x6d1   :  { %v3249_v58 = vmul.f32 %v6332_v38, %v2750_v5  ;;  %v3248_v6 = vmul.f32 %v6332_v38, %v2747_v44  ;;  %v3228_v39 = vadd.f32 %v3212_v62, %v6954_v57 }
 0x6d3   :  { %v3265_v5 = vadd.f32 %v3249_v58, %v3226_v16  ;;  %v3264_v14 = vadd.f32 %v3248_v6, %v6274_v7  ;;  %v3213_v7 = vmul.f32 %v6248_v34, %v6309_v12  ;;  %v3216_v58 = vmul.f32 %v6248_v34, %v6311_v37 }
 0x6d4   :  { %v2753_v24 = vpop.xlane.xlu0 %2752  ;;  %v2756_v3 = vpop.xlane.xlu1 %2755 }
 0x6d5   :  { %v3251_v56 = vmul.f32 %v6332_v38, %v2756_v3  ;;  %v3250_v42 = vmul.f32 %v6332_v38, %v2753_v24 }
 0x6d7   :  { %v3267_v3 = vadd.f32 %v3251_v56, %v3228_v39 }
 0x6d8   :  { %v6321_v60 = vpop.xlane.xlu0 %2758  ;;  %v6323_v8 = vpop.xlane.xlu1 %2761 }
 0x6d9   :  { %v3252_v12 = vmul.f32 %v6332_v38, %v6321_v60 }
 0x6dc   :  { %v6325_v4 = vpop.xlane.xlu0 %2764  ;;  %v6327_v31 = vpop.xlane.xlu1 %2767 }
 0x6dd   :  { %v3255_v37 = vmul.f32 %v6332_v38, %v6327_v31  ;;  %v3217_v31 = vmul.f32 %v6248_v34, %v6317_v52 }
 0x6e0   :  { %v6334_v36 = vpop.xlane.xlu0 %2770  ;;  %v6336_v54 = vpop.xlane.xlu1 %2773 }
 0x6e1   :  { %v3256_v52 = vmul.f32 %v6332_v38, %v6334_v36 }
 0x6e4   :  { %v6345_v21 = vpop.xlane.xlu0 %2776 }
 0x6f4   :  { %v2860_v20 = vpop.xlane.xlu1 %2859 }
 0x6f5   :  { %v3282_v35 = vmul.f32 %v6342_v49, %v2860_v20 }
 0x6f7   :  { %v3298_v9 = vadd.f32 %v3282_v35, %v3259_v13 }
 0x6f8   :  { %v2866_v27 = vpop.xlane.xlu1 %2865  ;;  %v2863_v46 = vpop.xlane.xlu0 %2862 }
 0x6f9   :  { %v3314_v59 = vmax.f32 %v3298_v9, 0.0  ;;  %v3284_v33 = vmul.f32 %v6342_v49, %v2866_v27  ;;  %v3283_v19 = vmul.f32 %v6342_v49, %v2863_v46  ;;  %v3214_v27 = vmul.f32 %v6248_v34, %v6307_v50 }
 0x6fa   :  { %v3253_v50 = vmul.f32 %v6332_v38, %v6323_v8  ;;  %v3215_v8 = vmul.f32 %v6248_v34, %v6313_v15  ;;  %v3254_v15 = vmul.f32 %v6332_v38, %v6325_v4 }
 0x6fb   :  { %3330 = vst.msk [vmem:[%s6494_s13] sm:$0xff] %vm2931_vm4, %v3314_v59  ;;  %v3300_v61 = vadd.f32 %v3284_v33, %v3261_v11  ;;  %v3299_v40 = vadd.f32 %v3283_v19, %v3260_v1  ;;  %v3227_v11 = vadd.f32 %v3211_v32, %v6004_v45  ;;  %v3232_v32 = vadd.f32 %v3216_v58, %v6030_v53 }
 0x6fc   :  { %v2872_v10 = vpop.xlane.xlu1 %2871  ;;  %v2869_v0 = vpop.xlane.xlu0 %2868  ;;  %v3231_v62 = vadd.f32 %v3215_v8, %v6032_v55 }
 0x6fd   :  { %v3316_v22 = vmax.f32 %v3300_v61, 0.0  ;;  %v3315_v47 = vmax.f32 %v3299_v40, 0.0  ;;  %v3286_v63 = vmul.f32 %v6342_v49, %v2872_v10  ;;  %v3285_v26 = vmul.f32 %v6342_v49, %v2869_v0 }
 0x6fe   :  { %v3266_v46 = vadd.f32 %v3250_v42, %v3227_v11  ;;  %v3230_v40 = vadd.f32 %v3214_v27, %v6016_v51  ;;  %v3270_v55 = vadd.f32 %v3254_v15, %v3231_v62 }
 0x6ff   :  { %3332 = vst.msk [vmem:[%s6494_s13 + $0x10] sm:$0xff] %vm2931_vm4, %v3316_v22  ;;  %3331 = vst.msk [vmem:[%s6494_s13 + $0x8] sm:$0xff] %vm2931_vm4, %v3315_v47  ;;  %v3302_v41 = vadd.f32 %v3286_v63, %v3263_v23  ;;  %v3301_v44 = vadd.f32 %v3285_v26, %v3262_v48  ;;  %v6955_v23 = vld [vmem:[#allocation78_spill] sm:$0xff] }
 0x700   :  { %v2878_v17 = vpop.xlane.xlu1 %2877  ;;  %v2875_v20 = vpop.xlane.xlu0 %2874  ;;  %v3229_v48 = vadd.f32 %v3213_v7, %v6955_v23  ;;  %v3269_v6 = vadd.f32 %v3253_v50, %v3230_v40 }
 0x701   :  { %v3318_v13 = vmax.f32 %v3302_v41, 0.0  ;;  %v3317_v43 = vmax.f32 %v3301_v44, 0.0  ;;  %v3288_v35 = vmul.f32 %v6342_v49, %v2878_v17  ;;  %v3287_v9 = vmul.f32 %v6342_v49, %v2875_v20 }
 0x702   :  { %v3268_v10 = vadd.f32 %v3252_v12, %v3229_v48  ;;  %v3218_v41 = vmul.f32 %v6248_v34, %v6315_v29  ;;  %v3271_v44 = vadd.f32 %v3255_v37, %v3232_v32  ;;  %v3257_v29 = vmul.f32 %v6332_v38, %v6336_v54 }
 0x703   :  { %3334 = vst.msk [vmem:[%s6494_s13 + $0x20] sm:$0xff] %vm2931_vm4, %v3318_v13  ;;  %3333 = vst.msk [vmem:[%s6494_s13 + $0x18] sm:$0xff] %vm2931_vm4, %v3317_v43  ;;  %v3304_v24 = vadd.f32 %v3288_v35, %v3265_v5  ;;  %v3303_v45 = vadd.f32 %v3287_v9, %v3264_v14  ;;  %v3233_v43 = vadd.f32 %v3217_v31, %v6042_v18 }
 0x704   :  { %v2884_v1 = vpop.xlane.xlu1 %2883  ;;  %v2881_v59 = vpop.xlane.xlu0 %2880  ;;  %v3234_v13 = vadd.f32 %v3218_v41, %v6040_v25  ;;  %v3219_v35 = vmul.f32 %v6248_v34, %v6319_v2  ;;  %v3258_v25 = vmul.f32 %v6332_v38, %v6345_v21 }
 0x705   :  { %v3320_v33 = vmax.f32 %v3304_v24, 0.0  ;;  %v3319_v19 = vmax.f32 %v3303_v45, 0.0  ;;  %v3290_v30 = vmul.f32 %v6342_v49, %v2884_v1  ;;  %v3289_v61 = vmul.f32 %v6342_v49, %v2881_v59 }
 0x706   :  { %v3273_v9 = vadd.f32 %v3257_v29, %v3234_v13  ;;  %v3272_v11 = vadd.f32 %v3256_v52, %v3233_v43  ;;  %v3235_v7 = vadd.f32 %v3219_v35, %v6046_v28 }
 0x707   :  { %3336 = vst.msk [vmem:[%s6494_s13 + $0x30] sm:$0xff] %vm2931_vm4, %v3320_v33  ;;  %3335 = vst.msk [vmem:[%s6494_s13 + $0x28] sm:$0xff] %vm2931_vm4, %v3319_v19  ;;  %v3306_v60 = vadd.f32 %v3290_v30, %v3267_v3  ;;  %v3305_v51 = vadd.f32 %v3289_v61, %v3266_v46 }
 0x708   :  { %v2890_v0 = vpop.xlane.xlu1 %2889  ;;  %v2887_v22 = vpop.xlane.xlu0 %2886  ;;  %v3274_v45 = vadd.f32 %v3258_v25, %v3235_v7 }
 0x709   :  { %v3322_v47 = vmax.f32 %v3306_v60, 0.0  ;;  %v3321_v63 = vmax.f32 %v3305_v51, 0.0  ;;  %v3292_v26 = vmul.f32 %v6342_v49, %v2890_v0  ;;  %v3291_v16 = vmul.f32 %v6342_v49, %v2887_v22 }
 0x70b   :  { %3338 = vst.msk [vmem:[%s6494_s13 + $0x40] sm:$0xff] %vm2931_vm4, %v3322_v47  ;;  %3337 = vst.msk [vmem:[%s6494_s13 + $0x38] sm:$0xff] %vm2931_vm4, %v3321_v63  ;;  %v3308_v4 = vadd.f32 %v3292_v26, %v3269_v6  ;;  %v3307_v53 = vadd.f32 %v3291_v16, %v3268_v10 }
 0x70c   :  { %v2896_v5 = vpop.xlane.xlu1 %2895  ;;  %v2893_v14 = vpop.xlane.xlu0 %2892 }
 0x70d   :  { %v3324_v56 = vmax.f32 %v3308_v4, 0.0  ;;  %v3323_v42 = vmax.f32 %v3307_v53, 0.0  ;;  %v3294_v17 = vmul.f32 %v6342_v49, %v2896_v5  ;;  %v3293_v20 = vmul.f32 %v6342_v49, %v2893_v14 }
 0x70f   :  { %3340 = vst.msk [vmem:[%s6494_s13 + $0x50] sm:$0xff] %vm2931_vm4, %v3324_v56  ;;  %3339 = vst.msk [vmem:[%s6494_s13 + $0x48] sm:$0xff] %vm2931_vm4, %v3323_v42  ;;  %v3310_v36 = vadd.f32 %v3294_v17, %v3271_v44  ;;  %v3309_v54 = vadd.f32 %v3293_v20, %v3270_v55 }
 0x710   :  { %v2902_v18 = vpop.xlane.xlu1 %2901  ;;  %v2899_v57 = vpop.xlane.xlu0 %2898 }
 0x711   :  { %v3326_v34 = vmax.f32 %v3310_v36, 0.0  ;;  %v3325_v2 = vmax.f32 %v3309_v54, 0.0  ;;  %v3296_v39 = vmul.f32 %v6342_v49, %v2902_v18  ;;  %v3295_v27 = vmul.f32 %v6342_v49, %v2899_v57 }
 0x713   :  { %3342 = vst.msk [vmem:[%s6494_s13 + $0x60] sm:$0xff] %vm2931_vm4, %v3326_v34  ;;  %3341 = vst.msk [vmem:[%s6494_s13 + $0x58] sm:$0xff] %vm2931_vm4, %v3325_v2  ;;  %v3312_v38 = vadd.f32 %v3296_v39, %v3273_v9  ;;  %v3311_v21 = vadd.f32 %v3295_v27, %v3272_v11 }
 0x714   :  { %v2905_v24 = vpop.xlane.xlu0 %2904 }
 0x715   :  { %v3328_v3 = vmax.f32 %v3312_v38, 0.0  ;;  %v3327_v46 = vmax.f32 %v3311_v21, 0.0  ;;  %v3297_v50 = vmul.f32 %v6342_v49, %v2905_v24 }
 0x717   :  { %3344 = vst.msk [vmem:[%s6494_s13 + $0x70] sm:$0xff] %vm2931_vm4, %v3328_v3  ;;  %3343 = vst.msk [vmem:[%s6494_s13 + $0x68] sm:$0xff] %vm2931_vm4, %v3327_v46  ;;  %v3313_v28 = vadd.f32 %v3297_v50, %v3274_v45 }
 0x719   :  { %v3329_v12 = vmax.f32 %v3313_v28, 0.0 }
 0x71b   :  { %3345 = vst.msk [vmem:[%s6494_s13 + $0x78] sm:$0xff] %vm2931_vm4, %v3329_v12 }
 0x71c   :  { %3350 = vsyncpa [#allocation5], 1 }
 0x71d   :  { %3351 = vsyncpa [#allocation7], 1 }
 0x71e   :  { %3352 = vsyncpa [#allocation10], 1 }

// kernel: gc_forward.3
= control target key start
LH: loop header
LB: loop body
LE: loop exit
PB: predicated region body
PF: predicated region fallthrough
CT: control target
= control target key end

     0   :  { %vm143_vm0 = vcmask 130048   ;;  %v9330_v3 = vmov 0.0   ;;  %vm906_vm1 = vcmask 195584   ;;  %vm2124_vm2 = vcmask 64512   ;;  %s9296_s4 = inlined_call_operand.vmem [shape: f32[16,128], index: 4, kind: input, shape index: {}]   ;;  %s9297_s2 = inlined_call_operand.vmem [shape: f32[128,16], index: 2, kind: input, shape index: {}]   ;;  %s9298_s6 = inlined_call_operand.vmem [shape: f32[128,512], index: 6, kind: input, shape index: {}]   ;;  %s9299_s5 = inlined_call_operand.vmem [shape: f32[16,256], index: 5, kind: input, shape index: {}]   ;;  %s9300_s8 = inlined_call_operand.vmem [shape: f32[24,256], index: 8, kind: input, shape index: {}]   ;;  %s9301_s0 = inlined_call_operand.vmem [shape: f32[128,128], index: 0, kind: input, shape index: {}]   ;;  %s9302_s7 = inlined_call_operand.vmem [shape: f32[128,256], index: 7, kind: input, shape index: {}]   ;;  %s9303_s1 = inlined_call_operand.vmem [shape: f32[128,24], index: 1, kind: input, shape index: {}]   ;;  %s9304_s10 = inlined_call_operand.vmem [shape: f32[256,256], index: 10, kind: input, shape index: {}]   ;;  %s9305_s9 = inlined_call_operand.vmem [shape: f32[1,256], index: 9, kind: input, shape index: {}]   ;;  %s9306_s11 = inlined_call_operand.vmem [shape: f32[256,256], index: 11, kind: input, shape index: {}]   ;;  %s9307_s13 = inlined_call_operand.vmem [shape: f32[256,8], index: 13, kind: input, shape index: {}]   ;;  %s9308_s12 = inlined_call_operand.vmem [shape: f32[1,256], index: 12, kind: input, shape index: {}]   ;;  %s9309_s14 = inlined_call_operand.vmem [shape: f32[8,256], index: 14, kind: input, shape index: {}]   ;;  %s9310_s15 = inlined_call_operand.vmem [shape: f32[256,32], index: 15, kind: input, shape index: {}]   ;;  %s9311_s19 = inlined_call_operand.vmem [shape: f32[16,32], index: 19, kind: input, shape index: {}]   ;;  %s9312_s16 = inlined_call_operand.vmem [shape: f32[32,32], index: 16, kind: input, shape index: {}]   ;;  %s9313_s3 = inlined_call_operand.vmem [shape: f32[128,16], index: 3, kind: input, shape index: {}]   ;;  %s9314_s18 = inlined_call_operand.vmem [shape: f32[3,32], index: 18, kind: input, shape index: {}]   ;;  %s9315_s20 = inlined_call_operand.vmem [shape: f32[1,32], index: 20, kind: input, shape index: {}]   ;;  %s9316_s21 = inlined_call_operand.vmem [shape: f32[64,64], index: 21, kind: input, shape index: {}]   ;;  %s9317_s17 = inlined_call_operand.vmem [shape: f32[1,32], index: 17, kind: input, shape index: {}]   ;;  %s9318_s23 = inlined_call_operand.vmem [shape: f32[32,32], index: 23, kind: input, shape index: {}]   ;;  %s9319_s22 = inlined_call_operand.vmem [shape: f32[1,64], index: 22, kind: input, shape index: {}]   ;;  %s9320_s24 = inlined_call_operand.vmem [shape: f32[128,32], index: 24, kind: output, shape index: {}]  }
   0x1   :  { %9392 = sst [smem:[#allocation92_spill]] %s9296_s4  ;;  %405 = vmatprep.mubr.f32.mxu1 %v9330_v3  ;;  %vm2764_vm3 = vcmask 261120  }
   0x2   :  { %9393 = sst [smem:[#allocation93_spill]] %s9297_s2  ;;  %s9401_s27 = sld [smem:[#allocation92_spill]] }
   0x3   :  { %9394 = sst [smem:[#allocation94_spill]] %s9298_s6  ;;  %s9402_s29 = sld [smem:[#allocation93_spill]] }
   0x4   :  { %9395 = sst [smem:[#allocation95_spill]] %s9299_s5  ;;  %s9403_s5 = sld [smem:[#allocation94_spill]] }
   0x5   :  { %9396 = sst [smem:[#allocation96_spill]] %s9300_s8  ;;  %s9404_s6 = sld [smem:[#allocation95_spill]] }
   0x6   :  { %9397 = sst [smem:[#allocation97_spill]] %s9301_s0  ;;  %s9405_s4 = sld [smem:[#allocation96_spill]] }
   0x7   :  { %9398 = sst [smem:[#allocation98_spill]] %s9302_s7  ;;  %s9406_s8 = sld [smem:[#allocation97_spill]] }
   0x8   :  { %9399 = sst [smem:[#allocation99_spill]] %s9303_s1  ;;  %v141_v0 = vld [vmem:[%s9401_s27] sm:$0xff]  ;;  %v142_v1 = vld [vmem:[%s9401_s27 + $0x8] sm:$0xff]  ;;  %s9407_s28 = sld [smem:[#allocation98_spill]] }
   0x9   :  { %9400 = sst [smem:[#allocation100_spill]] %s9304_s10  ;;  %v5926_v2 = vld [vmem:[%s9402_s29] sm:$0xff]  ;;  %v5307_v4 = vpack.c.bf16 %v142_v1, %v141_v0  ;;  %v5952_v12 = vld [vmem:[%s9402_s29 + $0x8] sm:$0xff]  ;;  %v5957_v14 = vld [vmem:[%s9402_s29 + $0x10] sm:$0xff]  ;;  %s9408_s25 = sld [smem:[#allocation99_spill]] }
   0xa   :  { %5151 = vmatprep.mubr.msk.f32.mxu0 %vm143_vm0, %v5926_v2  ;;  %v503_v5 = vld [vmem:[%s9403_s5 + $0x8] sm:$0xff]  ;;  %v502_v8 = vld [vmem:[%s9403_s5] sm:$0xff]  ;;  %v5978_v20 = vld [vmem:[%s9402_s29 + $0x18] sm:$0xff]  ;;  %s9409_s26 = sld [smem:[#allocation100_spill]]  ;;  %s5781_s1 = smov 122  }
   0xb   :  { %v507_v6 = vld [vmem:[%s9403_s5 + $0x28] sm:$0xff]  ;;  %v506_v9 = vld [vmem:[%s9403_s5 + $0x20] sm:$0xff]  ;;  %5308 = vmatprep.subr.bf16.mxu0 %v5307_v4  ;;  %v6009_v30 = vld [vmem:[%s9402_s29 + $0x30] sm:$0xff]  ;;  %s5782_s10 = smov 119   ;;  %s5783_s2 = smov 116  }
   0xc   :  { %v5315_v7 = vpack.c.bf16 %v507_v6, %v503_v5  ;;  %v511_v10 = vld [vmem:[%s9403_s5 + $0x48] sm:$0xff]  ;;  %5310 = vmatpush3.bf16.msra.mxu0 %v5307_v4  ;;  %v5317_v13 = vpack.c.bf16 %v506_v9, %v502_v8  ;;  %v510_v16 = vld [vmem:[%s9403_s5 + $0x40] sm:$0xff]  ;;  %v340_v37 = vld [vmem:[%s9404_s6 + $0x18] sm:$0xff] }
   0xd   :  { %v515_v11 = vld [vmem:[%s9403_s5 + $0x68] sm:$0xff]  ;;  %v514_v17 = vld [vmem:[%s9403_s5 + $0x60] sm:$0xff]  ;;  %v6036_v38 = vld [vmem:[%s9402_s29 + $0x38] sm:$0xff] }
   0xe   :  { %5316 = vmatprep.subr.bf16.mxu0 %v5315_v7  ;;  %v5319_v15 = vpack.c.bf16 %v515_v11, %v511_v10  ;;  %v519_v18 = vld [vmem:[%s9403_s5 + $0x88] sm:$0xff]  ;;  %v5321_v21 = vpack.c.bf16 %v514_v17, %v510_v16  ;;  %v5983_v22 = vld [vmem:[%s9402_s29 + $0x20] sm:$0xff]  ;;  %v339_v46 = vld [vmem:[%s9404_s6 + $0x10] sm:$0xff] }
   0xf   :  { %v523_v19 = vld [vmem:[%s9403_s5 + $0xa8] sm:$0xff]  ;;  %5152 = vmatmul.mubr.msk.f32.vlgmr.msra.gmra.mrb[0].mxu0 %vm143_vm0, %v5952_v12  ;;  %v518_v24 = vld [vmem:[%s9403_s5 + $0x80] sm:$0xff]  ;;  %v6073_v52 = vld [vmem:[%s9402_s29 + $0x50] sm:$0xff] }
  0x10   :  { %5318 = vmatpush1.bf16.msra.mxu0 %v5317_v13  ;;  %5154 = vmatprep.mubr.msk.f32.mxu0 %vm143_vm0, %v5957_v14  ;;  %v5323_v23 = vpack.c.bf16 %v523_v19, %v519_v18  ;;  %v522_v25 = vld [vmem:[%s9403_s5 + $0xa0] sm:$0xff]  ;;  %v527_v26 = vld [vmem:[%s9403_s5 + $0xc8] sm:$0xff]  ;;  %v6094_v58 = vld [vmem:[%s9402_s29 + $0x58] sm:$0xff] }
  0x11   :  { %5320 = vmatprep.subr.bf16.mxu0 %v5319_v15  ;;  %v531_v27 = vld [vmem:[%s9403_s5 + $0xe8] sm:$0xff]  ;;  %v5325_v29 = vpack.c.bf16 %v522_v25, %v518_v24  ;;  %v526_v32 = vld [vmem:[%s9403_s5 + $0xc0] sm:$0xff]  ;;  %v6128_v5 = vld [vmem:[%s9402_s29 + $0x70] sm:$0xff] }
  0x12   :  { %v6004_v28 = vld [vmem:[%s9402_s29 + $0x28] sm:$0xff]  ;;  %v5327_v31 = vpack.c.bf16 %v531_v27, %v527_v26  ;;  %v530_v33 = vld [vmem:[%s9403_s5 + $0xe0] sm:$0xff]  ;;  %v891_v10 = vld [vmem:[%s9405_s4 + $0x18] sm:$0xff] }
  0x13   :  { %5155 = vmatmul.mubr.msk.f32.gmra.mrb[2].mxu0 %vm143_vm0, %v5978_v20  ;;  %v535_v34 = vld [vmem:[%s9403_s5 + $0x108] sm:$0xff]  ;;  %v5329_v39 = vpack.c.bf16 %v530_v33, %v526_v32  ;;  %v6041_v40 = vld [vmem:[%s9402_s29 + $0x40] sm:$0xff]  ;;  %v6152_v11 = vld [vmem:[%s9402_s29 + $0x78] sm:$0xff] }
  0x14   :  { %5322 = vmatpush1.bf16.msra.mxu0 %v5321_v21  ;;  %5157 = vmatprep.mubr.msk.f32.mxu0 %vm143_vm0, %v5983_v22  ;;  %v539_v35 = vld [vmem:[%s9403_s5 + $0x128] sm:$0xff]  ;;  %v337_v42 = vld [vmem:[%s9404_s6] sm:$0xff]  ;;  %v890_v16 = vld [vmem:[%s9405_s4 + $0x10] sm:$0xff] }
  0x15   :  { %5324 = vmatprep.subr.bf16.mxu0 %v5323_v23  ;;  %v338_v36 = vld [vmem:[%s9404_s6 + $0x8] sm:$0xff]  ;;  %v5331_v43 = vpack.c.bf16 %v539_v35, %v535_v34  ;;  %v534_v44 = vld [vmem:[%s9403_s5 + $0x100] sm:$0xff]  ;;  %v5313_v49 = vpack.c.bf16 %v339_v46, %v337_v42  ;;  %v505_v17 = vld [vmem:[%s9403_s5 + $0x18] sm:$0xff] }
  0x16   :  { %v5311_v41 = vpack.c.bf16 %v340_v37, %v338_v36  ;;  %v538_v45 = vld [vmem:[%s9403_s5 + $0x120] sm:$0xff]  ;;  %v543_v47 = vld [vmem:[%s9403_s5 + $0x148] sm:$0xff]  ;;  %v509_v18 = vld [vmem:[%s9403_s5 + $0x38] sm:$0xff] }
  0x17   :  { %5158 = vmatmul.mubr.msk.f32.gmra.mrb[4].mxu0 %vm143_vm0, %v6004_v28  ;;  %v547_v48 = vld [vmem:[%s9403_s5 + $0x168] sm:$0xff]  ;;  %v5333_v51 = vpack.c.bf16 %v538_v45, %v534_v44  ;;  %v542_v54 = vld [vmem:[%s9403_s5 + $0x140] sm:$0xff]  ;;  %v504_v19 = vld [vmem:[%s9403_s5 + $0x10] sm:$0xff]  ;;  %v5347_v23 = vpack.c.bf16 %v509_v18, %v505_v17 }
  0x18   :  { %5326 = vmatpush1.bf16.msra.mxu0 %v5325_v29  ;;  %5160 = vmatprep.mubr.msk.f32.mxu0 %vm143_vm0, %v6009_v30  ;;  %v6068_v50 = vld [vmem:[%s9402_s29 + $0x48] sm:$0xff]  ;;  %v5335_v53 = vpack.c.bf16 %v547_v48, %v543_v47  ;;  %v546_v55 = vld [vmem:[%s9403_s5 + $0x160] sm:$0xff]  ;;  %v508_v24 = vld [vmem:[%s9403_s5 + $0x30] sm:$0xff] }
  0x19   :  { %5328 = vmatprep.subr.bf16.mxu0 %v5327_v31  ;;  %5312 = vmatprep.subr.bf16.mxu1 %v5311_v41  ;;  %v551_v56 = vld [vmem:[%s9403_s5 + $0x188] sm:$0xff]  ;;  %v5337_v59 = vpack.c.bf16 %v546_v55, %v542_v54  ;;  %v6099_v60 = vld [vmem:[%s9402_s29 + $0x60] sm:$0xff]  ;;  %v1392_v27 = vld [vmem:[%s9407_s28 + $0x18] sm:$0xff] }
  0x1a   :  { %5314 = vmatpush1.bf16.msra.mxu1 %v5313_v49  ;;  %v555_v57 = vld [vmem:[%s9403_s5 + $0x1a8] sm:$0xff]  ;;  %v550_v62 = vld [vmem:[%s9403_s5 + $0x180] sm:$0xff]  ;;  %v513_v31 = vld [vmem:[%s9403_s5 + $0x58] sm:$0xff] }
  0x1b   :  { %5161 = vmatmul.mubr.msk.f32.gmra.mrb[6].mxu0 %vm143_vm0, %v6036_v38  ;;  %v5339_v61 = vpack.c.bf16 %v555_v57, %v551_v56  ;;  %v554_v63 = vld [vmem:[%s9403_s5 + $0x1a0] sm:$0xff]  ;;  %v559_v0 = vld [vmem:[%s9403_s5 + $0x1c8] sm:$0xff]  ;;  %5348 = vmatprep.subr.bf16.mxu1 %v5347_v23  ;;  %v517_v32 = vld [vmem:[%s9403_s5 + $0x78] sm:$0xff] }
  0x1c   :  { %5330 = vmatpush1.bf16.msra.mxu0 %v5329_v39  ;;  %5163 = vmatprep.mubr.msk.f32.mxu0 %vm143_vm0, %v6041_v40  ;;  %v563_v1 = vld [vmem:[%s9403_s5 + $0x1e8] sm:$0xff]  ;;  %v5341_v4 = vpack.c.bf16 %v554_v63, %v550_v62  ;;  %v558_v7 = vld [vmem:[%s9403_s5 + $0x1c0] sm:$0xff]  ;;  %v5351_v35 = vpack.c.bf16 %v517_v32, %v513_v31  ;;  %v512_v36 = vld [vmem:[%s9403_s5 + $0x50] sm:$0xff] }
  0x1d   :  { %5332 = vmatprep.subr.bf16.mxu0 %v5331_v43  ;;  %4769 = vmatmul.mubr.msk.f32.vlgmr.msra.gmra.mrb[0].mxu1 %vm143_vm0, %v5926_v2  ;;  %v6123_v2 = vld [vmem:[%s9402_s29 + $0x68] sm:$0xff]  ;;  %v5343_v6 = vpack.c.bf16 %v563_v1, %v559_v0  ;;  %v562_v8 = vld [vmem:[%s9403_s5 + $0x1e0] sm:$0xff]  ;;  %v516_v37 = vld [vmem:[%s9403_s5 + $0x70] sm:$0xff]  ;;  %s5780_s29 = smov 125  }
  0x1e   :  { %411 = vmatprep.mubr.f32.mxu1 %v9330_v3  ;;  %v889_v9 = vld [vmem:[%s9405_s4 + $0x8] sm:$0xff]  ;;  %v888_v15 = vld [vmem:[%s9405_s4] sm:$0xff]  ;;  %v5353_v39 = vpack.c.bf16 %v516_v37, %v512_v36  ;;  %v521_v41 = vld [vmem:[%s9403_s5 + $0x98] sm:$0xff] }
  0x1f   :  { %5164 = vmatmul.mubr.msk.f32.gmra.mrb[8].mxu0 %vm143_vm0, %v6068_v50  ;;  %v5379_v13 = vpack.c.bf16 %v891_v10, %v889_v9  ;;  %v5381_v21 = vpack.c.bf16 %v890_v16, %v888_v15  ;;  %v893_v25 = vld [vmem:[%s9405_s4 + $0x28] sm:$0xff]  ;;  %v892_v33 = vld [vmem:[%s9405_s4 + $0x20] sm:$0xff]  ;;  %v525_v42 = vld [vmem:[%s9403_s5 + $0xb8] sm:$0xff] }
  0x20   :  { %5334 = vmatpush1.bf16.msra.mxu0 %v5333_v51  ;;  %5166 = vmatprep.mubr.msk.f32.mxu0 %vm143_vm0, %v6073_v52  ;;  %v1390_v26 = vld [vmem:[%s9407_s28 + $0x8] sm:$0xff]  ;;  %v5355_v43 = vpack.c.bf16 %v525_v42, %v521_v41  ;;  %v520_v44 = vld [vmem:[%s9403_s5 + $0x90] sm:$0xff]  ;;  %v529_v47 = vld [vmem:[%s9403_s5 + $0xd8] sm:$0xff] }
  0x21   :  { %5336 = vmatprep.subr.bf16.mxu0 %v5335_v53  ;;  %4770 = vmatmul.mubr.msk.f32.gmra.mrb[2].mxu1 %vm143_vm0, %v5952_v12  ;;  %v5345_v12 = vpack.c.bf16 %v562_v8, %v558_v7  ;;  %v6200_v29 = vld [vmem:[%s9406_s8 + $0x8] sm:$0xff]  ;;  %v5447_v34 = vpack.c.bf16 %v1392_v27, %v1390_v26  ;;  %v524_v45 = vld [vmem:[%s9403_s5 + $0xb0] sm:$0xff]  ;;  %v533_v48 = vld [vmem:[%s9403_s5 + $0xf8] sm:$0xff] }
  0x22   :  { %417 = vmatprep.mubr.f32.mxu1 %v9330_v3  ;;  %v5357_v46 = vpack.c.bf16 %v524_v45, %v520_v44  ;;  %v5359_v49 = vpack.c.bf16 %v533_v48, %v529_v47  ;;  %v6263_v51 = vld [vmem:[%s9406_s8 + $0x20] sm:$0xff]  ;;  %v6323_v53 = vld [vmem:[%s9406_s8 + $0x50] sm:$0xff]  ;;  %v6333_v54 = vld [vmem:[%s9406_s8 + $0x58] sm:$0xff] }
  0x23   :  { %5167 = vmatmul.mubr.msk.f32.gmra.mrb[10].mxu0 %vm143_vm0, %v6094_v58  ;;  %v6343_v55 = vld [vmem:[%s9406_s8 + $0x60] sm:$0xff]  ;;  %v6353_v56 = vld [vmem:[%s9406_s8 + $0x68] sm:$0xff]  ;;  %v528_v57 = vld [vmem:[%s9403_s5 + $0xd0] sm:$0xff] }
  0x24   :  { %5338 = vmatpush1.bf16.msra.mxu0 %v5337_v59  ;;  %5169 = vmatprep.mubr.msk.f32.mxu0 %vm143_vm0, %v6099_v60  ;;  %v6366_v59 = vld [vmem:[%s9406_s8 + $0x70] sm:$0xff]  ;;  %v537_v62 = vld [vmem:[%s9403_s5 + $0x118] sm:$0xff]  ;;  %v1389_v0 = vld [vmem:[%s9407_s28] sm:$0xff] }
  0x25   :  { %5340 = vmatprep.subr.bf16.mxu0 %v5339_v61  ;;  %4771 = vmatmul.mubr.msk.f32.gmra.mrb[4].mxu1 %vm143_vm0, %v5957_v14  ;;  %v6178_v14 = vld [vmem:[%s9406_s8] sm:$0xff]  ;;  %v6373_v61 = vld [vmem:[%s9406_s8 + $0x78] sm:$0xff]  ;;  %v1391_v1 = vld [vmem:[%s9407_s28 + $0x10] sm:$0xff] }
  0x26   :  { %423 = vmatprep.mubr.f32.mxu1 %v9330_v3  ;;  %v541_v63 = vld [vmem:[%s9403_s5 + $0x138] sm:$0xff]  ;;  %v540_v7 = vld [vmem:[%s9403_s5 + $0x130] sm:$0xff]  ;;  %v93_v8 = vld [vmem:[%s9408_s25] sm:$0xff]  ;;  %v5449_v9 = vpack.c.bf16 %v1391_v1, %v1389_v0 }
  0x27   :  { %5170 = vmatmul.mubr.msk.f32.gmra.mrb[12].mxu0 %vm143_vm0, %v6123_v2  ;;  %v1398_v15 = vld [vmem:[%s9407_s28 + $0x48] sm:$0xff]  ;;  %v1400_v16 = vld [vmem:[%s9407_s28 + $0x58] sm:$0xff]  ;;  %v544_v31 = vld [vmem:[%s9403_s5 + $0x150] sm:$0xff] }
  0x28   :  { %5342 = vmatpush1.bf16.msra.mxu0 %v5341_v4  ;;  %5172 = vmatprep.mubr.msk.f32.mxu0 %vm143_vm0, %v6128_v5  ;;  %v1394_v4 = vld [vmem:[%s9407_s28 + $0x28] sm:$0xff]  ;;  %v5455_v23 = vpack.c.bf16 %v1400_v16, %v1398_v15  ;;  %v548_v32 = vld [vmem:[%s9403_s5 + $0x170] sm:$0xff]  ;;  %v1401_v37 = vld [vmem:[%s9407_s28 + $0x60] sm:$0xff] }
  0x29   :  { %5344 = vmatprep.subr.bf16.mxu0 %v5343_v6  ;;  %4772 = vmatmul.mubr.msk.f32.gmra.mrb[6].mxu1 %vm143_vm0, %v5978_v20  ;;  %v5349_v20 = vpack.c.bf16 %v508_v24, %v504_v19  ;;  %v536_v6 = vld [vmem:[%s9403_s5 + $0x110] sm:$0xff]  ;;  %v94_v17 = vld [vmem:[%s9408_s25 + $0x8] sm:$0xff]  ;;  %v545_v19 = vld [vmem:[%s9403_s5 + $0x158] sm:$0xff] }
  0x2a   :  { %429 = vmatprep.mubr.f32.mxu1 %v9330_v3  ;;  %v5365_v10 = vpack.c.bf16 %v540_v7, %v536_v6  ;;  %v1397_v24 = vld [vmem:[%s9407_s28 + $0x40] sm:$0xff]  ;;  %v1402_v27 = vld [vmem:[%s9407_s28 + $0x68] sm:$0xff]  ;;  %v1408_v42 = vld [vmem:[%s9407_s28 + $0x98] sm:$0xff] }
  0x2b   :  { %5173 = vmatmul.mubr.msk.f32.gmra.mrb[14].mxu0 %vm143_vm0, %v6152_v11  ;;  %5350 = vmatpush1.bf16.msra.mxu1 %v5349_v20  ;;  %v1404_v20 = vld [vmem:[%s9407_s28 + $0x78] sm:$0xff]  ;;  %v1406_v41 = vld [vmem:[%s9407_s28 + $0x88] sm:$0xff]  ;;  %v1405_v48 = vld [vmem:[%s9407_s28 + $0x80] sm:$0xff] }
  0x2c   :  { %5346 = vmatpush1.bf16.msra.mxu0 %v5345_v12  ;;  %630 = vmatprep.mubr.f32.mxu0 %v9330_v3  ;;  %v1393_v12 = vld [vmem:[%s9407_s28 + $0x20] sm:$0xff]  ;;  %v5459_v36 = vpack.c.bf16 %v1404_v20, %v1402_v27  ;;  %v553_v45 = vld [vmem:[%s9403_s5 + $0x198] sm:$0xff]  ;;  %v5463_v47 = vpack.c.bf16 %v1408_v42, %v1406_v41  ;;  %v1411_v6 = vld [vmem:[%s9407_s28 + $0xb0] sm:$0xff] }
  0x2d   :  { %5380 = vmatprep.subr.bf16.mxu0 %v5379_v13  ;;  %4773 = vmatmul.mubr.msk.f32.gmra.mrb[8].mxu1 %vm143_vm0, %v5983_v22  ;;  %v6225_v22 = vld [vmem:[%s9406_s8 + $0x10] sm:$0xff]  ;;  %v97_v0 = vld [vmem:[%s9408_s25 + $0x20] sm:$0xff]  ;;  %v1414_v7 = vld [vmem:[%s9407_s28 + $0xc8] sm:$0xff] }
  0x2e   :  { %435 = vmatprep.mubr.f32.mxu1 %v9330_v3  ;;  %5352 = vmatprep.subr.bf16.mxu1 %v5351_v35  ;;  %v1395_v13 = vld [vmem:[%s9407_s28 + $0x30] sm:$0xff]  ;;  %v5369_v35 = vpack.c.bf16 %v548_v32, %v544_v31  ;;  %v1413_v15 = vld [vmem:[%s9407_s28 + $0xc0] sm:$0xff]  ;;  %v1149_v32 = vld [vmem:[%s9409_s26 + $0x8] sm:$0xff] }
  0x2f   :  { %631 = vmatmul.mubr.f32.vlgmr.msra.gmra.mrb[16].mxu0 %v6178_v14  ;;  %5354 = vmatpush1.bf16.msra.mxu1 %v5353_v39  ;;  %v5453_v18 = vpack.c.bf16 %v1395_v13, %v1393_v12  ;;  %v1403_v39 = vld [vmem:[%s9407_s28 + $0x70] sm:$0xff]  ;;  %v565_v12 = vld [vmem:[%s9403_s5 + $0x1f8] sm:$0xff]  ;;  %v1417_v20 = vld [vmem:[%s9407_s28 + $0xe0] sm:$0xff] }
  0x30   :  { %5382 = vmatpush1.bf16.msra.mxu0 %v5381_v21  ;;  %636 = vmatprep.mubr.f32.mxu0 %v9330_v3  ;;  %v549_v21 = vld [vmem:[%s9403_s5 + $0x178] sm:$0xff]  ;;  %v5461_v44 = vpack.c.bf16 %v1403_v39, %v1401_v37  ;;  %v1415_v16 = vld [vmem:[%s9407_s28 + $0xd0] sm:$0xff]  ;;  %v1153_v42 = vld [vmem:[%s9409_s26 + $0x28] sm:$0xff] }
  0x31   :  { %959 = vmatprep.subr.mxu0 %v893_v25  ;;  %4774 = vmatmul.mubr.msk.f32.gmra.mrb[10].mxu1 %vm143_vm0, %v6004_v28  ;;  %v6247_v28 = vld [vmem:[%s9406_s8 + $0x18] sm:$0xff]  ;;  %v1399_v25 = vld [vmem:[%s9407_s28 + $0x50] sm:$0xff]  ;;  %v5367_v26 = vpack.c.bf16 %v549_v21, %v545_v19 }
  0x32   :  { %441 = vmatprep.mubr.f32.mxu1 %v9330_v3  ;;  %5356 = vmatprep.subr.bf16.mxu1 %v5355_v43  ;;  %v96_v43 = vld [vmem:[%s9408_s25 + $0x18] sm:$0xff]  ;;  %v560_v21 = vld [vmem:[%s9403_s5 + $0x1d0] sm:$0xff] }
  0x33   :  { %637 = vmatmul.mubr.f32.gmra.mrb[18].mxu0 %v6200_v29  ;;  %5358 = vmatpush1.bf16.msra.mxu1 %v5357_v46  ;;  %v557_v46 = vld [vmem:[%s9403_s5 + $0x1b8] sm:$0xff]  ;;  %v1419_v31 = vld [vmem:[%s9407_s28 + $0xf0] sm:$0xff] }
  0x34   :  { %642 = vmatprep.mubr.f32.mxu0 %v9330_v3  ;;  %960 = vmatpush1.msra.mxu0 %v892_v33  ;;  %v95_v33 = vld [vmem:[%s9408_s25 + $0x10] sm:$0xff]  ;;  %v1420_v19 = vld [vmem:[%s9407_s28 + $0xf8] sm:$0xff]  ;;  %v5477_v39 = vpack.c.bf16 %v1419_v31, %v1417_v20  ;;  %v1172_v31 = vld [vmem:[%s9409_s26 + $0xc0] sm:$0xff] }
  0x35   :  { %5448 = vmatprep.subr.bf16.mxu0 %v5447_v34  ;;  %4775 = vmatmul.mubr.msk.f32.gmra.mrb[12].mxu1 %vm143_vm0, %v6009_v30  ;;  %v6273_v30 = vld [vmem:[%s9406_s8 + $0x28] sm:$0xff]  ;;  %v5457_v34 = vpack.c.bf16 %v1399_v25, %v1397_v24  ;;  %v99_v25 = vld [vmem:[%s9408_s25 + $0x30] sm:$0xff]  ;;  %v100_v37 = vld [vmem:[%s9408_s25 + $0x38] sm:$0xff] }
  0x36   :  { %447 = vmatprep.mubr.f32.mxu1 %v9330_v3  ;;  %5360 = vmatprep.subr.bf16.mxu1 %v5359_v49  ;;  %v1407_v49 = vld [vmem:[%s9407_s28 + $0x90] sm:$0xff] }
  0x37   :  { %643 = vmatmul.mubr.f32.gmra.mrb[20].mxu0 %v6225_v22  ;;  %v5465_v1 = vpack.c.bf16 %v1407_v49, %v1405_v48  ;;  %v1157_v49 = vld [vmem:[%s9409_s26 + $0x48] sm:$0xff] }
  0x38   :  { %648 = vmatprep.mubr.f32.mxu0 %v9330_v3 }
  0x39   :  { %4776 = vmatmul.mubr.msk.f32.gmra.mrb[14].mxu1 %vm143_vm0, %v6036_v38  ;;  %v6283_v38 = vld [vmem:[%s9406_s8 + $0x30] sm:$0xff] }
  0x3a   :  { %453 = vmatprep.mubr.f32.mxu1 %v9330_v3 }
  0x3b   :  { %649 = vmatmul.mubr.f32.gmra.mrb[22].mxu0 %v6247_v28 }
  0x3c   :  { %654 = vmatprep.mubr.f32.mxu0 %v9330_v3 }
  0x3d   :  { %4777 = vmatmul.mubr.msk.f32.gmra.mrb[16].mxu1 %vm143_vm0, %v6041_v40  ;;  %v6293_v40 = vld [vmem:[%s9406_s8 + $0x38] sm:$0xff] }
  0x3e   :  { %459 = vmatprep.mubr.f32.mxu1 %v9330_v3 }
  0x3f   :  { %655 = vmatmul.mubr.f32.gmra.mrb[24].mxu0 %v6263_v51 }
  0x40   :  { %660 = vmatprep.mubr.f32.mxu0 %v9330_v3 }
  0x41   :  { %4778 = vmatmul.mubr.msk.f32.gmra.mrb[18].mxu1 %vm143_vm0, %v6068_v50  ;;  %v6303_v50 = vld [vmem:[%s9406_s8 + $0x40] sm:$0xff] }
  0x42   :  { %465 = vmatprep.mubr.f32.mxu1 %v9330_v3 }
  0x43   :  { %661 = vmatmul.mubr.f32.gmra.mrb[26].mxu0 %v6273_v30 }
  0x44   :  { %666 = vmatprep.mubr.f32.mxu0 %v9330_v3 }
  0x45   :  { %4779 = vmatmul.mubr.msk.f32.gmra.mrb[20].mxu1 %vm143_vm0, %v6073_v52  ;;  %v6313_v52 = vld [vmem:[%s9406_s8 + $0x48] sm:$0xff] }
  0x46   :  { %471 = vmatprep.mubr.f32.mxu1 %v9330_v3 }
  0x47   :  { %667 = vmatmul.mubr.f32.gmra.mrb[28].mxu0 %v6283_v38 }
  0x48   :  { %672 = vmatprep.mubr.f32.mxu0 %v9330_v3 }
  0x49   :  { %4780 = vmatmul.mubr.msk.f32.gmra.mrb[22].mxu1 %vm143_vm0, %v6094_v58  ;;  %v532_v58 = vld [vmem:[%s9403_s5 + $0xf0] sm:$0xff] }
  0x4a   :  { %477 = vmatprep.mubr.f32.mxu1 %v9330_v3 }
  0x4b   :  { %673 = vmatmul.mubr.f32.gmra.mrb[30].mxu0 %v6293_v40 }
  0x4c   :  { %678 = vmatprep.mubr.f32.mxu0 %v9330_v3 }
  0x4d   :  { %4781 = vmatmul.mubr.msk.f32.gmra.mrb[24].mxu1 %vm143_vm0, %v6099_v60  ;;  %v5361_v60 = vpack.c.bf16 %v532_v58, %v528_v57  ;;  %v5371_v57 = vpack.c.bf16 %v557_v46, %v553_v45  ;;  %v1410_v58 = vld [vmem:[%s9407_s28 + $0xa8] sm:$0xff]  ;;  %v1152_v45 = vld [vmem:[%s9409_s26 + $0x20] sm:$0xff]  ;;  %v1154_v46 = vld [vmem:[%s9409_s26 + $0x30] sm:$0xff] }
  0x4e   :  { %483 = vmatprep.mubr.f32.mxu1 %v9330_v3  ;;  %v5389_v48 = vpack.c.bf16 %v1154_v46, %v1152_v45  ;;  %v1183_v45 = vld [vmem:[%s9409_s26 + $0x118] sm:$0xff] }
  0x4f   :  { %679 = vmatmul.mubr.f32.gmra.mrb[32].mxu0 %v6303_v50  ;;  %5362 = vmatpush1.bf16.msra.mxu1 %v5361_v60  ;;  %v1412_v60 = vld [vmem:[%s9407_s28 + $0xb8] sm:$0xff] }
  0x50   :  { %684 = vmatprep.mubr.f32.mxu0 %v9330_v3 }
  0x51   :  { %4782 = vmatmul.mubr.msk.f32.gmra.mrb[26].mxu1 %vm143_vm0, %v6123_v2  ;;  %v5363_v2 = vpack.c.bf16 %v541_v63, %v537_v62  ;;  %v552_v62 = vld [vmem:[%s9403_s5 + $0x190] sm:$0xff] }
  0x52   :  { %489 = vmatprep.mubr.f32.mxu1 %v9330_v3  ;;  %v556_v63 = vld [vmem:[%s9403_s5 + $0x1b0] sm:$0xff] }
  0x53   :  { %685 = vmatmul.mubr.f32.gmra.mrb[34].mxu0 %v6313_v52  ;;  %5364 = vmatprep.subr.bf16.mxu1 %v5363_v2  ;;  %v5373_v2 = vpack.c.bf16 %v556_v63, %v552_v62  ;;  %v1158_v62 = vld [vmem:[%s9409_s26 + $0x50] sm:$0xff]  ;;  %v102_v63 = vld [vmem:[%s9408_s25 + $0x48] sm:$0xff] }
  0x54   :  { %690 = vmatprep.mubr.f32.mxu0 %v9330_v3  ;;  %5366 = vmatpush1.bf16.msra.mxu1 %v5365_v10 }
  0x55   :  { %4783 = vmatmul.mubr.msk.f32.gmra.mrb[28].mxu1 %vm143_vm0, %v6128_v5  ;;  %v1396_v5 = vld [vmem:[%s9407_s28 + $0x38] sm:$0xff]  ;;  %5368 = vmatprep.subr.bf16.mxu1 %v5367_v26  ;;  %v5473_v26 = vpack.c.bf16 %v1415_v16, %v1413_v15 }
  0x56   :  { %495 = vmatprep.mubr.f32.mxu1 %v9330_v3  ;;  %v104_v15 = vld [vmem:[%s9408_s25 + $0x58] sm:$0xff] }
  0x57   :  { %691 = vmatmul.mubr.f32.gmra.mrb[36].mxu0 %v6323_v53 }
  0x58   :  { %696 = vmatprep.mubr.f32.mxu0 %v9330_v3  ;;  %5370 = vmatpush1.bf16.msra.mxu1 %v5369_v35  ;;  %v1148_v35 = vld [vmem:[%s9409_s26] sm:$0xff] }
  0x59   :  { %4784 = vmatmul.mubr.msk.f32.gmra.mrb[30].mxu1 %vm143_vm0, %v6152_v11  ;;  %v5451_v11 = vpack.c.bf16 %v1396_v5, %v1394_v4  ;;  %5372 = vmatprep.subr.bf16.mxu1 %v5371_v57  ;;  %v5467_v4 = vpack.c.bf16 %v1412_v60, %v1410_v58  ;;  %v1409_v5 = vld [vmem:[%s9407_s28 + $0xa0] sm:$0xff]  ;;  %v1159_v57 = vld [vmem:[%s9409_s26 + $0x58] sm:$0xff] }
  0x5a   :  { %791 = vmatprep.mubr.f32.mxu1 %v9330_v3  ;;  %v5469_v10 = vpack.c.bf16 %v1411_v6, %v1409_v5  ;;  %v5391_v58 = vpack.c.bf16 %v1159_v57, %v1157_v49  ;;  %v1156_v60 = vld [vmem:[%s9409_s26 + $0x40] sm:$0xff]  ;;  %v1162_v6 = vld [vmem:[%s9409_s26 + $0x70] sm:$0xff]  ;;  %v108_v49 = vld [vmem:[%s9408_s25 + $0x78] sm:$0xff] }
  0x5b   :  { %697 = vmatmul.mubr.f32.gmra.mrb[38].mxu0 %v6333_v54  ;;  %v1160_v5 = vld [vmem:[%s9409_s26 + $0x60] sm:$0xff] }
  0x5c   :  { %702 = vmatprep.mubr.f32.mxu0 %v9330_v3  ;;  %5374 = vmatpush1.bf16.msra.mxu1 %v5373_v2  ;;  %v1163_v2 = vld [vmem:[%s9409_s26 + $0x78] sm:$0xff] }
  0x5f   :  { %703 = vmatmul.mubr.f32.gmra.mrb[40].mxu0 %v6343_v55 }
  0x60   :  { %708 = vmatprep.mubr.f32.mxu0 %v9330_v3 }
  0x63   :  { %709 = vmatmul.mubr.f32.gmra.mrb[42].mxu0 %v6353_v56 }
  0x64   :  { %714 = vmatprep.mubr.f32.mxu0 %v9330_v3 }
  0x67   :  { %715 = vmatmul.mubr.f32.gmra.mrb[44].mxu0 %v6366_v59 }
  0x68   :  { %720 = vmatprep.mubr.f32.mxu0 %v9330_v3 }
  0x6b   :  { %721 = vmatmul.mubr.f32.gmra.mrb[46].mxu0 %v6373_v61 }
  0x6c   :  { %1019 = vmatprep.mubr.f32.mxu0 %v9330_v3 }
  0x6f   :  { %4785 = vmatmul.mubr.msk.f32.vlgmr.msra.gmra.mrb[48].mxu0 %vm906_vm1, %v93_v8  ;;  %v1416_v8 = vld [vmem:[%s9407_s28 + $0xd8] sm:$0xff] }
  0x70   :  { %1025 = vmatprep.mubr.f32.mxu0 %v9330_v3  ;;  %5450 = vmatpush1.bf16.msra.mxu0 %v5449_v9  ;;  %v98_v9 = vld [vmem:[%s9408_s25 + $0x28] sm:$0xff]  ;;  %v5471_v13 = vpack.c.bf16 %v1416_v8, %v1414_v7  ;;  %v103_v7 = vld [vmem:[%s9408_s25 + $0x50] sm:$0xff]  ;;  %v5397_v8 = vpack.c.bf16 %v1162_v6, %v1160_v5  ;;  %v1188_v6 = vld [vmem:[%s9409_s26 + $0x140] sm:$0xff] }
  0x71   :  { %5452 = vmatprep.subr.bf16.mxu0 %v5451_v11  ;;  %v561_v11 = vld [vmem:[%s9403_s5 + $0x1d8] sm:$0xff] }
  0x73   :  { %4786 = vmatmul.mubr.msk.f32.gmra.mrb[50].mxu0 %vm906_vm1, %v94_v17  ;;  %v1418_v17 = vld [vmem:[%s9407_s28 + $0xe8] sm:$0xff] }
  0x74   :  { %1031 = vmatprep.mubr.f32.mxu0 %v9330_v3  ;;  %5454 = vmatpush1.bf16.msra.mxu0 %v5453_v18  ;;  %v5375_v18 = vpack.c.bf16 %v565_v12, %v561_v11  ;;  %v5475_v27 = vpack.c.bf16 %v1420_v19, %v1418_v17  ;;  %v1164_v12 = vld [vmem:[%s9409_s26 + $0x80] sm:$0xff]  ;;  %v1169_v17 = vld [vmem:[%s9409_s26 + $0xa8] sm:$0xff] }
  0x75   :  { %5456 = vmatprep.subr.bf16.mxu0 %v5455_v23  ;;  %v564_v23 = vld [vmem:[%s9403_s5 + $0x1f0] sm:$0xff] }
  0x76   :  { %5376 = vmatprep.subr.bf16.mxu1 %v5375_v18  ;;  %v5377_v24 = vpack.c.bf16 %v564_v23, %v560_v21  ;;  %v1171_v18 = vld [vmem:[%s9409_s26 + $0xb8] sm:$0xff]  ;;  %v1168_v21 = vld [vmem:[%s9409_s26 + $0xa0] sm:$0xff]  ;;  %v1170_v23 = vld [vmem:[%s9409_s26 + $0xb0] sm:$0xff] }
  0x77   :  { %4787 = vmatmul.mubr.msk.f32.gmra.mrb[52].mxu0 %vm906_vm1, %v95_v33  ;;  %v1151_v33 = vld [vmem:[%s9409_s26 + $0x18] sm:$0xff]  ;;  %v5403_v19 = vpack.c.bf16 %v1171_v18, %v1169_v17 }
  0x78   :  { %1037 = vmatprep.mubr.f32.mxu0 %v9330_v3  ;;  %5458 = vmatpush1.bf16.msra.mxu0 %v5457_v34  ;;  %v5383_v34 = vpack.c.bf16 %v1151_v33, %v1149_v32  ;;  %v1174_v32 = vld [vmem:[%s9409_s26 + $0xd0] sm:$0xff]  ;;  %v106_v33 = vld [vmem:[%s9408_s25 + $0x68] sm:$0xff]  ;;  %v1199_v17 = vld [vmem:[%s9409_s26 + $0x198] sm:$0xff] }
  0x79   :  { %5460 = vmatprep.subr.bf16.mxu0 %v5459_v36  ;;  %5378 = vmatpush1.bf16.msra.mxu1 %v5377_v24  ;;  %v1150_v36 = vld [vmem:[%s9409_s26 + $0x10] sm:$0xff]  ;;  %v105_v24 = vld [vmem:[%s9408_s25 + $0x60] sm:$0xff] }
  0x7a   :  { %v5385_v41 = vpack.c.bf16 %v1150_v36, %v1148_v35  ;;  %5384 = vmatprep.subr.bf16.mxu1 %v5383_v34  ;;  %v5409_v34 = vpack.c.bf16 %v1174_v32, %v1172_v31  ;;  %v1177_v35 = vld [vmem:[%s9409_s26 + $0xe8] sm:$0xff]  ;;  %v1179_v36 = vld [vmem:[%s9409_s26 + $0xf8] sm:$0xff] }
  0x7b   :  { %4788 = vmatmul.mubr.msk.f32.gmra.mrb[54].mxu0 %vm906_vm1, %v96_v43  ;;  %v1155_v43 = vld [vmem:[%s9409_s26 + $0x38] sm:$0xff]  ;;  %v1205_v32 = vld [vmem:[%s9409_s26 + $0x1c8] sm:$0xff] }
  0x7c   :  { %1043 = vmatprep.mubr.f32.mxu0 %v9330_v3  ;;  %5462 = vmatpush1.bf16.msra.mxu0 %v5461_v44  ;;  %v5387_v44 = vpack.c.bf16 %v1155_v43, %v1153_v42  ;;  %v107_v42 = vld [vmem:[%s9408_s25 + $0x70] sm:$0xff] }
  0x7d   :  { %5464 = vmatprep.subr.bf16.mxu0 %v5463_v47  ;;  %792 = vmatmul.mubr.f32.vlgmr.msra.gmra.mrb[32].mxu1 %v6178_v14  ;;  %v101_v47 = vld [vmem:[%s9408_s25 + $0x40] sm:$0xff] }
  0x7e   :  { %797 = vmatprep.mubr.f32.mxu1 %v9330_v3  ;;  %5386 = vmatpush1.bf16.msra.mxu1 %v5385_v41  ;;  %v1178_v41 = vld [vmem:[%s9409_s26 + $0xf0] sm:$0xff] }
  0x7f   :  { %4789 = vmatmul.mubr.msk.f32.gmra.mrb[56].mxu0 %vm906_vm1, %v97_v0  ;;  %5388 = vmatprep.subr.bf16.mxu1 %v5387_v44  ;;  %v5393_v0 = vpack.c.bf16 %v1158_v62, %v1156_v60  ;;  %v1181_v44 = vld [vmem:[%s9409_s26 + $0x108] sm:$0xff]  ;;  %v1187_v60 = vld [vmem:[%s9409_s26 + $0x138] sm:$0xff] }
  0x80   :  { %1049 = vmatprep.mubr.f32.mxu0 %v9330_v3  ;;  %5466 = vmatpush1.bf16.msra.mxu0 %v5465_v1  ;;  %v1161_v1 = vld [vmem:[%s9409_s26 + $0x68] sm:$0xff]  ;;  %v5415_v46 = vpack.c.bf16 %v1183_v45, %v1181_v44  ;;  %v1210_v44 = vld [vmem:[%s9409_s26 + $0x1f0] sm:$0xff] }
  0x81   :  { %5468 = vmatprep.subr.bf16.mxu0 %v5467_v4  ;;  %798 = vmatmul.mubr.f32.gmra.mrb[34].mxu1 %v6200_v29  ;;  %v5395_v4 = vpack.c.bf16 %v1163_v2, %v1161_v1  ;;  %v1189_v2 = vld [vmem:[%s9409_s26 + $0x148] sm:$0xff] }
  0x82   :  { %803 = vmatprep.mubr.f32.mxu1 %v9330_v3  ;;  %5390 = vmatpush1.bf16.msra.mxu1 %v5389_v48  ;;  %v1182_v48 = vld [vmem:[%s9409_s26 + $0x110] sm:$0xff] }
  0x83   :  { %4790 = vmatmul.mubr.msk.f32.gmra.mrb[58].mxu0 %vm906_vm1, %v98_v9  ;;  %5392 = vmatprep.subr.bf16.mxu1 %v5391_v58  ;;  %v1165_v9 = vld [vmem:[%s9409_s26 + $0x88] sm:$0xff] }
  0x84   :  { %1055 = vmatprep.mubr.f32.mxu0 %v9330_v3  ;;  %5470 = vmatpush1.bf16.msra.mxu0 %v5469_v10  ;;  %v1167_v10 = vld [vmem:[%s9409_s26 + $0x98] sm:$0xff]  ;;  %v1185_v58 = vld [vmem:[%s9409_s26 + $0x128] sm:$0xff] }
  0x85   :  { %5472 = vmatprep.subr.bf16.mxu0 %v5471_v13  ;;  %804 = vmatmul.mubr.f32.gmra.mrb[36].mxu1 %v6225_v22  ;;  %v5399_v11 = vpack.c.bf16 %v1167_v10, %v1165_v9  ;;  %v1166_v13 = vld [vmem:[%s9409_s26 + $0x90] sm:$0xff]  ;;  %v5419_v62 = vpack.c.bf16 %v1187_v60, %v1185_v58  ;;  %v1193_v9 = vld [vmem:[%s9409_s26 + $0x168] sm:$0xff]  ;;  %v1195_v10 = vld [vmem:[%s9409_s26 + $0x178] sm:$0xff] }
  0x86   :  { %809 = vmatprep.mubr.f32.mxu1 %v9330_v3  ;;  %5394 = vmatpush1.bf16.msra.mxu1 %v5393_v0  ;;  %v5401_v16 = vpack.c.bf16 %v1166_v13, %v1164_v12  ;;  %v1186_v0 = vld [vmem:[%s9409_s26 + $0x130] sm:$0xff]  ;;  %v1192_v12 = vld [vmem:[%s9409_s26 + $0x160] sm:$0xff] }
  0x87   :  { %4791 = vmatmul.mubr.msk.f32.gmra.mrb[60].mxu0 %vm906_vm1, %v99_v25  ;;  %5396 = vmatprep.subr.bf16.mxu1 %v5395_v4  ;;  %v5405_v25 = vpack.c.bf16 %v1170_v23, %v1168_v21  ;;  %v1191_v4 = vld [vmem:[%s9409_s26 + $0x158] sm:$0xff]  ;;  %v1194_v13 = vld [vmem:[%s9409_s26 + $0x170] sm:$0xff] }
  0x88   :  { %1061 = vmatprep.mubr.f32.mxu0 %v9330_v3  ;;  %5474 = vmatpush1.bf16.msra.mxu0 %v5473_v26  ;;  %v1173_v26 = vld [vmem:[%s9409_s26 + $0xc8] sm:$0xff]  ;;  %v5423_v5 = vpack.c.bf16 %v1191_v4, %v1189_v2  ;;  %v1198_v21 = vld [vmem:[%s9409_s26 + $0x190] sm:$0xff] }
  0x89   :  { %5476 = vmatprep.subr.bf16.mxu0 %v5475_v27  ;;  %810 = vmatmul.mubr.f32.gmra.mrb[38].mxu1 %v6247_v28  ;;  %v1175_v27 = vld [vmem:[%s9409_s26 + $0xd8] sm:$0xff] }
  0x8a   :  { %815 = vmatprep.mubr.f32.mxu1 %v9330_v3  ;;  %5398 = vmatpush1.bf16.msra.mxu1 %v5397_v8  ;;  %v5407_v20 = vpack.c.bf16 %v1175_v27, %v1173_v26  ;;  %v1200_v27 = vld [vmem:[%s9409_s26 + $0x1a0] sm:$0xff] }
  0x8b   :  { %4792 = vmatmul.mubr.msk.f32.gmra.mrb[62].mxu0 %vm906_vm1, %v100_v37  ;;  %5400 = vmatprep.subr.bf16.mxu1 %v5399_v11  ;;  %v5411_v37 = vpack.c.bf16 %v1179_v36, %v1177_v35  ;;  %v5427_v11 = vpack.c.bf16 %v1195_v10, %v1193_v9  ;;  %v1204_v35 = vld [vmem:[%s9409_s26 + $0x1c0] sm:$0xff]  ;;  %v1206_v36 = vld [vmem:[%s9409_s26 + $0x1d0] sm:$0xff] }
  0x8c   :  { %1067 = vmatprep.mubr.f32.mxu0 %v9330_v3  ;;  %5478 = vmatpush1.bf16.msra.mxu0 %v5477_v39  ;;  %v1176_v39 = vld [vmem:[%s9409_s26 + $0xe0] sm:$0xff] }
  0x8d   :  { %816 = vmatmul.mubr.f32.gmra.mrb[40].mxu1 %v6263_v51  ;;  %v5413_v43 = vpack.c.bf16 %v1178_v41, %v1176_v39  ;;  %v1209_v39 = vld [vmem:[%s9409_s26 + $0x1e8] sm:$0xff]  ;;  %v1211_v41 = vld [vmem:[%s9409_s26 + $0x1f8] sm:$0xff] }
  0x8e   :  { %821 = vmatprep.mubr.f32.mxu1 %v9330_v3  ;;  %5402 = vmatpush1.bf16.msra.mxu1 %v5401_v16  ;;  %v1197_v16 = vld [vmem:[%s9409_s26 + $0x188] sm:$0xff] }
  0x8f   :  { %4793 = vmatmul.mubr.msk.f32.gmra.mrb[64].mxu0 %vm906_vm1, %v101_v47  ;;  %5404 = vmatprep.subr.bf16.mxu1 %v5403_v19  ;;  %v1180_v47 = vld [vmem:[%s9409_s26 + $0x100] sm:$0xff]  ;;  %v5431_v18 = vpack.c.bf16 %v1199_v17, %v1197_v16 }
  0x90   :  { %1073 = vmatprep.mubr.f32.mxu0 %v9330_v3  ;;  %v5417_v57 = vpack.c.bf16 %v1182_v48, %v1180_v47  ;;  %v1196_v19 = vld [vmem:[%s9409_s26 + $0x180] sm:$0xff] }
  0x91   :  { %822 = vmatmul.mubr.f32.gmra.mrb[42].mxu1 %v6273_v30  ;;  %v5433_v23 = vpack.c.bf16 %v1198_v21, %v1196_v19 }
  0x92   :  { %827 = vmatprep.mubr.f32.mxu1 %v9330_v3  ;;  %5406 = vmatpush1.bf16.msra.mxu1 %v5405_v25  ;;  %v1203_v25 = vld [vmem:[%s9409_s26 + $0x1b8] sm:$0xff] }
  0x93   :  { %4794 = vmatmul.mubr.msk.f32.gmra.mrb[66].mxu0 %vm906_vm1, %v102_v63  ;;  %5408 = vmatprep.subr.bf16.mxu1 %v5407_v20  ;;  %v1184_v63 = vld [vmem:[%s9409_s26 + $0x120] sm:$0xff]  ;;  %v1202_v20 = vld [vmem:[%s9409_s26 + $0x1b0] sm:$0xff] }
  0x94   :  { %1079 = vmatprep.mubr.f32.mxu0 %v9330_v3  ;;  %v5421_v1 = vpack.c.bf16 %v1186_v0, %v1184_v63  ;;  %v5437_v31 = vpack.c.bf16 %v1202_v20, %v1200_v27  ;;  %v896_v27 = vlaneseq }
  0x95   :  { %828 = vmatmul.mubr.f32.gmra.mrb[44].mxu1 %v6283_v38 }
  0x96   :  { %833 = vmatprep.mubr.f32.mxu1 %v9330_v3  ;;  %5410 = vmatpush1.bf16.msra.mxu1 %v5409_v34 }
  0x97   :  { %4795 = vmatmul.mubr.msk.f32.gmra.mrb[68].mxu0 %vm906_vm1, %v103_v7  ;;  %5412 = vmatprep.subr.bf16.mxu1 %v5411_v37  ;;  %v1190_v7 = vld [vmem:[%s9409_s26 + $0x150] sm:$0xff]  ;;  %v5441_v37 = vpack.c.bf16 %v1206_v36, %v1204_v35 }
  0x98   :  { %1085 = vmatprep.mubr.f32.mxu0 %v9330_v3  ;;  %v5425_v8 = vpack.c.bf16 %v1190_v7, %v1188_v6 }
  0x99   :  { %834 = vmatmul.mubr.f32.gmra.mrb[46].mxu1 %v6293_v40 }
  0x9a   :  { %839 = vmatprep.mubr.f32.mxu1 %v9330_v3  ;;  %5414 = vmatpush1.bf16.msra.mxu1 %v5413_v43  ;;  %v1208_v43 = vld [vmem:[%s9409_s26 + $0x1e0] sm:$0xff] }
  0x9b   :  { %4796 = vmatmul.mubr.msk.f32.gmra.mrb[70].mxu0 %vm906_vm1, %v104_v15  ;;  %5416 = vmatprep.subr.bf16.mxu1 %v5415_v46  ;;  %v5429_v15 = vpack.c.bf16 %v1194_v13, %v1192_v12  ;;  %v5445_v45 = vpack.c.bf16 %v1210_v44, %v1208_v43 }
  0x9c   :  { %1091 = vmatprep.mubr.f32.mxu0 %v9330_v3 }
  0x9d   :  { %840 = vmatmul.mubr.f32.gmra.mrb[48].mxu1 %v6303_v50 }
  0x9e   :  { %845 = vmatprep.mubr.f32.mxu1 %v9330_v3  ;;  %5418 = vmatpush1.bf16.msra.mxu1 %v5417_v57 }
  0x9f   :  { %4797 = vmatmul.mubr.msk.f32.gmra.mrb[72].mxu0 %vm906_vm1, %v105_v24  ;;  %5420 = vmatprep.subr.bf16.mxu1 %v5419_v62  ;;  %v1201_v24 = vld [vmem:[%s9409_s26 + $0x1a8] sm:$0xff] }
  0xa0   :  { %1097 = vmatprep.mubr.f32.mxu0 %v9330_v3  ;;  %v5435_v26 = vpack.c.bf16 %v1203_v25, %v1201_v24 }
  0xa1   :  { %846 = vmatmul.mubr.f32.gmra.mrb[50].mxu1 %v6313_v52 }
  0xa2   :  { %851 = vmatprep.mubr.f32.mxu1 %v9330_v3  ;;  %5422 = vmatpush1.bf16.msra.mxu1 %v5421_v1 }
  0xa3   :  { %4798 = vmatmul.mubr.msk.f32.gmra.mrb[74].mxu0 %vm906_vm1, %v106_v33  ;;  %5424 = vmatprep.subr.bf16.mxu1 %v5423_v5  ;;  %v1207_v33 = vld [vmem:[%s9409_s26 + $0x1d8] sm:$0xff] }
  0xa4   :  { %1103 = vmatprep.mubr.f32.mxu0 %v9330_v3  ;;  %v5439_v34 = vpack.c.bf16 %v1207_v33, %v1205_v32 }
  0xa5   :  { %852 = vmatmul.mubr.f32.gmra.mrb[52].mxu1 %v6323_v53 }
  0xa6   :  { %857 = vmatprep.mubr.f32.mxu1 %v9330_v3  ;;  %5426 = vmatpush1.bf16.msra.mxu1 %v5425_v8 }
  0xa7   :  { %4799 = vmatmul.mubr.msk.f32.gmra.mrb[76].mxu0 %vm906_vm1, %v107_v42  ;;  %5428 = vmatprep.subr.bf16.mxu1 %v5427_v11  ;;  %v5443_v42 = vpack.c.bf16 %v1211_v41, %v1209_v39 }
  0xa8   :  { %1109 = vmatprep.mubr.f32.mxu0 %v9330_v3 }
  0xa9   :  { %858 = vmatmul.mubr.f32.gmra.mrb[54].mxu1 %v6333_v54 }
  0xaa   :  { %863 = vmatprep.mubr.f32.mxu1 %v9330_v3  ;;  %5430 = vmatpush1.bf16.msra.mxu1 %v5429_v15 }
  0xab   :  { %4800 = vmatmul.mubr.msk.f32.gmra.mrb[78].mxu0 %vm906_vm1, %v108_v49  ;;  %5432 = vmatprep.subr.bf16.mxu1 %v5431_v18 }
  0xac   :  { %1485 = vmatprep.mubr.f32.mxu0 %v9330_v3 }
  0xad   :  { %864 = vmatmul.mubr.f32.gmra.mrb[56].mxu1 %v6343_v55 }
  0xae   :  { %869 = vmatprep.mubr.f32.mxu1 %v9330_v3  ;;  %5434 = vmatpush1.bf16.msra.mxu1 %v5433_v23 }
  0xaf   :  { %5436 = vmatprep.subr.bf16.mxu1 %v5435_v26 }
  0xb1   :  { %870 = vmatmul.mubr.f32.gmra.mrb[58].mxu1 %v6353_v56 }
  0xb2   :  { %875 = vmatprep.mubr.f32.mxu1 %v9330_v3  ;;  %5438 = vmatpush1.bf16.msra.mxu1 %v5437_v31 }
  0xb3   :  { %5440 = vmatprep.subr.bf16.mxu1 %v5439_v34 }
  0xb5   :  { %876 = vmatmul.mubr.f32.gmra.mrb[60].mxu1 %v6366_v59 }
  0xb6   :  { %881 = vmatprep.mubr.f32.mxu1 %v9330_v3  ;;  %5442 = vmatpush1.bf16.msra.mxu1 %v5441_v37 }
  0xb7   :  { %5444 = vmatprep.subr.bf16.mxu1 %v5443_v42 }
  0xb9   :  { %882 = vmatmul.mubr.f32.gmra.mrb[62].mxu1 %v6373_v61 }
  0xba   :  { %5446 = vmatpush1.bf16.msra.mxu1 %v5445_v45 }
  0xe2   :  { %v5153_v46 = vpop.f32.mrb[0].mxu0 }
  0xe3   :  { %v258_v47 = vpop.f32.mrb[1].mxu0  ;;  %v1374_v58 = vmul.f32 %v5153_v46, %v6200_v29 }
  0xe4   :  { %v1373_v48 = vmul.f32 %v258_v47, %v6178_v14 }
  0xe6   :  { %v5156_v49 = vpop.f32.mrb[2].mxu0  ;;  %1486 = vmatmul.mubr.f32.vlgmr.msra.gmra.mrb[80].mxu0 %v1373_v48 }
  0xe7   :  { %v268_v57 = vpop.f32.mrb[3].mxu0  ;;  %1491 = vmatprep.mubr.f32.mxu0 %v9330_v3  ;;  %v1376_v14 = vmul.f32 %v5156_v49, %v6247_v28 }
  0xe8   :  { %v1375_v63 = vmul.f32 %v268_v57, %v6225_v22 }
  0xea   :  { %v5159_v60 = vpop.f32.mrb[4].mxu0  ;;  %1492 = vmatmul.mubr.f32.gmra.mrb[82].mxu0 %v1374_v58 }
  0xeb   :  { %v278_v62 = vpop.f32.mrb[5].mxu0  ;;  %1497 = vmatprep.mubr.f32.mxu0 %v9330_v3  ;;  %v1378_v8 = vmul.f32 %v5159_v60, %v6273_v30 }
  0xec   :  { %v1377_v29 = vmul.f32 %v278_v62, %v6263_v51 }
  0xee   :  { %v5162_v0 = vpop.f32.mrb[6].mxu0  ;;  %1498 = vmatmul.mubr.f32.gmra.mrb[84].mxu0 %v1375_v63 }
  0xef   :  { %v288_v1 = vpop.f32.mrb[7].mxu0  ;;  %1503 = vmatprep.mubr.f32.mxu0 %v9330_v3  ;;  %v1380_v16 = vmul.f32 %v5162_v0, %v6293_v40 }
  0xf0   :  { %v6827_v5 = vpop.f32.mrb[0].mxu1  ;;  %v1379_v51 = vmul.f32 %v288_v1, %v6283_v38 }
  0xf1   :  { %v6829_v6 = vpop.f32.mrb[1].mxu1 }
  0xf2   :  { %v5165_v2 = vpop.f32.mrb[8].mxu0  ;;  %1504 = vmatmul.mubr.f32.gmra.mrb[86].mxu0 %v1376_v14 }
  0xf3   :  { %v298_v4 = vpop.f32.mrb[9].mxu0  ;;  %1509 = vmatprep.mubr.f32.mxu0 %v9330_v3  ;;  %v1382_v31 = vmul.f32 %v5165_v2, %v6313_v52 }
  0xf4   :  { %v6833_v9 = vpop.f32.mrb[2].mxu1  ;;  %v1381_v23 = vmul.f32 %v298_v4, %v6303_v50 }
  0xf5   :  { %v6835_v28 = vpop.f32.mrb[3].mxu1 }
  0xf6   :  { %v5168_v7 = vpop.f32.mrb[10].mxu0  ;;  %1510 = vmatmul.mubr.f32.gmra.mrb[88].mxu0 %v1377_v29 }
  0xf7   :  { %v308_v22 = vpop.f32.mrb[11].mxu0  ;;  %1515 = vmatprep.mubr.f32.mxu0 %v9330_v3  ;;  %v1384_v45 = vmul.f32 %v5168_v7, %v6333_v54 }
  0xf8   :  { %v6841_v12 = vpop.f32.mrb[4].mxu1  ;;  %v1383_v37 = vmul.f32 %v308_v22, %v6323_v53 }
  0xf9   :  { %v6843_v13 = vpop.f32.mrb[5].mxu1 }
  0xfa   :  { %v6837_v10 = vpop.f32.mrb[12].mxu0  ;;  %1516 = vmatmul.mubr.f32.gmra.mrb[90].mxu0 %v1378_v8 }
  0xfb   :  { %v318_v11 = vpop.f32.mrb[13].mxu0  ;;  %1521 = vmatprep.mubr.f32.mxu0 %v9330_v3 }
  0xfc   :  { %v6851_v17 = vpop.f32.mrb[6].mxu1  ;;  %v1385_v58 = vmul.f32 %v318_v11, %v6343_v55  ;;  %v1386_v55 = vmul.f32 %v6837_v10, %v6353_v56 }
  0xfd   :  { %v6853_v18 = vpop.f32.mrb[7].mxu1 }
  0xfe   :  { %v6845_v15 = vpop.f32.mrb[14].mxu0  ;;  %1522 = vmatmul.mubr.f32.gmra.mrb[92].mxu0 %v1379_v51 }
  0xff   :  { %v6847_v30 = vpop.f32.mrb[15].mxu0  ;;  %1527 = vmatprep.mubr.f32.mxu0 %v9330_v3 }
 0x100   :  { %v6865_v40 = vpop.f32.mrb[8].mxu1  ;;  %v1387_v56 = vmul.f32 %v6847_v30, %v6366_v59  ;;  %v1388_v59 = vmul.f32 %v6845_v15, %v6373_v61 }
 0x101   :  { %v6867_v25 = vpop.f32.mrb[9].mxu1 }
 0x102   :  { %v6855_v19 = vpop.f32.mrb[16].mxu0  ;;  %1528 = vmatmul.mubr.f32.gmra.mrb[94].mxu0 %v1380_v16 }
 0x103   :  { %v6859_v21 = vpop.f32.mrb[17].mxu0  ;;  %1533 = vmatprep.mubr.f32.mxu0 %v9330_v3 }
 0x104   :  { %v6879_v32 = vpop.f32.mrb[10].mxu1 }
 0x105   :  { %v6881_v33 = vpop.f32.mrb[11].mxu1 }
 0x106   :  { %v6869_v26 = vpop.f32.mrb[18].mxu0  ;;  %1534 = vmatmul.mubr.f32.gmra.mrb[96].mxu0 %v1381_v23  ;;  %9410 = vst [vmem:[#allocation2_spill] sm:$0xff] %v6881_v33 }
 0x107   :  { %v6873_v20 = vpop.f32.mrb[19].mxu0  ;;  %1539 = vmatprep.mubr.f32.mxu0 %v9330_v3 }
 0x108   :  { %v6893_v39 = vpop.f32.mrb[12].mxu1 }
 0x109   :  { %9411 = vst [vmem:[#allocation3_spill] sm:$0xff] %v6893_v39  ;;  %v6895_v41 = vpop.f32.mrb[13].mxu1 }
 0x10a   :  { %v6883_v34 = vpop.f32.mrb[20].mxu0  ;;  %1540 = vmatmul.mubr.f32.gmra.mrb[98].mxu0 %v1382_v31  ;;  %9412 = vst [vmem:[#allocation4_spill] sm:$0xff] %v6895_v41 }
 0x10b   :  { %v6887_v36 = vpop.f32.mrb[21].mxu0  ;;  %1545 = vmatprep.mubr.f32.mxu0 %v9330_v3 }
 0x10c   :  { %v6907_v46 = vpop.f32.mrb[14].mxu1 }
 0x10d   :  { %9413 = vst [vmem:[#allocation5_spill] sm:$0xff] %v6907_v46  ;;  %v6909_v47 = vpop.f32.mrb[15].mxu1  ;;  %v1964_v46 = vld [vmem:[%s9307_s13 + $0x88] sm:$0xff] }
 0x10e   :  { %v6897_v42 = vpop.f32.mrb[22].mxu0  ;;  %1546 = vmatmul.mubr.f32.gmra.mrb[100].mxu0 %v1383_v37  ;;  %9414 = vst [vmem:[#allocation6_spill] sm:$0xff] %v6909_v47 }
 0x10f   :  { %v6901_v44 = vpop.f32.mrb[23].mxu0  ;;  %1551 = vmatprep.mubr.f32.mxu0 %v9330_v3 }
 0x110   :  { %v6921_v60 = vpop.f32.mrb[16].mxu1 }
 0x111   :  { %9415 = vst [vmem:[#allocation7_spill] sm:$0xff] %v6921_v60  ;;  %v6923_v62 = vpop.f32.mrb[17].mxu1 }
 0x112   :  { %v6911_v48 = vpop.f32.mrb[24].mxu0  ;;  %1552 = vmatmul.mubr.f32.gmra.mrb[102].mxu0 %v1384_v45  ;;  %9416 = vst [vmem:[#allocation8_spill] sm:$0xff] %v6923_v62 }
 0x113   :  { %v6915_v57 = vpop.f32.mrb[25].mxu0  ;;  %1557 = vmatprep.mubr.f32.mxu0 %v9330_v3 }
 0x114   :  { %v6936_v2 = vpop.f32.mrb[18].mxu1 }
 0x115   :  { %9418 = vst [vmem:[#allocation10_spill] sm:$0xff] %v6936_v2  ;;  %v6938_v4 = vpop.f32.mrb[19].mxu1 }
 0x116   :  { %v6925_v63 = vpop.f32.mrb[26].mxu0  ;;  %1558 = vmatmul.mubr.f32.gmra.mrb[104].mxu0 %v1385_v58  ;;  %9419 = vst [vmem:[#allocation11_spill] sm:$0xff] %v6938_v4 }
 0x117   :  { %v6929_v1 = vpop.f32.mrb[27].mxu0  ;;  %1563 = vmatprep.mubr.f32.mxu0 %v9330_v3 }
 0x118   :  { %9417 = vst [vmem:[#allocation9_spill] sm:$0xff] %v6929_v1  ;;  %v6951_v10 = vpop.f32.mrb[20].mxu1 }
 0x119   :  { %9422 = vst [vmem:[#allocation14_spill] sm:$0xff] %v6951_v10  ;;  %v6953_v11 = vpop.f32.mrb[21].mxu1 }
 0x11a   :  { %v6940_v29 = vpop.f32.mrb[28].mxu0  ;;  %1564 = vmatmul.mubr.f32.gmra.mrb[106].mxu0 %v1386_v55  ;;  %9423 = vst [vmem:[#allocation15_spill] sm:$0xff] %v6953_v11 }
 0x11b   :  { %9420 = vst [vmem:[#allocation12_spill] sm:$0xff] %v6940_v29  ;;  %v6944_v22 = vpop.f32.mrb[29].mxu0  ;;  %1569 = vmatprep.mubr.f32.mxu0 %v9330_v3  ;;  %v1956_v29 = vld [vmem:[%s9307_s13 + $0x48] sm:$0xff] }
 0x11c   :  { %9421 = vst [vmem:[#allocation13_spill] sm:$0xff] %v6944_v22  ;;  %v6966_v31 = vpop.f32.mrb[22].mxu1  ;;  %v1952_v22 = vld [vmem:[%s9307_s13 + $0x28] sm:$0xff] }
 0x11d   :  { %9426 = vst [vmem:[#allocation18_spill] sm:$0xff] %v6966_v31  ;;  %v6968_v37 = vpop.f32.mrb[23].mxu1 }
 0x11e   :  { %v6955_v51 = vpop.f32.mrb[30].mxu0  ;;  %1570 = vmatmul.mubr.f32.gmra.mrb[108].mxu0 %v1387_v56  ;;  %9427 = vst [vmem:[#allocation19_spill] sm:$0xff] %v6968_v37 }
 0x11f   :  { %9424 = vst [vmem:[#allocation16_spill] sm:$0xff] %v6955_v51  ;;  %v6959_v23 = vpop.f32.mrb[31].mxu0  ;;  %1575 = vmatprep.mubr.f32.mxu0 %v9330_v3  ;;  %v1963_v51 = vld [vmem:[%s9307_s13 + $0x80] sm:$0xff] }
 0x120   :  { %9425 = vst [vmem:[#allocation17_spill] sm:$0xff] %v6959_v23  ;;  %v6978_v3 = vpop.f32.mrb[24].mxu1  ;;  %v1708_v23 = vld [vmem:[%s9306_s11 + $0xf0] sm:$0xff] }
 0x121   :  { %9430 = vst [vmem:[#allocation22_spill] sm:$0xff] %v6978_v3  ;;  %v6980_v61 = vpop.f32.mrb[25].mxu1 }
 0x122   :  { %v6970_v45 = vpop.f32.mrb[32].mxu0  ;;  %1576 = vmatmul.mubr.f32.gmra.mrb[110].mxu0 %v1388_v59  ;;  %9431 = vst [vmem:[#allocation23_spill] sm:$0xff] %v6980_v61 }
 0x123   :  { %9428 = vst [vmem:[#allocation20_spill] sm:$0xff] %v6970_v45  ;;  %v6974_v55 = vpop.f32.mrb[33].mxu0  ;;  %v1709_v45 = vld [vmem:[%s9306_s11 + $0xf8] sm:$0xff] }
 0x124   :  { %9429 = vst [vmem:[#allocation21_spill] sm:$0xff] %v6974_v55  ;;  %v6990_v58 = vpop.f32.mrb[26].mxu1 }
 0x125   :  { %9434 = vst [vmem:[#allocation26_spill] sm:$0xff] %v6990_v58  ;;  %v6992_v8 = vpop.f32.mrb[27].mxu1 }
 0x126   :  { %v6982_v15 = vpop.f32.mrb[34].mxu0  ;;  %9435 = vst [vmem:[#allocation27_spill] sm:$0xff] %v6992_v8 }
 0x127   :  { %9432 = vst [vmem:[#allocation24_spill] sm:$0xff] %v6982_v15  ;;  %v6986_v16 = vpop.f32.mrb[35].mxu0 }
 0x128   :  { %9433 = vst [vmem:[#allocation25_spill] sm:$0xff] %v6986_v16  ;;  %v7002_v30 = vpop.f32.mrb[28].mxu1 }
 0x129   :  { %9438 = vst [vmem:[#allocation30_spill] sm:$0xff] %v7002_v30  ;;  %v7004_v54 = vpop.f32.mrb[29].mxu1 }
 0x12a   :  { %v6994_v7 = vpop.f32.mrb[36].mxu0  ;;  %9439 = vst [vmem:[#allocation31_spill] sm:$0xff] %v7004_v54 }
 0x12b   :  { %9436 = vst [vmem:[#allocation28_spill] sm:$0xff] %v6994_v7  ;;  %v6998_v14 = vpop.f32.mrb[37].mxu0 }
 0x12c   :  { %9437 = vst [vmem:[#allocation29_spill] sm:$0xff] %v6998_v14  ;;  %v7014_v56 = vpop.f32.mrb[30].mxu1 }
 0x12d   :  { %9442 = vst [vmem:[#allocation34_spill] sm:$0xff] %v7014_v56  ;;  %v7016_v52 = vpop.f32.mrb[31].mxu1 }
 0x12e   :  { %v7006_v49 = vpop.f32.mrb[38].mxu0  ;;  %9443 = vst [vmem:[#allocation35_spill] sm:$0xff] %v7016_v52 }
 0x12f   :  { %9440 = vst [vmem:[#allocation32_spill] sm:$0xff] %v7006_v49  ;;  %v7010_v53 = vpop.f32.mrb[39].mxu0 }
 0x130   :  { %9441 = vst [vmem:[#allocation33_spill] sm:$0xff] %v7010_v53  ;;  %v7032_v53 = vshrl.u32 %v896_v27, 7  ;;  %v894_v27 = vld [vmem:[%s9305_s9] sm:$0x3]  ;;  %s5784_s9 = smov 113  }
 0x132   :  { %v7018_v35 = vpop.f32.mrb[40].mxu0  ;;  %9448 = vst [vmem:[#allocation40_spill] sm:$0xff] %v7032_v53  ;;  %v9347_v59 = vsub.s32 0, %v7032_v53  ;;  %v9351_v43 = vsub.s32 1, %v7032_v53 }
 0x133   :  { %9444 = vst [vmem:[#allocation36_spill] sm:$0xff] %v7018_v35  ;;  %v7022_v50 = vpop.f32.mrb[41].mxu0 }
 0x134   :  { %9445 = vst [vmem:[#allocation37_spill] sm:$0xff] %v7022_v50  ;;  %v7057_v0 = vrot.slane %v894_v27, %v9347_v59 }
 0x136   :  { %v7026_v24 = vpop.f32.mrb[42].mxu0 }
 0x137   :  { %9446 = vst [vmem:[#allocation38_spill] sm:$0xff] %v7026_v24  ;;  %v7030_v38 = vpop.f32.mrb[43].mxu0 }
 0x138   :  { %9447 = vst [vmem:[#allocation39_spill] sm:$0xff] %v7030_v38 }
 0x13a   :  { %v7036_v49 = vpop.f32.mrb[44].mxu0 }
 0x13b   :  { %9449 = vst [vmem:[#allocation41_spill] sm:$0xff] %v7036_v49  ;;  %v7040_v35 = vpop.f32.mrb[45].mxu0 }
 0x13c   :  { %9450 = vst [vmem:[#allocation42_spill] sm:$0xff] %v7040_v35  ;;  %v7063_v35 = vrot.slane %v894_v27, %v9351_v43 }
 0x13e   :  { %v7049_v24 = vpop.f32.mrb[46].mxu0 }
 0x13f   :  { %9451 = vst [vmem:[#allocation43_spill] sm:$0xff] %v7049_v24  ;;  %v7053_v38 = vpop.f32.mrb[47].mxu0 }
 0x140   :  { %9452 = vst [vmem:[#allocation44_spill] sm:$0xff] %v7053_v38 }
 0x142   :  { %v1021_v54 = vpop.f32.mrb[48].mxu0 }
 0x143   :  { %v1022_v49 = vadd.f32 %v1021_v54, %v7057_v0  ;;  %v1023_v30 = vpop.f32.mrb[49].mxu0 }
 0x144   :  { %v1024_v8 = vadd.f32 %v1023_v30, %v7063_v35 }
 0x145   :  { %v1116_v56 = vmax.f32 %v1022_v49, 0.0 }
 0x146   :  { %v1117_v37 = vmax.f32 %v1024_v8, 0.0  ;;  %v1027_v24 = vpop.f32.mrb[50].mxu0 }
 0x147   :  { %v1028_v58 = vadd.f32 %v1027_v24, %v7057_v0  ;;  %v1029_v59 = vpop.f32.mrb[51].mxu0 }
 0x148   :  { %v1030_v61 = vadd.f32 %v1029_v59, %v7063_v35  ;;  %1276 = vmatprep.mubr.f32.mxu1 %v1117_v37 }
 0x149   :  { %1277 = vmatmul.mubr.f32.vlgmr.msra.gmra.mrb[64].mxu1 %v1116_v56  ;;  %v1118_v27 = vmax.f32 %v1028_v58, 0.0 }
 0x14a   :  { %v1119_v50 = vmax.f32 %v1030_v61, 0.0  ;;  %v1033_v53 = vpop.f32.mrb[52].mxu0 }
 0x14b   :  { %v1034_v43 = vadd.f32 %v1033_v53, %v7057_v0  ;;  %v1035_v38 = vpop.f32.mrb[53].mxu0 }
 0x14c   :  { %v1036_v54 = vadd.f32 %v1035_v38, %v7063_v35  ;;  %1282 = vmatprep.mubr.f32.mxu1 %v1119_v50 }
 0x14d   :  { %1283 = vmatmul.mubr.f32.gmra.mrb[66].mxu1 %v1118_v27  ;;  %v1120_v49 = vmax.f32 %v1034_v43, 0.0 }
 0x14e   :  { %v1121_v8 = vmax.f32 %v1036_v54, 0.0  ;;  %v1039_v30 = vpop.f32.mrb[54].mxu0 }
 0x14f   :  { %v1040_v24 = vadd.f32 %v1039_v30, %v7057_v0  ;;  %v1041_v52 = vpop.f32.mrb[55].mxu0 }
 0x150   :  { %v1042_v59 = vadd.f32 %v1041_v52, %v7063_v35  ;;  %1288 = vmatprep.mubr.f32.mxu1 %v1121_v8 }
 0x151   :  { %1289 = vmatmul.mubr.f32.gmra.mrb[68].mxu1 %v1120_v49  ;;  %v1122_v58 = vmax.f32 %v1040_v24, 0.0 }
 0x152   :  { %v1123_v37 = vmax.f32 %v1042_v59, 0.0  ;;  %v1045_v56 = vpop.f32.mrb[56].mxu0 }
 0x153   :  { %v1046_v53 = vadd.f32 %v1045_v56, %v7057_v0  ;;  %v1047_v61 = vpop.f32.mrb[57].mxu0 }
 0x154   :  { %v1048_v38 = vadd.f32 %v1047_v61, %v7063_v35  ;;  %1294 = vmatprep.mubr.f32.mxu1 %v1123_v37  ;;  %v7079_v37 = vpop.f32.mrb[32].mxu1 }
 0x155   :  { %1295 = vmatmul.mubr.f32.gmra.mrb[70].mxu1 %v1122_v58  ;;  %v1124_v43 = vmax.f32 %v1046_v53, 0.0  ;;  %v7081_v58 = vpop.f32.mrb[33].mxu1 }
 0x156   :  { %v1125_v50 = vmax.f32 %v1048_v38, 0.0  ;;  %v1051_v27 = vpop.f32.mrb[58].mxu0 }
 0x157   :  { %v1052_v54 = vadd.f32 %v1051_v27, %v7057_v0  ;;  %v1053_v30 = vpop.f32.mrb[59].mxu0 }
 0x158   :  { %v1054_v52 = vadd.f32 %v1053_v30, %v7063_v35  ;;  %1300 = vmatprep.mubr.f32.mxu1 %v1125_v50 }
 0x159   :  { %1301 = vmatmul.mubr.f32.gmra.mrb[72].mxu1 %v1124_v43  ;;  %v1126_v24 = vmax.f32 %v1052_v54, 0.0  ;;  %v7085_v54 = vpop.f32.mrb[34].mxu1 }
 0x15a   :  { %v1127_v8 = vmax.f32 %v1054_v52, 0.0  ;;  %v1057_v49 = vpop.f32.mrb[60].mxu0  ;;  %v1679_v52 = vld [vmem:[%s9306_s11 + $0x8] sm:$0xff] }
 0x15b   :  { %v1058_v59 = vadd.f32 %v1057_v49, %v7057_v0  ;;  %v1059_v56 = vpop.f32.mrb[61].mxu0  ;;  %v7093_v49 = vpop.f32.mrb[35].mxu1 }
 0x15c   :  { %v1060_v61 = vadd.f32 %v1059_v56, %v7063_v35  ;;  %1306 = vmatprep.mubr.f32.mxu1 %v1127_v8  ;;  %v1681_v8 = vld [vmem:[%s9306_s11 + $0x18] sm:$0xff]  ;;  %v1680_v56 = vld [vmem:[%s9306_s11 + $0x10] sm:$0xff] }
 0x15d   :  { %1307 = vmatmul.mubr.f32.gmra.mrb[74].mxu1 %v1126_v24  ;;  %v1128_v27 = vmax.f32 %v1058_v59, 0.0  ;;  %v5479_v24 = vpack.c.bf16 %v1681_v8, %v1679_v52  ;;  %v1678_v59 = vld [vmem:[%s9306_s11] sm:$0xff]  ;;  %v7103_v52 = vpop.f32.mrb[36].mxu1  ;;  %v1683_v8 = vld [vmem:[%s9306_s11 + $0x28] sm:$0xff] }
 0x15e   :  { %v1129_v53 = vmax.f32 %v1060_v61, 0.0  ;;  %v1063_v38 = vpop.f32.mrb[62].mxu0 }
 0x15f   :  { %v1064_v50 = vadd.f32 %v1063_v38, %v7057_v0  ;;  %v1065_v43 = vpop.f32.mrb[63].mxu0  ;;  %v5481_v38 = vpack.c.bf16 %v1680_v56, %v1678_v59  ;;  %5480 = vmatprep.subr.bf16.mxu1 %v5479_v24  ;;  %v1684_v24 = vld [vmem:[%s9306_s11 + $0x30] sm:$0xff] }
 0x160   :  { %v1066_v30 = vadd.f32 %v1065_v43, %v7063_v35  ;;  %1312 = vmatprep.mubr.f32.mxu1 %v1129_v53 }
 0x161   :  { %1313 = vmatmul.mubr.f32.gmra.mrb[76].mxu1 %v1128_v27  ;;  %v1130_v43 = vmax.f32 %v1064_v50, 0.0  ;;  %v7111_v50 = vpop.f32.mrb[37].mxu1 }
 0x162   :  { %v1131_v61 = vmax.f32 %v1066_v30, 0.0  ;;  %v1069_v53 = vpop.f32.mrb[64].mxu0  ;;  %5482 = vmatpush1.bf16.msra.mxu1 %v5481_v38  ;;  %v1685_v30 = vld [vmem:[%s9306_s11 + $0x38] sm:$0xff] }
 0x163   :  { %v1070_v3 = vadd.f32 %v1069_v53, %v7057_v0  ;;  %v1071_v31 = vpop.f32.mrb[65].mxu0  ;;  %v5483_v59 = vpack.c.bf16 %v1685_v30, %v1683_v8  ;;  %v7121_v8 = vpop.f32.mrb[38].mxu1  ;;  %v1687_v30 = vld [vmem:[%s9306_s11 + $0x48] sm:$0xff] }
 0x164   :  { %v1072_v27 = vadd.f32 %v1071_v31, %v7063_v35  ;;  %1318 = vmatprep.mubr.f32.mxu1 %v1131_v61  ;;  %v1682_v31 = vld [vmem:[%s9306_s11 + $0x20] sm:$0xff] }
 0x165   :  { %1319 = vmatmul.mubr.f32.gmra.mrb[78].mxu1 %v1130_v43  ;;  %v5485_v53 = vpack.c.bf16 %v1684_v24, %v1682_v31  ;;  %v1132_v38 = vmax.f32 %v1070_v3, 0.0  ;;  %5484 = vmatprep.subr.bf16.mxu1 %v5483_v59  ;;  %v7129_v3 = vpop.f32.mrb[39].mxu1  ;;  %v1688_v59 = vld [vmem:[%s9306_s11 + $0x50] sm:$0xff] }
 0x166   :  { %v1133_v56 = vmax.f32 %v1072_v27, 0.0  ;;  %v1075_v61 = vpop.f32.mrb[66].mxu0  ;;  %v1689_v27 = vld [vmem:[%s9306_s11 + $0x58] sm:$0xff] }
 0x167   :  { %v1076_v14 = vadd.f32 %v1075_v61, %v7057_v0  ;;  %v1077_v11 = vpop.f32.mrb[67].mxu0  ;;  %5486 = vmatpush1.bf16.msra.mxu1 %v5485_v53  ;;  %v5487_v31 = vpack.c.bf16 %v1689_v27, %v1687_v30  ;;  %v7139_v30 = vpop.f32.mrb[40].mxu1  ;;  %v1691_v27 = vld [vmem:[%s9306_s11 + $0x68] sm:$0xff] }
 0x168   :  { %v1078_v43 = vadd.f32 %v1077_v11, %v7063_v35  ;;  %1324 = vmatprep.mubr.f32.mxu1 %v1133_v56  ;;  %v1686_v11 = vld [vmem:[%s9306_s11 + $0x40] sm:$0xff] }
 0x169   :  { %1325 = vmatmul.mubr.f32.gmra.mrb[80].mxu1 %v1132_v38  ;;  %v5489_v61 = vpack.c.bf16 %v1688_v59, %v1686_v11  ;;  %v1134_v53 = vmax.f32 %v1076_v14, 0.0  ;;  %5488 = vmatprep.subr.bf16.mxu1 %v5487_v31  ;;  %v7147_v14 = vpop.f32.mrb[41].mxu1  ;;  %v1692_v31 = vld [vmem:[%s9306_s11 + $0x70] sm:$0xff] }
 0x16a   :  { %v1135_v24 = vmax.f32 %v1078_v43, 0.0  ;;  %v1081_v56 = vpop.f32.mrb[68].mxu0  ;;  %v1693_v43 = vld [vmem:[%s9306_s11 + $0x78] sm:$0xff] }
 0x16b   :  { %v1082_v7 = vadd.f32 %v1081_v56, %v7057_v0  ;;  %v1083_v10 = vpop.f32.mrb[69].mxu0  ;;  %5490 = vmatpush1.bf16.msra.mxu1 %v5489_v61  ;;  %v5491_v11 = vpack.c.bf16 %v1693_v43, %v1691_v27  ;;  %v7157_v27 = vpop.f32.mrb[42].mxu1  ;;  %v1695_v43 = vld [vmem:[%s9306_s11 + $0x88] sm:$0xff] }
 0x16c   :  { %v1084_v38 = vadd.f32 %v1083_v10, %v7063_v35  ;;  %1330 = vmatprep.mubr.f32.mxu1 %v1135_v24  ;;  %v1690_v10 = vld [vmem:[%s9306_s11 + $0x60] sm:$0xff] }
 0x16d   :  { %1331 = vmatmul.mubr.f32.gmra.mrb[82].mxu1 %v1134_v53  ;;  %v5493_v56 = vpack.c.bf16 %v1692_v31, %v1690_v10  ;;  %v1136_v61 = vmax.f32 %v1082_v7, 0.0  ;;  %5492 = vmatprep.subr.bf16.mxu1 %v5491_v11  ;;  %v7165_v7 = vpop.f32.mrb[43].mxu1  ;;  %v1696_v11 = vld [vmem:[%s9306_s11 + $0x90] sm:$0xff] }
 0x16e   :  { %v1137_v59 = vmax.f32 %v1084_v38, 0.0  ;;  %v1087_v24 = vpop.f32.mrb[70].mxu0  ;;  %v1697_v38 = vld [vmem:[%s9306_s11 + $0x98] sm:$0xff]  ;;  %9453 = vst [vmem:[#allocation45_spill] sm:$0xff] %v7165_v7  ;;  %v1960_v7 = vld [vmem:[%s9307_s13 + $0x68] sm:$0xff] }
 0x16f   :  { %v1088_v16 = vadd.f32 %v1087_v24, %v7057_v0  ;;  %v1089_v4 = vpop.f32.mrb[71].mxu0  ;;  %5494 = vmatpush1.bf16.msra.mxu1 %v5493_v56  ;;  %v5495_v10 = vpack.c.bf16 %v1697_v38, %v1695_v43  ;;  %v7175_v43 = vpop.f32.mrb[44].mxu1  ;;  %v1699_v38 = vld [vmem:[%s9306_s11 + $0xa8] sm:$0xff] }
 0x170   :  { %v1090_v53 = vadd.f32 %v1089_v4, %v7063_v35  ;;  %1336 = vmatprep.mubr.f32.mxu1 %v1137_v59  ;;  %v1694_v4 = vld [vmem:[%s9306_s11 + $0x80] sm:$0xff]  ;;  %9454 = vst [vmem:[#allocation46_spill] sm:$0xff] %v7175_v43 }
 0x171   :  { %1337 = vmatmul.mubr.f32.gmra.mrb[84].mxu1 %v1136_v61  ;;  %v5497_v24 = vpack.c.bf16 %v1696_v11, %v1694_v4  ;;  %v1138_v56 = vmax.f32 %v1088_v16, 0.0  ;;  %5496 = vmatprep.subr.bf16.mxu1 %v5495_v10  ;;  %v7183_v16 = vpop.f32.mrb[45].mxu1  ;;  %v1700_v10 = vld [vmem:[%s9306_s11 + $0xb0] sm:$0xff] }
 0x172   :  { %v1139_v31 = vmax.f32 %v1090_v53, 0.0  ;;  %v1093_v59 = vpop.f32.mrb[72].mxu0  ;;  %v1701_v53 = vld [vmem:[%s9306_s11 + $0xb8] sm:$0xff]  ;;  %9455 = vst [vmem:[#allocation47_spill] sm:$0xff] %v7183_v16 }
 0x173   :  { %v1094_v15 = vadd.f32 %v1093_v59, %v7057_v0  ;;  %v1095_v2 = vpop.f32.mrb[73].mxu0  ;;  %5498 = vmatpush1.bf16.msra.mxu1 %v5497_v24  ;;  %v5499_v4 = vpack.c.bf16 %v1701_v53, %v1699_v38  ;;  %v1703_v24 = vld [vmem:[%s9306_s11 + $0xc8] sm:$0xff]  ;;  %v1702_v38 = vld [vmem:[%s9306_s11 + $0xc0] sm:$0xff] }
 0x174   :  { %v1096_v61 = vadd.f32 %v1095_v2, %v7063_v35  ;;  %1342 = vmatprep.mubr.f32.mxu1 %v1139_v31  ;;  %v1698_v2 = vld [vmem:[%s9306_s11 + $0xa0] sm:$0xff] }
 0x175   :  { %1343 = vmatmul.mubr.f32.gmra.mrb[86].mxu1 %v1138_v56  ;;  %v5501_v59 = vpack.c.bf16 %v1700_v10, %v1698_v2  ;;  %v1705_v56 = vld [vmem:[%s9306_s11 + $0xd8] sm:$0xff]  ;;  %v1140_v53 = vmax.f32 %v1094_v15, 0.0  ;;  %5500 = vmatprep.subr.bf16.mxu1 %v5499_v4  ;;  %v1704_v2 = vld [vmem:[%s9306_s11 + $0xd0] sm:$0xff]  ;;  %v1707_v10 = vld [vmem:[%s9306_s11 + $0xe8] sm:$0xff]  ;;  %v7211_v15 = vpop.f32.mrb[46].mxu1 }
 0x176   :  { %v1141_v11 = vmax.f32 %v1096_v61, 0.0  ;;  %v1099_v31 = vpop.f32.mrb[74].mxu0  ;;  %v5503_v61 = vpack.c.bf16 %v1705_v56, %v1703_v24  ;;  %9456 = vst [vmem:[#allocation48_spill] sm:$0xff] %v7211_v15  ;;  %v5505_v4 = vpack.c.bf16 %v1704_v2, %v1702_v38  ;;  %v5507_v24 = vpack.c.bf16 %v1709_v45, %v1707_v10  ;;  %v1706_v56 = vld [vmem:[%s9306_s11 + $0xe0] sm:$0xff] }
 0x177   :  { %v1100_v55 = vadd.f32 %v1099_v31, %v7057_v0  ;;  %v1101_v62 = vpop.f32.mrb[75].mxu0  ;;  %5502 = vmatpush1.bf16.msra.mxu1 %v5501_v59  ;;  %v7213_v31 = vpop.f32.mrb[47].mxu1  ;;  %v1713_v59 = vld [vmem:[%s9306_s11 + $0x118] sm:$0xff]  ;;  %v1710_v15 = vld [vmem:[%s9306_s11 + $0x100] sm:$0xff] }
 0x178   :  { %v1102_v60 = vadd.f32 %v1101_v62, %v7063_v35  ;;  %1348 = vmatprep.mubr.f32.mxu1 %v1141_v11  ;;  %9457 = vst [vmem:[#allocation49_spill] sm:$0xff] %v7213_v31  ;;  %5504 = vmatprep.subr.bf16.mxu1 %v5503_v61  ;;  %v1711_v11 = vld [vmem:[%s9306_s11 + $0x108] sm:$0xff]  ;;  %v7229_v2 = vpop.f32.mrb[48].mxu1 }
 0x179   :  { %1349 = vmatmul.mubr.f32.gmra.mrb[88].mxu1 %v1140_v53  ;;  %v1142_v38 = vmax.f32 %v1100_v55, 0.0  ;;  %9458 = vst [vmem:[#allocation50_spill] sm:$0xff] %v7229_v2  ;;  %v7231_v10 = vpop.f32.mrb[49].mxu1  ;;  %v5511_v31 = vpack.c.bf16 %v1713_v59, %v1711_v11  ;;  %v1712_v55 = vld [vmem:[%s9306_s11 + $0x110] sm:$0xff]  ;;  %v1714_v2 = vld [vmem:[%s9306_s11 + $0x120] sm:$0xff] }
 0x17a   :  { %v1143_v47 = vmax.f32 %v1102_v60, 0.0  ;;  %v1105_v62 = vpop.f32.mrb[76].mxu0  ;;  %v5509_v60 = vpack.c.bf16 %v1708_v23, %v1706_v56  ;;  %9459 = vst [vmem:[#allocation51_spill] sm:$0xff] %v7231_v10  ;;  %v1717_v23 = vld [vmem:[%s9306_s11 + $0x138] sm:$0xff]  ;;  %v7247_v59 = vpop.f32.mrb[50].mxu1 }
 0x17b   :  { %v1106_v45 = vadd.f32 %v1105_v62, %v7057_v0  ;;  %v1107_v53 = vpop.f32.mrb[77].mxu0  ;;  %5506 = vmatpush1.bf16.msra.mxu1 %v5505_v4  ;;  %9460 = vst [vmem:[#allocation52_spill] sm:$0xff] %v7247_v59 }
 0x17c   :  { %v1108_v61 = vadd.f32 %v1107_v53, %v7063_v35  ;;  %1354 = vmatprep.mubr.f32.mxu1 %v1143_v47  ;;  %5508 = vmatprep.subr.bf16.mxu1 %v5507_v24  ;;  %v1715_v47 = vld [vmem:[%s9306_s11 + $0x128] sm:$0xff] }
 0x17d   :  { %1355 = vmatmul.mubr.f32.gmra.mrb[90].mxu1 %v1142_v38  ;;  %v1144_v4 = vmax.f32 %v1106_v45, 0.0  ;;  %v5513_v38 = vpack.c.bf16 %v1712_v55, %v1710_v15  ;;  %v5515_v10 = vpack.c.bf16 %v1717_v23, %v1715_v47  ;;  %v1721_v15 = vld [vmem:[%s9306_s11 + $0x158] sm:$0xff]  ;;  %v1718_v47 = vld [vmem:[%s9306_s11 + $0x140] sm:$0xff]  ;;  %v1720_v23 = vld [vmem:[%s9306_s11 + $0x150] sm:$0xff] }
 0x17e   :  { %v1145_v62 = vmax.f32 %v1108_v61, 0.0  ;;  %v1111_v53 = vpop.f32.mrb[78].mxu0  ;;  %v7249_v61 = vpop.f32.mrb[51].mxu1 }
 0x17f   :  { %v1112_v24 = vadd.f32 %v1111_v53, %v7057_v0  ;;  %v1113_v56 = vpop.f32.mrb[79].mxu0  ;;  %5510 = vmatpush1.bf16.msra.mxu1 %v5509_v60  ;;  %9461 = vst [vmem:[#allocation53_spill] sm:$0xff] %v7249_v61  ;;  %v1716_v0 = vld [vmem:[%s9306_s11 + $0x130] sm:$0xff] }
 0x180   :  { %v1114_v11 = vadd.f32 %v1113_v56, %v7063_v35  ;;  %1360 = vmatprep.mubr.f32.mxu1 %v1145_v62  ;;  %5512 = vmatprep.subr.bf16.mxu1 %v5511_v31  ;;  %v1719_v35 = vld [vmem:[%s9306_s11 + $0x148] sm:$0xff]  ;;  %v7263_v31 = vpop.f32.mrb[52].mxu1  ;;  %v5517_v55 = vpack.c.bf16 %v1716_v0, %v1714_v2  ;;  %v1725_v2 = vld [vmem:[%s9306_s11 + $0x178] sm:$0xff]  ;;  %v1724_v0 = vld [vmem:[%s9306_s11 + $0x170] sm:$0xff] }
 0x181   :  { %1361 = vmatmul.mubr.f32.gmra.mrb[92].mxu1 %v1144_v4  ;;  %v1146_v60 = vmax.f32 %v1112_v24, 0.0  ;;  %9462 = vst [vmem:[#allocation54_spill] sm:$0xff] %v7263_v31  ;;  %v7265_v62 = vpop.f32.mrb[53].mxu1  ;;  %v5519_v53 = vpack.c.bf16 %v1721_v15, %v1719_v35  ;;  %v1723_v4 = vld [vmem:[%s9306_s11 + $0x168] sm:$0xff]  ;;  %v1729_v35 = vld [vmem:[%s9306_s11 + $0x198] sm:$0xff] }
 0x182   :  { %v1147_v45 = vmax.f32 %v1114_v11, 0.0  ;;  %9463 = vst [vmem:[#allocation55_spill] sm:$0xff] %v7265_v62  ;;  %v7279_v24 = vpop.f32.mrb[54].mxu1  ;;  %v5523_v11 = vpack.c.bf16 %v1725_v2, %v1723_v4  ;;  %v1731_v4 = vld [vmem:[%s9306_s11 + $0x1a8] sm:$0xff]  ;;  %v1733_v2 = vld [vmem:[%s9306_s11 + $0x1b8] sm:$0xff] }
 0x183   :  { %5514 = vmatpush1.bf16.msra.mxu1 %v5513_v38  ;;  %9464 = vst [vmem:[#allocation56_spill] sm:$0xff] %v7279_v24  ;;  %v7281_v56 = vpop.f32.mrb[55].mxu1  ;;  %v1722_v38 = vld [vmem:[%s9306_s11 + $0x160] sm:$0xff] }
 0x184   :  { %1366 = vmatprep.mubr.f32.mxu1 %v1147_v45  ;;  %5516 = vmatprep.subr.bf16.mxu1 %v5515_v10  ;;  %v5521_v10 = vpack.c.bf16 %v1720_v23, %v1718_v47  ;;  %9465 = vst [vmem:[#allocation57_spill] sm:$0xff] %v7281_v56  ;;  %v1727_v45 = vld [vmem:[%s9306_s11 + $0x188] sm:$0xff]  ;;  %v7295_v15 = vpop.f32.mrb[56].mxu1  ;;  %v1726_v47 = vld [vmem:[%s9306_s11 + $0x180] sm:$0xff]  ;;  %v1728_v23 = vld [vmem:[%s9306_s11 + $0x190] sm:$0xff] }
 0x185   :  { %1367 = vmatmul.mubr.f32.gmra.mrb[94].mxu1 %v1146_v60  ;;  %9466 = vst [vmem:[#allocation58_spill] sm:$0xff] %v7295_v15  ;;  %v5525_v60 = vpack.c.bf16 %v1724_v0, %v1722_v38  ;;  %v5531_v0 = vpack.c.bf16 %v1733_v2, %v1731_v4 }
 0x187   :  { %5518 = vmatpush1.bf16.msra.mxu1 %v5517_v55  ;;  %v7297_v55 = vpop.f32.mrb[57].mxu1 }
 0x188   :  { %5520 = vmatprep.subr.bf16.mxu1 %v5519_v53  ;;  %9467 = vst [vmem:[#allocation59_spill] sm:$0xff] %v7297_v55  ;;  %v5527_v53 = vpack.c.bf16 %v1729_v35, %v1727_v45  ;;  %v1730_v45 = vld [vmem:[%s9306_s11 + $0x1a0] sm:$0xff]  ;;  %v1732_v35 = vld [vmem:[%s9306_s11 + $0x1b0] sm:$0xff]  ;;  %v1735_v55 = vld [vmem:[%s9306_s11 + $0x1c8] sm:$0xff] }
 0x18b   :  { %5522 = vmatpush1.bf16.msra.mxu1 %v5521_v10  ;;  %v7311_v10 = vpop.f32.mrb[58].mxu1 }
 0x18c   :  { %5524 = vmatprep.subr.bf16.mxu1 %v5523_v11  ;;  %9468 = vst [vmem:[#allocation60_spill] sm:$0xff] %v7311_v10  ;;  %v5529_v11 = vpack.c.bf16 %v1728_v23, %v1726_v47  ;;  %v7313_v38 = vpop.f32.mrb[59].mxu1  ;;  %v1734_v10 = vld [vmem:[%s9306_s11 + $0x1c0] sm:$0xff] }
 0x18d   :  { %9469 = vst [vmem:[#allocation61_spill] sm:$0xff] %v7313_v38  ;;  %v7327_v47 = vpop.f32.mrb[60].mxu1 }
 0x18e   :  { %9470 = vst [vmem:[#allocation62_spill] sm:$0xff] %v7327_v47  ;;  %v7329_v23 = vpop.f32.mrb[61].mxu1  ;;  %v1736_v47 = vld [vmem:[%s9306_s11 + $0x1d0] sm:$0xff] }
 0x18f   :  { %5526 = vmatpush1.bf16.msra.mxu1 %v5525_v60  ;;  %v1737_v60 = vld [vmem:[%s9306_s11 + $0x1d8] sm:$0xff]  ;;  %9471 = vst [vmem:[#allocation63_spill] sm:$0xff] %v7329_v23  ;;  %v7331_v2 = vpop.f32.mrb[62].mxu1 }
 0x190   :  { %5528 = vmatprep.subr.bf16.mxu1 %v5527_v53  ;;  %v5533_v53 = vpack.c.bf16 %v1732_v35, %v1730_v45  ;;  %v5535_v4 = vpack.c.bf16 %v1737_v60, %v1735_v55  ;;  %9472 = vst [vmem:[#allocation64_spill] sm:$0xff] %v7331_v2  ;;  %v7333_v38 = vpop.f32.mrb[63].mxu1  ;;  %v1739_v55 = vld [vmem:[%s9306_s11 + $0x1e8] sm:$0xff]  ;;  %v1738_v35 = vld [vmem:[%s9306_s11 + $0x1e0] sm:$0xff]  ;;  %v1740_v60 = vld [vmem:[%s9306_s11 + $0x1f0] sm:$0xff] }
 0x191   :  { %9473 = vst [vmem:[#allocation65_spill] sm:$0xff] %v7333_v38 }
 0x193   :  { %5530 = vmatpush1.bf16.msra.mxu1 %v5529_v11  ;;  %v5537_v11 = vpack.c.bf16 %v1736_v47, %v1734_v10 }
 0x194   :  { %5532 = vmatprep.subr.bf16.mxu1 %v5531_v0  ;;  %v1741_v0 = vld [vmem:[%s9306_s11 + $0x1f8] sm:$0xff] }
 0x195   :  { %v5539_v45 = vpack.c.bf16 %v1741_v0, %v1739_v55 }
 0x197   :  { %5534 = vmatpush1.bf16.msra.mxu1 %v5533_v53  ;;  %v5541_v53 = vpack.c.bf16 %v1740_v60, %v1738_v35 }
 0x198   :  { %5536 = vmatprep.subr.bf16.mxu1 %v5535_v4 }
 0x19b   :  { %5538 = vmatpush1.bf16.msra.mxu1 %v5537_v11 }
 0x19c   :  { %5540 = vmatprep.subr.bf16.mxu1 %v5539_v45 }
 0x19f   :  { %5542 = vmatpush1.bf16.msra.mxu1 %v5541_v53 }
 0x1b9   :  { %v7353_v10 = vpop.f32.mrb[80].mxu0 }
 0x1ba   :  { %v7355_v47 = vpop.f32.mrb[81].mxu0 }
 0x1bd   :  { %v7357_v4 = vpop.f32.mrb[82].mxu0 }
 0x1be   :  { %v7359_v11 = vpop.f32.mrb[83].mxu0 }
 0x1c1   :  { %v7361_v55 = vpop.f32.mrb[84].mxu0 }
 0x1c2   :  { %v7363_v0 = vpop.f32.mrb[85].mxu0 }
 0x1c5   :  { %v7365_v38 = vpop.f32.mrb[86].mxu0 }
 0x1c6   :  { %v7367_v2 = vpop.f32.mrb[87].mxu0 }
 0x1c9   :  { %v7369_v23 = vpop.f32.mrb[88].mxu0 }
 0x1ca   :  { %v7371_v45 = vpop.f32.mrb[89].mxu0 }
 0x1cd   :  { %v7373_v35 = vpop.f32.mrb[90].mxu0 }
 0x1ce   :  { %9474 = vst [vmem:[#allocation66_spill] sm:$0xff] %v7373_v35  ;;  %v7375_v60 = vpop.f32.mrb[91].mxu0 }
 0x1cf   :  { %9475 = vst [vmem:[#allocation67_spill] sm:$0xff] %v7375_v60  ;;  %v1958_v60 = vld [vmem:[%s9307_s13 + $0x58] sm:$0xff] }
 0x1d1   :  { %v7377_v53 = vpop.f32.mrb[92].mxu0 }
 0x1d2   :  { %9476 = vst [vmem:[#allocation68_spill] sm:$0xff] %v7377_v53  ;;  %v7379_v15 = vpop.f32.mrb[93].mxu0 }
 0x1d3   :  { %9477 = vst [vmem:[#allocation69_spill] sm:$0xff] %v7379_v15 }
 0x1d5   :  { %v7381_v56 = vpop.f32.mrb[94].mxu0 }
 0x1d6   :  { %9478 = vst [vmem:[#allocation70_spill] sm:$0xff] %v7381_v56  ;;  %v7383_v24 = vpop.f32.mrb[95].mxu0 }
 0x1d7   :  { %9479 = vst [vmem:[#allocation71_spill] sm:$0xff] %v7383_v24  ;;  %v1947_v24 = vld [vmem:[%s9307_s13] sm:$0xff] }
 0x1d9   :  { %v7385_v62 = vpop.f32.mrb[96].mxu0 }
 0x1da   :  { %9480 = vst [vmem:[#allocation72_spill] sm:$0xff] %v7385_v62  ;;  %v7387_v31 = vpop.f32.mrb[97].mxu0  ;;  %v5543_v62 = vpack.c.bf16 %v1964_v46, %v1963_v51  ;;  %v1949_v46 = vld [vmem:[%s9307_s13 + $0x10] sm:$0xff]  ;;  %v1950_v51 = vld [vmem:[%s9307_s13 + $0x18] sm:$0xff] }
 0x1db   :  { %9481 = vst [vmem:[#allocation73_spill] sm:$0xff] %v7387_v31  ;;  %v1966_v31 = vld [vmem:[%s9307_s13 + $0x98] sm:$0xff] }
 0x1dc   :  { %5544 = vmatprep.subr.bf16.mxu0 %v5543_v62  ;;  %5643 = vmatprep.subr.bf16.mxu1 %v5543_v62  ;;  %v1969_v62 = vld [vmem:[%s9307_s13 + $0xb0] sm:$0xff] }
 0x1dd   :  { %v7389_v61 = vpop.f32.mrb[98].mxu0 }
 0x1de   :  { %9482 = vst [vmem:[#allocation74_spill] sm:$0xff] %v7389_v61  ;;  %v7391_v59 = vpop.f32.mrb[99].mxu0  ;;  %v1948_v61 = vld [vmem:[%s9307_s13 + $0x8] sm:$0xff] }
 0x1df   :  { %9483 = vst [vmem:[#allocation75_spill] sm:$0xff] %v7391_v59  ;;  %v1965_v59 = vld [vmem:[%s9307_s13 + $0x90] sm:$0xff]  ;;  %v7415_v53 = vpack.c.bf16 %v1948_v61, %v1947_v24  ;;  %v1968_v61 = vld [vmem:[%s9307_s13 + $0xa8] sm:$0xff] }
 0x1e0   :  { %v7417_v16 = vpack.c.bf16 %v1966_v31, %v1965_v59  ;;  %v7432_v59 = vpack.c.bf16 %v1950_v51, %v1949_v46  ;;  %v1970_v46 = vld [vmem:[%s9307_s13 + $0xb8] sm:$0xff] }
 0x1e1   :  { %v7402_v56 = vpop.f32.mrb[100].mxu0  ;;  %5546 = vmatpush3.bf16.msra.mxu0 %v7415_v53 }
 0x1e2   :  { %9484 = vst [vmem:[#allocation76_spill] sm:$0xff] %v7402_v56  ;;  %v7413_v15 = vpop.f32.mrb[101].mxu0  ;;  %v1967_v56 = vld [vmem:[%s9307_s13 + $0xa0] sm:$0xff]  ;;  %5548 = vmatprep.subr.bf16.mxu0 %v7417_v16 }
 0x1e3   :  { %9485 = vst [vmem:[#allocation77_spill] sm:$0xff] %v7413_v15  ;;  %v7437_v24 = vpack.c.bf16 %v1968_v61, %v1967_v56  ;;  %v1951_v15 = vld [vmem:[%s9307_s13 + $0x20] sm:$0xff]  ;;  %v7459_v61 = vpack.c.bf16 %v1970_v46, %v1969_v62 }
 0x1e4   :  { %v7454_v56 = vpack.c.bf16 %v1952_v22, %v1951_v15  ;;  %v1971_v22 = vld [vmem:[%s9307_s13 + $0xc0] sm:$0xff]  ;;  %v1972_v15 = vld [vmem:[%s9307_s13 + $0xc8] sm:$0xff] }
 0x1e5   :  { %v7434_v31 = vpop.f32.mrb[102].mxu0  ;;  %5550 = vmatpush3.bf16.msra.mxu0 %v7432_v59 }
 0x1e6   :  { %9486 = vst [vmem:[#allocation78_spill] sm:$0xff] %v7434_v31  ;;  %v7445_v41 = vpop.f32.mrb[103].mxu0  ;;  %5552 = vmatprep.subr.bf16.mxu0 %v7437_v24  ;;  %v1954_v31 = vld [vmem:[%s9307_s13 + $0x38] sm:$0xff] }
 0x1e7   :  { %9487 = vst [vmem:[#allocation79_spill] sm:$0xff] %v7445_v41  ;;  %v1953_v41 = vld [vmem:[%s9307_s13 + $0x30] sm:$0xff] }
 0x1e8   :  { %v7476_v62 = vpack.c.bf16 %v1954_v31, %v1953_v41  ;;  %v1973_v41 = vld [vmem:[%s9307_s13 + $0xd0] sm:$0xff]  ;;  %v1974_v31 = vld [vmem:[%s9307_s13 + $0xd8] sm:$0xff] }
 0x1e9   :  { %v7456_v51 = vpop.f32.mrb[104].mxu0  ;;  %5554 = vmatpush3.bf16.msra.mxu0 %v7454_v56 }
 0x1ea   :  { %9488 = vst [vmem:[#allocation80_spill] sm:$0xff] %v7456_v51  ;;  %v7467_v43 = vpop.f32.mrb[105].mxu0  ;;  %5556 = vmatprep.subr.bf16.mxu0 %v7459_v61  ;;  %v7481_v51 = vpack.c.bf16 %v1972_v15, %v1971_v22 }
 0x1eb   :  { %9489 = vst [vmem:[#allocation81_spill] sm:$0xff] %v7467_v43  ;;  %v1955_v43 = vld [vmem:[%s9307_s13 + $0x40] sm:$0xff] }
 0x1ec   :  { %v7498_v22 = vpack.c.bf16 %v1956_v29, %v1955_v43  ;;  %v1975_v29 = vld [vmem:[%s9307_s13 + $0xe0] sm:$0xff]  ;;  %v1976_v43 = vld [vmem:[%s9307_s13 + $0xe8] sm:$0xff] }
 0x1ed   :  { %v7478_v46 = vpop.f32.mrb[106].mxu0  ;;  %5558 = vmatpush3.bf16.msra.mxu0 %v7476_v62 }
 0x1ee   :  { %9490 = vst [vmem:[#allocation82_spill] sm:$0xff] %v7478_v46  ;;  %v7489_v39 = vpop.f32.mrb[107].mxu0  ;;  %9492 = vst [vmem:[#allocation84_spill] sm:$0xff] %v7498_v22  ;;  %5560 = vmatprep.subr.bf16.mxu0 %v7481_v51  ;;  %v7503_v46 = vpack.c.bf16 %v1974_v31, %v1973_v41 }
 0x1ef   :  { %9491 = vst [vmem:[#allocation83_spill] sm:$0xff] %v7489_v39  ;;  %v1957_v39 = vld [vmem:[%s9307_s13 + $0x50] sm:$0xff] }
 0x1f0   :  { %9494 = vst [vmem:[#allocation86_spill] sm:$0xff] %v7503_v46  ;;  %v7520_v41 = vpack.c.bf16 %v1958_v60, %v1957_v39  ;;  %v1977_v39 = vld [vmem:[%s9307_s13 + $0xf0] sm:$0xff]  ;;  %v1978_v60 = vld [vmem:[%s9307_s13 + $0xf8] sm:$0xff] }
 0x1f1   :  { %v7500_v15 = vpop.f32.mrb[108].mxu0  ;;  %5562 = vmatpush3.bf16.msra.mxu0 %v7498_v22 }
 0x1f2   :  { %9493 = vst [vmem:[#allocation85_spill] sm:$0xff] %v7500_v15  ;;  %v7511_v35 = vpop.f32.mrb[109].mxu0  ;;  %5564 = vmatprep.subr.bf16.mxu0 %v7503_v46  ;;  %v7525_v15 = vpack.c.bf16 %v1976_v43, %v1975_v29  ;;  %v7545_v43 = vpack.c.bf16 %v1978_v60, %v1977_v39 }
 0x1f3   :  { %9495 = vst [vmem:[#allocation87_spill] sm:$0xff] %v7511_v35  ;;  %v1959_v35 = vld [vmem:[%s9307_s13 + $0x60] sm:$0xff] }
 0x1f4   :  { %v7542_v29 = vpack.c.bf16 %v1960_v7, %v1959_v35  ;;  %9499 = vst [vmem:[#allocation91_spill] sm:$0xff] %v7545_v43  ;;  %v9501_v7 = vsub.f32 %v6829_v6, %v6859_v21  ;;  %v9503_v6 = vsub.f32 %v6835_v28, %v6873_v20  ;;  %v9505_v20 = vsub.f32 %v6843_v13, %v6887_v36 }
 0x1f5   :  { %v7522_v31 = vpop.f32.mrb[110].mxu0  ;;  %5566 = vmatpush3.bf16.msra.mxu0 %v7520_v41  ;;  %v9507_v36 = vsub.f32 %v6853_v18, %v6901_v44  ;;  %v9509_v44 = vsub.f32 %v6867_v25, %v6915_v57  ;;  %v9511_v57 = vld [vmem:[#allocation2_spill] sm:$0xff] }
 0x1f6   :  { %9496 = vst [vmem:[#allocation88_spill] sm:$0xff] %v7522_v31  ;;  %v7533_v1 = vpop.f32.mrb[111].mxu0  ;;  %9498 = vst [vmem:[#allocation90_spill] sm:$0xff] %v7542_v29  ;;  %5568 = vmatprep.subr.bf16.mxu0 %v7525_v15  ;;  %v9500_v31 = vsub.f32 %v6827_v5, %v6855_v19  ;;  %v9502_v5 = vsub.f32 %v6833_v9, %v6869_v26  ;;  %v9504_v9 = vsub.f32 %v6841_v12, %v6883_v34 }
 0x1f7   :  { %9497 = vst [vmem:[#allocation89_spill] sm:$0xff] %v7533_v1 }
 0x1f9   :  { %5570 = vmatpush3.bf16.msra.mxu0 %v7542_v29 }
 0x1fa   :  { %5572 = vmatprep.subr.bf16.mxu0 %v7545_v43 }
 0x21c   :  { %v1278_v1 = vpop.f32.mrb[64].mxu1 }
 0x21d   :  { %v1614_v46 = vadd.f32 %v9500_v31, %v1278_v1  ;;  %v7553_v22 = vadd.f32 %v1278_v1, %v7079_v37  ;;  %v1280_v33 = vpop.f32.mrb[65].mxu1  ;;  %v9514_v31 = vld [vmem:[#allocation45_spill] sm:$0xff] }
 0x21e   :  { %v1615_v35 = vadd.f32 %v9501_v7, %v1280_v33  ;;  %v7559_v39 = vadd.f32 %v1280_v33, %v7081_v58  ;;  %v9517_v7 = vld [vmem:[#allocation84_spill] sm:$0xff] }
 0x21f   :  { %v1646_v60 = vadd.f32 %v1614_v46, %v7353_v10 }
 0x220   :  { %v1647_v43 = vadd.f32 %v1615_v35, %v7355_v47  ;;  %v1284_v29 = vpop.f32.mrb[66].mxu1  ;;  %v9519_v35 = vld [vmem:[#allocation12_spill] sm:$0xff] }
 0x221   :  { %v1616_v19 = vadd.f32 %v9502_v5, %v1284_v29  ;;  %v7567_v1 = vadd.f32 %v1284_v29, %v7085_v54  ;;  %v1286_v37 = vpop.f32.mrb[67].mxu1  ;;  %v9521_v5 = vld [vmem:[#allocation46_spill] sm:$0xff] }
 0x222   :  { %v1617_v21 = vadd.f32 %v9503_v6, %v1286_v37  ;;  %v7573_v33 = vadd.f32 %v1286_v37, %v7093_v49  ;;  %1818 = vmatprep.mubr.f32.mxu1 %v1647_v43  ;;  %v9516_v43 = vld [vmem:[#allocation67_spill] sm:$0xff]  ;;  %v9522_v6 = vld [vmem:[#allocation86_spill] sm:$0xff] }
 0x223   :  { %v1648_v58 = vadd.f32 %v1616_v19, %v7357_v4  ;;  %1819 = vmatmul.mubr.f32.vlgmr.msra.gmra.mrb[96].mxu1 %v1646_v60 }
 0x224   :  { %v1649_v10 = vadd.f32 %v1617_v21, %v7359_v11  ;;  %v1290_v47 = vpop.f32.mrb[68].mxu1  ;;  %5651 = vmatpush3.bf16.msra.mxu1 %v7415_v53  ;;  %v9523_v21 = vld [vmem:[#allocation4_spill] sm:$0xff] }
 0x225   :  { %v1618_v26 = vadd.f32 %v9504_v9, %v1290_v47  ;;  %v7582_v54 = vadd.f32 %v1290_v47, %v7103_v52  ;;  %v1292_v28 = vpop.f32.mrb[69].mxu1  ;;  %5644 = vmatprep.subr.bf16.mxu1 %v7417_v16  ;;  %v9506_v52 = vsub.f32 %v6851_v17, %v6897_v42  ;;  %v9526_v9 = vld [vmem:[#allocation47_spill] sm:$0xff] }
 0x226   :  { %v1619_v49 = vadd.f32 %v9505_v20, %v1292_v28  ;;  %v7589_v4 = vadd.f32 %v1292_v28, %v7111_v50  ;;  %1824 = vmatprep.mubr.f32.mxu1 %v1649_v10  ;;  %v9527_v28 = vld [vmem:[#allocation68_spill] sm:$0xff] }
 0x227   :  { %v1650_v11 = vadd.f32 %v1618_v26, %v7361_v55  ;;  %1825 = vmatmul.mubr.f32.gmra.mrb[98].mxu1 %v1648_v58  ;;  %v9524_v58 = vld [vmem:[#allocation13_spill] sm:$0xff] }
 0x228   :  { %v1651_v12 = vadd.f32 %v1619_v49, %v7363_v0  ;;  %v1296_v34 = vpop.f32.mrb[70].mxu1  ;;  %5652 = vmatpush3.bf16.msra.mxu1 %v7432_v59  ;;  %v9525_v10 = vsub.f32 %v9523_v21, %v9524_v58  ;;  %v9528_v49 = vld [vmem:[#allocation69_spill] sm:$0xff] }
 0x229   :  { %v1620_v16 = vadd.f32 %v9506_v52, %v1296_v34  ;;  %v7598_v53 = vadd.f32 %v1296_v34, %v7121_v8  ;;  %v1298_v13 = vpop.f32.mrb[71].mxu1  ;;  %5645 = vmatprep.subr.bf16.mxu1 %v7437_v24  ;;  %v9508_v8 = vsub.f32 %v6865_v40, %v6911_v48  ;;  %v9529_v34 = vld [vmem:[#allocation5_spill] sm:$0xff]  ;;  %v9530_v52 = vld [vmem:[#allocation16_spill] sm:$0xff] }
 0x22a   :  { %v1621_v50 = vadd.f32 %v9507_v36, %v1298_v13  ;;  %v7605_v55 = vadd.f32 %v1298_v13, %v7129_v3  ;;  %1830 = vmatprep.mubr.f32.mxu1 %v1651_v12  ;;  %v9532_v36 = vld [vmem:[#allocation48_spill] sm:$0xff] }
 0x22b   :  { %v1652_v0 = vadd.f32 %v1620_v16, %v7365_v38  ;;  %1831 = vmatmul.mubr.f32.gmra.mrb[100].mxu1 %v1650_v11  ;;  %v9531_v16 = vsub.f32 %v9529_v34, %v9530_v52  ;;  %v9559_v52 = vld [vmem:[#allocation74_spill] sm:$0xff] }
 0x22c   :  { %v1653_v17 = vadd.f32 %v1621_v50, %v7367_v2  ;;  %v1302_v42 = vpop.f32.mrb[72].mxu1  ;;  %5653 = vmatpush3.bf16.msra.mxu1 %v7454_v56 }
 0x22d   :  { %v1622_v59 = vadd.f32 %v9508_v8, %v1302_v42  ;;  %v7614_v24 = vadd.f32 %v1302_v42, %v7139_v30  ;;  %v1304_v18 = vpop.f32.mrb[73].mxu1  ;;  %5646 = vmatprep.subr.bf16.mxu1 %v7459_v61  ;;  %v9510_v30 = vsub.f32 %v6879_v32, %v6925_v63  ;;  %v9534_v42 = vld [vmem:[#allocation17_spill] sm:$0xff] }
 0x22e   :  { %v1623_v3 = vadd.f32 %v9509_v44, %v1304_v18  ;;  %v7621_v38 = vadd.f32 %v1304_v18, %v7147_v14  ;;  %1836 = vmatprep.mubr.f32.mxu1 %v1653_v17  ;;  %v9512_v14 = vld [vmem:[#allocation9_spill] sm:$0xff]  ;;  %v9533_v17 = vld [vmem:[#allocation6_spill] sm:$0xff] }
 0x22f   :  { %v1654_v2 = vadd.f32 %v1622_v59, %v7369_v23  ;;  %1837 = vmatmul.mubr.f32.gmra.mrb[102].mxu1 %v1652_v0  ;;  %v9513_v46 = vsub.f32 %v9511_v57, %v9512_v14  ;;  %v9535_v8 = vsub.f32 %v9533_v17, %v9534_v42  ;;  %v9536_v18 = vld [vmem:[#allocation49_spill] sm:$0xff]  ;;  %v9543_v14 = vld [vmem:[#allocation50_spill] sm:$0xff]  ;;  %v9562_v42 = vld [vmem:[#allocation28_spill] sm:$0xff] }
 0x230   :  { %v1655_v40 = vadd.f32 %v1623_v3, %v7371_v45  ;;  %v1308_v48 = vpop.f32.mrb[74].mxu1  ;;  %5654 = vmatpush3.bf16.msra.mxu1 %v7476_v62  ;;  %v9515_v45 = vld [vmem:[#allocation66_spill] sm:$0xff] }
 0x231   :  { %v1624_v56 = vadd.f32 %v9510_v30, %v1308_v48  ;;  %v7630_v61 = vadd.f32 %v1308_v48, %v7157_v27  ;;  %v1310_v25 = vpop.f32.mrb[75].mxu1  ;;  %5647 = vmatprep.subr.bf16.mxu1 %v7481_v51  ;;  %v9518_v27 = vld [vmem:[#allocation3_spill] sm:$0xff]  ;;  %v9537_v3 = vld [vmem:[#allocation70_spill] sm:$0xff] }
 0x232   :  { %v1625_v23 = vadd.f32 %v9513_v46, %v1310_v25  ;;  %v7637_v29 = vadd.f32 %v1310_v25, %v9514_v31  ;;  %1842 = vmatprep.mubr.f32.mxu1 %v1655_v40  ;;  %v9520_v60 = vsub.f32 %v9518_v27, %v9519_v35  ;;  %v9539_v30 = vld [vmem:[#allocation90_spill] sm:$0xff]  ;;  %v9541_v25 = vld [vmem:[#allocation20_spill] sm:$0xff]  ;;  %v9544_v31 = vld [vmem:[#allocation91_spill] sm:$0xff] }
 0x233   :  { %v1656_v62 = vadd.f32 %v1624_v56, %v9515_v45  ;;  %1843 = vmatmul.mubr.f32.gmra.mrb[104].mxu1 %v1654_v2  ;;  %v9538_v2 = vld [vmem:[#allocation71_spill] sm:$0xff]  ;;  %v9545_v45 = vld [vmem:[#allocation8_spill] sm:$0xff]  ;;  %v9561_v17 = vld [vmem:[#allocation14_spill] sm:$0xff] }
 0x234   :  { %v1657_v32 = vadd.f32 %v1625_v23, %v9516_v43  ;;  %v1314_v63 = vpop.f32.mrb[76].mxu1  ;;  %5655 = vmatpush3.bf16.msra.mxu1 %v9517_v7  ;;  %v9540_v56 = vld [vmem:[#allocation7_spill] sm:$0xff]  ;;  %v9549_v27 = vld [vmem:[#allocation72_spill] sm:$0xff] }
 0x235   :  { %v1626_v51 = vadd.f32 %v9520_v60, %v1314_v63  ;;  %v7646_v19 = vadd.f32 %v1314_v63, %v9521_v5  ;;  %v1316_v37 = vpop.f32.mrb[77].mxu1  ;;  %5648 = vmatprep.subr.bf16.mxu1 %v9522_v6  ;;  %v9542_v57 = vsub.f32 %v9540_v56, %v9541_v25  ;;  %v9548_v63 = vld [vmem:[#allocation51_spill] sm:$0xff]  ;;  %v9550_v60 = vld [vmem:[#allocation73_spill] sm:$0xff]  ;;  %v9552_v6 = vld [vmem:[#allocation24_spill] sm:$0xff] }
 0x236   :  { %v1627_v47 = vadd.f32 %v9525_v10, %v1316_v37  ;;  %v7653_v26 = vadd.f32 %v1316_v37, %v9526_v9  ;;  %1848 = vmatprep.mubr.f32.mxu1 %v1657_v32  ;;  %v9551_v37 = vld [vmem:[#allocation10_spill] sm:$0xff]  ;;  %v9554_v10 = vld [vmem:[#allocation52_spill] sm:$0xff]  ;;  %v9568_v56 = vld [vmem:[#allocation55_spill] sm:$0xff] }
 0x237   :  { %v1658_v20 = vadd.f32 %v1626_v51, %v9527_v28  ;;  %1849 = vmatmul.mubr.f32.gmra.mrb[106].mxu1 %v1656_v62  ;;  %v9546_v62 = vld [vmem:[#allocation21_spill] sm:$0xff]  ;;  %v9553_v21 = vsub.f32 %v9551_v37, %v9552_v6  ;;  %v9555_v28 = vld [vmem:[#allocation11_spill] sm:$0xff] }
 0x238   :  { %v1659_v11 = vadd.f32 %v1627_v47, %v9528_v49  ;;  %v1320_v12 = vpop.f32.mrb[78].mxu1  ;;  %5656 = vmatpush3.bf16.msra.mxu1 %v7520_v41  ;;  %v9547_v43 = vsub.f32 %v9545_v45, %v9546_v62  ;;  %v9571_v45 = vld [vmem:[#allocation18_spill] sm:$0xff]  ;;  %v9572_v62 = vld [vmem:[#allocation32_spill] sm:$0xff]  ;;  %v9578_v6 = vld [vmem:[#allocation57_spill] sm:$0xff] }
 0x239   :  { %v1628_v13 = vadd.f32 %v9531_v16, %v1320_v12  ;;  %v7662_v50 = vadd.f32 %v1320_v12, %v9532_v36  ;;  %v1322_v0 = vpop.f32.mrb[79].mxu1  ;;  %5649 = vmatprep.subr.bf16.mxu1 %v7525_v15  ;;  %v9558_v12 = vld [vmem:[#allocation53_spill] sm:$0xff] }
 0x23a   :  { %v1629_v59 = vadd.f32 %v9535_v8, %v1322_v0  ;;  %v7669_v44 = vadd.f32 %v1322_v0, %v9536_v18  ;;  %1854 = vmatprep.mubr.f32.mxu1 %v1659_v11  ;;  %v9563_v8 = vsub.f32 %v9561_v17, %v9562_v42  ;;  %v9564_v18 = vld [vmem:[#allocation54_spill] sm:$0xff]  ;;  %v9587_v17 = vld [vmem:[#allocation37_spill] sm:$0xff] }
 0x23b   :  { %v1660_v41 = vadd.f32 %v1628_v13, %v9537_v3  ;;  %1855 = vmatmul.mubr.f32.gmra.mrb[108].mxu1 %v1658_v20  ;;  %v9556_v20 = vld [vmem:[#allocation25_spill] sm:$0xff]  ;;  %v9560_v13 = vld [vmem:[#allocation75_spill] sm:$0xff] }
 0x23c   :  { %v1661_v40 = vadd.f32 %v1629_v59, %v9538_v2  ;;  %v1326_v48 = vpop.f32.mrb[80].mxu1  ;;  %5657 = vmatpush3.bf16.msra.mxu1 %v9539_v30  ;;  %v9557_v49 = vsub.f32 %v9555_v28, %v9556_v20  ;;  %v9565_v2 = vld [vmem:[#allocation15_spill] sm:$0xff] }
 0x23d   :  { %v1630_v15 = vadd.f32 %v9542_v57, %v1326_v48  ;;  %v7678_v46 = vadd.f32 %v1326_v48, %v9543_v14  ;;  %v1328_v23 = vpop.f32.mrb[81].mxu1  ;;  %5650 = vmatprep.subr.bf16.mxu1 %v9544_v31  ;;  %v9569_v57 = vld [vmem:[#allocation76_spill] sm:$0xff]  ;;  %v9570_v14 = vld [vmem:[#allocation77_spill] sm:$0xff] }
 0x23e   :  { %v1631_v32 = vadd.f32 %v9547_v43, %v1328_v23  ;;  %v7685_v7 = vadd.f32 %v1328_v23, %v9548_v63  ;;  %1860 = vmatprep.mubr.f32.mxu1 %v1661_v40  ;;  %v9566_v40 = vld [vmem:[#allocation29_spill] sm:$0xff]  ;;  %v9573_v43 = vsub.f32 %v9571_v45, %v9572_v62  ;;  %v9574_v63 = vld [vmem:[#allocation56_spill] sm:$0xff]  ;;  %v9598_v62 = vld [vmem:[#allocation27_spill] sm:$0xff] }
 0x23f   :  { %v1662_v35 = vadd.f32 %v1630_v15, %v9549_v27  ;;  %1861 = vmatmul.mubr.f32.gmra.mrb[110].mxu1 %v1660_v41  ;;  %v9567_v48 = vsub.f32 %v9565_v2, %v9566_v40  ;;  %v9592_v40 = vld [vmem:[#allocation81_spill] sm:$0xff] }
 0x240   :  { %v1663_v51 = vadd.f32 %v1631_v32, %v9550_v60  ;;  %v1332_v5 = vpop.f32.mrb[82].mxu1  ;;  %v9575_v60 = vld [vmem:[#allocation19_spill] sm:$0xff] }
 0x241   :  { %v1632_v58 = vadd.f32 %v9553_v21, %v1332_v5  ;;  %v7693_v47 = vadd.f32 %v1332_v5, %v9554_v10  ;;  %v1334_v9 = vpop.f32.mrb[83].mxu1 }
 0x242   :  { %v1633_v11 = vadd.f32 %v9557_v49, %v1334_v9  ;;  %v7699_v34 = vadd.f32 %v1334_v9, %v9558_v12  ;;  %1866 = vmatprep.mubr.f32.mxu1 %v1663_v51  ;;  %v9576_v51 = vld [vmem:[#allocation33_spill] sm:$0xff]  ;;  %v9580_v9 = vld [vmem:[#allocation79_spill] sm:$0xff]  ;;  %v9581_v49 = vld [vmem:[#allocation22_spill] sm:$0xff] }
 0x243   :  { %v1664_v16 = vadd.f32 %v1632_v58, %v9559_v52  ;;  %1867 = vmatmul.mubr.f32.gmra.mrb[112].mxu1 %v1662_v35  ;;  %v9577_v5 = vsub.f32 %v9575_v60, %v9576_v51  ;;  %v9579_v58 = vld [vmem:[#allocation78_spill] sm:$0xff] }
 0x244   :  { %v1665_v36 = vadd.f32 %v1633_v11, %v9560_v13  ;;  %v1338_v0 = vpop.f32.mrb[84].mxu1  ;;  %v9582_v11 = vld [vmem:[#allocation36_spill] sm:$0xff]  ;;  %v9603_v51 = vld [vmem:[#allocation82_spill] sm:$0xff] }
 0x245   :  { %v1634_v59 = vadd.f32 %v9563_v8, %v1338_v0  ;;  %v7707_v3 = vadd.f32 %v1338_v0, %v9564_v18  ;;  %v1340_v41 = vpop.f32.mrb[85].mxu1  ;;  %v9583_v12 = vsub.f32 %v9581_v49, %v9582_v11  ;;  %v9586_v0 = vld [vmem:[#allocation23_spill] sm:$0xff]  ;;  %v9608_v49 = vld [vmem:[#allocation62_spill] sm:$0xff] }
 0x246   :  { %v1635_v30 = vadd.f32 %v9567_v48, %v1340_v41  ;;  %v7713_v25 = vadd.f32 %v1340_v41, %v9568_v56  ;;  %1872 = vmatprep.mubr.f32.mxu1 %v1665_v36  ;;  %v9588_v42 = vsub.f32 %v9586_v0, %v9587_v17  ;;  %v9591_v41 = vld [vmem:[#allocation80_spill] sm:$0xff]  ;;  %v9593_v56 = vld [vmem:[#allocation26_spill] sm:$0xff]  ;;  %v9613_v17 = vld [vmem:[#allocation63_spill] sm:$0xff] }
 0x247   :  { %v1666_v15 = vadd.f32 %v1634_v59, %v9569_v57  ;;  %1873 = vmatmul.mubr.f32.gmra.mrb[114].mxu1 %v1664_v16  ;;  %v9584_v16 = vld [vmem:[#allocation58_spill] sm:$0xff]  ;;  %v9589_v59 = vld [vmem:[#allocation59_spill] sm:$0xff] }
 0x248   :  { %v1667_v23 = vadd.f32 %v1635_v30, %v9570_v14  ;;  %v1344_v31 = vpop.f32.mrb[86].mxu1  ;;  %v9594_v57 = vld [vmem:[#allocation38_spill] sm:$0xff] }
 0x249   :  { %v1636_v32 = vadd.f32 %v9573_v43, %v1344_v31  ;;  %v7721_v27 = vadd.f32 %v1344_v31, %v9574_v63  ;;  %v1346_v35 = vpop.f32.mrb[87].mxu1  ;;  %v9599_v43 = vld [vmem:[#allocation39_spill] sm:$0xff] }
 0x24a   :  { %v1637_v37 = vadd.f32 %v9577_v5, %v1346_v35  ;;  %v7727_v21 = vadd.f32 %v1346_v35, %v9578_v6  ;;  %1878 = vmatprep.mubr.f32.mxu1 %v1667_v23  ;;  %v9596_v23 = vld [vmem:[#allocation60_spill] sm:$0xff]  ;;  %v9601_v35 = vld [vmem:[#allocation61_spill] sm:$0xff] }
 0x24b   :  { %v1668_v10 = vadd.f32 %v1636_v32, %v9579_v58  ;;  %1879 = vmatmul.mubr.f32.gmra.mrb[116].mxu1 %v1666_v15  ;;  %v9595_v15 = vsub.f32 %v9593_v56, %v9594_v57  ;;  %v9600_v32 = vsub.f32 %v9598_v62, %v9599_v43  ;;  %v9623_v62 = vld [vmem:[#allocation44_spill] sm:$0xff] }
 0x24c   :  { %v1669_v28 = vadd.f32 %v1637_v37, %v9580_v9  ;;  %v1350_v20 = vpop.f32.mrb[88].mxu1  ;;  %v9604_v37 = vld [vmem:[#allocation83_spill] sm:$0xff]  ;;  %v9606_v9 = vld [vmem:[#allocation41_spill] sm:$0xff] }
 0x24d   :  { %v1638_v52 = vadd.f32 %v9583_v12, %v1350_v20  ;;  %v7735_v13 = vadd.f32 %v1350_v20, %v9584_v16  ;;  %v1352_v36 = vpop.f32.mrb[89].mxu1  ;;  %v9611_v16 = vld [vmem:[#allocation42_spill] sm:$0xff] }
 0x24e   :  { %v1639_v8 = vadd.f32 %v9588_v42, %v1352_v36  ;;  %v7741_v18 = vadd.f32 %v1352_v36, %v9589_v59  ;;  %1884 = vmatprep.mubr.f32.mxu1 %v1669_v28 }
 0x24f   :  { %9585 = vst [vmem:[#allocation2_spill] sm:$0xff] %v7735_v13  ;;  %v1670_v2 = vadd.f32 %v1638_v52, %v9591_v41  ;;  %1885 = vmatmul.mubr.f32.gmra.mrb[118].mxu1 %v1668_v10  ;;  %v9605_v10 = vld [vmem:[#allocation30_spill] sm:$0xff]  ;;  %v9610_v52 = vld [vmem:[#allocation31_spill] sm:$0xff] }
 0x250   :  { %9590 = vst [vmem:[#allocation9_spill] sm:$0xff] %v7741_v18  ;;  %v1671_v48 = vadd.f32 %v1639_v8, %v9592_v40  ;;  %v1356_v30 = vpop.f32.mrb[90].mxu1  ;;  %v9607_v28 = vsub.f32 %v9605_v10, %v9606_v9  ;;  %v9612_v36 = vsub.f32 %v9610_v52, %v9611_v16  ;;  %v9615_v8 = vld [vmem:[#allocation85_spill] sm:$0xff]  ;;  %v9616_v41 = vld [vmem:[#allocation87_spill] sm:$0xff] }
 0x251   :  { %v1640_v14 = vadd.f32 %v9595_v15, %v1356_v30  ;;  %v7749_v31 = vadd.f32 %v1356_v30, %v9596_v23  ;;  %v1358_v45 = vpop.f32.mrb[91].mxu1  ;;  %v9618_v30 = vld [vmem:[#allocation43_spill] sm:$0xff]  ;;  %v9620_v15 = vld [vmem:[#allocation64_spill] sm:$0xff]  ;;  %v1962_v10 = vld [vmem:[%s9307_s13 + $0x78] sm:$0xff] }
 0x252   :  { %v1641_v63 = vadd.f32 %v9600_v32, %v1358_v45  ;;  %v7755_v60 = vadd.f32 %v1358_v45, %v9601_v35  ;;  %1890 = vmatprep.mubr.f32.mxu1 %v1671_v48  ;;  %v9617_v48 = vld [vmem:[#allocation34_spill] sm:$0xff]  ;;  %v9622_v45 = vld [vmem:[#allocation35_spill] sm:$0xff] }
 0x253   :  { %9597 = vst [vmem:[#allocation45_spill] sm:$0xff] %v7749_v31  ;;  %v1672_v5 = vadd.f32 %v1640_v14, %v9603_v51  ;;  %1891 = vmatmul.mubr.f32.gmra.mrb[120].mxu1 %v1670_v2  ;;  %v9619_v56 = vsub.f32 %v9617_v48, %v9618_v30  ;;  %v9624_v43 = vsub.f32 %v9622_v45, %v9623_v62  ;;  %v9627_v51 = vld [vmem:[#allocation88_spill] sm:$0xff]  ;;  %v9388_v31 = vmov 0  }
 0x254   :  { %9602 = vst [vmem:[#allocation66_spill] sm:$0xff] %v7755_v60  ;;  %v1673_v6 = vadd.f32 %v1641_v63, %v9604_v37  ;;  %v1362_v58 = vpop.f32.mrb[92].mxu1  ;;  %v9625_v63 = vld [vmem:[#allocation65_spill] sm:$0xff]  ;;  %5672 = vset.pattern.permute.xlu1 %v9388_v31 }
 0x255   :  { %v1642_v20 = vadd.f32 %v9607_v28, %v1362_v58  ;;  %v7763_v11 = vadd.f32 %v1362_v58, %v9608_v49  ;;  %v1364_v12 = vpop.f32.mrb[93].mxu1  ;;  %v9628_v37 = vld [vmem:[#allocation89_spill] sm:$0xff]  ;;  %v1961_v58 = vld [vmem:[%s9307_s13 + $0x70] sm:$0xff]  ;;  %v1742_v28 = vld [vmem:[%s9308_s12] sm:$0x3] }
 0x256   :  { %v1643_v0 = vadd.f32 %v9612_v36, %v1364_v12  ;;  %v7769_v42 = vadd.f32 %v1364_v12, %v9613_v17  ;;  %1896 = vmatprep.mubr.f32.mxu1 %v1673_v6  ;;  %v5573_v9 = vpack.c.bf16 %v1962_v10, %v1961_v58 }
 0x257   :  { %9609 = vst [vmem:[#allocation67_spill] sm:$0xff] %v7763_v11  ;;  %v1674_v59 = vadd.f32 %v1642_v20, %v9615_v8  ;;  %1897 = vmatmul.mubr.f32.gmra.mrb[122].mxu1 %v1672_v5  ;;  %v9629_v20 = vld [vmem:[#allocation40_spill] sm:$0xff] }
 0x258   :  { %9614 = vst [vmem:[#allocation84_spill] sm:$0xff] %v7769_v42  ;;  %v1675_v2 = vadd.f32 %v1643_v0, %v9616_v41  ;;  %v1368_v40 = vpop.f32.mrb[94].mxu1  ;;  %5574 = vmatpush3.bf16.msra.mxu0 %v5573_v9  ;;  %5658 = vmatpush3.bf16.msra.mxu1 %v5573_v9  ;;  %v9630_v49 = vsub.s32 0, %v9629_v20  ;;  %v9631_v52 = vsub.s32 1, %v9629_v20 }
 0x259   :  { %v1644_v57 = vadd.f32 %v9619_v56, %v1368_v40  ;;  %v7777_v14 = vadd.f32 %v1368_v40, %v9620_v15  ;;  %v1370_v23 = vpop.f32.mrb[95].mxu1 }
 0x25a   :  { %v1645_v32 = vadd.f32 %v9624_v43, %v1370_v23  ;;  %v7783_v35 = vadd.f32 %v1370_v23, %v9625_v63  ;;  %1902 = vmatprep.mubr.f32.mxu1 %v1675_v2  ;;  %v7798_v12 = vrot.slane %v1742_v28, %v9630_v49  ;;  %v7802_v16 = vrot.slane %v1742_v28, %v9631_v52 }
 0x25b   :  { %9621 = vst [vmem:[#allocation3_spill] sm:$0xff] %v7777_v14  ;;  %v1676_v5 = vadd.f32 %v1644_v57, %v9627_v51  ;;  %1903 = vmatmul.mubr.f32.gmra.mrb[124].mxu1 %v1674_v59  ;;  %v2607_v14 = vld [vmem:[%s9310_s15 + $0xf8] sm:$0xff] }
 0x25c   :  { %9626 = vst [vmem:[#allocation12_spill] sm:$0xff] %v7783_v35  ;;  %v1677_v6 = vadd.f32 %v1645_v32, %v9628_v37  ;;  %v2601_v35 = vld [vmem:[%s9310_s15 + $0xc8] sm:$0xff] }
 0x25e   :  { %1908 = vmatprep.mubr.f32.mxu1 %v1677_v6 }
 0x25f   :  { %1909 = vmatmul.mubr.f32.gmra.mrb[126].mxu1 %v1676_v5 }
 0x2f6   :  { %v1820_v36 = vpop.f32.mrb[96].mxu1 }
 0x2f7   :  { %v1821_v0 = vadd.f32 %v1820_v36, %v7798_v12  ;;  %v1822_v17 = vpop.f32.mrb[97].mxu1 }
 0x2f8   :  { %v1823_v8 = vadd.f32 %v1822_v17, %v7802_v16 }
 0x2f9   :  { %v1915_v2 = vmax.f32 %v1821_v0, 0.0 }
 0x2fa   :  { %v1916_v59 = vmax.f32 %v1823_v8, 0.0  ;;  %v1826_v41 = vpop.f32.mrb[98].mxu1 }
 0x2fb   :  { %v1827_v40 = vadd.f32 %v1826_v41, %v7798_v12  ;;  %v1828_v48 = vpop.f32.mrb[99].mxu1 }
 0x2fc   :  { %v1829_v30 = vadd.f32 %v1828_v48, %v7802_v16  ;;  %2043 = vmatprep.mubr.f32.mxu0 %v1916_v59 }
 0x2fd   :  { %2044 = vmatmul.mubr.f32.vlgmr.msra.gmra.mrb[112].mxu0 %v1915_v2  ;;  %v1917_v15 = vmax.f32 %v1827_v40, 0.0 }
 0x2fe   :  { %v1918_v56 = vmax.f32 %v1829_v30, 0.0  ;;  %v1832_v57 = vpop.f32.mrb[100].mxu1 }
 0x2ff   :  { %v1833_v23 = vadd.f32 %v1832_v57, %v7798_v12  ;;  %v1834_v45 = vpop.f32.mrb[101].mxu1 }
 0x300   :  { %v1835_v62 = vadd.f32 %v1834_v45, %v7802_v16  ;;  %2048 = vmatprep.mubr.f32.mxu0 %v1918_v56 }
 0x301   :  { %2049 = vmatmul.mubr.f32.gmra.mrb[114].mxu0 %v1917_v15  ;;  %v1919_v63 = vmax.f32 %v1833_v23, 0.0 }
 0x302   :  { %v1920_v43 = vmax.f32 %v1835_v62, 0.0  ;;  %v1838_v32 = vpop.f32.mrb[102].mxu1 }
 0x303   :  { %v1839_v51 = vadd.f32 %v1838_v32, %v7798_v12  ;;  %v1840_v5 = vpop.f32.mrb[103].mxu1 }
 0x304   :  { %v1841_v37 = vadd.f32 %v1840_v5, %v7802_v16  ;;  %2053 = vmatprep.mubr.f32.mxu0 %v1920_v43 }
 0x305   :  { %2054 = vmatmul.mubr.f32.gmra.mrb[116].mxu0 %v1919_v63  ;;  %v1921_v10 = vmax.f32 %v1839_v51, 0.0 }
 0x306   :  { %v1922_v6 = vmax.f32 %v1841_v37, 0.0  ;;  %v1844_v58 = vpop.f32.mrb[104].mxu1 }
 0x307   :  { %v1845_v9 = vadd.f32 %v1844_v58, %v7798_v12  ;;  %v1846_v28 = vpop.f32.mrb[105].mxu1 }
 0x308   :  { %v1847_v20 = vadd.f32 %v1846_v28, %v7802_v16  ;;  %2058 = vmatprep.mubr.f32.mxu0 %v1922_v6 }
 0x309   :  { %2059 = vmatmul.mubr.f32.gmra.mrb[118].mxu0 %v1921_v10  ;;  %v1923_v36 = vmax.f32 %v1845_v9, 0.0 }
 0x30a   :  { %v1924_v49 = vmax.f32 %v1847_v20, 0.0  ;;  %v1850_v52 = vpop.f32.mrb[106].mxu1 }
 0x30b   :  { %v1851_v0 = vadd.f32 %v1850_v52, %v7798_v12  ;;  %v1852_v17 = vpop.f32.mrb[107].mxu1 }
 0x30c   :  { %v1853_v8 = vadd.f32 %v1852_v17, %v7802_v16  ;;  %2063 = vmatprep.mubr.f32.mxu0 %v1924_v49 }
 0x30d   :  { %2064 = vmatmul.mubr.f32.gmra.mrb[120].mxu0 %v1923_v36  ;;  %v1925_v2 = vmax.f32 %v1851_v0, 0.0 }
 0x30e   :  { %v1926_v59 = vmax.f32 %v1853_v8, 0.0  ;;  %v1856_v41 = vpop.f32.mrb[108].mxu1 }
 0x30f   :  { %v1857_v40 = vadd.f32 %v1856_v41, %v7798_v12  ;;  %v1858_v48 = vpop.f32.mrb[109].mxu1 }
 0x310   :  { %v1859_v30 = vadd.f32 %v1858_v48, %v7802_v16  ;;  %2068 = vmatprep.mubr.f32.mxu0 %v1926_v59 }
 0x311   :  { %2069 = vmatmul.mubr.f32.gmra.mrb[122].mxu0 %v1925_v2  ;;  %v1927_v15 = vmax.f32 %v1857_v40, 0.0 }
 0x312   :  { %v1928_v56 = vmax.f32 %v1859_v30, 0.0  ;;  %v1862_v57 = vpop.f32.mrb[110].mxu1 }
 0x313   :  { %v1863_v23 = vadd.f32 %v1862_v57, %v7798_v12  ;;  %v1864_v45 = vpop.f32.mrb[111].mxu1 }
 0x314   :  { %v1865_v62 = vadd.f32 %v1864_v45, %v7802_v16  ;;  %2073 = vmatprep.mubr.f32.mxu0 %v1928_v56 }
 0x315   :  { %2074 = vmatmul.mubr.f32.gmra.mrb[124].mxu0 %v1927_v15  ;;  %v1929_v63 = vmax.f32 %v1863_v23, 0.0 }
 0x316   :  { %v1930_v43 = vmax.f32 %v1865_v62, 0.0  ;;  %v1868_v32 = vpop.f32.mrb[112].mxu1 }
 0x317   :  { %v1869_v51 = vadd.f32 %v1868_v32, %v7798_v12  ;;  %v1870_v5 = vpop.f32.mrb[113].mxu1 }
 0x318   :  { %v1871_v37 = vadd.f32 %v1870_v5, %v7802_v16  ;;  %2078 = vmatprep.mubr.f32.mxu0 %v1930_v43 }
 0x319   :  { %2079 = vmatmul.mubr.f32.gmra.mrb[126].mxu0 %v1929_v63  ;;  %v1931_v10 = vmax.f32 %v1869_v51, 0.0 }
 0x31a   :  { %v1932_v6 = vmax.f32 %v1871_v37, 0.0  ;;  %v1874_v58 = vpop.f32.mrb[114].mxu1 }
 0x31b   :  { %v1875_v9 = vadd.f32 %v1874_v58, %v7798_v12  ;;  %v1876_v28 = vpop.f32.mrb[115].mxu1 }
 0x31c   :  { %v1877_v20 = vadd.f32 %v1876_v28, %v7802_v16  ;;  %2083 = vmatprep.mubr.f32.mxu0 %v1932_v6 }
 0x31d   :  { %2084 = vmatmul.mubr.f32.gmra.mrb[128].mxu0 %v1931_v10  ;;  %v1933_v36 = vmax.f32 %v1875_v9, 0.0 }
 0x31e   :  { %v1934_v49 = vmax.f32 %v1877_v20, 0.0  ;;  %v1880_v52 = vpop.f32.mrb[116].mxu1 }
 0x31f   :  { %v1881_v0 = vadd.f32 %v1880_v52, %v7798_v12  ;;  %v1882_v17 = vpop.f32.mrb[117].mxu1 }
 0x320   :  { %v1883_v8 = vadd.f32 %v1882_v17, %v7802_v16  ;;  %2088 = vmatprep.mubr.f32.mxu0 %v1934_v49 }
 0x321   :  { %2089 = vmatmul.mubr.f32.gmra.mrb[130].mxu0 %v1933_v36  ;;  %v1935_v2 = vmax.f32 %v1881_v0, 0.0 }
 0x322   :  { %v1936_v59 = vmax.f32 %v1883_v8, 0.0  ;;  %v1886_v41 = vpop.f32.mrb[118].mxu1 }
 0x323   :  { %v1887_v40 = vadd.f32 %v1886_v41, %v7798_v12  ;;  %v1888_v48 = vpop.f32.mrb[119].mxu1 }
 0x324   :  { %v1889_v30 = vadd.f32 %v1888_v48, %v7802_v16  ;;  %2093 = vmatprep.mubr.f32.mxu0 %v1936_v59 }
 0x325   :  { %2094 = vmatmul.mubr.f32.gmra.mrb[132].mxu0 %v1935_v2  ;;  %v1937_v15 = vmax.f32 %v1887_v40, 0.0  ;;  %v9632_v2 = vmov 0.0  }
 0x326   :  { %v1938_v56 = vmax.f32 %v1889_v30, 0.0  ;;  %v1892_v57 = vpop.f32.mrb[120].mxu1 }
 0x327   :  { %v1893_v23 = vadd.f32 %v1892_v57, %v7798_v12  ;;  %v1894_v45 = vpop.f32.mrb[121].mxu1 }
 0x328   :  { %v1895_v62 = vadd.f32 %v1894_v45, %v7802_v16  ;;  %2098 = vmatprep.mubr.f32.mxu0 %v1938_v56 }
 0x329   :  { %2099 = vmatmul.mubr.f32.gmra.mrb[134].mxu0 %v1937_v15  ;;  %v1939_v63 = vmax.f32 %v1893_v23, 0.0 }
 0x32a   :  { %v1940_v43 = vmax.f32 %v1895_v62, 0.0  ;;  %v1898_v32 = vpop.f32.mrb[122].mxu1 }
 0x32b   :  { %v1899_v51 = vadd.f32 %v1898_v32, %v7798_v12  ;;  %v1900_v5 = vpop.f32.mrb[123].mxu1 }
 0x32c   :  { %v1901_v37 = vadd.f32 %v1900_v5, %v7802_v16  ;;  %2103 = vmatprep.mubr.f32.mxu1 %v1940_v43 }
 0x32d   :  { %2104 = vmatmul.mubr.f32.vlgmr.msra.gmra.mrb[128].mxu1 %v1939_v63  ;;  %v1941_v10 = vmax.f32 %v1899_v51, 0.0 }
 0x32e   :  { %v1942_v6 = vmax.f32 %v1901_v37, 0.0  ;;  %v1904_v58 = vpop.f32.mrb[124].mxu1 }
 0x32f   :  { %v1905_v9 = vadd.f32 %v1904_v58, %v7798_v12  ;;  %v1906_v28 = vpop.f32.mrb[125].mxu1 }
 0x330   :  { %v1907_v20 = vadd.f32 %v1906_v28, %v7802_v16  ;;  %2108 = vmatprep.mubr.f32.mxu1 %v1942_v6 }
 0x331   :  { %2109 = vmatmul.mubr.f32.gmra.mrb[130].mxu1 %v1941_v10  ;;  %v1943_v36 = vmax.f32 %v1905_v9, 0.0 }
 0x332   :  { %v1944_v49 = vmax.f32 %v1907_v20, 0.0  ;;  %v1910_v52 = vpop.f32.mrb[126].mxu1 }
 0x333   :  { %v1911_v0 = vadd.f32 %v1910_v52, %v7798_v12  ;;  %v1912_v17 = vpop.f32.mrb[127].mxu1 }
 0x334   :  { %v1913_v8 = vadd.f32 %v1912_v17, %v7802_v16  ;;  %2113 = vmatprep.mubr.f32.mxu1 %v1944_v49 }
 0x335   :  { %2114 = vmatmul.mubr.f32.gmra.mrb[132].mxu1 %v1943_v36  ;;  %v1945_v41 = vmax.f32 %v1911_v0, 0.0 }
 0x336   :  { %v1946_v59 = vmax.f32 %v1913_v8, 0.0 }
 0x338   :  { %2118 = vmatprep.mubr.f32.mxu1 %v1946_v59 }
 0x339   :  { %2119 = vmatmul.mubr.f32.gmra.mrb[134].mxu1 %v1945_v41 }
 0x33a   :  { %2447 = vmatprep.mubr.f32.mxu1 %v9632_v2 }
 0x3d0   :  { %v4937_v40 = vpop.f32.mrb[112].mxu0 }
 0x3d1   :  { %v4938_v48 = vpop.f32.mrb[113].mxu0 }
 0x3d2   :  { %v7837_v30 = vadd.f32 %v4938_v48, %v4937_v40 }
 0x3d4   :  { %v4940_v56 = vpop.f32.mrb[114].mxu0  ;;  %v2125_v12 = vsel %vm2124_vm2, %v7837_v30, -inf }
 0x3d5   :  { %v4941_v57 = vpop.f32.mrb[115].mxu0  ;;  %2126 = vmax.xlane.f32.xlu0 %v2125_v12 }
 0x3d6   :  { %v7841_v16 = vadd.f32 %v4941_v57, %v4940_v56 }
 0x3d8   :  { %v4943_v15 = vpop.f32.mrb[116].mxu0  ;;  %v2128_v23 = vsel %vm2124_vm2, %v7841_v16, -inf }
 0x3d9   :  { %v4944_v45 = vpop.f32.mrb[117].mxu0  ;;  %2129 = vmax.xlane.f32.xlu0 %v2128_v23 }
 0x3da   :  { %v7845_v62 = vadd.f32 %v4944_v45, %v4943_v15 }
 0x3dc   :  { %v4946_v43 = vpop.f32.mrb[118].mxu0  ;;  %v2131_v32 = vsel %vm2124_vm2, %v7845_v62, -inf }
 0x3dd   :  { %v4947_v63 = vpop.f32.mrb[119].mxu0  ;;  %2132 = vmax.xlane.f32.xlu1 %v2131_v32 }
 0x3de   :  { %v7849_v51 = vadd.f32 %v4947_v63, %v4946_v43 }
 0x3e0   :  { %v4949_v5 = vpop.f32.mrb[120].mxu0  ;;  %v2134_v37 = vsel %vm2124_vm2, %v7849_v51, -inf }
 0x3e1   :  { %v4950_v6 = vpop.f32.mrb[121].mxu0  ;;  %2135 = vmax.xlane.f32.xlu1 %v2134_v37 }
 0x3e2   :  { %v7853_v58 = vadd.f32 %v4950_v6, %v4949_v5 }
 0x3e4   :  { %v4952_v10 = vpop.f32.mrb[122].mxu0  ;;  %v2137_v9 = vsel %vm2124_vm2, %v7853_v58, -inf }
 0x3e5   :  { %v4953_v28 = vpop.f32.mrb[123].mxu0  ;;  %2138 = vmax.xlane.f32.xlu0 %v2137_v9 }
 0x3e6   :  { %v7857_v20 = vadd.f32 %v4953_v28, %v4952_v10 }
 0x3e8   :  { %v4955_v49 = vpop.f32.mrb[124].mxu0  ;;  %v2140_v52 = vsel %vm2124_vm2, %v7857_v20, -inf }
 0x3e9   :  { %v4956_v36 = vpop.f32.mrb[125].mxu0  ;;  %2141 = vmax.xlane.f32.xlu1 %v2140_v52 }
 0x3ea   :  { %v7861_v0 = vadd.f32 %v4956_v36, %v4955_v49 }
 0x3ec   :  { %v4958_v17 = vpop.f32.mrb[126].mxu0  ;;  %v2143_v8 = vsel %vm2124_vm2, %v7861_v0, -inf }
 0x3ed   :  { %v4959_v59 = vpop.f32.mrb[127].mxu0  ;;  %2144 = vmax.xlane.f32.xlu0 %v2143_v8 }
 0x3ee   :  { %v7865_v41 = vadd.f32 %v4959_v59, %v4958_v17 }
 0x3f0   :  { %v4961_v40 = vpop.f32.mrb[128].mxu0  ;;  %v2146_v48 = vsel %vm2124_vm2, %v7865_v41, -inf }
 0x3f1   :  { %v4962_v56 = vpop.f32.mrb[129].mxu0  ;;  %2147 = vmax.xlane.f32.xlu1 %v2146_v48 }
 0x3f2   :  { %v7869_v12 = vadd.f32 %v4962_v56, %v4961_v40 }
 0x3f4   :  { %v4964_v57 = vpop.f32.mrb[130].mxu0  ;;  %v2149_v15 = vsel %vm2124_vm2, %v7869_v12, -inf }
 0x3f5   :  { %v4965_v23 = vpop.f32.mrb[131].mxu0  ;;  %2150 = vmax.xlane.f32.xlu0 %v2149_v15 }
 0x3f6   :  { %v7873_v45 = vadd.f32 %v4965_v23, %v4964_v57 }
 0x3f8   :  { %v4967_v43 = vpop.f32.mrb[132].mxu0  ;;  %v2152_v32 = vsel %vm2124_vm2, %v7873_v45, -inf }
 0x3f9   :  { %v4968_v63 = vpop.f32.mrb[133].mxu0  ;;  %2153 = vmax.xlane.f32.xlu1 %v2152_v32 }
 0x3fa   :  { %v7877_v5 = vadd.f32 %v4968_v63, %v4967_v43 }
 0x3fc   :  { %v4970_v37 = vpop.f32.mrb[134].mxu0  ;;  %v2155_v6 = vsel %vm2124_vm2, %v7877_v5, -inf }
 0x3fd   :  { %v4971_v10 = vpop.f32.mrb[135].mxu0  ;;  %2156 = vmax.xlane.f32.xlu0 %v2155_v6  ;;  %v2334_v6 = vld [vmem:[%s9309_s14 + $0x8] sm:$0xff] }
 0x3fe   :  { %v7881_v9 = vadd.f32 %v4971_v10, %v4970_v37  ;;  %v2333_v10 = vld [vmem:[%s9309_s14] sm:$0xff]  ;;  %2383 = vmatprep.subr.mxu1 %v2334_v6  ;;  %s5786_s14 = smov 107  }
 0x3ff   :  { %2384 = vmatpush1.msra.mxu1 %v2333_v10 }
 0x400   :  { %v4973_v28 = vpop.f32.mrb[128].mxu1  ;;  %v2158_v49 = vsel %vm2124_vm2, %v7881_v9, -inf }
 0x401   :  { %2159 = vmax.xlane.f32.xlu1 %v2158_v49  ;;  %v4974_v52 = vpop.f32.mrb[129].mxu1 }
 0x402   :  { %v7885_v36 = vadd.f32 %v4974_v52, %v4973_v28 }
 0x404   :  { %v4976_v17 = vpop.f32.mrb[130].mxu1  ;;  %v2161_v8 = vsel %vm2124_vm2, %v7885_v36, -inf }
 0x405   :  { %v4977_v59 = vpop.f32.mrb[131].mxu1  ;;  %2162 = vmax.xlane.f32.xlu0 %v2161_v8 }
 0x406   :  { %v7889_v40 = vadd.f32 %v4977_v59, %v4976_v17 }
 0x408   :  { %v4979_v48 = vpop.f32.mrb[132].mxu1  ;;  %v2164_v56 = vsel %vm2124_vm2, %v7889_v40, -inf }
 0x409   :  { %v4980_v57 = vpop.f32.mrb[133].mxu1  ;;  %2165 = vmax.xlane.f32.xlu1 %v2164_v56 }
 0x40a   :  { %v7893_v15 = vadd.f32 %v4980_v57, %v4979_v48 }
 0x40c   :  { %v4982_v23 = vpop.f32.mrb[134].mxu1  ;;  %v2167_v43 = vsel %vm2124_vm2, %v7893_v15, -inf }
 0x40d   :  { %2168 = vmax.xlane.f32.xlu0 %v2167_v43  ;;  %v4983_v32 = vpop.f32.mrb[135].mxu1 }
 0x40e   :  { %v7897_v63 = vadd.f32 %v4983_v32, %v4982_v23 }
 0x410   :  { %v2170_v37 = vsel %vm2124_vm2, %v7897_v63, -inf }
 0x411   :  { %2171 = vmax.xlane.f32.xlu1 %v2170_v37 }
 0x462   :  { %v2127_v28 = vpop.xlane.xlu0 %2126 }
 0x463   :  { %v2173_v49 = vsub.f32 %v7837_v30, %v2127_v28 }
 0x465   :  { %v2189_v52 = vmul.f32 1.442695, %v2173_v49 }
 0x466   :  { %v2130_v17 = vpop.xlane.xlu0 %2129 }
 0x467   :  { %5699 = vpow2.f32 %v2189_v52  ;;  %v2174_v8 = vsub.f32 %v7841_v16, %v2130_v17 }
 0x469   :  { %v2191_v59 = vmul.f32 1.442695, %v2174_v8 }
 0x46a   :  { %v2133_v48 = vpop.xlane.xlu1 %2132 }
 0x46b   :  { %5701 = vpow2.f32 %v2191_v59  ;;  %v2175_v56 = vsub.f32 %v7845_v62, %v2133_v48 }
 0x46d   :  { %v2193_v57 = vmul.f32 1.442695, %v2175_v56 }
 0x46e   :  { %v2136_v23 = vpop.xlane.xlu1 %2135 }
 0x46f   :  { %5703 = vpow2.f32 %v2193_v57  ;;  %v2176_v43 = vsub.f32 %v7849_v51, %v2136_v23 }
 0x471   :  { %v7911_v32 = vpop.eup %5699  ;;  %v2195_v37 = vmul.f32 1.442695, %v2176_v43 }
 0x472   :  { %v2139_v6 = vpop.xlane.xlu0 %2138  ;;  %v2221_v30 = vsel %vm2124_vm2, %v7911_v32, 0.0 }
 0x473   :  { %5705 = vpow2.f32 %v2195_v37  ;;  %v2177_v16 = vsub.f32 %v7853_v58, %v2139_v6  ;;  %2222 = vadd.xlane.f32.xlu0 %v2221_v30 }
 0x475   :  { %v7916_v10 = vpop.eup %5701  ;;  %v2197_v28 = vmul.f32 1.442695, %v2177_v16 }
 0x476   :  { %v2142_v62 = vpop.xlane.xlu1 %2141  ;;  %v2224_v49 = vsel %vm2124_vm2, %v7916_v10, 0.0 }
 0x477   :  { %5707 = vpow2.f32 %v2197_v28  ;;  %v2178_v51 = vsub.f32 %v7857_v20, %v2142_v62  ;;  %2225 = vadd.xlane.f32.xlu1 %v2224_v49 }
 0x479   :  { %v7921_v52 = vpop.eup %5703  ;;  %v2199_v17 = vmul.f32 1.442695, %v2178_v51 }
 0x47a   :  { %v2145_v8 = vpop.xlane.xlu0 %2144  ;;  %v2227_v59 = vsel %vm2124_vm2, %v7921_v52, 0.0 }
 0x47b   :  { %5709 = vpow2.f32 %v2199_v17  ;;  %v2179_v58 = vsub.f32 %v7861_v0, %v2145_v8  ;;  %2228 = vadd.xlane.f32.xlu0 %v2227_v59 }
 0x47d   :  { %v7926_v48 = vpop.eup %5705  ;;  %v2201_v56 = vmul.f32 1.442695, %v2179_v58 }
 0x47e   :  { %v2148_v57 = vpop.xlane.xlu1 %2147  ;;  %v2230_v23 = vsel %vm2124_vm2, %v7926_v48, 0.0 }
 0x47f   :  { %5711 = vpow2.f32 %v2201_v56  ;;  %v2180_v20 = vsub.f32 %v7865_v41, %v2148_v57  ;;  %2231 = vadd.xlane.f32.xlu1 %v2230_v23 }
 0x481   :  { %v7931_v43 = vpop.eup %5707  ;;  %v2203_v37 = vmul.f32 1.442695, %v2180_v20 }
 0x482   :  { %v2151_v6 = vpop.xlane.xlu0 %2150  ;;  %v2233_v30 = vsel %vm2124_vm2, %v7931_v43, 0.0 }
 0x483   :  { %5713 = vpow2.f32 %v2203_v37  ;;  %v2181_v0 = vsub.f32 %v7869_v12, %v2151_v6  ;;  %2234 = vadd.xlane.f32.xlu0 %v2233_v30 }
 0x485   :  { %v7936_v16 = vpop.eup %5709  ;;  %v2205_v28 = vmul.f32 1.442695, %v2181_v0 }
 0x486   :  { %v2154_v62 = vpop.xlane.xlu1 %2153  ;;  %v2236_v49 = vsel %vm2124_vm2, %v7936_v16, 0.0 }
 0x487   :  { %5715 = vpow2.f32 %v2205_v28  ;;  %v2182_v41 = vsub.f32 %v7873_v45, %v2154_v62  ;;  %2237 = vadd.xlane.f32.xlu1 %v2236_v49 }
 0x489   :  { %v7941_v51 = vpop.eup %5711  ;;  %v2207_v17 = vmul.f32 1.442695, %v2182_v41 }
 0x48a   :  { %v2157_v8 = vpop.xlane.xlu0 %2156  ;;  %v2239_v59 = vsel %vm2124_vm2, %v7941_v51, 0.0 }
 0x48b   :  { %5717 = vpow2.f32 %v2207_v17  ;;  %v2183_v12 = vsub.f32 %v7877_v5, %v2157_v8  ;;  %2240 = vadd.xlane.f32.xlu0 %v2239_v59 }
 0x48d   :  { %v7946_v58 = vpop.eup %5713  ;;  %v2209_v56 = vmul.f32 1.442695, %v2183_v12 }
 0x48e   :  { %v2160_v57 = vpop.xlane.xlu1 %2159  ;;  %v2242_v23 = vsel %vm2124_vm2, %v7946_v58, 0.0 }
 0x48f   :  { %5719 = vpow2.f32 %v2209_v56  ;;  %v2184_v45 = vsub.f32 %v7881_v9, %v2160_v57  ;;  %2243 = vadd.xlane.f32.xlu1 %v2242_v23 }
 0x491   :  { %v7951_v20 = vpop.eup %5715  ;;  %v2211_v37 = vmul.f32 1.442695, %v2184_v45 }
 0x492   :  { %v2163_v6 = vpop.xlane.xlu0 %2162  ;;  %v2245_v30 = vsel %vm2124_vm2, %v7951_v20, 0.0 }
 0x493   :  { %5721 = vpow2.f32 %v2211_v37  ;;  %v2185_v5 = vsub.f32 %v7885_v36, %v2163_v6  ;;  %2246 = vadd.xlane.f32.xlu0 %v2245_v30 }
 0x495   :  { %v7956_v0 = vpop.eup %5717  ;;  %v2213_v28 = vmul.f32 1.442695, %v2185_v5 }
 0x496   :  { %v2166_v62 = vpop.xlane.xlu1 %2165  ;;  %v2248_v49 = vsel %vm2124_vm2, %v7956_v0, 0.0 }
 0x497   :  { %5723 = vpow2.f32 %v2213_v28  ;;  %v2186_v9 = vsub.f32 %v7889_v40, %v2166_v62  ;;  %2249 = vadd.xlane.f32.xlu1 %v2248_v49  ;;  %v7990_v49 = vld [vmem:[%s9408_s25 + $0x8] sm:$0xff] }
 0x499   :  { %v7961_v41 = vpop.eup %5719  ;;  %v2215_v17 = vmul.f32 1.442695, %v2186_v9  ;;  %v7997_v9 = vld [vmem:[%s9408_s25] sm:$0xff] }
 0x49a   :  { %v2169_v8 = vpop.xlane.xlu0 %2168  ;;  %v2251_v59 = vsel %vm2124_vm2, %v7961_v41, 0.0 }
 0x49b   :  { %5725 = vpow2.f32 %v2215_v17  ;;  %v2187_v36 = vsub.f32 %v7893_v15, %v2169_v8  ;;  %2252 = vadd.xlane.f32.xlu0 %v2251_v59  ;;  %v2592_v17 = vld [vmem:[%s9310_s15 + $0x80] sm:$0xff]  ;;  %v2593_v8 = vld [vmem:[%s9310_s15 + $0x88] sm:$0xff] }
 0x49c   :  { %v5575_v59 = vpack.c.bf16 %v2593_v8, %v2592_v17  ;;  %v8036_v17 = vld [vmem:[%s9408_s25 + $0x10] sm:$0xff] }
 0x49d   :  { %v7966_v12 = vpop.eup %5721  ;;  %v2217_v56 = vmul.f32 1.442695, %v2187_v36  ;;  %v2576_v36 = vld [vmem:[%s9310_s15] sm:$0xff] }
 0x49e   :  { %v2172_v57 = vpop.xlane.xlu1 %2171  ;;  %v2254_v23 = vsel %vm2124_vm2, %v7966_v12, 0.0  ;;  %5576 = vmatprep.subr.bf16.mxu0 %v5575_v59 }
 0x49f   :  { %5727 = vpow2.f32 %v2217_v56  ;;  %v2188_v40 = vsub.f32 %v7897_v63, %v2172_v57  ;;  %2255 = vadd.xlane.f32.xlu1 %v2254_v23  ;;  %v2577_v56 = vld [vmem:[%s9310_s15 + $0x8] sm:$0xff]  ;;  %v2594_v57 = vld [vmem:[%s9310_s15 + $0x90] sm:$0xff] }
 0x4a0   :  { %v5577_v23 = vpack.c.bf16 %v2577_v56, %v2576_v36  ;;  %v2580_v36 = vld [vmem:[%s9310_s15 + $0x20] sm:$0xff]  ;;  %v2581_v56 = vld [vmem:[%s9310_s15 + $0x28] sm:$0xff] }
 0x4a1   :  { %v7971_v45 = vpop.eup %5723  ;;  %v2219_v37 = vmul.f32 1.442695, %v2188_v40  ;;  %v2595_v40 = vld [vmem:[%s9310_s15 + $0x98] sm:$0xff] }
 0x4a2   :  { %v2257_v6 = vsel %vm2124_vm2, %v7971_v45, 0.0  ;;  %5578 = vmatpush3.bf16.msra.mxu0 %v5577_v23  ;;  %v8057_v23 = vld [vmem:[%s9408_s25 + $0x18] sm:$0xff] }
 0x4a3   :  { %5729 = vpow2.f32 %v2219_v37  ;;  %2258 = vadd.xlane.f32.xlu0 %v2257_v6  ;;  %v2578_v37 = vld [vmem:[%s9310_s15 + $0x10] sm:$0xff]  ;;  %v2579_v6 = vld [vmem:[%s9310_s15 + $0x18] sm:$0xff] }
 0x4a4   :  { %v5581_v8 = vpack.c.bf16 %v2579_v6, %v2578_v37  ;;  %v5585_v37 = vpack.c.bf16 %v2581_v56, %v2580_v36  ;;  %v2584_v36 = vld [vmem:[%s9310_s15 + $0x40] sm:$0xff]  ;;  %v2585_v56 = vld [vmem:[%s9310_s15 + $0x48] sm:$0xff] }
 0x4a5   :  { %v7975_v15 = vpop.eup %5725 }
 0x4a6   :  { %v2260_v30 = vsel %vm2124_vm2, %v7975_v15, 0.0 }
 0x4a7   :  { %2261 = vadd.xlane.f32.xlu1 %v2260_v30  ;;  %v5579_v30 = vpack.c.bf16 %v2595_v40, %v2594_v57  ;;  %v2598_v57 = vld [vmem:[%s9310_s15 + $0xb0] sm:$0xff]  ;;  %v2599_v40 = vld [vmem:[%s9310_s15 + $0xb8] sm:$0xff] }
 0x4a8   :  { %v5587_v6 = vpack.c.bf16 %v2599_v40, %v2598_v57  ;;  %v2602_v57 = vld [vmem:[%s9310_s15 + $0xd0] sm:$0xff]  ;;  %v2603_v40 = vld [vmem:[%s9310_s15 + $0xd8] sm:$0xff] }
 0x4a9   :  { %v7979_v5 = vpop.eup %5727  ;;  %5580 = vmatprep.subr.bf16.mxu0 %v5579_v30  ;;  %v2582_v30 = vld [vmem:[%s9310_s15 + $0x30] sm:$0xff] }
 0x4aa   :  { %v2263_v63 = vsel %vm2124_vm2, %v7979_v5, 0.0  ;;  %5582 = vmatpush3.bf16.msra.mxu0 %v5581_v8 }
 0x4ab   :  { %2264 = vadd.xlane.f32.xlu0 %v2263_v63  ;;  %v2596_v63 = vld [vmem:[%s9310_s15 + $0xa0] sm:$0xff] }
 0x4ad   :  { %v7983_v28 = vpop.eup %5729 }
 0x4ae   :  { %v2266_v62 = vsel %vm2124_vm2, %v7983_v28, 0.0 }
 0x4af   :  { %2267 = vadd.xlane.f32.xlu1 %v2266_v62  ;;  %v2597_v62 = vld [vmem:[%s9310_s15 + $0xa8] sm:$0xff] }
 0x4b0   :  { %v5583_v59 = vpack.c.bf16 %v2597_v62, %v2596_v63  ;;  %v2583_v63 = vld [vmem:[%s9310_s15 + $0x38] sm:$0xff]  ;;  %v2600_v62 = vld [vmem:[%s9310_s15 + $0xc0] sm:$0xff] }
 0x4b1   :  { %v5589_v8 = vpack.c.bf16 %v2583_v63, %v2582_v30  ;;  %v2587_v30 = vld [vmem:[%s9310_s15 + $0x58] sm:$0xff]  ;;  %v2604_v63 = vld [vmem:[%s9310_s15 + $0xe0] sm:$0xff] }
 0x4b2   :  { %5584 = vmatprep.subr.bf16.mxu0 %v5583_v59  ;;  %v5591_v59 = vpack.c.bf16 %v2601_v35, %v2600_v62  ;;  %v5593_v35 = vpack.c.bf16 %v2585_v56, %v2584_v36  ;;  %v2605_v62 = vld [vmem:[%s9310_s15 + $0xe8] sm:$0xff]  ;;  %v2588_v56 = vld [vmem:[%s9310_s15 + $0x60] sm:$0xff] }
 0x4b3   :  { %5586 = vmatpush3.bf16.msra.mxu0 %v5585_v37  ;;  %v5595_v37 = vpack.c.bf16 %v2603_v40, %v2602_v57  ;;  %v5599_v36 = vpack.c.bf16 %v2605_v62, %v2604_v63  ;;  %v2589_v57 = vld [vmem:[%s9310_s15 + $0x68] sm:$0xff]  ;;  %v2606_v40 = vld [vmem:[%s9310_s15 + $0xf0] sm:$0xff] }
 0x4b4   :  { %5588 = vmatprep.subr.bf16.mxu0 %v5587_v6  ;;  %v2586_v6 = vld [vmem:[%s9310_s15 + $0x50] sm:$0xff] }
 0x4b5   :  { %v8162_v62 = vld [vmem:[%s9408_s25 + $0x30] sm:$0xff] }
 0x4b7   :  { %5590 = vmatpush3.bf16.msra.mxu0 %v5589_v8  ;;  %v8110_v8 = vld [vmem:[%s9408_s25 + $0x20] sm:$0xff] }
 0x4b8   :  { %5592 = vmatprep.subr.bf16.mxu0 %v5591_v59  ;;  %v5597_v59 = vpack.c.bf16 %v2587_v30, %v2586_v6  ;;  %v2590_v6 = vld [vmem:[%s9310_s15 + $0x70] sm:$0xff]  ;;  %v2591_v30 = vld [vmem:[%s9310_s15 + $0x78] sm:$0xff]  ;;  %s5785_s15 = smov 110  }
 0x4b9   :  { %v5605_v63 = vpack.c.bf16 %v2591_v30, %v2590_v6 }
 0x4bb   :  { %5594 = vmatpush3.bf16.msra.mxu0 %v5593_v35  ;;  %v5601_v35 = vpack.c.bf16 %v2589_v57, %v2588_v56 }
 0x4bc   :  { %5596 = vmatprep.subr.bf16.mxu0 %v5595_v37  ;;  %v5603_v37 = vpack.c.bf16 %v2607_v14, %v2606_v40  ;;  %v8143_v14 = vld [vmem:[%s9408_s25 + $0x28] sm:$0xff] }
 0x4bf   :  { %5598 = vmatpush3.bf16.msra.mxu0 %v5597_v59  ;;  %v8175_v59 = vld [vmem:[%s9408_s25 + $0x38] sm:$0xff] }
 0x4c0   :  { %3008 = vrot.lane.b32.xlu1 %v7990_v49, %s5780_s29  ;;  %5600 = vmatprep.subr.bf16.mxu0 %v5599_v36 }
 0x4c1   :  { %3006 = vrot.lane.b32.xlu0 %v7997_v9, %s5780_s29 }
 0x4c3   :  { %5602 = vmatpush3.bf16.msra.mxu0 %v5601_v35 }
 0x4c4   :  { %3070 = vrot.lane.b32.xlu1 %v7997_v9, %s5781_s1  ;;  %5604 = vmatprep.subr.bf16.mxu0 %v5603_v37 }
 0x4c5   :  { %3010 = vrot.lane.b32.xlu0 %v8036_v17, %s5780_s29 }
 0x4c7   :  { %5606 = vmatpush3.bf16.msra.mxu0 %v5605_v63 }
 0x4c8   :  { %3072 = vrot.lane.b32.xlu1 %v7990_v49, %s5781_s1 }
 0x4c9   :  { %3012 = vrot.lane.b32.xlu0 %v8057_v23, %s5780_s29 }
 0x4cc   :  { %3134 = vrot.lane.b32.xlu1 %v7997_v9, %s5782_s10 }
 0x4cd   :  { %3074 = vrot.lane.b32.xlu0 %v8036_v17, %s5781_s1 }
 0x4d0   :  { %3136 = vrot.lane.b32.xlu1 %v7990_v49, %s5782_s10 }
 0x4d1   :  { %3076 = vrot.lane.b32.xlu0 %v8057_v23, %s5781_s1 }
 0x4d4   :  { %3198 = vrot.lane.b32.xlu1 %v7997_v9, %s5783_s2 }
 0x4d5   :  { %3014 = vrot.lane.b32.xlu0 %v8110_v8, %s5780_s29 }
 0x4d8   :  { %3200 = vrot.lane.b32.xlu1 %v7990_v49, %s5783_s2 }
 0x4d9   :  { %3262 = vrot.lane.b32.xlu0 %v7997_v9, %s5784_s9 }
 0x4dc   :  { %3138 = vrot.lane.b32.xlu1 %v8036_v17, %s5782_s10 }
 0x4dd   :  { %3140 = vrot.lane.b32.xlu0 %v8057_v23, %s5782_s10 }
 0x4e0   :  { %3016 = vrot.lane.b32.xlu1 %v8143_v14, %s5780_s29 }
 0x4e1   :  { %3078 = vrot.lane.b32.xlu0 %v8110_v8, %s5781_s1 }
 0x4e4   :  { %3264 = vrot.lane.b32.xlu1 %v7990_v49, %s5784_s9 }
 0x4e5   :  { %3326 = vrot.lane.b32.xlu0 %v7997_v9, %s5785_s15 }
 0x4e8   :  { %3202 = vrot.lane.b32.xlu1 %v8036_v17, %s5783_s2 }
 0x4e9   :  { %3204 = vrot.lane.b32.xlu0 %v8057_v23, %s5783_s2 }
 0x4ec   :  { %3080 = vrot.lane.b32.xlu1 %v8143_v14, %s5781_s1 }
 0x4ed   :  { %3018 = vrot.lane.b32.xlu0 %v8162_v62, %s5780_s29 }
 0x4f0   :  { %3328 = vrot.lane.b32.xlu1 %v7990_v49, %s5785_s15 }
 0x4f1   :  { %3266 = vrot.lane.b32.xlu0 %v8036_v17, %s5784_s9 }
 0x4f4   :  { %3142 = vrot.lane.b32.xlu1 %v8110_v8, %s5782_s10 }
 0x4f5   :  { %3020 = vrot.lane.b32.xlu0 %v8175_v59, %s5780_s29 }
 0x4f8   :  { %3390 = vrot.lane.b32.xlu1 %v7997_v9, %s5786_s14 }
 0x4f9   :  { %3268 = vrot.lane.b32.xlu0 %v8057_v23, %s5784_s9 }
 0x4fc   :  { %3144 = vrot.lane.b32.xlu1 %v8143_v14, %s5782_s10 }
 0x4fd   :  { %3082 = vrot.lane.b32.xlu0 %v8162_v62, %s5781_s1 }
 0x500   :  { %v2223_v36 = vpop.xlane.xlu0 %2222  ;;  %3392 = vrot.lane.b32.xlu1 %v7990_v49, %s5786_s14 }
 0x501   :  { %5731 = vrcp.f32 %v2223_v36  ;;  %3330 = vrot.lane.b32.xlu0 %v8036_v17, %s5785_s15 }
 0x504   :  { %v2226_v56 = vpop.xlane.xlu1 %2225  ;;  %3206 = vrot.lane.b32.xlu1 %v8110_v8, %s5783_s2 }
 0x505   :  { %5733 = vrcp.f32 %v2226_v56  ;;  %3208 = vrot.lane.b32.xlu0 %v8143_v14, %s5783_s2 }
 0x508   :  { %v2229_v57 = vpop.xlane.xlu0 %2228  ;;  %3084 = vrot.lane.b32.xlu1 %v8175_v59, %s5781_s1 }
 0x509   :  { %5735 = vrcp.f32 %v2229_v57  ;;  %v8207_v57 = vld [vmem:[%s9408_s25 + $0x40] sm:$0xff] }
 0x50a   :  { %9633 = vst [vmem:[#allocation46_spill] sm:$0xff] %v8207_v57  ;;  %3022 = vrot.lane.b32.xlu0 %v8207_v57, %s5780_s29 }
 0x50b   :  { %v5732_v40 = vpop.eup %5731 }
 0x50c   :  { %v2285_v35 = vmul.f32 %v5732_v40, %v7911_v32  ;;  %v2232_v37 = vpop.xlane.xlu1 %2231  ;;  %3332 = vrot.lane.b32.xlu1 %v8057_v23, %s5785_s15 }
 0x50d   :  { %5737 = vrcp.f32 %v2232_v37 }
 0x50e   :  { %4801 = vmatmul.mubr.msk.f32.vlgmr.msra.gmra.mrb[136].mxu1 %vm2124_vm2, %v2285_v35  ;;  %3270 = vrot.lane.b32.xlu0 %v8110_v8, %s5784_s9 }
 0x50f   :  { %v5734_v6 = vpop.eup %5733  ;;  %2453 = vmatprep.mubr.f32.mxu1 %v9632_v2 }
 0x510   :  { %v2235_v30 = vpop.xlane.xlu0 %2234  ;;  %v2286_v63 = vmul.f32 %v5734_v6, %v7916_v10  ;;  %3146 = vrot.lane.b32.xlu1 %v8162_v62, %s5782_s10 }
 0x511   :  { %5739 = vrcp.f32 %v2235_v30  ;;  %v8226_v30 = vld [vmem:[%s9408_s25 + $0x48] sm:$0xff] }
 0x512   :  { %4802 = vmatmul.mubr.msk.f32.gmra.mrb[138].mxu1 %vm2124_vm2, %v2286_v63  ;;  %9634 = vst [vmem:[#allocation86_spill] sm:$0xff] %v8226_v30  ;;  %3024 = vrot.lane.b32.xlu0 %v8226_v30, %s5780_s29 }
 0x513   :  { %v5736_v32 = vpop.eup %5735  ;;  %2459 = vmatprep.mubr.f32.mxu1 %v9632_v2 }
 0x514   :  { %v2238_v36 = vpop.xlane.xlu1 %2237  ;;  %v2287_v56 = vmul.f32 %v5736_v32, %v7921_v52  ;;  %3394 = vrot.lane.b32.xlu1 %v8036_v17, %s5786_s14 }
 0x515   :  { %5741 = vrcp.f32 %v2238_v36 }
 0x516   :  { %4803 = vmatmul.mubr.msk.f32.gmra.mrb[140].mxu1 %vm2124_vm2, %v2287_v56  ;;  %3272 = vrot.lane.b32.xlu0 %v8143_v14, %s5784_s9 }
 0x517   :  { %v5738_v10 = vpop.eup %5737  ;;  %2465 = vmatprep.mubr.f32.mxu1 %v9632_v2 }
 0x518   :  { %v2241_v40 = vpop.xlane.xlu0 %2240  ;;  %v2288_v52 = vmul.f32 %v5738_v10, %v7926_v48  ;;  %3148 = vrot.lane.b32.xlu1 %v8175_v59, %s5782_s10 }
 0x519   :  { %5743 = vrcp.f32 %v2241_v40 }
 0x51a   :  { %4804 = vmatmul.mubr.msk.f32.gmra.mrb[142].mxu1 %vm2124_vm2, %v2288_v52  ;;  %3086 = vrot.lane.b32.xlu0 %v8207_v57, %s5781_s1 }
 0x51b   :  { %v5740_v35 = vpop.eup %5739  ;;  %2471 = vmatprep.mubr.f32.mxu1 %v9632_v2 }
 0x51c   :  { %v2244_v37 = vpop.xlane.xlu1 %2243  ;;  %v2289_v6 = vmul.f32 %v5740_v35, %v7931_v43  ;;  %3396 = vrot.lane.b32.xlu1 %v8057_v23, %s5786_s14 }
 0x51d   :  { %5745 = vrcp.f32 %v2244_v37 }
 0x51e   :  { %4805 = vmatmul.mubr.msk.f32.gmra.mrb[144].mxu1 %vm2124_vm2, %v2289_v6  ;;  %3334 = vrot.lane.b32.xlu0 %v8110_v8, %s5785_s15 }
 0x51f   :  { %v5742_v48 = vpop.eup %5741  ;;  %2477 = vmatprep.mubr.f32.mxu1 %v9632_v2 }
 0x520   :  { %v2247_v63 = vpop.xlane.xlu0 %2246  ;;  %v2290_v43 = vmul.f32 %v5742_v48, %v7936_v16  ;;  %3210 = vrot.lane.b32.xlu1 %v8162_v62, %s5783_s2  ;;  %v8266_v48 = vld [vmem:[%s9408_s25 + $0x50] sm:$0xff] }
 0x521   :  { %5747 = vrcp.f32 %v2247_v63  ;;  %9635 = vst [vmem:[#allocation4_spill] sm:$0xff] %v8266_v48 }
 0x522   :  { %4806 = vmatmul.mubr.msk.f32.gmra.mrb[146].mxu1 %vm2124_vm2, %v2290_v43  ;;  %3212 = vrot.lane.b32.xlu0 %v8175_v59, %s5783_s2 }
 0x523   :  { %v5744_v32 = vpop.eup %5743  ;;  %2483 = vmatprep.mubr.f32.mxu1 %v9632_v2 }
 0x524   :  { %v2250_v36 = vpop.xlane.xlu1 %2249  ;;  %v2291_v56 = vmul.f32 %v5744_v32, %v7941_v51  ;;  %3088 = vrot.lane.b32.xlu1 %v8226_v30, %s5781_s1 }
 0x525   :  { %5749 = vrcp.f32 %v2250_v36 }
 0x526   :  { %4807 = vmatmul.mubr.msk.f32.gmra.mrb[148].mxu1 %vm2124_vm2, %v2291_v56  ;;  %3026 = vrot.lane.b32.xlu0 %v8266_v48, %s5780_s29  ;;  %v8285_v56 = vld [vmem:[%s9408_s25 + $0x58] sm:$0xff] }
 0x527   :  { %v5746_v16 = vpop.eup %5745  ;;  %2489 = vmatprep.mubr.f32.mxu1 %v9632_v2  ;;  %9636 = vst [vmem:[#allocation13_spill] sm:$0xff] %v8285_v56 }
 0x528   :  { %v2253_v10 = vpop.xlane.xlu0 %2252  ;;  %v2292_v40 = vmul.f32 %v5746_v16, %v7946_v58  ;;  %3336 = vrot.lane.b32.xlu1 %v8143_v14, %s5785_s15 }
 0x529   :  { %5751 = vrcp.f32 %v2253_v10 }
 0x52a   :  { %4808 = vmatmul.mubr.msk.f32.gmra.mrb[150].mxu1 %vm2124_vm2, %v2292_v40  ;;  %3274 = vrot.lane.b32.xlu0 %v8162_v62, %s5784_s9 }
 0x52b   :  { %v5748_v51 = vpop.eup %5747  ;;  %2495 = vmatprep.mubr.f32.mxu1 %v9632_v2 }
 0x52c   :  { %v2256_v52 = vpop.xlane.xlu1 %2255  ;;  %v2293_v35 = vmul.f32 %v5748_v51, %v7951_v20  ;;  %3150 = vrot.lane.b32.xlu1 %v8207_v57, %s5782_s10 }
 0x52d   :  { %5753 = vrcp.f32 %v2256_v52 }
 0x52e   :  { %4809 = vmatmul.mubr.msk.f32.gmra.mrb[152].mxu1 %vm2124_vm2, %v2293_v35  ;;  %3028 = vrot.lane.b32.xlu0 %v8285_v56, %s5780_s29  ;;  %v8374_v35 = vld [vmem:[%s9408_s25 + $0x78] sm:$0xff] }
 0x52f   :  { %v5750_v58 = vpop.eup %5749  ;;  %2501 = vmatprep.mubr.f32.mxu1 %v9632_v2  ;;  %9640 = vst [vmem:[#allocation5_spill] sm:$0xff] %v8374_v35 }
 0x530   :  { %v2259_v37 = vpop.xlane.xlu0 %2258  ;;  %v2294_v6 = vmul.f32 %v5750_v58, %v7956_v0  ;;  %3398 = vrot.lane.b32.xlu1 %v8110_v8, %s5786_s14 }
 0x531   :  { %5755 = vrcp.f32 %v2259_v37 }
 0x532   :  { %4810 = vmatmul.mubr.msk.f32.gmra.mrb[154].mxu1 %vm2124_vm2, %v2294_v6  ;;  %3276 = vrot.lane.b32.xlu0 %v8175_v59, %s5784_s9 }
 0x533   :  { %v5752_v20 = vpop.eup %5751  ;;  %2507 = vmatprep.mubr.f32.mxu1 %v9632_v2 }
 0x534   :  { %v2262_v63 = vpop.xlane.xlu1 %2261  ;;  %v2295_v0 = vmul.f32 %v5752_v20, %v7961_v41  ;;  %3152 = vrot.lane.b32.xlu1 %v8226_v30, %s5782_s10 }
 0x535   :  { %5757 = vrcp.f32 %v2262_v63 }
 0x536   :  { %4811 = vmatmul.mubr.msk.f32.gmra.mrb[156].mxu1 %vm2124_vm2, %v2295_v0  ;;  %3090 = vrot.lane.b32.xlu0 %v8266_v48, %s5781_s1 }
 0x537   :  { %v5754_v43 = vpop.eup %5753  ;;  %2513 = vmatprep.mubr.f32.mxu1 %v9632_v2 }
 0x538   :  { %v2265_v32 = vpop.xlane.xlu0 %2264  ;;  %v2296_v36 = vmul.f32 %v5754_v43, %v7966_v12  ;;  %3400 = vrot.lane.b32.xlu1 %v8143_v14, %s5786_s14 }
 0x539   :  { %5759 = vrcp.f32 %v2265_v32 }
 0x53a   :  { %4812 = vmatmul.mubr.msk.f32.gmra.mrb[158].mxu1 %vm2124_vm2, %v2296_v36  ;;  %3338 = vrot.lane.b32.xlu0 %v8162_v62, %s5785_s15 }
 0x53b   :  { %v5756_v41 = vpop.eup %5755  ;;  %2519 = vmatprep.mubr.f32.mxu1 %v9632_v2 }
 0x53c   :  { %v2268_v16 = vpop.xlane.xlu1 %2267  ;;  %v2297_v12 = vmul.f32 %v5756_v41, %v7971_v45  ;;  %3214 = vrot.lane.b32.xlu1 %v8207_v57, %s5783_s2  ;;  %v3007_v0 = vpop.permute.xlu0 %3006 }
 0x53d   :  { %5761 = vrcp.f32 %v2268_v16 }
 0x53e   :  { %4813 = vmatmul.mubr.msk.f32.gmra.mrb[160].mxu1 %vm2124_vm2, %v2297_v12  ;;  %3216 = vrot.lane.b32.xlu0 %v8226_v30, %s5783_s2 }
 0x53f   :  { %v5758_v10 = vpop.eup %5757  ;;  %2525 = vmatprep.mubr.f32.mxu1 %v9632_v2 }
 0x540   :  { %v2298_v40 = vmul.f32 %v5758_v10, %v7975_v15  ;;  %3092 = vrot.lane.b32.xlu1 %v8285_v56, %s5781_s1  ;;  %v3009_v58 = vpop.permute.xlu1 %3008  ;;  %v8414_v32 = vpop.permute.xlu0 %3010 }
 0x542   :  { %4814 = vmatmul.mubr.msk.f32.gmra.mrb[162].mxu1 %vm2124_vm2, %v2298_v40 }
 0x543   :  { %v5760_v45 = vpop.eup %5759  ;;  %2531 = vmatprep.mubr.f32.mxu1 %v9632_v2 }
 0x544   :  { %v2299_v51 = vmul.f32 %v5760_v45, %v7979_v5  ;;  %v8323_v5 = vld [vmem:[%s9408_s25 + $0x60] sm:$0xff]  ;;  %3340 = vrot.lane.b32.xlu1 %v8175_v59, %s5785_s15  ;;  %v3071_v37 = vpop.permute.xlu1 %3070  ;;  %v8420_v41 = vpop.permute.xlu0 %3012 }
 0x545   :  { %9637 = vst [vmem:[#allocation47_spill] sm:$0xff] %v8323_v5  ;;  %3030 = vrot.lane.b32.xlu0 %v8323_v5, %s5780_s29  ;;  %v3455_v45 = vld [vmem:[%s9311_s19] sm:$0xff] }
 0x546   :  { %4815 = vmatmul.mubr.msk.f32.gmra.mrb[164].mxu1 %vm2124_vm2, %v2299_v51  ;;  %v3456_v51 = vld [vmem:[%s9311_s19 + $0x8] sm:$0xff] }
 0x547   :  { %v5762_v52 = vpop.eup %5761  ;;  %2537 = vmatprep.mubr.f32.mxu1 %v9632_v2  ;;  %v8336_v2 = vld [vmem:[%s9408_s25 + $0x68] sm:$0xff] }
 0x548   :  { %v2300_v15 = vmul.f32 %v5762_v52, %v7983_v28  ;;  %3154 = vrot.lane.b32.xlu1 %v8266_v48, %s5782_s10  ;;  %9638 = vst [vmem:[#allocation68_spill] sm:$0xff] %v8336_v2  ;;  %v8361_v28 = vld [vmem:[%s9408_s25 + $0x70] sm:$0xff]  ;;  %v3073_v6 = vpop.permute.xlu1 %3072  ;;  %v3075_v12 = vpop.permute.xlu0 %3074 }
 0x549   :  { %3278 = vrot.lane.b32.xlu0 %v8207_v57, %s5784_s9  ;;  %9639 = vst [vmem:[#allocation69_spill] sm:$0xff] %v8361_v28 }
 0x54a   :  { %4816 = vmatmul.mubr.msk.f32.gmra.mrb[166].mxu1 %vm2124_vm2, %v2300_v15  ;;  %v8444_v15 = vpack.c.bf16 %v3456_v51, %v3455_v45  ;;  %v3054_v45 = vmax.f32 %v7997_v9, %v3007_v0 }
 0x54c   :  { %3402 = vrot.lane.b32.xlu1 %v8162_v62, %s5786_s14  ;;  %v8404_v20 = vpop.permute.xlu1 %3134  ;;  %v8432_v40 = vpop.permute.xlu0 %3076  ;;  %5616 = vmatprep.subr.bf16.mxu0 %v8444_v15 }
 0x54d   :  { %3032 = vrot.lane.b32.xlu0 %v8336_v2, %s5780_s29 }
 0x550   :  { %3156 = vrot.lane.b32.xlu1 %v8285_v56, %s5782_s10  ;;  %v3137_v63 = vpop.permute.xlu1 %3136 }
 0x551   :  { %3280 = vrot.lane.b32.xlu0 %v8226_v30, %s5784_s9 }
 0x554   :  { %3404 = vrot.lane.b32.xlu1 %v8175_v59, %s5786_s14  ;;  %v3199_v43 = vpop.permute.xlu1 %3198 }
 0x555   :  { %3094 = vrot.lane.b32.xlu0 %v8323_v5, %s5781_s1 }
 0x558   :  { %3218 = vrot.lane.b32.xlu1 %v8266_v48, %s5783_s2  ;;  %v3201_v36 = vpop.permute.xlu1 %3200 }
 0x559   :  { %3342 = vrot.lane.b32.xlu0 %v8207_v57, %s5785_s15 }
 0x55c   :  { %3096 = vrot.lane.b32.xlu1 %v8336_v2, %s5781_s1  ;;  %v8426_v16 = vpop.permute.xlu1 %3138 }
 0x55d   :  { %3220 = vrot.lane.b32.xlu0 %v8285_v56, %s5783_s2 }
 0x560   :  { %3344 = vrot.lane.b32.xlu1 %v8226_v30, %s5785_s15  ;;  %v3017_v10 = vpop.permute.xlu1 %3016 }
 0x561   :  { %3034 = vrot.lane.b32.xlu0 %v8361_v28, %s5780_s29 }
 0x564   :  { %3158 = vrot.lane.b32.xlu1 %v8323_v5, %s5782_s10  ;;  %v3265_v52 = vpop.permute.xlu1 %3264 }
 0x565   :  { %3282 = vrot.lane.b32.xlu0 %v8266_v48, %s5784_s9 }
 0x568   :  { %3406 = vrot.lane.b32.xlu1 %v8207_v57, %s5786_s14 }
 0x569   :  { %3036 = vrot.lane.b32.xlu0 %v8374_v35, %s5780_s29 }
 0x56c   :  { %3160 = vrot.lane.b32.xlu1 %v8336_v2, %s5782_s10 }
 0x56d   :  { %3284 = vrot.lane.b32.xlu0 %v8285_v56, %s5784_s9 }
 0x570   :  { %3408 = vrot.lane.b32.xlu1 %v8226_v30, %s5786_s14  ;;  %v3059_v30 = vmax.f32 %v8143_v14, %v3017_v10  ;;  %v3118_v14 = vmax.f32 %v3054_v45, %v3071_v37 }
 0x571   :  { %3098 = vrot.lane.b32.xlu0 %v8361_v28, %s5781_s1 }
 0x572   :  { %v3182_v37 = vmax.f32 %v3118_v14, %v8404_v20 }
 0x574   :  { %3222 = vrot.lane.b32.xlu1 %v8323_v5, %s5783_s2 }
 0x575   :  { %3346 = vrot.lane.b32.xlu0 %v8266_v48, %s5785_s15 }
 0x578   :  { %3100 = vrot.lane.b32.xlu1 %v8374_v35, %s5781_s1 }
 0x579   :  { %3224 = vrot.lane.b32.xlu0 %v8336_v2, %s5783_s2 }
 0x57c   :  { %3348 = vrot.lane.b32.xlu1 %v8285_v56, %s5785_s15 }
 0x57d   :  { %3162 = vrot.lane.b32.xlu0 %v8361_v28, %s5782_s10 }
 0x580   :  { %3286 = vrot.lane.b32.xlu1 %v8323_v5, %s5784_s9 }
 0x581   :  { %3410 = vrot.lane.b32.xlu0 %v8266_v48, %s5786_s14  ;;  %v3055_v48 = vmax.f32 %v7990_v49, %v3009_v58  ;;  %v2754_v49 = vld [vmem:[%s9312_s16 + $0x8] sm:$0xff] }
 0x584   :  { %3164 = vrot.lane.b32.xlu1 %v8374_v35, %s5782_s10 }
 0x585   :  { %3288 = vrot.lane.b32.xlu0 %v8336_v2, %s5784_s9 }
 0x588   :  { %3412 = vrot.lane.b32.xlu1 %v8285_v56, %s5786_s14  ;;  %v3203_v56 = vpop.permute.xlu1 %3202 }
 0x589   :  { %3226 = vrot.lane.b32.xlu0 %v8361_v28, %s5783_s2 }
 0x58c   :  { %3350 = vrot.lane.b32.xlu1 %v8323_v5, %s5785_s15  ;;  %v3081_v51 = vpop.permute.xlu1 %3080 }
 0x58d   :  { %3228 = vrot.lane.b32.xlu0 %v8374_v35, %s5783_s2  ;;  %v8458_v11 = vmax.f32 %v3059_v30, %v3081_v51  ;;  %v2755_v30 = vld [vmem:[%s9312_s16 + $0x10] sm:$0xff]  ;;  %v3246_v51 = vmax.f32 %v3182_v37, %v3199_v43  ;;  %v9641_v37 = vmov 0  }
 0x590   :  { %3352 = vrot.lane.b32.xlu1 %v8336_v2, %s5785_s15  ;;  %v3329_v58 = vpop.permute.xlu1 %3328 }
 0x591   :  { %3290 = vrot.lane.b32.xlu0 %v8361_v28, %s5784_s9 }
 0x594   :  { %3414 = vrot.lane.b32.xlu1 %v8323_v5, %s5786_s14  ;;  %v8446_v5 = vpop.permute.xlu0 %3014  ;;  %v8477_v45 = vpop.permute.xlu1 %3142 }
 0x595   :  { %3292 = vrot.lane.b32.xlu0 %v8374_v35, %s5784_s9 }
 0x598   :  { %3416 = vrot.lane.b32.xlu1 %v8336_v2, %s5786_s14  ;;  %v3263_v42 = vpop.permute.xlu0 %3262  ;;  %v3119_v2 = vmax.f32 %v3055_v48, %v3073_v6  ;;  %v2756_v48 = vld [vmem:[%s9312_s16 + $0x18] sm:$0xff]  ;;  %v5788_v6 = vmov 1  }
 0x599   :  { %3354 = vrot.lane.b32.xlu0 %v8361_v28, %s5785_s15  ;;  %v3310_v57 = vmax.f32 %v3246_v51, %v3263_v42  ;;  %v3057_v42 = vmax.f32 %v8057_v23, %v8420_v41 }
 0x59a   :  { %v3183_v9 = vmax.f32 %v3119_v2, %v3137_v63  ;;  %5674 = vset.pattern.permute.xlu0 %v5788_v6 }
 0x59c   :  { %3356 = vrot.lane.b32.xlu1 %v8374_v35, %s5785_s15  ;;  %v3141_v60 = vpop.permute.xlu0 %3140  ;;  %v3247_v2 = vmax.f32 %v3183_v9, %v3201_v36 }
 0x59d   :  { %3418 = vrot.lane.b32.xlu0 %v8361_v28, %s5786_s14  ;;  %v2753_v28 = vld [vmem:[%s9312_s16] sm:$0xff] }
 0x59e   :  { %v5607_v10 = vpack.c.bf16 %v2754_v49, %v2753_v28  ;;  %v5611_v28 = vpack.c.bf16 %v2756_v48, %v2755_v30  ;;  %v3391_v49 = vpop.permute.xlu1 %3390  ;;  %v3311_v31 = vmax.f32 %v3247_v2, %v3265_v52  ;;  %v3056_v30 = vmax.f32 %v8036_v17, %v8414_v32 }
 0x5a0   :  { %3420 = vrot.lane.b32.xlu1 %v8374_v35, %s5786_s14  ;;  %v8467_v0 = vpop.permute.xlu0 %3078  ;;  %5608 = vmatprep.subr.bf16.mxu1 %v5607_v10  ;;  %v3120_v9 = vmax.f32 %v3056_v30, %v3075_v12 }
 0x5a1   :  { %5610 = vmatpush3.bf16.msra.mxu1 %v5607_v10  ;;  %v3375_v10 = vmax.f32 %v3311_v31, %v3329_v58 }
 0x5a2   :  { %5612 = vmatprep.subr.bf16.mxu1 %v5611_v28  ;;  %v8479_v18 = vpop.permute.xlu1 %3144  ;;  %v3184_v31 = vmax.f32 %v3120_v9, %v8426_v16 }
 0x5a4   :  { %v3327_v63 = vpop.permute.xlu0 %3326  ;;  %v3248_v12 = vmax.f32 %v3184_v31, %v3203_v56 }
 0x5a5   :  { %5614 = vmatpush3.bf16.msra.mxu1 %v5611_v28  ;;  %v3374_v20 = vmax.f32 %v3310_v57, %v3327_v63  ;;  %v3121_v57 = vmax.f32 %v3057_v42, %v8432_v40 }
 0x5a6   :  { %v3393_v14 = vpop.permute.xlu1 %3392 }
 0x5a7   :  { %v3439_v48 = vmax.f32 %v3375_v10, %v3393_v14  ;;  %v8485_v43 = vmax.f32 %v3374_v20, %v3391_v49  ;;  %v3185_v2 = vmax.f32 %v3121_v57, %v3141_v60  ;;  %v3058_v60 = vmax.f32 %v8110_v8, %v8446_v5 }
 0x5a8   :  { %v3205_v35 = vpop.permute.xlu0 %3204 }
 0x5a9   :  { %3680 = vperm.xlu1 %5672, %v3439_v48   ;;  %3795 = vperm.xlu0 %5674, %v3439_v48   ;;  %v3249_v16 = vmax.f32 %v3185_v2, %v3205_v35  ;;  %v3122_v57 = vmax.f32 %v3058_v60, %v8467_v0 }
 0x5aa   :  { %v3207_v52 = vpop.permute.xlu1 %3206 }
 0x5ac   :  { %v8481_v13 = vpop.permute.xlu0 %3018 }
 0x5ad   :  { %5673 = vset.pattern.permute.xlu1 %v5788_v6 }
 0x5ae   :  { %v8493_v17 = vpop.permute.xlu1 %3084  ;;  %3791 = vperm.xlu1 %5673, %v8485_v43  }
 0x5b0   :  { %v3267_v36 = vpop.permute.xlu0 %3266 }
 0x5b1   :  { %v3312_v23 = vmax.f32 %v3248_v12, %v3267_v36  ;;  %v5789_v36 = vmov 2  }
 0x5b2   :  { %v3333_v58 = vpop.permute.xlu1 %3332  ;;  %5675 = vset.pattern.permute.xlu1 %v9641_v37 }
 0x5b4   :  { %v8489_v28 = vpop.permute.xlu0 %3020 }
 0x5b6   :  { %v8500_v41 = vpop.permute.xlu1 %3146 }
 0x5b8   :  { %v3269_v32 = vpop.permute.xlu0 %3268 }
 0x5b9   :  { %v3313_v30 = vmax.f32 %v3249_v16, %v3269_v32 }
 0x5ba   :  { %v3395_v10 = vpop.permute.xlu1 %3394 }
 0x5bb   :  { %v3377_v40 = vmax.f32 %v3313_v30, %v3333_v58  ;;  %v3187_v30 = vmax.f32 %v8458_v11, %v8479_v18 }
 0x5bc   :  { %v8498_v63 = vpop.permute.xlu0 %3082 }
 0x5be   :  { %v8505_v56 = vpop.permute.xlu1 %3148 }
 0x5c0   :  { %v3331_v51 = vpop.permute.xlu0 %3330 }
 0x5c1   :  { %v3376_v49 = vmax.f32 %v3312_v23, %v3331_v51  ;;  %v3186_v23 = vmax.f32 %v3122_v57, %v8477_v45 }
 0x5c2   :  { %v3397_v35 = vpop.permute.xlu1 %3396 }
 0x5c3   :  { %v8502_v20 = vmax.f32 %v3376_v49, %v3395_v10  ;;  %v8513_v42 = vmax.f32 %v3377_v40, %v3397_v35  ;;  %v3250_v10 = vmax.f32 %v3186_v23, %v3207_v52 }
 0x5c4   :  { %v3209_v14 = vpop.permute.xlu0 %3208 }
 0x5c5   :  { %3685 = vperm.xlu1 %5675, %v8502_v20   ;;  %3803 = vperm.xlu0 %5674, %v8513_v42   ;;  %v3251_v57 = vmax.f32 %v3187_v30, %v3209_v14 }
 0x5c6   :  { %v8517_v32 = vpop.permute.xlu1 %3210 }
 0x5c8   :  { %v8507_v9 = vpop.permute.xlu0 %3022 }
 0x5c9   :  { %5676 = vset.pattern.permute.xlu1 %v5789_v36 }
 0x5ca   :  { %3892 = vperm.xlu1 %5676, %v8485_v43   ;;  %v8524_v16 = vpop.permute.xlu1 %3088 }
 0x5cc   :  { %v3271_v31 = vpop.permute.xlu0 %3270 }
 0x5ce   :  { %3896 = vperm.xlu1 %5676, %v3439_v48  }
 0x5d0   :  { %v8520_v5 = vpop.permute.xlu0 %3024 }
 0x5d2   :  { %5677 = vset.pattern.permute.xlu1 %v5788_v6 }
 0x5d3   :  { %3799 = vperm.xlu1 %5677, %v8502_v20  }
 0x5d7   :  { %5678 = vset.pattern.permute.xlu1 %v9641_v37 }
 0x5e1   :  { %v2449_v12 = vpop.f32.mrb[136].mxu1 }
 0x5e2   :  { %v2544_v58 = vmul.f32 %v2449_v12, %v7553_v22  ;;  %v2451_v8 = vpop.f32.mrb[137].mxu1  ;;  %v3273_v22 = vpop.permute.xlu0 %3272 }
 0x5e3   :  { %v2545_v2 = vmul.f32 %v2451_v8, %v7559_v39  ;;  %v3337_v39 = vpop.permute.xlu1 %3336  ;;  %v3315_v23 = vmax.f32 %v3251_v57, %v3273_v22 }
 0x5e5   :  { %v2455_v0 = vpop.f32.mrb[138].mxu1  ;;  %2672 = vmatprep.mubr.f32.mxu0 %v2545_v2 }
 0x5e6   :  { %v2546_v48 = vmul.f32 %v2455_v0, %v7567_v1  ;;  %v2457_v51 = vpop.f32.mrb[139].mxu1  ;;  %2673 = vmatmul.mubr.f32.vlgmr.msra.gmra.mrb[136].mxu0 %v2544_v58  ;;  %v8535_v1 = vpop.permute.xlu0 %3086 }
 0x5e7   :  { %v2547_v49 = vmul.f32 %v2457_v51, %v7573_v33  ;;  %5618 = vmatpush3.bf16.msra.mxu0 %v8444_v15  ;;  %v3314_v33 = vmax.f32 %v3250_v10, %v3271_v31  ;;  %v8538_v52 = vpop.permute.xlu1 %3150  ;;  %v3379_v51 = vmax.f32 %v3315_v23, %v3337_v39 }
 0x5e9   :  { %v2461_v45 = vpop.f32.mrb[140].mxu1  ;;  %2677 = vmatprep.mubr.f32.mxu0 %v2547_v49 }
 0x5ea   :  { %v2548_v40 = vmul.f32 %v2461_v45, %v7582_v54  ;;  %v2463_v60 = vpop.f32.mrb[141].mxu1  ;;  %2678 = vmatmul.mubr.f32.gmra.mrb[138].mxu0 %v2546_v48  ;;  %v3335_v18 = vpop.permute.xlu0 %3334  ;;  %v3060_v45 = vmax.f32 %v8162_v62, %v8481_v13 }
 0x5eb   :  { %v2549_v35 = vmul.f32 %v2463_v60, %v7589_v4  ;;  %v3378_v54 = vmax.f32 %v3314_v33, %v3335_v18  ;;  %v3399_v8 = vpop.permute.xlu1 %3398 }
 0x5ed   :  { %v2467_v15 = vpop.f32.mrb[142].mxu1  ;;  %2682 = vmatprep.mubr.f32.mxu0 %v2549_v35  ;;  %v8542_v0 = vmax.f32 %v3378_v54, %v3399_v8 }
 0x5ee   :  { %v2550_v12 = vmul.f32 %v2467_v15, %v7598_v53  ;;  %v2469_v58 = vpop.f32.mrb[143].mxu1  ;;  %2683 = vmatmul.mubr.f32.gmra.mrb[140].mxu0 %v2548_v40  ;;  %v8545_v48 = vpop.permute.xlu0 %3212 }
 0x5ef   :  { %v2551_v11 = vmul.f32 %v2469_v58, %v7605_v55  ;;  %3695 = vperm.xlu1 %5678, %v8542_v0   ;;  %v8549_v14 = vpop.permute.xlu1 %3152 }
 0x5f1   :  { %v2473_v2 = vpop.f32.mrb[144].mxu1  ;;  %2687 = vmatprep.mubr.f32.mxu0 %v2551_v11 }
 0x5f2   :  { %v2552_v4 = vmul.f32 %v2473_v2, %v7614_v24  ;;  %v2475_v31 = vpop.f32.mrb[145].mxu1  ;;  %2688 = vmatmul.mubr.f32.gmra.mrb[142].mxu0 %v2550_v12  ;;  %v8552_v10 = vpop.permute.xlu0 %3026 }
 0x5f3   :  { %v2553_v53 = vmul.f32 %v2475_v31, %v7621_v38  ;;  %5679 = vset.pattern.permute.xlu1 %v5789_v36  ;;  %v3401_v38 = vpop.permute.xlu1 %3400 }
 0x5f4   :  { %3900 = vperm.xlu1 %5679, %v8502_v20   ;;  %v8559_v40 = vmax.f32 %v3379_v51, %v3401_v38  ;;  %v3061_v20 = vmax.f32 %v8175_v59, %v8489_v28 }
 0x5f5   :  { %v2479_v55 = vpop.f32.mrb[146].mxu1  ;;  %2692 = vmatprep.mubr.f32.mxu0 %v2553_v53 }
 0x5f6   :  { %v2554_v49 = vmul.f32 %v2479_v55, %v7630_v61  ;;  %v2481_v22 = vpop.f32.mrb[147].mxu1  ;;  %2693 = vmatmul.mubr.f32.gmra.mrb[144].mxu0 %v2552_v4  ;;  %v3275_v60 = vpop.permute.xlu0 %3274  ;;  %3811 = vperm.xlu0 %5674, %v8559_v40   ;;  %v3125_v58 = vmax.f32 %v3061_v20, %v8493_v17 }
 0x5f7   :  { %v2555_v24 = vmul.f32 %v2481_v22, %v7637_v29  ;;  %v3124_v29 = vmax.f32 %v3060_v45, %v8498_v63  ;;  %v8565_v13 = vpop.permute.xlu1 %3214 }
 0x5f8   :  { %3904 = vperm.xlu1 %5679, %v8513_v42   ;;  %v3189_v54 = vmax.f32 %v3125_v58, %v8505_v56 }
 0x5f9   :  { %v2485_v30 = vpop.f32.mrb[148].mxu1  ;;  %2697 = vmatprep.mubr.f32.mxu0 %v2555_v24  ;;  %v3188_v63 = vmax.f32 %v3124_v29, %v8500_v41 }
 0x5fa   :  { %v2556_v61 = vmul.f32 %v2485_v30, %v7646_v19  ;;  %v2487_v39 = vpop.f32.mrb[149].mxu1  ;;  %2698 = vmatmul.mubr.f32.gmra.mrb[146].mxu0 %v2554_v49  ;;  %v8571_v15 = vpop.permute.xlu0 %3028 }
 0x5fb   :  { %v2557_v35 = vmul.f32 %v2487_v39, %v7653_v26  ;;  %v8575_v57 = vpop.permute.xlu1 %3092 }
 0x5fc   :  { %5680 = vset.pattern.permute.xlu1 %v5788_v6 }
 0x5fd   :  { %v2491_v62 = vpop.f32.mrb[150].mxu1  ;;  %2702 = vmatprep.mubr.f32.mxu0 %v2557_v35  ;;  %3807 = vperm.xlu1 %5680, %v8542_v0  }
 0x5fe   :  { %v2558_v19 = vmul.f32 %v2491_v62, %v7662_v50  ;;  %v2493_v33 = vpop.f32.mrb[151].mxu1  ;;  %2703 = vmatmul.mubr.f32.gmra.mrb[148].mxu0 %v2556_v61  ;;  %v3277_v28 = vpop.permute.xlu0 %3276  ;;  %v9642_v61 = vld [vmem:[#allocation2_spill] sm:$0xff] }
 0x5ff   :  { %v2559_v26 = vmul.f32 %v2493_v33, %v7669_v44  ;;  %v3252_v44 = vmax.f32 %v3188_v63, %v8517_v32  ;;  %v3341_v41 = vpop.permute.xlu1 %3340  ;;  %v3253_v32 = vmax.f32 %v3189_v54, %v8545_v48  ;;  %v9644_v62 = vld [vmem:[#allocation46_spill] sm:$0xff]  ;;  %v9648_v54 = vld [vmem:[#allocation84_spill] sm:$0xff] }
 0x600   :  { %v3062_v20 = vmax.f32 %v9644_v62, %v8507_v9  ;;  %v133_v62 = vld [vmem:[%s9313_s3 + $0x40] sm:$0xff] }
 0x601   :  { %v2497_v12 = vpop.f32.mrb[152].mxu1  ;;  %2707 = vmatprep.mubr.f32.mxu0 %v2559_v26  ;;  %5681 = vset.pattern.permute.xlu1 %v9641_v37  ;;  %v3316_v23 = vmax.f32 %v3252_v44, %v3275_v60  ;;  %v3317_v22 = vmax.f32 %v3253_v32, %v3277_v28  ;;  %v9645_v26 = vld [vmem:[#allocation45_spill] sm:$0xff] }
 0x602   :  { %v2560_v50 = vmul.f32 %v2497_v12, %v7678_v46  ;;  %v2499_v59 = vpop.f32.mrb[153].mxu1  ;;  %2708 = vmatmul.mubr.f32.gmra.mrb[150].mxu0 %v2558_v19  ;;  %v8586_v2 = vpop.permute.xlu0 %3090  ;;  %v3126_v28 = vmax.f32 %v3062_v20, %v8535_v1  ;;  %v134_v20 = vld [vmem:[%s9313_s3 + $0x48] sm:$0xff] }
 0x603   :  { %v2561_v18 = vmul.f32 %v2499_v59, %v7685_v7  ;;  %v8589_v4 = vpop.permute.xlu1 %3154  ;;  %v3381_v30 = vmax.f32 %v3317_v22, %v3341_v41 }
 0x605   :  { %v2503_v11 = vpop.f32.mrb[154].mxu1  ;;  %2712 = vmatprep.mubr.f32.mxu0 %v2561_v18  ;;  %v9647_v18 = vld [vmem:[#allocation67_spill] sm:$0xff] }
 0x606   :  { %v2562_v17 = vmul.f32 %v2503_v11, %v7693_v47  ;;  %v2505_v8 = vpop.f32.mrb[155].mxu1  ;;  %2713 = vmatmul.mubr.f32.gmra.mrb[152].mxu0 %v2560_v50  ;;  %v3339_v53 = vpop.permute.xlu0 %3338  ;;  %v9646_v50 = vld [vmem:[#allocation66_spill] sm:$0xff] }
 0x607   :  { %v2563_v46 = vmul.f32 %v2505_v8, %v7699_v34  ;;  %v3380_v55 = vmax.f32 %v3316_v23, %v3339_v53  ;;  %v3403_v51 = vpop.permute.xlu1 %3402  ;;  %v3190_v8 = vmax.f32 %v3126_v28, %v8538_v52  ;;  %v9649_v23 = vld [vmem:[#allocation3_spill] sm:$0xff]  ;;  %v125_v52 = vld [vmem:[%s9313_s3] sm:$0xff] }
 0x609   :  { %v2509_v7 = vpop.f32.mrb[156].mxu1  ;;  %2717 = vmatprep.mubr.f32.mxu0 %v2563_v46  ;;  %v8594_v34 = vmax.f32 %v3380_v55, %v3403_v51 }
 0x60a   :  { %v2564_v31 = vmul.f32 %v2509_v7, %v7707_v3  ;;  %v2511_v56 = vpop.f32.mrb[157].mxu1  ;;  %2718 = vmatmul.mubr.f32.gmra.mrb[154].mxu0 %v2562_v17  ;;  %v8597_v38 = vpop.permute.xlu0 %3216 }
 0x60b   :  { %v2565_v47 = vmul.f32 %v2511_v56, %v7713_v25  ;;  %3705 = vperm.xlu1 %5681, %v8594_v34   ;;  %v8601_v48 = vpop.permute.xlu1 %3156  ;;  %v9650_v56 = vld [vmem:[#allocation12_spill] sm:$0xff] }
 0x60d   :  { %v2515_v49 = vpop.f32.mrb[158].mxu1  ;;  %2722 = vmatprep.mubr.f32.mxu0 %v2565_v47  ;;  %v3254_v47 = vmax.f32 %v3190_v8, %v8565_v13  ;;  %v127_v13 = vld [vmem:[%s9313_s3 + $0x10] sm:$0xff]  ;;  %v9653_v8 = vld [vmem:[#allocation13_spill] sm:$0xff] }
 0x60e   :  { %v2566_v24 = vmul.f32 %v2515_v49, %v7721_v27  ;;  %v2517_v45 = vpop.f32.mrb[159].mxu1  ;;  %2723 = vmatmul.mubr.f32.gmra.mrb[156].mxu0 %v2564_v31  ;;  %v8604_v35 = vpop.permute.xlu0 %3030  ;;  %v9643_v27 = vld [vmem:[#allocation9_spill] sm:$0xff]  ;;  %v126_v49 = vld [vmem:[%s9313_s3 + $0x8] sm:$0xff] }
 0x60f   :  { %v2567_v3 = vmul.f32 %v2517_v45, %v7727_v21  ;;  %5682 = vset.pattern.permute.xlu1 %v5789_v36  ;;  %v3405_v21 = vpop.permute.xlu1 %3404 }
 0x610   :  { %3908 = vperm.xlu1 %5682, %v8542_v0   ;;  %v8611_v33 = vmax.f32 %v3381_v30, %v3405_v21  ;;  %v129_v30 = vld [vmem:[%s9313_s3 + $0x20] sm:$0xff] }
 0x611   :  { %v2521_v25 = vpop.f32.mrb[160].mxu1  ;;  %2727 = vmatprep.mubr.f32.mxu0 %v2567_v3  ;;  %v128_v3 = vld [vmem:[%s9313_s3 + $0x18] sm:$0xff] }
 0x612   :  { %v2568_v39 = vmul.f32 %v2521_v25, %v9642_v61  ;;  %v2523_v60 = vpop.f32.mrb[161].mxu1  ;;  %2728 = vmatmul.mubr.f32.gmra.mrb[158].mxu0 %v2566_v24  ;;  %v3279_v58 = vpop.permute.xlu0 %3278  ;;  %3819 = vperm.xlu0 %5674, %v8611_v33  }
 0x613   :  { %v2569_v29 = vmul.f32 %v2523_v60, %v9643_v27  ;;  %v8617_v9 = vpop.permute.xlu1 %3218  ;;  %v3318_v22 = vmax.f32 %v3254_v47, %v3279_v58  ;;  %v130_v60 = vld [vmem:[%s9313_s3 + $0x28] sm:$0xff]  ;;  %v131_v27 = vld [vmem:[%s9313_s3 + $0x30] sm:$0xff] }
 0x614   :  { %3912 = vperm.xlu1 %5682, %v8559_v40  }
 0x615   :  { %v2527_v19 = vpop.f32.mrb[162].mxu1  ;;  %2732 = vmatprep.mubr.f32.mxu0 %v2569_v29  ;;  %v132_v29 = vld [vmem:[%s9313_s3 + $0x38] sm:$0xff] }
 0x616   :  { %v2570_v63 = vmul.f32 %v2527_v19, %v9645_v26  ;;  %v2529_v12 = vpop.f32.mrb[163].mxu1  ;;  %2733 = vmatmul.mubr.f32.gmra.mrb[160].mxu0 %v2568_v39  ;;  %v8621_v11 = vpop.permute.xlu0 %3032  ;;  %v135_v19 = vld [vmem:[%s9313_s3 + $0x50] sm:$0xff]  ;;  %v136_v26 = vld [vmem:[%s9313_s3 + $0x58] sm:$0xff] }
 0x617   :  { %v2571_v59 = vmul.f32 %v2529_v12, %v9646_v50  ;;  %v8625_v46 = vpop.permute.xlu1 %3096 }
 0x618   :  { %5683 = vset.pattern.permute.xlu1 %v5788_v6 }
 0x619   :  { %v2533_v0 = vpop.f32.mrb[164].mxu1  ;;  %2737 = vmatprep.mubr.f32.mxu0 %v2571_v59  ;;  %3815 = vperm.xlu1 %5683, %v8594_v34  }
 0x61a   :  { %v2572_v44 = vmul.f32 %v2533_v0, %v9647_v18  ;;  %v2535_v41 = vpop.f32.mrb[165].mxu1  ;;  %2738 = vmatmul.mubr.f32.gmra.mrb[162].mxu0 %v2570_v63  ;;  %v8630_v31 = vpop.permute.xlu0 %3280 }
 0x61b   :  { %v2573_v17 = vmul.f32 %v2535_v41, %v9648_v54  ;;  %v3345_v55 = vpop.permute.xlu1 %3344 }
 0x61d   :  { %v2539_v1 = vpop.f32.mrb[166].mxu1  ;;  %2742 = vmatprep.mubr.f32.mxu0 %v2573_v17  ;;  %5684 = vset.pattern.permute.xlu1 %v9641_v37 }
 0x61e   :  { %v2574_v7 = vmul.f32 %v2539_v1, %v9649_v23  ;;  %v2541_v32 = vpop.f32.mrb[167].mxu1  ;;  %2743 = vmatmul.mubr.f32.gmra.mrb[164].mxu0 %v2572_v44  ;;  %v8638_v51 = vpop.permute.xlu0 %3094  ;;  %v3065_v1 = vmax.f32 %v9653_v8, %v8571_v15  ;;  %v138_v15 = vld [vmem:[%s9313_s3 + $0x68] sm:$0xff] }
 0x61f   :  { %v2575_v53 = vmul.f32 %v2541_v32, %v9650_v56  ;;  %v8647_v24 = vpop.permute.xlu1 %3158 }
 0x621   :  { %2747 = vmatprep.mubr.f32.mxu0 %v2575_v53 }
 0x622   :  { %2748 = vmatmul.mubr.f32.gmra.mrb[166].mxu0 %v2574_v7  ;;  %v3343_v45 = vpop.permute.xlu0 %3342  ;;  %v137_v7 = vld [vmem:[%s9313_s3 + $0x60] sm:$0xff] }
 0x623   :  { %5211 = vmatprep.mubr.msk.f32.mxu0 %vm143_vm0, %v125_v52  ;;  %v3382_v25 = vmax.f32 %v3318_v22, %v3343_v45  ;;  %v3407_v61 = vpop.permute.xlu1 %3406  ;;  %v9654_v52 = vld [vmem:[#allocation47_spill] sm:$0xff] }
 0x625   :  { %v3446_v39 = vmax.f32 %v3382_v25, %v3407_v61  ;;  %v9656_v61 = vld [vmem:[#allocation68_spill] sm:$0xff] }
 0x626   :  { %5212 = vmatmul.mubr.msk.f32.vlgmr.msra.gmra.mrb[168].mxu0 %vm143_vm0, %v126_v49 }
 0x627   :  { %5214 = vmatprep.mubr.msk.f32.mxu0 %vm143_vm0, %v127_v13  ;;  %3823 = vperm.xlu0 %5674, %v3446_v39   ;;  %v3161_v41 = vpop.permute.xlu1 %3160  ;;  %v9655_v13 = vld [vmem:[#allocation69_spill] sm:$0xff] }
 0x628   :  { %3715 = vperm.xlu1 %5684, %v3446_v39  }
 0x62a   :  { %5215 = vmatmul.mubr.msk.f32.gmra.mrb[170].mxu0 %vm143_vm0, %v128_v3 }
 0x62b   :  { %5217 = vmatprep.mubr.msk.f32.mxu0 %vm143_vm0, %v129_v30  ;;  %5686 = vset.pattern.permute.xlu0 %v9641_v37  ;;  %v3409_v17 = vpop.permute.xlu1 %3408 }
 0x62c   :  { %3675 = vperm.xlu0 %5686, %v8485_v43   ;;  %5685 = vset.pattern.permute.xlu1 %v5789_v36  ;;  %v3221_v43 = vpop.permute.xlu0 %3220 }
 0x62d   :  { %3916 = vperm.xlu1 %5685, %v8594_v34   ;;  %v9651_v34 = vld [vmem:[#allocation86_spill] sm:$0xff] }
 0x62e   :  { %5218 = vmatmul.mubr.msk.f32.gmra.mrb[172].mxu0 %vm143_vm0, %v130_v60  ;;  %v3063_v21 = vmax.f32 %v9651_v34, %v8520_v5  ;;  %v9652_v5 = vld [vmem:[#allocation4_spill] sm:$0xff] }
 0x62f   :  { %5220 = vmatprep.mubr.msk.f32.mxu0 %vm143_vm0, %v131_v27  ;;  %v3064_v58 = vmax.f32 %v9652_v5, %v8552_v10  ;;  %v3223_v23 = vpop.permute.xlu1 %3222 }
 0x630   :  { %3690 = vperm.xlu0 %5686, %v8513_v42   ;;  %v3035_v42 = vpop.permute.xlu0 %3034 }
 0x631   :  { %3920 = vperm.xlu1 %5685, %v8611_v33   ;;  %v3128_v28 = vmax.f32 %v3064_v58, %v8586_v2  ;;  %v3068_v45 = vmax.f32 %v9655_v13, %v3035_v42 }
 0x632   :  { %5221 = vmatmul.mubr.msk.f32.gmra.mrb[174].mxu0 %vm143_vm0, %v132_v29 }
 0x633   :  { %5223 = vmatprep.mubr.msk.f32.mxu0 %vm143_vm0, %v133_v62  ;;  %v3192_v44 = vmax.f32 %v3128_v28, %v8589_v4  ;;  %v3129_v4 = vmax.f32 %v3065_v1, %v8575_v57 }
 0x634   :  { %3700 = vperm.xlu0 %5686, %v8559_v40   ;;  %v3127_v40 = vmax.f32 %v3063_v21, %v8524_v16 }
 0x635   :  { %5687 = vset.pattern.permute.xlu1 %v5788_v6  ;;  %v3193_v57 = vmax.f32 %v3129_v4, %v8601_v48  ;;  %v3067_v48 = vmax.f32 %v9656_v61, %v8621_v11 }
 0x636   :  { %5224 = vmatmul.mubr.msk.f32.gmra.mrb[176].mxu0 %vm143_vm0, %v134_v20  ;;  %v3191_v63 = vmax.f32 %v3127_v40, %v8549_v14  ;;  %v3256_v14 = vmax.f32 %v3192_v44, %v8617_v9  ;;  %v140_v20 = vld [vmem:[%s9313_s3 + $0x78] sm:$0xff] }
 0x637   :  { %5226 = vmatprep.mubr.msk.f32.mxu0 %vm143_vm0, %v135_v19  ;;  %v3257_v49 = vmax.f32 %v3193_v57, %v3221_v43  ;;  %v9657_v44 = vld [vmem:[#allocation5_spill] sm:$0xff] }
 0x638   :  { %3710 = vperm.xlu0 %5686, %v8611_v33   ;;  %v3283_v33 = vpop.permute.xlu0 %3282  ;;  %v3255_v50 = vmax.f32 %v3191_v63, %v8597_v38 }
 0x639   :  { %v3320_v2 = vmax.f32 %v3256_v14, %v3283_v33 }
 0x63a   :  { %5227 = vmatmul.mubr.msk.f32.gmra.mrb[178].mxu0 %vm143_vm0, %v136_v26  ;;  %v3319_v0 = vmax.f32 %v3255_v50, %v8630_v31  ;;  %v3101_v31 = vpop.permute.xlu1 %3100 }
 0x63b   :  { %5229 = vmatprep.mubr.msk.f32.mxu0 %vm143_vm0, %v137_v7 }
 0x63c   :  { %v8700_v12 = vpop.permute.xlu0 %3036  ;;  %v3383_v16 = vmax.f32 %v3319_v0, %v3345_v55  ;;  %v3066_v55 = vmax.f32 %v9654_v52, %v8604_v35  ;;  %v139_v35 = vld [vmem:[%s9313_s3 + $0x70] sm:$0xff] }
 0x63e   :  { %v8711_v10 = vmax.f32 %v3383_v16, %v3409_v17  ;;  %5230 = vmatmul.mubr.msk.f32.gmra.mrb[180].mxu0 %vm143_vm0, %v138_v15  ;;  %v3349_v47 = vpop.permute.xlu1 %3348  ;;  %v3130_v25 = vmax.f32 %v3066_v55, %v8638_v51  ;;  %v3131_v51 = vmax.f32 %v3067_v48, %v8625_v46 }
 0x63f   :  { %5232 = vmatprep.mubr.msk.f32.mxu0 %vm143_vm0, %v139_v35 }
 0x640   :  { %v3285_v59 = vpop.permute.xlu0 %3284  ;;  %3720 = vperm.xlu0 %5686, %v8711_v10   ;;  %3827 = vperm.xlu1 %5687, %v8711_v10   ;;  %v3194_v29 = vmax.f32 %v3130_v25, %v8647_v24  ;;  %v3195_v19 = vmax.f32 %v3131_v51, %v3161_v41  ;;  %v3069_v41 = vmax.f32 %v9657_v44, %v8700_v12 }
 0x641   :  { %v3321_v30 = vmax.f32 %v3257_v49, %v3285_v59 }
 0x642   :  { %v3287_v3 = vpop.permute.xlu1 %3286  ;;  %5233 = vmatmul.mubr.msk.f32.gmra.mrb[182].mxu0 %vm143_vm0, %v140_v20  ;;  %v3258_v21 = vmax.f32 %v3194_v29, %v3223_v23  ;;  %v3133_v8 = vmax.f32 %v3069_v41, %v3101_v31 }
 0x643   :  { %v3385_v62 = vmax.f32 %v3321_v30, %v3349_v47 }
 0x644   :  { %v3099_v18 = vpop.permute.xlu0 %3098  ;;  %5688 = vset.pattern.permute.xlu1 %v5789_v36  ;;  %v3322_v33 = vmax.f32 %v3258_v21, %v3287_v3 }
 0x645   :  { %3924 = vperm.xlu1 %5688, %v3446_v39   ;;  %v3132_v60 = vmax.f32 %v3068_v45, %v3099_v18 }
 0x646   :  { %v3165_v27 = vpop.permute.xlu1 %3164 }
 0x648   :  { %v3347_v54 = vpop.permute.xlu0 %3346 }
 0x649   :  { %v3384_v32 = vmax.f32 %v3320_v2, %v3347_v54  ;;  %5689 = vset.pattern.permute.xlu1 %v9641_v37  ;;  %v3197_v2 = vmax.f32 %v3133_v8, %v3165_v27 }
 0x64a   :  { %v3413_v34 = vpop.permute.xlu1 %3412 }
 0x64b   :  { %v3449_v24 = vmax.f32 %v3385_v62, %v3413_v34 }
 0x64c   :  { %v3225_v38 = vpop.permute.xlu0 %3224 }
 0x64d   :  { %3730 = vperm.xlu1 %5689, %v3449_v24   ;;  %v3259_v63 = vmax.f32 %v3195_v19, %v3225_v38 }
 0x64e   :  { %v3351_v40 = vpop.permute.xlu1 %3350 }
 0x64f   :  { %v3386_v50 = vmax.f32 %v3322_v33, %v3351_v40 }
 0x650   :  { %v3163_v9 = vpop.permute.xlu0 %3162 }
 0x651   :  { %v3196_v11 = vmax.f32 %v3132_v60, %v3163_v9  ;;  %5690 = vset.pattern.permute.xlu1 %v5788_v6 }
 0x652   :  { %v3353_v58 = vpop.permute.xlu1 %3352 }
 0x654   :  { %v3411_v56 = vpop.permute.xlu0 %3410 }
 0x655   :  { %v3448_v53 = vmax.f32 %v3384_v32, %v3411_v56 }
 0x656   :  { %v3415_v18 = vpop.permute.xlu1 %3414 }
 0x657   :  { %3725 = vperm.xlu0 %5686, %v3448_v53   ;;  %3831 = vperm.xlu1 %5690, %v3448_v53   ;;  %v3450_v16 = vmax.f32 %v3386_v50, %v3415_v18 }
 0x658   :  { %v3289_v22 = vpop.permute.xlu0 %3288 }
 0x659   :  { %v3323_v59 = vmax.f32 %v3259_v63, %v3289_v22 }
 0x65a   :  { %v3417_v1 = vpop.permute.xlu1 %3416 }
 0x65b   :  { %3835 = vperm.xlu1 %5690, %v3449_v24   ;;  %v3387_v54 = vmax.f32 %v3323_v59, %v3353_v58  ;;  %3735 = vperm.xlu0 %5686, %v3450_v16  }
 0x65c   :  { %v3227_v39 = vpop.permute.xlu0 %3226 }
 0x65d   :  { %v3260_v26 = vmax.f32 %v3196_v11, %v3227_v39  ;;  %v3451_v38 = vmax.f32 %v3387_v54, %v3417_v1 }
 0x65e   :  { %v3357_v23 = vpop.permute.xlu1 %3356 }
 0x65f   :  { %5691 = vset.pattern.permute.xlu1 %v5789_v36 }
 0x660   :  { %v3229_v43 = vpop.permute.xlu0 %3228  ;;  %3932 = vperm.xlu1 %5691, %v3448_v53  }
 0x661   :  { %v3261_v12 = vmax.f32 %v3197_v2, %v3229_v43 }
 0x662   :  { %v3421_v9 = vpop.permute.xlu1 %3420 }
 0x664   :  { %v3291_v42 = vpop.permute.xlu0 %3290  ;;  %5692 = vset.pattern.permute.xlu1 %v9641_v37 }
 0x665   :  { %v3324_v46 = vmax.f32 %v3260_v26, %v3291_v42  ;;  %3740 = vperm.xlu1 %5692, %v3451_v38  }
 0x666   :  { %v8754_v32 = vpop.permute.xlu1 %3680 }
 0x668   :  { %v3293_v5 = vpop.permute.xlu0 %3292 }
 0x669   :  { %5693 = vset.pattern.permute.xlu1 %v5788_v6  ;;  %v3325_v4 = vmax.f32 %v3261_v12, %v3293_v5 }
 0x66a   :  { %3839 = vperm.xlu1 %5693, %v3450_v16  }
 0x66b   :  { %v3389_v7 = vmax.f32 %v3325_v4, %v3357_v23 }
 0x66c   :  { %v3355_v28 = vpop.permute.xlu0 %3354 }
 0x66d   :  { %v3388_v0 = vmax.f32 %v3324_v46, %v3355_v28  ;;  %v8752_v15 = vmax.f32 %v3389_v7, %v3421_v9 }
 0x66e   :  { %3843 = vperm.xlu1 %5693, %v3451_v38  }
 0x670   :  { %v3419_v14 = vpop.permute.xlu0 %3418 }
 0x671   :  { %v3452_v17 = vmax.f32 %v3388_v0, %v3419_v14 }
 0x672   :  { %5695 = vset.pattern.permute.xlu1 %v5789_v36 }
 0x673   :  { %3745 = vperm.xlu0 %5686, %v3452_v17   ;;  %3940 = vperm.xlu1 %5695, %v3450_v16  }
 0x674   :  { %v8784_v34 = vpop.permute.xlu0 %3795 }
 0x677   :  { %5694 = vset.pattern.permute.xlu0 %v5789_v36  ;;  %5696 = vset.pattern.permute.xlu1 %v9641_v37 }
 0x678   :  { %3928 = vperm.xlu0 %5694, %v8711_v10   ;;  %3750 = vperm.xlu1 %5696, %v8752_v15   ;;  %v8759_v10 = vpop.permute.xlu1 %3791  ;;  %v3804_v33 = vpop.permute.xlu0 %3803 }
 0x67c   :  { %3936 = vperm.xlu0 %5694, %v3449_v24   ;;  %5697 = vset.pattern.permute.xlu1 %v5788_v6  ;;  %v8762_v31 = vpop.permute.xlu1 %3685  ;;  %v3812_v59 = vpop.permute.xlu0 %3811 }
 0x67d   :  { %3847 = vperm.xlu1 %5697, %v3452_v17  }
 0x680   :  { %3944 = vperm.xlu0 %5694, %v3451_v38   ;;  %v8765_v57 = vpop.permute.xlu1 %3892 }
 0x681   :  { %3851 = vperm.xlu1 %5697, %v8752_v15  }
 0x684   :  { %3948 = vperm.xlu0 %5694, %v3452_v17   ;;  %v8767_v37 = vpop.permute.xlu1 %3896 }
 0x685   :  { %5698 = vset.pattern.permute.xlu1 %v5789_v36 }
 0x688   :  { %v8771_v13 = vpop.permute.xlu1 %3799 }
 0x68c   :  { %v8774_v30 = vpop.permute.xlu1 %3695 }
 0x690   :  { %v8778_v29 = vpop.permute.xlu1 %3900 }
 0x691   :  { %v8796_v54 = vpop.permute.xlu0 %3819 }
 0x694   :  { %v8781_v43 = vpop.permute.xlu1 %3904 }
 0x698   :  { %v8787_v26 = vpop.permute.xlu1 %3807 }
 0x69c   :  { %v8790_v58 = vpop.permute.xlu1 %3705 }
 0x6a0   :  { %v8794_v41 = vpop.permute.xlu1 %3908 }
 0x6a4   :  { %v3913_v1 = vpop.permute.xlu1 %3912 }
 0x6a6   :  { %v8800_v2 = vpop.permute.xlu0 %3823 }
 0x6a8   :  { %v3816_v4 = vpop.permute.xlu1 %3815 }
 0x6b9   :  { %v5017_v56 = vpop.f32.mrb[136].mxu0 }
 0x6ba   :  { %v5018_v53 = vpop.f32.mrb[137].mxu0 }
 0x6bb   :  { %v5019_v47 = vadd.f32 %v5018_v53, %v5017_v56  ;;  %v8803_v53 = vpop.permute.xlu0 %3675 }
 0x6bd   :  { %v5020_v52 = vpop.f32.mrb[138].mxu0  ;;  %5183 = vmatprep.mubr.msk.f32.mxu1 %vm2764_vm3, %v5019_v47 }
 0x6be   :  { %v5021_v6 = vpop.f32.mrb[139].mxu0 }
 0x6bf   :  { %v5022_v55 = vadd.f32 %v5021_v6, %v5020_v52  ;;  %v3716_v6 = vpop.permute.xlu1 %3715 }
 0x6c1   :  { %v5023_v49 = vpop.f32.mrb[140].mxu0  ;;  %5184 = vmatmul.mubr.msk.f32.vlgmr.msra.gmra.mrb[168].mxu1 %vm2764_vm3, %v5022_v55 }
 0x6c2   :  { %v5024_v22 = vpop.f32.mrb[141].mxu0 }
 0x6c3   :  { %v5025_v36 = vadd.f32 %v5024_v22, %v5023_v49  ;;  %v3691_v49 = vpop.permute.xlu0 %3690 }
 0x6c5   :  { %v5026_v45 = vpop.f32.mrb[142].mxu0  ;;  %5186 = vmatprep.mubr.msk.f32.mxu1 %vm2764_vm3, %v5025_v36 }
 0x6c6   :  { %v5027_v3 = vpop.f32.mrb[143].mxu0 }
 0x6c7   :  { %v5028_v25 = vadd.f32 %v5027_v3, %v5026_v45  ;;  %v8814_v45 = vld [vmem:[%s9314_s18] ss:$0 sm:$0xff] }
 0x6c8   :  { %v3760_v3 = vmul.f32 %v8814_v45, %v3691_v49 }
 0x6c9   :  { %v5029_v61 = vpop.f32.mrb[144].mxu0  ;;  %5187 = vmatmul.mubr.msk.f32.gmra.mrb[170].mxu1 %vm2764_vm3, %v5028_v25  ;;  %v3917_v25 = vpop.permute.xlu1 %3916 }
 0x6ca   :  { %v5030_v48 = vpop.f32.mrb[145].mxu0 }
 0x6cb   :  { %v5031_v39 = vadd.f32 %v5030_v48, %v5029_v61  ;;  %v8820_v61 = vld [vmem:[%s9314_s18 + $0x1] ss:$0 sm:$0xff]  ;;  %v3759_v48 = vmul.f32 %v8814_v45, %v8762_v31 }
 0x6cc   :  { %v3860_v31 = vmul.f32 %v8820_v61, %v8771_v13  ;;  %v3863_v13 = vmul.f32 %v8820_v61, %v3812_v59  ;;  %v3763_v59 = vmul.f32 %v8814_v45, %v8790_v58 }
 0x6cd   :  { %v5032_v60 = vpop.f32.mrb[146].mxu0  ;;  %5189 = vmatprep.mubr.msk.f32.mxu1 %vm2764_vm3, %v5031_v39  ;;  %v8827_v39 = vld [vmem:[%s9315_s20] ss:$0 sm:$0xff] }
 0x6ce   :  { %v5033_v27 = vpop.f32.mrb[147].mxu0 }
 0x6cf   :  { %v5034_v62 = vadd.f32 %v5033_v27, %v5032_v60  ;;  %v3701_v27 = vpop.permute.xlu0 %3700 }
 0x6d1   :  { %v5035_v35 = vpop.f32.mrb[148].mxu0  ;;  %5190 = vmatmul.mubr.msk.f32.gmra.mrb[172].mxu1 %vm2764_vm3, %v5034_v62  ;;  %v3861_v62 = vmul.f32 %v8820_v61, %v3804_v33 }
 0x6d2   :  { %v5036_v20 = vpop.f32.mrb[149].mxu0 }
 0x6d3   :  { %v5037_v51 = vadd.f32 %v5036_v20, %v5035_v35 }
 0x6d5   :  { %v5038_v11 = vpop.f32.mrb[150].mxu0  ;;  %5192 = vmatprep.mubr.msk.f32.mxu1 %vm2764_vm3, %v5037_v51  ;;  %v8834_v51 = vld [vmem:[%s9314_s18 + $0x2] ss:$0 sm:$0xff] }
 0x6d6   :  { %v5039_v21 = vpop.f32.mrb[151].mxu0  ;;  %v3961_v33 = vmul.f32 %v8834_v51, %v8778_v29  ;;  %v3964_v29 = vmul.f32 %v8834_v51, %v3913_v1 }
 0x6d7   :  { %v5040_v24 = vadd.f32 %v5039_v21, %v5038_v11  ;;  %v3962_v21 = vmul.f32 %v8834_v51, %v8781_v43 }
 0x6d9   :  { %v5041_v19 = vpop.f32.mrb[152].mxu0  ;;  %5193 = vmatmul.mubr.msk.f32.gmra.mrb[174].mxu1 %vm2764_vm3, %v5040_v24 }
 0x6da   :  { %v5042_v42 = vpop.f32.mrb[153].mxu0 }
 0x6db   :  { %v5043_v40 = vadd.f32 %v5042_v42, %v5041_v19  ;;  %v3762_v19 = vmul.f32 %v8814_v45, %v3701_v27  ;;  %v3921_v42 = vpop.permute.xlu1 %3920  ;;  %v3965_v27 = vmul.f32 %v8834_v51, %v3917_v25 }
 0x6dd   :  { %v5044_v63 = vpop.f32.mrb[154].mxu0  ;;  %5195 = vmatprep.mubr.msk.f32.mxu1 %vm2764_vm3, %v5043_v40  ;;  %v3761_v40 = vmul.f32 %v8814_v45, %v8774_v30 }
 0x6de   :  { %v5045_v5 = vpop.f32.mrb[155].mxu0 }
 0x6df   :  { %v5046_v46 = vadd.f32 %v5045_v5, %v5044_v63 }
 0x6e1   :  { %v5047_v50 = vpop.f32.mrb[156].mxu0  ;;  %5196 = vmatmul.mubr.msk.f32.gmra.mrb[176].mxu1 %vm2764_vm3, %v5046_v46  ;;  %v3711_v46 = vpop.permute.xlu0 %3710 }
 0x6e2   :  { %v5048_v28 = vpop.f32.mrb[157].mxu0 }
 0x6e3   :  { %v5049_v0 = vadd.f32 %v5048_v28, %v5047_v50 }
 0x6e5   :  { %v5050_v18 = vpop.f32.mrb[158].mxu0  ;;  %5198 = vmatprep.mubr.msk.f32.mxu1 %vm2764_vm3, %v5049_v0 }
 0x6e6   :  { %v5051_v44 = vpop.f32.mrb[159].mxu0 }
 0x6e7   :  { %v5052_v16 = vadd.f32 %v5051_v44, %v5050_v18  ;;  %v3862_v18 = vmul.f32 %v8820_v61, %v8787_v26 }
 0x6e9   :  { %v5053_v14 = vpop.f32.mrb[160].mxu0  ;;  %5199 = vmatmul.mubr.msk.f32.gmra.mrb[178].mxu1 %vm2764_vm3, %v5052_v16 }
 0x6ea   :  { %v5054_v17 = vpop.f32.mrb[161].mxu0 }
 0x6eb   :  { %v5055_v8 = vadd.f32 %v5054_v17, %v5053_v14  ;;  %v3764_v14 = vmul.f32 %v8814_v45, %v3711_v46  ;;  %v3828_v17 = vpop.permute.xlu1 %3827 }
 0x6ed   :  { %v5056_v38 = vpop.f32.mrb[162].mxu0  ;;  %5201 = vmatprep.mubr.msk.f32.mxu1 %vm2764_vm3, %v5055_v8 }
 0x6ee   :  { %v5057_v12 = vpop.f32.mrb[163].mxu0 }
 0x6ef   :  { %v5058_v23 = vadd.f32 %v5057_v12, %v5056_v38  ;;  %v3963_v38 = vmul.f32 %v8834_v51, %v8794_v41  ;;  %v3966_v41 = vmul.f32 %v8834_v51, %v3921_v42 }
 0x6f1   :  { %v5059_v7 = vpop.f32.mrb[164].mxu0  ;;  %5202 = vmatmul.mubr.msk.f32.gmra.mrb[180].mxu1 %vm2764_vm3, %v5058_v23  ;;  %v3865_v23 = vmul.f32 %v8820_v61, %v8796_v54 }
 0x6f2   :  { %v5060_v9 = vpop.f32.mrb[165].mxu0 }
 0x6f3   :  { %v5061_v56 = vadd.f32 %v5060_v9, %v5059_v7 }
 0x6f5   :  { %v5062_v47 = vpop.f32.mrb[166].mxu0  ;;  %5204 = vmatprep.mubr.msk.f32.mxu1 %vm2764_vm3, %v5061_v56 }
 0x6f6   :  { %v5063_v52 = vpop.f32.mrb[167].mxu0 }
 0x6f7   :  { %v5064_v55 = vadd.f32 %v5063_v52, %v5062_v47  ;;  %v3864_v47 = vmul.f32 %v8820_v61, %v3816_v4 }
 0x6f9   :  { %5205 = vmatmul.mubr.msk.f32.gmra.mrb[182].mxu1 %vm2764_vm3, %v5064_v55  ;;  %v8807_v22 = vpop.f32.mrb[168].mxu0  ;;  %v3721_v55 = vpop.permute.xlu0 %3720 }
 0x6fa   :  { %v8809_v36 = vpop.f32.mrb[169].mxu0 }
 0x6fd   :  { %v5216_v60 = vpop.f32.mrb[170].mxu0 }
 0x6fe   :  { %v3659_v35 = vadd.f32 %v5216_v60, %v8827_v39  ;;  %v3581_v20 = vpop.f32.mrb[171].mxu0  ;;  %v3765_v60 = vmul.f32 %v8814_v45, %v3716_v6 }
 0x6ff   :  { %v3658_v11 = vadd.f32 %v8827_v39, %v3581_v20 }
 0x700   :  { %v3776_v24 = vadd.f32 %v3760_v3, %v3659_v35  ;;  %v3766_v3 = vmul.f32 %v8814_v45, %v3721_v55 }
 0x701   :  { %v3775_v63 = vadd.f32 %v3759_v48, %v3658_v11  ;;  %v5219_v5 = vpop.f32.mrb[172].mxu0  ;;  %v3925_v11 = vpop.permute.xlu1 %3924 }
 0x702   :  { %v3877_v50 = vadd.f32 %v3861_v62, %v3776_v24  ;;  %v3661_v28 = vadd.f32 %v5219_v5, %v8827_v39  ;;  %v3591_v0 = vpop.f32.mrb[173].mxu0 }
 0x703   :  { %v3876_v43 = vadd.f32 %v3860_v31, %v3775_v63  ;;  %v3660_v44 = vadd.f32 %v8827_v39, %v3591_v0  ;;  %v3867_v31 = vmul.f32 %v8820_v61, %v3828_v17 }
 0x704   :  { %v8851_v16 = vadd.f32 %v3962_v21, %v3877_v50  ;;  %v3778_v30 = vadd.f32 %v3762_v19, %v3661_v28  ;;  %v3866_v21 = vmul.f32 %v8820_v61, %v8800_v2  ;;  %v3726_v28 = vpop.permute.xlu0 %3725 }
 0x705   :  { %v8855_v8 = vadd.f32 %v3961_v33, %v3876_v43  ;;  %v3777_v12 = vadd.f32 %v3761_v40, %v3660_v44  ;;  %v5222_v26 = vpop.f32.mrb[174].mxu0  ;;  %v3967_v33 = vmul.f32 %v8834_v51, %v3925_v11  ;;  %v3767_v2 = vmul.f32 %v8814_v45, %v3726_v28 }
 0x706   :  { %v3879_v7 = vadd.f32 %v3863_v13, %v3778_v30  ;;  %v3663_v9 = vadd.f32 %v5222_v26, %v8827_v39  ;;  %v3601_v1 = vpop.f32.mrb[175].mxu0  ;;  %v3731_v13 = vpop.permute.xlu1 %3730 }
 0x707   :  { %v3878_v56 = vadd.f32 %v3862_v18, %v3777_v12  ;;  %v3662_v52 = vadd.f32 %v8827_v39, %v3601_v1  ;;  %v3768_v44 = vmul.f32 %v8814_v45, %v3731_v13  ;;  %v4091_v13 = vld [vmem:[%s9316_s21 + $0x20] sm:$0xff] }
 0x708   :  { %v8866_v49 = vadd.f32 %v3964_v29, %v3879_v7  ;;  %v3780_v58 = vadd.f32 %v3764_v14, %v3663_v9 }
 0x709   :  { %v8870_v48 = vadd.f32 %v3963_v38, %v3878_v56  ;;  %v3779_v54 = vadd.f32 %v3763_v59, %v3662_v52  ;;  %v5225_v62 = vpop.f32.mrb[176].mxu0 }
 0x70a   :  { %v3881_v35 = vadd.f32 %v3865_v23, %v3780_v58  ;;  %v3665_v4 = vadd.f32 %v5225_v62, %v8827_v39  ;;  %v3611_v20 = vpop.f32.mrb[177].mxu0  ;;  %v3832_v50 = vpop.permute.xlu1 %3831 }
 0x70b   :  { %v3880_v24 = vadd.f32 %v3864_v47, %v3779_v54  ;;  %v3664_v19 = vadd.f32 %v8827_v39, %v3611_v20  ;;  %v3868_v30 = vmul.f32 %v8820_v61, %v3832_v50  ;;  %v3736_v47 = vpop.permute.xlu0 %3735  ;;  %v4092_v50 = vld [vmem:[%s9316_s21 + $0x28] sm:$0xff] }
 0x70c   :  { %v8879_v42 = vadd.f32 %v3966_v41, %v3881_v35  ;;  %v3782_v40 = vadd.f32 %v3766_v3, %v3665_v4  ;;  %v3769_v55 = vmul.f32 %v8814_v45, %v3736_v47  ;;  %v5627_v28 = vpack.c.bf16 %v4092_v50, %v4091_v13 }
 0x70d   :  { %v8881_v6 = vadd.f32 %v3965_v27, %v3880_v24  ;;  %v3781_v25 = vadd.f32 %v3765_v60, %v3664_v19  ;;  %v5228_v0 = vpop.f32.mrb[178].mxu0  ;;  %v4087_v24 = vld [vmem:[%s9316_s21] sm:$0xff]  ;;  %v4088_v19 = vld [vmem:[%s9316_s21 + $0x8] sm:$0xff] }
 0x70e   :  { %v8884_v63 = vadd.f32 %v3867_v31, %v3782_v40  ;;  %v3621_v43 = vpop.f32.mrb[179].mxu0  ;;  %v3836_v18 = vpop.permute.xlu1 %3835  ;;  %v3667_v14 = vadd.f32 %v5228_v0, %v8827_v39  ;;  %v4089_v40 = vld [vmem:[%s9316_s21 + $0x10] sm:$0xff]  ;;  %v4094_v0 = vld [vmem:[%s9316_s21 + $0x38] sm:$0xff] }
 0x70f   :  { %v3882_v5 = vadd.f32 %v3866_v21, %v3781_v25  ;;  %v3666_v29 = vadd.f32 %v8827_v39, %v3621_v43  ;;  %v3869_v59 = vmul.f32 %v8820_v61, %v3836_v18  ;;  %v5619_v25 = vpack.c.bf16 %v4088_v19, %v4087_v24  ;;  %v8940_v18 = vld [vmem:[%s9317_s17] ss:$0 sm:$0xff] }
 0x710   :  { %v3784_v12 = vadd.f32 %v3768_v44, %v3667_v14 }
 0x711   :  { %v8886_v46 = vadd.f32 %v3967_v33, %v3882_v5  ;;  %v3783_v17 = vadd.f32 %v3767_v2, %v3666_v29  ;;  %v5231_v58 = vpop.f32.mrb[180].mxu0  ;;  %v4090_v33 = vld [vmem:[%s9316_s21 + $0x18] sm:$0xff]  ;;  %5620 = vmatprep.subr.bf16.mxu1 %v5619_v25  ;;  %v4093_v2 = vld [vmem:[%s9316_s21 + $0x30] sm:$0xff]  ;;  %s5790_s21 = smov 32  }
 0x712   :  { %v3933_v38 = vpop.permute.xlu1 %3932  ;;  %v8895_v7 = vadd.f32 %v3869_v59, %v3784_v12  ;;  %v3669_v41 = vadd.f32 %v5231_v58, %v8827_v39  ;;  %v3631_v3 = vpop.f32.mrb[181].mxu0  ;;  %v5623_v5 = vpack.c.bf16 %v4090_v33, %v4089_v40  ;;  %5622 = vmatpush3.bf16.msra.mxu1 %v5619_v25  ;;  %v5631_v43 = vpack.c.bf16 %v4094_v0, %v4093_v2 }
 0x713   :  { %v3884_v26 = vadd.f32 %v3868_v30, %v3783_v17  ;;  %v3969_v23 = vmul.f32 %v8834_v51, %v3933_v38  ;;  %v3668_v27 = vadd.f32 %v8827_v39, %v3631_v3 }
 0x714   :  { %5624 = vmatprep.subr.bf16.mxu1 %v5623_v5 }
 0x715   :  { %v8897_v9 = vadd.f32 %v3969_v23, %v3884_v26  ;;  %v3785_v4 = vadd.f32 %v3769_v55, %v3668_v27  ;;  %v8909_v11 = vpop.f32.mrb[182].mxu0 }
 0x716   :  { %v3741_v1 = vpop.permute.xlu1 %3740  ;;  %v8911_v21 = vpop.f32.mrb[183].mxu0  ;;  %5626 = vmatpush3.bf16.msra.mxu1 %v5623_v5 }
 0x717   :  { %v3770_v52 = vmul.f32 %v8814_v45, %v3741_v1  ;;  %5628 = vmatprep.subr.bf16.mxu1 %v5627_v28 }
 0x719   :  { %v3786_v35 = vadd.f32 %v3770_v52, %v3669_v41 }
 0x71a   :  { %v3840_v56 = vpop.permute.xlu1 %3839  ;;  %5630 = vmatpush3.bf16.msra.mxu1 %v5627_v28 }
 0x71b   :  { %v3870_v60 = vmul.f32 %v8820_v61, %v3840_v56  ;;  %5632 = vmatprep.subr.bf16.mxu1 %v5631_v43 }
 0x71d   :  { %v8907_v31 = vadd.f32 %v3870_v60, %v3785_v4 }
 0x71e   :  { %v3844_v54 = vpop.permute.xlu1 %3843  ;;  %5634 = vmatpush3.bf16.msra.mxu1 %v5631_v43 }
 0x71f   :  { %v3871_v62 = vmul.f32 %v8820_v61, %v3844_v54 }
 0x721   :  { %v8905_v20 = vadd.f32 %v3871_v62, %v3786_v35 }
 0x794   :  { %v5185_v44 = vpop.f32.mrb[168].mxu1 }
 0x795   :  { %v2885_v30 = vadd.f32 %v5185_v44, %v8940_v18  ;;  %v2879_v29 = vpop.f32.mrb[169].mxu1 }
 0x796   :  { %v2880_v14 = vadd.f32 %v8940_v18, %v2879_v29 }
 0x797   :  { %vm2959_vm4 = vcmp.gt.f32.partialorder %v2885_v30, 0.0  ;;  %v2975_v17 = vmul.f32 0.2, %v2885_v30 }
 0x798   :  { %v2974_v59 = vmul.f32 0.2, %v2880_v14  ;;  %vm2958_vm5 = vcmp.gt.f32.partialorder %v2880_v14, 0.0 }
 0x799   :  { %v2991_v38 = vsel %vm2959_vm4, %v2885_v30, %v2975_v17 }
 0x79a   :  { %4025 = vrot.lane.b32.xlu1 %v2991_v38, %s5790_s21  ;;  %v2990_v1 = vsel %vm2958_vm5, %v2880_v14, %v2974_v59  ;;  %vm4102_vm5 = vcmask 523264  }
 0x79c   :  { %v5188_v12 = vpop.f32.mrb[170].mxu1 }
 0x79d   :  { %v2895_v26 = vadd.f32 %v5188_v12, %v8940_v18  ;;  %v2889_v23 = vpop.f32.mrb[171].mxu1 }
 0x79e   :  { %v2890_v56 = vadd.f32 %v8940_v18, %v2889_v23  ;;  %4023 = vrot.lane.b32.xlu1 %v2990_v1, %s5790_s21 }
 0x79f   :  { %vm2961_vm6 = vcmp.gt.f32.partialorder %v2895_v26, 0.0  ;;  %v2977_v47 = vmul.f32 0.2, %v2895_v26 }
 0x7a0   :  { %vm2960_vm7 = vcmp.gt.f32.partialorder %v2890_v56, 0.0  ;;  %v2976_v52 = vmul.f32 0.2, %v2890_v56 }
 0x7a1   :  { %v2993_v55 = vsel %vm2961_vm6, %v2895_v26, %v2977_v47 }
 0x7a2   :  { %4029 = vrot.lane.b32.xlu0 %v2993_v55, %s5790_s21  ;;  %v2992_v58 = vsel %vm2960_vm7, %v2890_v56, %v2976_v52 }
 0x7a3   :  { %4027 = vrot.lane.b32.xlu1 %v2992_v58, %s5790_s21 }
 0x7a4   :  { %v5191_v41 = vpop.f32.mrb[172].mxu1 }
 0x7a5   :  { %v2905_v3 = vadd.f32 %v5191_v41, %v8940_v18  ;;  %v2899_v54 = vpop.f32.mrb[173].mxu1 }
 0x7a6   :  { %v2900_v60 = vadd.f32 %v8940_v18, %v2899_v54 }
 0x7a7   :  { %vm2963_vm8 = vcmp.gt.f32.partialorder %v2905_v3, 0.0  ;;  %v2979_v27 = vmul.f32 0.2, %v2905_v3 }
 0x7a8   :  { %vm2962_vm9 = vcmp.gt.f32.partialorder %v2900_v60, 0.0  ;;  %v2978_v62 = vmul.f32 0.2, %v2900_v60 }
 0x7a9   :  { %v2995_v35 = vsel %vm2963_vm8, %v2905_v3, %v2979_v27 }
 0x7aa   :  { %4033 = vrot.lane.b32.xlu0 %v2995_v35, %s5790_s21  ;;  %v2994_v4 = vsel %vm2962_vm9, %v2900_v60, %v2978_v62 }
 0x7ab   :  { %4031 = vrot.lane.b32.xlu1 %v2994_v4, %s5790_s21 }
 0x7ac   :  { %v5194_v24 = vpop.f32.mrb[174].mxu1 }
 0x7ad   :  { %v2915_v19 = vadd.f32 %v5194_v24, %v8940_v18  ;;  %v2909_v40 = vpop.f32.mrb[175].mxu1 }
 0x7ae   :  { %v2910_v25 = vadd.f32 %v8940_v18, %v2909_v40 }
 0x7af   :  { %vm2965_vm10 = vcmp.gt.f32.partialorder %v2915_v19, 0.0  ;;  %v2981_v33 = vmul.f32 0.2, %v2915_v19 }
 0x7b0   :  { %vm2964_vm11 = vcmp.gt.f32.partialorder %v2910_v25, 0.0  ;;  %v2980_v5 = vmul.f32 0.2, %v2910_v25 }
 0x7b1   :  { %v2997_v13 = vsel %vm2965_vm10, %v2915_v19, %v2981_v33  ;;  %v3746_v33 = vpop.permute.xlu0 %3745 }
 0x7b2   :  { %4037 = vrot.lane.b32.xlu0 %v2997_v13, %s5790_s21  ;;  %v2996_v50 = vsel %vm2964_vm11, %v2910_v25, %v2980_v5  ;;  %v8975_v25 = vpop.permute.xlu1 %3940  ;;  %v3656_v13 = vadd.f32 %v8827_v39, %v8809_v36  ;;  %v3959_v36 = vmul.f32 %v8834_v51, %v8765_v57 }
 0x7b3   :  { %4035 = vrot.lane.b32.xlu1 %v2996_v50, %s5790_s21  ;;  %v3758_v50 = vmul.f32 %v8814_v45, %v8754_v32  ;;  %v3960_v32 = vmul.f32 %v8834_v51, %v8767_v37 }
 0x7b4   :  { %v5197_v28 = vpop.f32.mrb[176].mxu1 }
 0x7b5   :  { %v2925_v2 = vadd.f32 %v5197_v28, %v8940_v18  ;;  %v2919_v0 = vpop.f32.mrb[177].mxu1  ;;  %v3657_v28 = vadd.f32 %v8807_v22, %v8827_v39 }
 0x7b6   :  { %v2920_v43 = vadd.f32 %v8940_v18, %v2919_v0  ;;  %v8977_v5 = vpop.permute.xlu1 %3750 }
 0x7b7   :  { %vm2967_vm12 = vcmp.gt.f32.partialorder %v2925_v2, 0.0  ;;  %v2983_v44 = vmul.f32 0.2, %v2925_v2  ;;  %3952 = vperm.xlu1 %5698, %v8752_v15  }
 0x7b8   :  { %vm2966_vm13 = vcmp.gt.f32.partialorder %v2920_v43, 0.0  ;;  %v2982_v30 = vmul.f32 0.2, %v2920_v43 }
 0x7b9   :  { %v2999_v29 = vsel %vm2967_vm12, %v2925_v2, %v2983_v44  ;;  %v3858_v2 = vmul.f32 %v8820_v61, %v8759_v10  ;;  %v3774_v44 = vadd.f32 %v3758_v50, %v3657_v28  ;;  %v3971_v28 = vmul.f32 %v8834_v51, %v8975_v25 }
 0x7ba   :  { %v2998_v14 = vsel %vm2966_vm13, %v2920_v43, %v2982_v30  ;;  %v3859_v43 = vmul.f32 %v8820_v61, %v8784_v34  ;;  %v3929_v30 = vpop.permute.xlu0 %3928 }
 0x7bb   :  { %4039 = vrot.lane.b32.xlu0 %v2998_v14, %s5790_s21  ;;  %4041 = vrot.lane.b32.xlu1 %v2999_v29, %s5790_s21  ;;  %v3848_v29 = vpop.permute.xlu1 %3847  ;;  %v3987_v25 = vadd.f32 %v3971_v28, %v8907_v31 }
 0x7bc   :  { %v5200_v17 = vpop.f32.mrb[178].mxu1  ;;  %v3875_v14 = vadd.f32 %v3859_v43, %v3774_v44 }
 0x7bd   :  { %v2935_v59 = vadd.f32 %v5200_v17, %v8940_v18  ;;  %v2929_v38 = vpop.f32.mrb[179].mxu1  ;;  %v4003_v31 = vmax.f32 %v3987_v25, 0.0 }
 0x7be   :  { %v2930_v12 = vadd.f32 %v8940_v18, %v2929_v38  ;;  %v3937_v17 = vpop.permute.xlu0 %3936  ;;  %v3976_v38 = vadd.f32 %v3960_v32, %v3875_v14 }
 0x7bf   :  { %vm2969_vm14 = vcmp.gt.f32.partialorder %v2935_v59, 0.0  ;;  %v2985_v26 = vmul.f32 0.2, %v2935_v59  ;;  %v3852_v22 = vpop.permute.xlu1 %3851  ;;  %v3970_v50 = vmul.f32 %v8834_v51, %v3937_v17 }
 0x7c0   :  { %vm2968_vm15 = vcmp.gt.f32.partialorder %v2930_v12, 0.0  ;;  %v2984_v23 = vmul.f32 0.2, %v2930_v12  ;;  %v3992_v34 = vmax.f32 %v3976_v38, 0.0 }
 0x7c1   :  { %v3001_v1 = vsel %vm2969_vm14, %v2935_v59, %v2985_v26 }
 0x7c2   :  { %4045 = vrot.lane.b32.xlu1 %v3001_v1, %s5790_s21  ;;  %v3000_v15 = vsel %vm2968_vm15, %v2930_v12, %v2984_v23  ;;  %v3945_v10 = vpop.permute.xlu0 %3944 }
 0x7c3   :  { %4043 = vrot.lane.b32.xlu0 %v3000_v15, %s5790_s21 }
 0x7c4   :  { %v5203_v56 = vpop.f32.mrb[180].mxu1 }
 0x7c5   :  { %v2945_v47 = vadd.f32 %v5203_v56, %v8940_v18  ;;  %v2939_v52 = vpop.f32.mrb[181].mxu1  ;;  %v3993_v56 = vmax.f32 %v8855_v8, 0.0 }
 0x7c6   :  { %v2940_v55 = vadd.f32 %v8940_v18, %v2939_v52  ;;  %v3949_v23 = vpop.permute.xlu0 %3948 }
 0x7c7   :  { %vm2971_vm0 = vcmp.gt.f32.partialorder %v2945_v47, 0.0  ;;  %v2987_v58 = vmul.f32 0.2, %v2945_v47 }
 0x7c8   :  { %vm2970_vm1 = vcmp.gt.f32.partialorder %v2940_v55, 0.0  ;;  %v2986_v41 = vmul.f32 0.2, %v2940_v55 }
 0x7c9   :  { %v3003_v3 = vsel %vm2971_vm0, %v2945_v47, %v2987_v58  ;;  %v3994_v47 = vmax.f32 %v8851_v16, 0.0  ;;  %v3997_v16 = vmax.f32 %v8881_v6, 0.0  ;;  %v3968_v6 = vmul.f32 %v8834_v51, %v3929_v30 }
 0x7ca   :  { %4049 = vrot.lane.b32.xlu1 %v3003_v3, %s5790_s21  ;;  %v3002_v54 = vsel %vm2970_vm1, %v2940_v55, %v2986_v41  ;;  %v3995_v3 = vmax.f32 %v8870_v48, 0.0 }
 0x7cb   :  { %4047 = vrot.lane.b32.xlu0 %v3002_v54, %s5790_s21  ;;  %v3996_v54 = vmax.f32 %v8866_v49, 0.0  ;;  %v3999_v49 = vmax.f32 %v8886_v46, 0.0 }
 0x7cc   :  { %v5206_v60 = vpop.f32.mrb[182].mxu1 }
 0x7cd   :  { %v2955_v27 = vadd.f32 %v5206_v60, %v8940_v18  ;;  %v2949_v62 = vpop.f32.mrb[183].mxu1 }
 0x7ce   :  { %v2950_v35 = vadd.f32 %v8940_v18, %v2949_v62  ;;  %v3757_v18 = vmul.f32 %v8814_v45, %v8803_v53 }
 0x7cf   :  { %vm2973_vm2 = vcmp.gt.f32.partialorder %v2955_v27, 0.0  ;;  %v2989_v4 = vmul.f32 0.2, %v2955_v27 }
 0x7d0   :  { %vm2972_vm4 = vcmp.gt.f32.partialorder %v2950_v35, 0.0  ;;  %v2988_v24 = vmul.f32 0.2, %v2950_v35  ;;  %v3773_v0 = vadd.f32 %v3757_v18, %v3656_v13  ;;  %v3670_v13 = vadd.f32 %v8827_v39, %v8911_v21 }
 0x7d1   :  { %v3005_v19 = vsel %vm2973_vm2, %v2955_v27, %v2989_v4  ;;  %v3984_v18 = vadd.f32 %v3968_v6, %v8884_v63  ;;  %v3986_v21 = vadd.f32 %v3970_v50, %v8895_v7  ;;  %v3972_v63 = vmul.f32 %v8834_v51, %v3945_v10 }
 0x7d2   :  { %4053 = vrot.lane.b32.xlu1 %v3005_v19, %s5790_s21  ;;  %v3004_v40 = vsel %vm2972_vm4, %v2950_v35, %v2988_v24  ;;  %v3874_v53 = vadd.f32 %v3858_v2, %v3773_v0  ;;  %v3998_v35 = vmax.f32 %v8879_v42, 0.0  ;;  %v3771_v42 = vmul.f32 %v8814_v45, %v3746_v33 }
 0x7d3   :  { %4051 = vrot.lane.b32.xlu0 %v3004_v40, %s5790_s21  ;;  %v3772_v2 = vmul.f32 %v8814_v45, %v8977_v5  ;;  %v3671_v0 = vadd.f32 %v8909_v11, %v8827_v39  ;;  %v3872_v33 = vmul.f32 %v8820_v61, %v3848_v29  ;;  %v4000_v44 = vmax.f32 %v3984_v18, 0.0 }
 0x7d4   :  { %v3975_v59 = vadd.f32 %v3959_v36, %v3874_v53  ;;  %v3787_v43 = vadd.f32 %v3771_v42, %v3670_v13  ;;  %v4001_v36 = vmax.f32 %v8897_v9, 0.0  ;;  %v3873_v45 = vmul.f32 %v8820_v61, %v3852_v22 }
 0x7d5   :  { %v3788_v14 = vadd.f32 %v3772_v2, %v3671_v0  ;;  %v3973_v11 = vmul.f32 %v8834_v51, %v3949_v23  ;;  %v4002_v7 = vmax.f32 %v3986_v21, 0.0  ;;  %v3988_v32 = vadd.f32 %v3972_v63, %v8905_v20 }
 0x7d6   :  { %v3991_v26 = vmax.f32 %v3975_v59, 0.0  ;;  %v3888_v39 = vadd.f32 %v3872_v33, %v3787_v43 }
 0x7d7   :  { %v3889_v61 = vadd.f32 %v3873_v45, %v3788_v14 }
 0x7d8   :  { %v3989_v38 = vadd.f32 %v3973_v11, %v3888_v39 }
 0x80c   :  { %v4026_v12 = vpop.permute.xlu1 %4025 }
 0x80d   :  { %v4072_v57 = vsel %vm2764_vm3, %v3992_v34, %v4026_v12  ;;  %v4004_v12 = vmax.f32 %v3988_v32, 0.0  ;;  %v4005_v34 = vmax.f32 %v3989_v38, 0.0 }
 0x810   :  { %v4024_v1 = vpop.permute.xlu1 %4023 }
 0x811   :  { %v4071_v15 = vsel %vm2764_vm3, %v3991_v26, %v4024_v1 }
 0x812   :  { %5251 = vmatprep.mubr.msk.f32.mxu1 %vm4102_vm5, %v4071_v15 }
 0x813   :  { %5252 = vmatmul.mubr.msk.f32.vlgmr.msra.gmra.mrb[184].mxu1 %vm4102_vm5, %v4072_v57 }
 0x814   :  { %v4030_v37 = vpop.permute.xlu0 %4029 }
 0x815   :  { %v4028_v52 = vpop.permute.xlu1 %4027  ;;  %v4074_v58 = vsel %vm2764_vm3, %v3994_v47, %v4030_v37  ;;  %v4345_v47 = vld [vmem:[%s9318_s23 + $0x8] sm:$0xff] }
 0x816   :  { %v4073_v55 = vsel %vm2764_vm3, %v3993_v56, %v4028_v52  ;;  %v4344_v56 = vld [vmem:[%s9318_s23] sm:$0xff] }
 0x817   :  { %5254 = vmatprep.mubr.msk.f32.mxu1 %vm4102_vm5, %v4073_v55  ;;  %v5635_v52 = vpack.c.bf16 %v4345_v47, %v4344_v56  ;;  %v4346_v55 = vld [vmem:[%s9318_s23 + $0x10] sm:$0xff] }
 0x818   :  { %5255 = vmatmul.mubr.msk.f32.gmra.mrb[186].mxu1 %vm4102_vm5, %v4074_v58  ;;  %v4347_v58 = vld [vmem:[%s9318_s23 + $0x18] sm:$0xff] }
 0x819   :  { %5636 = vmatprep.subr.bf16.mxu0 %v5635_v52 }
 0x81a   :  { %5638 = vmatpush3.bf16.msra.mxu0 %v5635_v52 }
 0x81c   :  { %v4034_v41 = vpop.permute.xlu0 %4033 }
 0x81d   :  { %v4032_v60 = vpop.permute.xlu1 %4031  ;;  %v4076_v8 = vsel %vm2764_vm3, %v3996_v54, %v4034_v41  ;;  %v5639_v41 = vpack.c.bf16 %v4347_v58, %v4346_v55 }
 0x81e   :  { %v4075_v27 = vsel %vm2764_vm3, %v3995_v3, %v4032_v60  ;;  %v9070_v3 = vld [vmem:[%s9319_s22] ss:$0 sm:$0xff]  ;;  %s5791_s22 = smov 96  }
 0x81f   :  { %5257 = vmatprep.mubr.msk.f32.mxu1 %vm4102_vm5, %v4075_v27  ;;  %5640 = vmatprep.subr.bf16.mxu0 %v5639_v41 }
 0x820   :  { %5258 = vmatmul.mubr.msk.f32.gmra.mrb[188].mxu1 %vm4102_vm5, %v4076_v8  ;;  %5642 = vmatpush3.bf16.msra.mxu0 %v5639_v41 }
 0x824   :  { %v4038_v62 = vpop.permute.xlu0 %4037 }
 0x825   :  { %v4036_v4 = vpop.permute.xlu1 %4035  ;;  %v4078_v48 = vsel %vm2764_vm3, %v3998_v35, %v4038_v62 }
 0x826   :  { %v4077_v24 = vsel %vm2764_vm3, %v3997_v16, %v4036_v4 }
 0x827   :  { %5260 = vmatprep.mubr.msk.f32.mxu1 %vm4102_vm5, %v4077_v24 }
 0x828   :  { %5261 = vmatmul.mubr.msk.f32.gmra.mrb[190].mxu1 %vm4102_vm5, %v4078_v48 }
 0x82d   :  { %v4040_v19 = vpop.permute.xlu0 %4039 }
 0x82e   :  { %v4079_v40 = vsel %vm2764_vm3, %v3999_v49, %v4040_v19 }
 0x82f   :  { %5263 = vmatprep.mubr.msk.f32.mxu1 %vm4102_vm5, %v4079_v40 }
 0x835   :  { %v4044_v30 = vpop.permute.xlu0 %4043 }
 0x836   :  { %v3953_v46 = vpop.permute.xlu1 %3952  ;;  %v4081_v29 = vsel %vm2764_vm3, %v4001_v36, %v4044_v30 }
 0x837   :  { %v3974_v9 = vmul.f32 %v8834_v51, %v3953_v46 }
 0x839   :  { %v3990_v26 = vadd.f32 %v3974_v9, %v3889_v61 }
 0x83a   :  { %v4042_v53 = vpop.permute.xlu1 %4041 }
 0x83b   :  { %v4080_v5 = vsel %vm2764_vm3, %v4000_v44, %v4042_v53  ;;  %v4006_v23 = vmax.f32 %v3990_v26, 0.0 }
 0x83c   :  { %5264 = vmatmul.mubr.msk.f32.gmra.mrb[192].mxu1 %vm4102_vm5, %v4080_v5 }
 0x83d   :  { %v4048_v17 = vpop.permute.xlu0 %4047  ;;  %5266 = vmatprep.mubr.msk.f32.mxu1 %vm4102_vm5, %v4081_v29 }
 0x83e   :  { %v4046_v59 = vpop.permute.xlu1 %4045  ;;  %v4083_v10 = vsel %vm2764_vm3, %v4003_v31, %v4048_v17 }
 0x83f   :  { %v4082_v22 = vsel %vm2764_vm3, %v4002_v7, %v4046_v59 }
 0x840   :  { %5267 = vmatmul.mubr.msk.f32.gmra.mrb[194].mxu1 %vm4102_vm5, %v4082_v22 }
 0x841   :  { %5269 = vmatprep.mubr.msk.f32.mxu1 %vm4102_vm5, %v4083_v10 }
 0x842   :  { %v4050_v20 = vpop.permute.xlu1 %4049 }
 0x843   :  { %v4084_v51 = vsel %vm2764_vm3, %v4004_v12, %v4050_v20 }
 0x844   :  { %5270 = vmatmul.mubr.msk.f32.gmra.mrb[196].mxu1 %vm4102_vm5, %v4084_v51 }
 0x845   :  { %v4052_v1 = vpop.permute.xlu0 %4051 }
 0x846   :  { %v4085_v15 = vsel %vm2764_vm3, %v4005_v34, %v4052_v1  ;;  %v4054_v57 = vpop.permute.xlu1 %4053 }
 0x847   :  { %v4086_v37 = vsel %vm2764_vm3, %v4006_v23, %v4054_v57  ;;  %5272 = vmatprep.mubr.msk.f32.mxu1 %vm4102_vm5, %v4085_v15 }
 0x848   :  { %5273 = vmatmul.mubr.msk.f32.gmra.mrb[198].mxu1 %vm4102_vm5, %v4086_v37 }
 0x8e6   :  { %v5253_v54 = vpop.f32.mrb[184].mxu1 }
 0x8e7   :  { %v9073_v60 = vadd.f32 %v5253_v54, %v9070_v3  ;;  %v4217_v27 = vpop.f32.mrb[185].mxu1 }
 0x8e8   :  { %v9076_v8 = vadd.f32 %v9070_v3, %v4217_v27 }
 0x8e9   :  { %v4313_v16 = vmul.f32 0.2, %v9073_v60  ;;  %vm4297_vm6 = vcmp.gt.f32.partialorder %v9073_v60, 0.0 }
 0x8ea   :  { %vm4296_vm7 = vcmp.gt.f32.partialorder %v9076_v8, 0.0  ;;  %v4312_v62 = vmul.f32 0.2, %v9076_v8 }
 0x8eb   :  { %v5256_v35 = vpop.f32.mrb[186].mxu1  ;;  %v4329_v19 = vsel %vm4297_vm6, %v9073_v60, %v4313_v16 }
 0x8ec   :  { %v9083_v4 = vadd.f32 %v5256_v35, %v9070_v3  ;;  %v4227_v24 = vpop.f32.mrb[187].mxu1  ;;  %v4328_v48 = vsel %vm4296_vm7, %v9076_v8, %v4312_v62 }
 0x8ed   :  { %v9087_v49 = vadd.f32 %v9070_v3, %v4227_v24  ;;  %5283 = vmatprep.mubr.msk.f32.mxu0 %vm2764_vm3, %v4328_v48 }
 0x8ee   :  { %5284 = vmatmul.mubr.msk.f32.vlgmr.msra.gmra.mrb[184].mxu0 %vm2764_vm3, %v4329_v19  ;;  %v4315_v40 = vmul.f32 0.2, %v9083_v4  ;;  %vm4299_vm9 = vcmp.gt.f32.partialorder %v9083_v4, 0.0 }
 0x8ef   :  { %vm4298_vm8 = vcmp.gt.f32.partialorder %v9087_v49, 0.0  ;;  %v4314_v6 = vmul.f32 0.2, %v9087_v49 }
 0x8f0   :  { %v4331_v13 = vsel %vm4299_vm9, %v9083_v4, %v4315_v40 }
 0x8f1   :  { %v4330_v42 = vsel %vm4298_vm8, %v9087_v49, %v4314_v6 }
 0x8f2   :  { %5286 = vmatprep.mubr.msk.f32.mxu0 %vm2764_vm3, %v4330_v42 }
 0x8f3   :  { %v5259_v18 = vpop.f32.mrb[188].mxu1  ;;  %5287 = vmatmul.mubr.msk.f32.gmra.mrb[186].mxu0 %vm2764_vm3, %v4331_v13 }
 0x8f4   :  { %v9101_v50 = vadd.f32 %v5259_v18, %v9070_v3  ;;  %v4237_v28 = vpop.f32.mrb[189].mxu1 }
 0x8f5   :  { %v9104_v46 = vadd.f32 %v9070_v3, %v4237_v28 }
 0x8f6   :  { %v4317_v2 = vmul.f32 0.2, %v9101_v50  ;;  %vm4301_vm11 = vcmp.gt.f32.partialorder %v9101_v50, 0.0 }
 0x8f7   :  { %vm4300_vm10 = vcmp.gt.f32.partialorder %v9104_v46, 0.0  ;;  %v4316_v0 = vmul.f32 0.2, %v9104_v46 }
 0x8f8   :  { %v4333_v33 = vsel %vm4301_vm11, %v9101_v50, %v4317_v2 }
 0x8f9   :  { %v4332_v43 = vsel %vm4300_vm10, %v9104_v46, %v4316_v0 }
 0x8fa   :  { %5289 = vmatprep.mubr.msk.f32.mxu0 %vm2764_vm3, %v4332_v43 }
 0x8fb   :  { %v5262_v44 = vpop.f32.mrb[190].mxu1  ;;  %5290 = vmatmul.mubr.msk.f32.gmra.mrb[188].mxu0 %vm2764_vm3, %v4333_v33 }
 0x8fc   :  { %v9115_v21 = vadd.f32 %v5262_v44, %v9070_v3  ;;  %v4247_v63 = vpop.f32.mrb[191].mxu1 }
 0x8fd   :  { %v9118_v30 = vadd.f32 %v9070_v3, %v4247_v63 }
 0x8fe   :  { %v4319_v36 = vmul.f32 0.2, %v9115_v21  ;;  %vm4303_vm13 = vcmp.gt.f32.partialorder %v9115_v21, 0.0 }
 0x8ff   :  { %vm4302_vm12 = vcmp.gt.f32.partialorder %v9118_v30, 0.0  ;;  %v4318_v25 = vmul.f32 0.2, %v9118_v30 }
 0x900   :  { %v4335_v14 = vsel %vm4303_vm13, %v9115_v21, %v4319_v36 }
 0x901   :  { %v4334_v53 = vsel %vm4302_vm12, %v9118_v30, %v4318_v25 }
 0x902   :  { %5292 = vmatprep.mubr.msk.f32.mxu0 %vm2764_vm3, %v4334_v53 }
 0x903   :  { %5293 = vmatmul.mubr.msk.f32.gmra.mrb[190].mxu0 %vm2764_vm3, %v4335_v14 }
 0x90f   :  { %v5265_v45 = vpop.f32.mrb[192].mxu1 }
 0x910   :  { %v9129_v5 = vadd.f32 %v5265_v45, %v9070_v3  ;;  %v4257_v39 = vpop.f32.mrb[193].mxu1 }
 0x911   :  { %v9132_v11 = vadd.f32 %v9070_v3, %v4257_v39 }
 0x912   :  { %v4321_v29 = vmul.f32 0.2, %v9129_v5  ;;  %vm4305_vm15 = vcmp.gt.f32.partialorder %v9129_v5, 0.0 }
 0x913   :  { %v5268_v7 = vpop.f32.mrb[194].mxu1  ;;  %vm4304_vm14 = vcmp.gt.f32.partialorder %v9132_v11, 0.0  ;;  %v4320_v32 = vmul.f32 0.2, %v9132_v11 }
 0x914   :  { %v9139_v9 = vadd.f32 %v5268_v7, %v9070_v3  ;;  %v4267_v17 = vpop.f32.mrb[195].mxu1  ;;  %v4337_v61 = vsel %vm4305_vm15, %v9129_v5, %v4321_v29 }
 0x915   :  { %v9142_v31 = vadd.f32 %v9070_v3, %v4267_v17  ;;  %v4336_v59 = vsel %vm4304_vm14, %v9132_v11, %v4320_v32 }
 0x916   :  { %5295 = vmatprep.mubr.msk.f32.mxu0 %vm2764_vm3, %v4336_v59  ;;  %v4323_v22 = vmul.f32 0.2, %v9139_v9  ;;  %vm4307_vm1 = vcmp.gt.f32.partialorder %v9139_v9, 0.0 }
 0x917   :  { %v5271_v38 = vpop.f32.mrb[196].mxu1  ;;  %5296 = vmatmul.mubr.msk.f32.gmra.mrb[192].mxu0 %vm2764_vm3, %v4337_v61  ;;  %vm4306_vm0 = vcmp.gt.f32.partialorder %v9142_v31, 0.0  ;;  %v4322_v10 = vmul.f32 0.2, %v9142_v31 }
 0x918   :  { %v9153_v12 = vadd.f32 %v5271_v38, %v9070_v3  ;;  %v4277_v26 = vpop.f32.mrb[197].mxu1  ;;  %v4339_v34 = vsel %vm4307_vm1, %v9139_v9, %v4323_v22 }
 0x919   :  { %v9156_v20 = vadd.f32 %v9070_v3, %v4277_v26  ;;  %v4338_v51 = vsel %vm4306_vm0, %v9142_v31, %v4322_v10 }
 0x91a   :  { %5298 = vmatprep.mubr.msk.f32.mxu0 %vm2764_vm3, %v4338_v51  ;;  %v4325_v23 = vmul.f32 0.2, %v9153_v12  ;;  %vm4309_vm4 = vcmp.gt.f32.partialorder %v9153_v12, 0.0 }
 0x91b   :  { %v5274_v1 = vpop.f32.mrb[198].mxu1  ;;  %5299 = vmatmul.mubr.msk.f32.gmra.mrb[194].mxu0 %vm2764_vm3, %v4339_v34  ;;  %vm4308_vm2 = vcmp.gt.f32.partialorder %v9156_v20, 0.0  ;;  %v4324_v15 = vmul.f32 0.2, %v9156_v20 }
 0x91c   :  { %v9167_v57 = vadd.f32 %v5274_v1, %v9070_v3  ;;  %v4287_v37 = vpop.f32.mrb[199].mxu1  ;;  %v4341_v52 = vsel %vm4309_vm4, %v9153_v12, %v4325_v23 }
 0x91d   :  { %v9170_v56 = vadd.f32 %v9070_v3, %v4287_v37  ;;  %v4340_v47 = vsel %vm4308_vm2, %v9156_v20, %v4324_v15 }
 0x91e   :  { %5301 = vmatprep.mubr.msk.f32.mxu0 %vm2764_vm3, %v4340_v47  ;;  %v4327_v55 = vmul.f32 0.2, %v9167_v57  ;;  %vm4311_vm6 = vcmp.gt.f32.partialorder %v9167_v57, 0.0 }
 0x91f   :  { %5302 = vmatmul.mubr.msk.f32.gmra.mrb[196].mxu0 %vm2764_vm3, %v4341_v52  ;;  %vm4310_vm5 = vcmp.gt.f32.partialorder %v9170_v56, 0.0  ;;  %v4326_v58 = vmul.f32 0.2, %v9170_v56 }
 0x920   :  { %v4343_v3 = vsel %vm4311_vm6, %v9167_v57, %v4327_v55 }
 0x921   :  { %v4342_v41 = vsel %vm4310_vm5, %v9170_v56, %v4326_v58 }
 0x922   :  { %5304 = vmatprep.mubr.msk.f32.mxu0 %vm2764_vm3, %v4342_v41 }
 0x923   :  { %5305 = vmatmul.mubr.msk.f32.gmra.mrb[198].mxu0 %vm2764_vm3, %v4343_v3 }
 0x9c1   :  { %v5285_v54 = vpop.f32.mrb[184].mxu0 }
 0x9c2   :  { %4559 = vrot.lane.b32.xlu1 %v5285_v54, %s5790_s21  ;;  %v4462_v27 = vpop.f32.mrb[185].mxu0 }
 0x9c3   :  { %4557 = vrot.lane.b32.xlu0 %v4462_v27, %s5790_s21 }
 0x9c6   :  { %v5288_v16 = vpop.f32.mrb[186].mxu0 }
 0x9c7   :  { %4563 = vrot.lane.b32.xlu1 %v5288_v16, %s5790_s21  ;;  %v4472_v62 = vpop.f32.mrb[187].mxu0 }
 0x9c8   :  { %4561 = vrot.lane.b32.xlu0 %v4472_v62, %s5790_s21 }
 0x9ce   :  { %v5291_v35 = vpop.f32.mrb[188].mxu0 }
 0x9cf   :  { %4567 = vrot.lane.b32.xlu1 %v5291_v35, %s5790_s21  ;;  %v4482_v24 = vpop.f32.mrb[189].mxu0 }
 0x9d0   :  { %4565 = vrot.lane.b32.xlu0 %v4482_v24, %s5790_s21 }
 0x9d6   :  { %v5294_v48 = vpop.f32.mrb[190].mxu0 }
 0x9d7   :  { %4571 = vrot.lane.b32.xlu1 %v5294_v48, %s5790_s21  ;;  %v4492_v19 = vpop.f32.mrb[191].mxu0 }
 0x9d8   :  { %4569 = vrot.lane.b32.xlu0 %v4492_v19, %s5790_s21 }
 0x9ea   :  { %v5297_v40 = vpop.f32.mrb[192].mxu0 }
 0x9eb   :  { %4575 = vrot.lane.b32.xlu1 %v5297_v40, %s5790_s21  ;;  %v4502_v6 = vpop.f32.mrb[193].mxu0 }
 0x9ec   :  { %4573 = vrot.lane.b32.xlu0 %v4502_v6, %s5790_s21 }
 0x9ee   :  { %v5300_v42 = vpop.f32.mrb[194].mxu0 }
 0x9ef   :  { %4579 = vrot.lane.b32.xlu1 %v5300_v42, %s5790_s21  ;;  %v4512_v13 = vpop.f32.mrb[195].mxu0 }
 0x9f0   :  { %4577 = vrot.lane.b32.xlu0 %v4512_v13, %s5790_s21 }
 0x9f2   :  { %v5303_v18 = vpop.f32.mrb[196].mxu0 }
 0x9f3   :  { %4583 = vrot.lane.b32.xlu1 %v5303_v18, %s5790_s21  ;;  %v4522_v28 = vpop.f32.mrb[197].mxu0 }
 0x9f4   :  { %4581 = vrot.lane.b32.xlu0 %v4522_v28, %s5790_s21 }
 0x9f6   :  { %v5306_v2 = vpop.f32.mrb[198].mxu0 }
 0x9f7   :  { %4587 = vrot.lane.b32.xlu1 %v5306_v2, %s5790_s21  ;;  %v4532_v0 = vpop.f32.mrb[199].mxu0 }
 0x9f8   :  { %4585 = vrot.lane.b32.xlu0 %v4532_v0, %s5790_s21 }
 0xa34   :  { %v4560_v43 = vpop.permute.xlu1 %4559 }
 0xa35   :  { %v4606_v33 = vadd.f32 %v4560_v43, %v9073_v60  ;;  %v4558_v44 = vpop.permute.xlu0 %4557 }
 0xa36   :  { %v4605_v63 = vadd.f32 %v4558_v44, %v9076_v8 }
 0xa37   :  { %vm4622_vm7 = vcmp.gt.f32.partialorder %v4606_v33, 0.0  ;;  %v4638_v36 = vmul.f32 0.2, %v4606_v33 }
 0xa38   :  { %vm4621_vm8 = vcmp.gt.f32.partialorder %v4605_v63, 0.0  ;;  %v4637_v25 = vmul.f32 0.2, %v4605_v63 }
 0xa39   :  { %v4564_v53 = vpop.permute.xlu1 %4563  ;;  %v4654_v14 = vsel %vm4622_vm7, %v4606_v33, %v4638_v36 }
 0xa3a   :  { %v4608_v45 = vadd.f32 %v4564_v53, %v9083_v4  ;;  %v4562_v39 = vpop.permute.xlu0 %4561  ;;  %4687 = vrot.lane.b32.xlu1 %v4654_v14, %s5791_s22  ;;  %v4653_v29 = vsel %vm4621_vm8, %v4605_v63, %v4637_v25 }
 0xa3b   :  { %v4607_v7 = vadd.f32 %v4562_v39, %v9087_v49  ;;  %4685 = vrot.lane.b32.xlu0 %v4653_v29, %s5791_s22 }
 0xa3c   :  { %vm4624_vm9 = vcmp.gt.f32.partialorder %v4608_v45, 0.0  ;;  %v4640_v60 = vmul.f32 0.2, %v4608_v45 }
 0xa3d   :  { %vm4623_vm10 = vcmp.gt.f32.partialorder %v4607_v7, 0.0  ;;  %v4639_v8 = vmul.f32 0.2, %v4607_v7 }
 0xa3e   :  { %v4656_v32 = vsel %vm4624_vm9, %v4608_v45, %v4640_v60 }
 0xa3f   :  { %4691 = vrot.lane.b32.xlu1 %v4656_v32, %s5791_s22  ;;  %v4655_v17 = vsel %vm4623_vm10, %v4607_v7, %v4639_v8 }
 0xa40   :  { %4689 = vrot.lane.b32.xlu0 %v4655_v17, %s5791_s22 }
 0xa41   :  { %v4568_v4 = vpop.permute.xlu1 %4567 }
 0xa42   :  { %v4610_v59 = vadd.f32 %v4568_v4, %v9101_v50  ;;  %v4566_v61 = vpop.permute.xlu0 %4565 }
 0xa43   :  { %v4609_v22 = vadd.f32 %v4566_v61, %v9104_v46 }
 0xa44   :  { %vm4626_vm11 = vcmp.gt.f32.partialorder %v4610_v59, 0.0  ;;  %v4642_v49 = vmul.f32 0.2, %v4610_v59 }
 0xa45   :  { %vm4625_vm12 = vcmp.gt.f32.partialorder %v4609_v22, 0.0  ;;  %v4641_v38 = vmul.f32 0.2, %v4609_v22 }
 0xa46   :  { %v4658_v10 = vsel %vm4626_vm11, %v4610_v59, %v4642_v49 }
 0xa47   :  { %4695 = vrot.lane.b32.xlu1 %v4658_v10, %s5791_s22  ;;  %v4657_v26 = vsel %vm4625_vm12, %v4609_v22, %v4641_v38 }
 0xa48   :  { %4693 = vrot.lane.b32.xlu0 %v4657_v26, %s5791_s22 }
 0xa49   :  { %v4572_v51 = vpop.permute.xlu1 %4571 }
 0xa4a   :  { %v4612_v34 = vadd.f32 %v4572_v51, %v9115_v21  ;;  %v4570_v23 = vpop.permute.xlu0 %4569 }
 0xa4b   :  { %v4611_v1 = vadd.f32 %v4570_v23, %v9118_v30 }
 0xa4c   :  { %vm4628_vm13 = vcmp.gt.f32.partialorder %v4612_v34, 0.0  ;;  %v4644_v50 = vmul.f32 0.2, %v4612_v34 }
 0xa4d   :  { %vm4627_vm14 = vcmp.gt.f32.partialorder %v4611_v1, 0.0  ;;  %v4643_v46 = vmul.f32 0.2, %v4611_v1 }
 0xa4e   :  { %v4660_v15 = vsel %vm4628_vm13, %v4612_v34, %v4644_v50 }
 0xa4f   :  { %4699 = vrot.lane.b32.xlu1 %v4660_v15, %s5791_s22  ;;  %v4659_v37 = vsel %vm4627_vm14, %v4611_v1, %v4643_v46 }
 0xa50   :  { %4697 = vrot.lane.b32.xlu0 %v4659_v37, %s5791_s22 }
 0xa5d   :  { %v4576_v47 = vpop.permute.xlu1 %4575 }
 0xa5e   :  { %v4614_v52 = vadd.f32 %v4576_v47, %v9129_v5  ;;  %v4574_v55 = vpop.permute.xlu0 %4573 }
 0xa5f   :  { %v4613_v58 = vadd.f32 %v4574_v55, %v9132_v11 }
 0xa60   :  { %vm4630_vm15 = vcmp.gt.f32.partialorder %v4614_v52, 0.0  ;;  %v4646_v21 = vmul.f32 0.2, %v4614_v52 }
 0xa61   :  { %vm4629_vm0 = vcmp.gt.f32.partialorder %v4613_v58, 0.0  ;;  %v4645_v30 = vmul.f32 0.2, %v4613_v58  ;;  %v4580_v41 = vpop.permute.xlu1 %4579 }
 0xa62   :  { %v4616_v3 = vadd.f32 %v4580_v41, %v9139_v9  ;;  %v4578_v54 = vpop.permute.xlu0 %4577  ;;  %v4662_v27 = vsel %vm4630_vm15, %v4614_v52, %v4646_v21 }
 0xa63   :  { %v4615_v16 = vadd.f32 %v4578_v54, %v9142_v31  ;;  %4703 = vrot.lane.b32.xlu1 %v4662_v27, %s5791_s22  ;;  %v4661_v62 = vsel %vm4629_vm0, %v4613_v58, %v4645_v30 }
 0xa64   :  { %vm4632_vm1 = vcmp.gt.f32.partialorder %v4616_v3, 0.0  ;;  %v4648_v35 = vmul.f32 0.2, %v4616_v3  ;;  %4701 = vrot.lane.b32.xlu0 %v4661_v62, %s5791_s22 }
 0xa65   :  { %vm4631_vm2 = vcmp.gt.f32.partialorder %v4615_v16, 0.0  ;;  %v4647_v5 = vmul.f32 0.2, %v4615_v16  ;;  %v4584_v11 = vpop.permute.xlu1 %4583 }
 0xa66   :  { %v4618_v24 = vadd.f32 %v4584_v11, %v9153_v12  ;;  %v4582_v48 = vpop.permute.xlu0 %4581  ;;  %v4664_v19 = vsel %vm4632_vm1, %v4616_v3, %v4648_v35 }
 0xa67   :  { %v4617_v9 = vadd.f32 %v4582_v48, %v9156_v20  ;;  %4707 = vrot.lane.b32.xlu1 %v4664_v19, %s5791_s22  ;;  %v4663_v40 = vsel %vm4631_vm2, %v4615_v16, %v4647_v5 }
 0xa68   :  { %vm4634_vm4 = vcmp.gt.f32.partialorder %v4618_v24, 0.0  ;;  %v4650_v31 = vmul.f32 0.2, %v4618_v24  ;;  %4705 = vrot.lane.b32.xlu0 %v4663_v40, %s5791_s22 }
 0xa69   :  { %vm4633_vm5 = vcmp.gt.f32.partialorder %v4617_v9, 0.0  ;;  %v4649_v6 = vmul.f32 0.2, %v4617_v9  ;;  %v4588_v42 = vpop.permute.xlu1 %4587 }
 0xa6a   :  { %v4620_v13 = vadd.f32 %v4588_v42, %v9167_v57  ;;  %v4586_v18 = vpop.permute.xlu0 %4585  ;;  %v4666_v28 = vsel %vm4634_vm4, %v4618_v24, %v4650_v31 }
 0xa6b   :  { %v4619_v12 = vadd.f32 %v4586_v18, %v9170_v56  ;;  %4711 = vrot.lane.b32.xlu1 %v4666_v28, %s5791_s22  ;;  %v4665_v2 = vsel %vm4633_vm5, %v4617_v9, %v4649_v6 }
 0xa6c   :  { %vm4636_vm6 = vcmp.gt.f32.partialorder %v4620_v13, 0.0  ;;  %v4652_v20 = vmul.f32 0.2, %v4620_v13  ;;  %4709 = vrot.lane.b32.xlu0 %v4665_v2, %s5791_s22 }
 0xa6d   :  { %vm4635_vm7 = vcmp.gt.f32.partialorder %v4619_v12, 0.0  ;;  %v4651_v0 = vmul.f32 0.2, %v4619_v12 }
 0xa6e   :  { %v4668_v43 = vsel %vm4636_vm6, %v4620_v13, %v4652_v20 }
 0xa6f   :  { %4715 = vrot.lane.b32.xlu1 %v4668_v43, %s5791_s22  ;;  %v4667_v33 = vsel %vm4635_vm7, %v4619_v12, %v4651_v0 }
 0xa70   :  { %4713 = vrot.lane.b32.xlu0 %v4667_v33, %s5791_s22 }
 0xaac   :  { %v4688_v57 = vpop.permute.xlu1 %4687 }
 0xaad   :  { %4734 = vst.msk [vmem:[%s9320_s24 + $0x8] sm:$0xff] %vm2764_vm3, %v4688_v57  ;;  %v4686_v56 = vpop.permute.xlu0 %4685 }
 0xaae   :  { %4733 = vst.msk [vmem:[%s9320_s24] sm:$0xff] %vm2764_vm3, %v4686_v56 }
 0xab1   :  { %v4692_v44 = vpop.permute.xlu1 %4691 }
 0xab2   :  { %4736 = vst.msk [vmem:[%s9320_s24 + $0x18] sm:$0xff] %vm2764_vm3, %v4692_v44  ;;  %v4690_v63 = vpop.permute.xlu0 %4689 }
 0xab3   :  { %4735 = vst.msk [vmem:[%s9320_s24 + $0x10] sm:$0xff] %vm2764_vm3, %v4690_v63 }
 0xab9   :  { %v4696_v36 = vpop.permute.xlu1 %4695 }
 0xaba   :  { %4738 = vst.msk [vmem:[%s9320_s24 + $0x28] sm:$0xff] %vm2764_vm3, %v4696_v36  ;;  %v4694_v25 = vpop.permute.xlu0 %4693 }
 0xabb   :  { %4737 = vst.msk [vmem:[%s9320_s24 + $0x20] sm:$0xff] %vm2764_vm3, %v4694_v25 }
 0xac1   :  { %v4700_v53 = vpop.permute.xlu1 %4699 }
 0xac2   :  { %4740 = vst.msk [vmem:[%s9320_s24 + $0x38] sm:$0xff] %vm2764_vm3, %v4700_v53  ;;  %v4698_v14 = vpop.permute.xlu0 %4697 }
 0xac3   :  { %4739 = vst.msk [vmem:[%s9320_s24 + $0x30] sm:$0xff] %vm2764_vm3, %v4698_v14 }
 0xad5   :  { %v4704_v45 = vpop.permute.xlu1 %4703 }
 0xad6   :  { %4742 = vst.msk [vmem:[%s9320_s24 + $0x48] sm:$0xff] %vm2764_vm3, %v4704_v45  ;;  %v4702_v39 = vpop.permute.xlu0 %4701 }
 0xad7   :  { %4741 = vst.msk [vmem:[%s9320_s24 + $0x40] sm:$0xff] %vm2764_vm3, %v4702_v39 }
 0xad9   :  { %v4708_v29 = vpop.permute.xlu1 %4707 }
 0xada   :  { %4744 = vst.msk [vmem:[%s9320_s24 + $0x58] sm:$0xff] %vm2764_vm3, %v4708_v29  ;;  %v4706_v7 = vpop.permute.xlu0 %4705 }
 0xadb   :  { %4743 = vst.msk [vmem:[%s9320_s24 + $0x50] sm:$0xff] %vm2764_vm3, %v4706_v7 }
 0xadd   :  { %v4712_v60 = vpop.permute.xlu1 %4711 }
 0xade   :  { %4746 = vst.msk [vmem:[%s9320_s24 + $0x68] sm:$0xff] %vm2764_vm3, %v4712_v60  ;;  %v4710_v8 = vpop.permute.xlu0 %4709 }
 0xadf   :  { %4745 = vst.msk [vmem:[%s9320_s24 + $0x60] sm:$0xff] %vm2764_vm3, %v4710_v8 }
 0xae1   :  { %v4716_v32 = vpop.permute.xlu1 %4715 }
 0xae2   :  { %4748 = vst.msk [vmem:[%s9320_s24 + $0x78] sm:$0xff] %vm2764_vm3, %v4716_v32  ;;  %v4714_v17 = vpop.permute.xlu0 %4713 }
 0xae3   :  { %4747 = vst.msk [vmem:[%s9320_s24 + $0x70] sm:$0xff] %vm2764_vm3, %v4714_v17 }

</bundles_post_ra>
